<compile_context>
chip_gen: v7x
topology: tpu7x:2x2x1
jax: 0.10.0
libtpu: 0.0.40
codegen_flags: <defaults>
</compile_context>

<pallas_src>
import numpy as np
import jax
import jax.numpy as jnp
from jax.experimental import pallas as pl
from jax.experimental.pallas import tpu as pltpu

OUT_HW = 112                       # F.interpolate(size=[112, 112])
EMBED_DIM = 128                    # synthetic facenet embedding width
COS_EPS = 1e-8                     # F.cosine_similarity default eps
W_TILE_BUDGET = 10 * 1024 * 1024   # double-buffered bf16 weight-tile budget (all gens)


# ----------------------------------------------------------------------------
# Bilinear interpolation matrix (PyTorch align_corners=False semantics).
# ----------------------------------------------------------------------------
def _interp_matrix(in_size: int, out_size: int) -> np.ndarray:
    A = np.zeros((out_size, in_size), dtype=np.float32)
    scale = in_size / out_size
    for i in range(out_size):
        src = (i + 0.5) * scale - 0.5
        src = max(src, 0.0)                      # PyTorch clamps negative coords
        i0 = min(int(np.floor(src)), in_size - 1)
        i1 = min(i0 + 1, in_size - 1)
        lam = src - i0
        A[i, i0] += 1.0 - lam
        A[i, i1] += lam
    return A


def _num_ksplit() -> int:
    """2 on v7x (2 TensorCores/chip) so each core streams half the weight;
    1 on v5e/v6e where a 'parallel' K split would just be a serial loop."""
    try:
        kind = jax.devices()[0].device_kind.lower()
    except Exception:
        return 1
    return 2 if ("v7" in kind or "7x" in kind) else 1


# ----------------------------------------------------------------------------
# Kernel 1: batched bilinear upsample.
#   rows = X @ Aw^T  (one merged matmul for every row of every image/channel)
#   out[n] = Ah_blockdiag @ rows[n]   (one matmul per image)
# ----------------------------------------------------------------------------
def _make_resize_kernel(nb: int, C: int, H: int):
    def kernel(x_ref, awt_ref, ahblk_ref, o_ref):
        # x_ref: (nb*C*H, W) -- all rows of nb images merged into the row axis.
        rows = jnp.dot(x_ref[...], awt_ref[...],
                       preferred_element_type=jnp.float32)          # (nb*C*H, 112)
        for n in range(nb):                                         # static, nb small
            o_ref[n] = jnp.dot(ahblk_ref[...],
                               rows[n * C * H:(n + 1) * C * H, :],
                               preferred_element_type=jnp.float32)  # (C*112, 112)
    return kernel


def bilinear_resize_112(xy):
    """xy: (N, C, H, W) f32 -> (N, C*112, 112) f32 (same memory as NCHW)."""
    N, C, H, W = xy.shape
    aw_t = np.ascontiguousarray(_interp_matrix(W, OUT_HW).T)        # (W, 112)
    ah = _interp_matrix(H, OUT_HW)                                  # (112, H)
    ah_blk = np.zeros((C * OUT_HW, C * H), dtype=np.float32)        # block-diagonal Ah
    for c in range(C):
        ah_blk[c * OUT_HW:(c + 1) * OUT_HW, c * H:(c + 1) * H] = ah

    # Two grid steps (one per TensorCore on v7x) unless that breaks (8, .) tiling.
    nblk = 2 if (N % 2 == 0 and ((N // 2) * C * H) % 8 == 0) else 1
    nb = N // nblk

    x2 = xy.reshape(N * C * H, W)                                   # free reshape
    return pl.pallas_call(
        _make_resize_kernel(nb, C, H),
        out_shape=jax.ShapeDtypeStruct((N, C * OUT_HW, OUT_HW), jnp.float32),
        grid=(nblk,),
        in_specs=[
            pl.BlockSpec((nb * C * H, W), lambda i: (i, 0)),
            pl.BlockSpec((W, OUT_HW), lambda i: (0, 0)),
            pl.BlockSpec((C * OUT_HW, C * H), lambda i: (0, 0)),
        ],
        out_specs=pl.BlockSpec((nb, C * OUT_HW, OUT_HW), lambda i: (i, 0, 0)),
        compiler_params=pltpu.CompilerParams(
            dimension_semantics=("parallel",)),
    )(x2, jnp.asarray(aw_t), jnp.asarray(ah_blk))


# ----------------------------------------------------------------------------
# Kernel 2 (fused, single-TensorCore path): bf16 weight stream, bf16 LHS cast,
# f32 accumulation, bias + cosine epilogue fused into the last K step.
# ----------------------------------------------------------------------------
def _make_feat_cosine_kernel(B: int):
    def kernel(lhs_ref, w_ref, bias_ref, loss_ref, acc_ref):
        k = pl.program_id(0)

        @pl.when(k == 0)
        def _():
            acc_ref[...] = jnp.zeros_like(acc_ref)

        acc_ref[...] += jnp.dot(lhs_ref[...].astype(jnp.bfloat16), w_ref[...],
                                preferred_element_type=jnp.float32)

        @pl.when(k == pl.num_programs(0) - 1)
        def _():
            feats = acc_ref[...] + bias_ref[...]                    # (2B, D)
            fx = feats[:B]                                          # features of x
            fy = feats[B:]                                          # features of y (detach = fwd no-op)
            w12 = jnp.sum(fx * fy, axis=-1, keepdims=True)
            w1 = jnp.sum(fx * fx, axis=-1, keepdims=True)
            w2 = jnp.sum(fy * fy, axis=-1, keepdims=True)
            # PyTorch F.cosine_similarity: w12 / sqrt(clamp_min(w1*w2, eps^2))
            denom = jnp.sqrt(jnp.maximum(w1 * w2, COS_EPS * COS_EPS))
            loss_ref[...] = 1.0 - w12 / denom                       # (B, 1)
    return kernel


# Kernel 2 (v7x path): K reduction split over the parallel axis, partial outputs.
def _feat_partial_kernel(lhs_ref, w_ref, part_ref, acc_ref):
    k = pl.program_id(1)

    @pl.when(k == 0)
    def _():
        acc_ref[...] = jnp.zeros_like(acc_ref)

    acc_ref[...] += jnp.dot(lhs_ref[...].astype(jnp.bfloat16), w_ref[...],
                            preferred_element_type=jnp.float32)

    @pl.when(k == pl.num_programs(1) - 1)
    def _():
        part_ref[0] = acc_ref[...]


def _choose_k_tiling(K: int, D: int, w_itemsize: int, nsplit: int, budget: int):
    """Pick (nsplit, tk, kt_inner): the largest multiple-of-128 tile dividing
    K/nsplit whose double-buffered weight tile fits in `budget` bytes of VMEM."""
    if nsplit > 1 and K % (nsplit * 128) != 0:
        nsplit = 1                                  # keep the split only if it tiles evenly
    kp = K // nsplit
    if kp % 128 != 0:
        return nsplit, kp, 1                        # single full-extent K block per split
    tk = 128
    for mult in range(kp // 128, 0, -1):
        cand = mult * 128
        if kp % cand == 0 and 2 * cand * D * w_itemsize <= budget:
            tk = cand
            break
    return nsplit, tk, kp // tk


# ----------------------------------------------------------------------------
# Full forward: IDLoss(x, y)
# ----------------------------------------------------------------------------
def id_loss(x, y, w, bias):
    """x, y: (B, C, H, W) f32 NCHW.  w: (C*112*112, D), expected bf16 (cast once,
    OUTSIDE the jitted loss).  bias: (D,) f32.  Returns (B,) loss."""
    B, C, H, W = x.shape
    K = C * OUT_HW * OUT_HW
    D = w.shape[1]
    if w.dtype != jnp.bfloat16:
        w = w.astype(jnp.bfloat16)   # fallback only; pass the weight as bf16 persistently

    # feat_y = facenet(y.detach()): detach is a forward no-op.
    y = jax.lax.stop_gradient(y)

    xy = jnp.concatenate([x, y], axis=0)            # (2B, C, H, W)
    up = bilinear_resize_112(xy)                    # (2B, C*112, 112) f32
    # NCHW row-major flatten.  The 112-lane -> K-lane merge is a small (~600 KB)
    # XLA relayout; kept host-side (an in-kernel lane-merging reshape is a
    # lowering risk for ~1 us of gain).
    flat = up.reshape(2 * B, K)

    nsplit, tk, kt_inner = _choose_k_tiling(K, D, 2, _num_ksplit(), W_TILE_BUDGET)

    flops = 2 * (2 * B) * K * D
    bytes_acc = K * D * 2 + 2 * B * K * 4 + 2 * B * D * 4

    if nsplit == 1:
        # v5e/v6e: one pallas_call does matmul + bias + cosine.
        loss = pl.pallas_call(
            _make_feat_cosine_kernel(B),
            out_shape=jax.ShapeDtypeStruct((B, 1), jnp.float32),
            grid=(kt_inner,),
            in_specs=[
                pl.BlockSpec((2 * B, tk), lambda k: (0, k)),
                pl.BlockSpec((tk, D), lambda k: (k, 0)),
                pl.BlockSpec((1, D), lambda k: (0, 0)),
            ],
            out_specs=pl.BlockSpec((B, 1), lambda k: (0, 0)),
            scratch_shapes=[pltpu.VMEM((2 * B, D), jnp.float32)],
            compiler_params=pltpu.CompilerParams(
                dimension_semantics=("arbitrary",),
                vmem_limit_bytes=32 * 1024 * 1024),
            cost_estimate=pl.CostEstimate(
                flops=flops, transcendentals=0, bytes_accessed=bytes_acc),
        )(flat, w, bias.reshape(1, D))
        return loss.reshape(B)

    # v7x: each TensorCore streams half the weight; 4 KB epilogue in plain jnp.
    partial = pl.pallas_call(
        _feat_partial_kernel,
        out_shape=jax.ShapeDtypeStruct((nsplit, 2 * B, D), jnp.float32),
        grid=(nsplit, kt_inner),
        in_specs=[
            pl.BlockSpec((2 * B, tk), lambda p, k: (0, p * kt_inner + k)),
            pl.BlockSpec((tk, D), lambda p, k: (p * kt_inner + k, 0)),
        ],
        out_specs=pl.BlockSpec((1, 2 * B, D), lambda p, k: (p, 0, 0)),
        scratch_shapes=[pltpu.VMEM((2 * B, D), jnp.float32)],
        compiler_params=pltpu.CompilerParams(
            dimension_semantics=("parallel", "arbitrary"),
            vmem_limit_bytes=32 * 1024 * 1024),
        cost_estimate=pl.CostEstimate(
            flops=flops, transcendentals=0,
            bytes_accessed=bytes_acc + (nsplit - 1) * 2 * B * D * 4),
    )(flat, w)

    feats = jnp.sum(partial, axis=0) + bias[None, :]                # (2B, D)
    fx, fy = feats[:B], feats[B:]
    w12 = jnp.sum(fx * fy, axis=-1)
    w1 = jnp.sum(fx * fx, axis=-1)
    w2 = jnp.sum(fy * fy, axis=-1)
    return 1.0 - w12 / jnp.sqrt(jnp.maximum(w1 * w2, COS_EPS * COS_EPS))


if __name__ == "__main__":
    key = jax.random.PRNGKey(0)
    kx, ky, kw, kb = jax.random.split(key, 4)

    B, C, H, W = 2, 3, 16, 16
    x = jax.random.normal(kx, (B, C, H, W), dtype=jnp.float32)
    y = jax.random.normal(ky, (B, C, H, W), dtype=jnp.float32)

    # Deterministic synthetic facenet parameters: Linear(C*112*112 -> EMBED_DIM).
    K = C * OUT_HW * OUT_HW
    w = jax.random.normal(kw, (K, EMBED_DIM), dtype=jnp.float32) * 0.01
    bias = jax.random.normal(kb, (EMBED_DIM,), dtype=jnp.float32) * 0.01

    # Cast the weight to bf16 ONCE, outside the jitted loss (no per-call cast traffic).
    w_bf16 = w.astype(jnp.bfloat16)

    loss = jax.jit(id_loss)(x, y, w_bf16, bias)
    jax.block_until_ready(loss)
    assert loss.shape == (B,)
    print("KERNEL_OK")
</pallas_src>

<mosaic_0001>
module attributes {stable_mosaic.version = 11 : i64} {
  func.func @kernel(%arg0: i32, %arg1: memref<4x18816xf32, #tpu.memory_space<vmem>>, %arg2: memref<18816x128xbf16, #tpu.memory_space<vmem>>, %arg3: memref<1x128xf32, #tpu.memory_space<vmem>>, %arg4: memref<2x1xf32, #tpu.memory_space<vmem>>, %arg5: memref<4x128xf32, #tpu.memory_space<vmem>>) attributes {dimension_semantics = [#tpu.dimension_semantics<arbitrary>], iteration_bounds = array<i64: 2>, scalar_prefetch = 0 : i64, scratch_operands = 1 : i64, tpu.core_type = #tpu.core_type<tc>, window_params = [{transform_indices = @transform_0, window_bounds = array<i64: 4, 18816>}, {transform_indices = @transform_1, window_bounds = array<i64: 18816, 128>}, {pipeline_mode = #tpu.pipeline_mode<synchronous>, transform_indices = @transform_2, window_bounds = array<i64: 1, 128>}, {pipeline_mode = #tpu.pipeline_mode<synchronous>, transform_indices = @transform_3, window_bounds = array<i64: 2, 1>}]} {
    %c0_i32 = arith.constant 0 : i32
    %0 = arith.cmpi eq, %arg0, %c0_i32 : i32
    %1 = arith.extui %0 : i1 to i32
    %c0_i32_0 = arith.constant 0 : i32
    %2 = arith.cmpi ne, %1, %c0_i32_0 : i32
    scf.if %2 {
      %cst_9 = arith.constant 0.000000e+00 : f32
      %13 = vector.broadcast %cst_9 : f32 to vector<4x128xf32>
      %c0_10 = arith.constant 0 : index
      %c0_11 = arith.constant 0 : index
      %14 = vector.load %arg5[%c0_10, %c0_11] : memref<4x128xf32, #tpu.memory_space<vmem>>, vector<4x128xf32>
      tpu.vector_store %arg5[%c0_10, %c0_11], %13 {strides = array<i32>} : memref<4x128xf32, #tpu.memory_space<vmem>>, vector<4x128xf32>,
    } else {
    }
    %c0 = arith.constant 0 : index
    %c0_1 = arith.constant 0 : index
    %3 = vector.load %arg5[%c0, %c0_1] : memref<4x128xf32, #tpu.memory_space<vmem>>, vector<4x128xf32>
    %c0_2 = arith.constant 0 : index
    %c0_3 = arith.constant 0 : index
    %4 = vector.load %arg1[%c0_2, %c0_3] : memref<4x18816xf32, #tpu.memory_space<vmem>>, vector<4x18816xf32>
    %5 = arith.truncf %4 : vector<4x18816xf32> to vector<4x18816xbf16>
    %c0_4 = arith.constant 0 : index
    %c0_5 = arith.constant 0 : index
    %6 = vector.load %arg2[%c0_4, %c0_5] : memref<18816x128xbf16, #tpu.memory_space<vmem>>, vector<18816x128xbf16>
    %cst = arith.constant dense<0.000000e+00> : vector<4x128xf32>
    %7 = tpu.matmul %5, %6, %cst {dimension_numbers = #tpu.dot_dimension_numbers<[1], [0], [0], [1], [0, 0, 1, 1], [], []>} : vector<4x18816xbf16>, vector<18816x128xbf16>, vector<4x128xf32> -> vector<4x128xf32>
    %8 = arith.addf %3, %7 : vector<4x128xf32>
    %c0_6 = arith.constant 0 : index
    %c0_7 = arith.constant 0 : index
    %9 = vector.load %arg5[%c0_6, %c0_7] : memref<4x128xf32, #tpu.memory_space<vmem>>, vector<4x128xf32>
    tpu.vector_store %arg5[%c0_6, %c0_7], %8 {strides = array<i32>} : memref<4x128xf32, #tpu.memory_space<vmem>>, vector<4x128xf32>,
    %c1_i32 = arith.constant 1 : i32
    %10 = arith.cmpi eq, %arg0, %c1_i32 : i32
    %11 = arith.extui %10 : i1 to i32
    %c0_i32_8 = arith.constant 0 : i32
    %12 = arith.cmpi ne, %11, %c0_i32_8 : i32
    scf.if %12 {
      %c0_9 = arith.constant 0 : index
      %c0_10 = arith.constant 0 : index
      %13 = vector.load %arg5[%c0_9, %c0_10] : memref<4x128xf32, #tpu.memory_space<vmem>>, vector<4x128xf32>
      %c0_11 = arith.constant 0 : index
      %c0_12 = arith.constant 0 : index
      %14 = vector.load %arg3[%c0_11, %c0_12] : memref<1x128xf32, #tpu.memory_space<vmem>>, vector<1x128xf32>
      %15 = vector.broadcast %14 : vector<1x128xf32> to vector<4x128xf32>
      %16 = arith.addf %13, %15 : vector<4x128xf32>
      %17 = vector.extract_strided_slice %16 {offsets = [0, 0], sizes = [2, 128], strides = [1, 1]} : vector<4x128xf32> to vector<2x128xf32>
      %18 = vector.extract_strided_slice %16 {offsets = [2, 0], sizes = [2, 128], strides = [1, 1]} : vector<4x128xf32> to vector<2x128xf32>
      %19 = arith.mulf %17, %18 : vector<2x128xf32>
      %cst_13 = arith.constant dense<0.000000e+00> : vector<2xf32>
      %20 = vector.multi_reduction <add>, %19, %cst_13 [1] : vector<2x128xf32> to vector<2xf32>
      %21 = vector.shape_cast %20 : vector<2xf32> to vector<2x1xf32>
      %22 = arith.mulf %17, %17 : vector<2x128xf32>
      %cst_14 = arith.constant dense<0.000000e+00> : vector<2xf32>
      %23 = vector.multi_reduction <add>, %22, %cst_14 [1] : vector<2x128xf32> to vector<2xf32>
      %24 = vector.shape_cast %23 : vector<2xf32> to vector<2x1xf32>
      %25 = arith.mulf %18, %18 : vector<2x128xf32>
      %cst_15 = arith.constant dense<0.000000e+00> : vector<2xf32>
      %26 = vector.multi_reduction <add>, %25, %cst_15 [1] : vector<2x128xf32> to vector<2xf32>
      %27 = vector.shape_cast %26 : vector<2xf32> to vector<2x1xf32>
      %28 = arith.mulf %24, %27 : vector<2x1xf32>
      %cst_16 = arith.constant 1.000000e-16 : f32
      %29 = vector.broadcast %cst_16 : f32 to vector<2x1xf32>
      %30 = arith.maximumf %28, %29 : vector<2x1xf32>
      %31 = math.sqrt %30 : vector<2x1xf32>
      %32 = arith.divf %21, %31 : vector<2x1xf32>
      %cst_17 = arith.constant 1.000000e+00 : f32
      %33 = vector.broadcast %cst_17 : f32 to vector<2x1xf32>
      %34 = arith.subf %33, %32 : vector<2x1xf32>
      %c0_18 = arith.constant 0 : index
      %c0_19 = arith.constant 0 : index
      %35 = vector.load %arg4[%c0_18, %c0_19] : memref<2x1xf32, #tpu.memory_space<vmem>>, vector<2x1xf32>
      tpu.vector_store %arg4[%c0_18, %c0_19], %34 {strides = array<i32>} : memref<2x1xf32, #tpu.memory_space<vmem>>, vector<2x1xf32>,
    } else {
    }
    return
  }
  func.func @transform_0(%arg0: i32) -> (i32, i32) {
    %c0_i32 = arith.constant 0 : i32
    %c0_i32_0 = arith.constant 0 : i32
    return %c0_i32, %arg0 : i32, i32
  }
  func.func @transform_1(%arg0: i32) -> (i32, i32) {
    %c0_i32 = arith.constant 0 : i32
    %c0_i32_0 = arith.constant 0 : i32
    return %arg0, %c0_i32 : i32, i32
  }
  func.func @transform_2(%arg0: i32) -> (i32, i32) {
    %c0_i32 = arith.constant 0 : i32
    %c0_i32_0 = arith.constant 0 : i32
    %c0_i32_1 = arith.constant 0 : i32
    return %c0_i32, %c0_i32_0 : i32, i32
  }
  func.func @transform_3(%arg0: i32) -> (i32, i32) {
    %c0_i32 = arith.constant 0 : i32
    %c0_i32_0 = arith.constant 0 : i32
    %c0_i32_1 = arith.constant 0 : i32
    return %c0_i32, %c0_i32_0 : i32, i32
  }
}

module attributes {stable_mosaic.version = 11 : i64} {
  func.func @kernel(%arg0: i32, %arg1: memref<96x16xf32, #tpu.memory_space<vmem>>, %arg2: memref<16x112xf32, #tpu.memory_space<vmem>>, %arg3: memref<336x48xf32, #tpu.memory_space<vmem>>, %arg4: memref<2x336x112xf32, #tpu.memory_space<vmem>>) attributes {dimension_semantics = [#tpu.dimension_semantics<parallel>], iteration_bounds = array<i64: 2>, scalar_prefetch = 0 : i64, scratch_operands = 0 : i64, tpu.core_type = #tpu.core_type<tc>, window_params = [{transform_indices = @transform_0, window_bounds = array<i64: 96, 16>}, {pipeline_mode = #tpu.pipeline_mode<synchronous>, transform_indices = @transform_1, window_bounds = array<i64: 16, 112>}, {pipeline_mode = #tpu.pipeline_mode<synchronous>, transform_indices = @transform_2, window_bounds = array<i64: 336, 48>}, {transform_indices = @transform_3, window_bounds = array<i64: 2, 336, 112>}]} {
    %c0 = arith.constant 0 : index
    %c0_0 = arith.constant 0 : index
    %0 = vector.load %arg1[%c0, %c0_0] : memref<96x16xf32, #tpu.memory_space<vmem>>, vector<96x16xf32>
    %c0_1 = arith.constant 0 : index
    %c0_2 = arith.constant 0 : index
    %1 = vector.load %arg2[%c0_1, %c0_2] : memref<16x112xf32, #tpu.memory_space<vmem>>, vector<16x112xf32>
    %cst = arith.constant dense<0.000000e+00> : vector<96x112xf32>
    %2 = tpu.matmul %0, %1, %cst {dimension_numbers = #tpu.dot_dimension_numbers<[1], [0], [0], [1], [0, 0, 1, 1], [], []>} : vector<96x16xf32>, vector<16x112xf32>, vector<96x112xf32> -> vector<96x112xf32>
    %c0_3 = arith.constant 0 : index
    %c0_4 = arith.constant 0 : index
    %3 = vector.load %arg3[%c0_3, %c0_4] : memref<336x48xf32, #tpu.memory_space<vmem>>, vector<336x48xf32>
    %4 = vector.extract_strided_slice %2 {offsets = [0, 0], sizes = [48, 112], strides = [1, 1]} : vector<96x112xf32> to vector<48x112xf32>
    %cst_5 = arith.constant dense<0.000000e+00> : vector<336x112xf32>
    %5 = tpu.matmul %3, %4, %cst_5 {dimension_numbers = #tpu.dot_dimension_numbers<[1], [0], [0], [1], [0, 0, 1, 1], [], []>} : vector<336x48xf32>, vector<48x112xf32>, vector<336x112xf32> -> vector<336x112xf32>
    %c0_6 = arith.constant 0 : index
    %c0_7 = arith.constant 0 : index
    %c0_8 = arith.constant 0 : index
    %6 = vector.load %arg4[%c0_6, %c0_7, %c0_8] : memref<2x336x112xf32, #tpu.memory_space<vmem>>, vector<1x336x112xf32>
    %7 = vector.shape_cast %6 : vector<1x336x112xf32> to vector<336x112xf32>
    %8 = vector.shape_cast %5 : vector<336x112xf32> to vector<1x336x112xf32>
    tpu.vector_store %arg4[%c0_6, %c0_7, %c0_8], %8 {strides = array<i32>} : memref<2x336x112xf32, #tpu.memory_space<vmem>>, vector<1x336x112xf32>,
    %c0_9 = arith.constant 0 : index
    %c0_10 = arith.constant 0 : index
    %9 = vector.load %arg3[%c0_9, %c0_10] : memref<336x48xf32, #tpu.memory_space<vmem>>, vector<336x48xf32>
    %10 = vector.extract_strided_slice %2 {offsets = [48, 0], sizes = [48, 112], strides = [1, 1]} : vector<96x112xf32> to vector<48x112xf32>
    %cst_11 = arith.constant dense<0.000000e+00> : vector<336x112xf32>
    %11 = tpu.matmul %9, %10, %cst_11 {dimension_numbers = #tpu.dot_dimension_numbers<[1], [0], [0], [1], [0, 0, 1, 1], [], []>} : vector<336x48xf32>, vector<48x112xf32>, vector<336x112xf32> -> vector<336x112xf32>
    %c1 = arith.constant 1 : index
    %c0_12 = arith.constant 0 : index
    %c0_13 = arith.constant 0 : index
    %12 = vector.load %arg4[%c1, %c0_12, %c0_13] : memref<2x336x112xf32, #tpu.memory_space<vmem>>, vector<1x336x112xf32>
    %13 = vector.shape_cast %12 : vector<1x336x112xf32> to vector<336x112xf32>
    %14 = vector.shape_cast %11 : vector<336x112xf32> to vector<1x336x112xf32>
    tpu.vector_store %arg4[%c1, %c0_12, %c0_13], %14 {strides = array<i32>} : memref<2x336x112xf32, #tpu.memory_space<vmem>>, vector<1x336x112xf32>,
    return
  }
  func.func @transform_0(%arg0: i32) -> (i32, i32) {
    %c0_i32 = arith.constant 0 : i32
    %c0_i32_0 = arith.constant 0 : i32
    return %arg0, %c0_i32 : i32, i32
  }
  func.func @transform_1(%arg0: i32) -> (i32, i32) {
    %c0_i32 = arith.constant 0 : i32
    %c0_i32_0 = arith.constant 0 : i32
    %c0_i32_1 = arith.constant 0 : i32
    return %c0_i32, %c0_i32_0 : i32, i32
  }
  func.func @transform_2(%arg0: i32) -> (i32, i32) {
    %c0_i32 = arith.constant 0 : i32
    %c0_i32_0 = arith.constant 0 : i32
    %c0_i32_1 = arith.constant 0 : i32
    return %c0_i32, %c0_i32_0 : i32, i32
  }
  func.func @transform_3(%arg0: i32) -> (i32, i32, i32) {
    %c0_i32 = arith.constant 0 : i32
    %c0_i32_0 = arith.constant 0 : i32
    %c0_i32_1 = arith.constant 0 : i32
    return %arg0, %c0_i32, %c0_i32_0 : i32, i32, i32
  }
}

</mosaic_0001>

<bundles_post_ra>
// kernel: id_loss.2
= control target key start
LH: loop header
LB: loop body
LE: loop exit
PB: predicated region body
PF: predicated region fallthrough
CT: control target
= control target key end

     0   :  { %8 = vsyncpa [#allocation3], 0  ;;  %s2386_s0 = inlined_call_operand.vmem [shape: f32[192,16], index: 0, kind: input, shape index: {}]   ;;  %s2387_s1 = inlined_call_operand.hbm [shape: f32[16,112], index: 1, kind: input, shape index: {}]   ;;  %s2388_s2 = inlined_call_operand.hbm [shape: f32[336,48], index: 2, kind: input, shape index: {}]   ;;  %s2389_s3 = inlined_call_operand.vmem [shape: f32[4,336,112], index: 3, kind: output, shape index: {}]  }
   0x1   :  { %9 = vsyncpa [#allocation5], 0  ;;  %s2027_s12 = smov 0  }
   0x2 LB: > { %s2033_s13 = sadd.s32 4294967295, %s2001_s12   ;;  %p1437_p0 = scmp.ge.s32.totalorder %s2001_s12, 1  ;;  %s2001_s12 = sphi %s2027_s12, %s15_s12  }
   0x3   : > { %p114_p1 = scmp.lt.s32.totalorder %s2001_s12, 3  ;;  %s2003_s14 = smov [#allocation2]  }
   0x4   : > { %s126_s15 = sshll.u32 %s2003_s14, 4  ;;  %p2390_p3 = scmp.eq.s32.totalorder %s2033_s13, 0  ;;  %s127_s15 = int_to_ptr.vmem [resolvable:$true] %s126_s15 }
   0x5   : > { %p2037_p2 = pnand %p1437_p0, %p114_p1  ;;  %s2004_s17 = smov [#allocation4]  }
   0x6   : > { %s139_s18 = sshll.u32 %s2004_s17, 4  ;;  %s1931_s22 = scalar_lea.hbm %s2387_s1, 256  ;;  %s2050_s18 = int_to_ptr.vmem [resolvable:$true] %s139_s18 }
   0x7   : > { %s2392_s16 = scalar_select %p2037_p2, 1, 0 }
   0x8   : > { %p1908_p4 = pneg %p2037_p2  ;;  %p1932_p6 = scmp.ne.s32.totalorder %s2387_s1, %s1931_s22 }
   0x9   : > { %p1938_p10 = scmp.lt.u32.totalorder %s1931_s22, %s2387_s1 }
   0xa   : > { %p2046_p5 = pnand %p2390_p3, %p1908_p4 }
   0xc   : > { %p1933_p7 = pneg %p2046_p5 }
   0xe   : > { %p1934_p8 = pnand %p1933_p7, %p1932_p6 }
  0x10   : > { %p1935_p9 = pneg %p1934_p8 }
  0x12   : > { %p1940_p11 = pnand %p1938_p10, %p1935_p9 }
  0x14   : > { %1943 = shalt.err (!%p1940_p11)
}
  0x15   : > { %s1944_s27 = scalar_lea.vmem %s127_s15, 256  ;;  %p1952_p1 = scmp.lt.s32.totalorder %s127_s15, %s127_s15 }
  0x16   : > { %p1945_p12 = scmp.ne.s32.totalorder %s127_s15, %s1944_s27  ;;  %p1953_p4 = scmp.lt.s32.totalorder %s1944_s27, %s1944_s27 }
  0x18   : > { %p1947_p13 = pnand %p1945_p12, %p1933_p7  ;;  %p1954_p3 = por %p1953_p4, %p1952_p1 }
  0x1a   : > { %p1948_p0 = pneg %p1947_p13 }
  0x1c   : > { %p1955_p2 = pnand %p1954_p3, %p1948_p0 }
  0x1e   : > { %1958 = shalt.err (!%p1955_p2)
}
  0x1f   : > { %s2005_s28 = smov 128   ;;  %s2006_s29 = smov 8  }
  0x20   : > { %1911 = dma.hbm_to_vmem [thread:$0]  (!%p2046_p5), %s2387_s1, 256, %s127_s15, [#allocation3], %s2005_s28, %s2005_s28, %s2006_s29  }
  0x21   : > { %s1959_s7 = scalar_lea.hbm %s2388_s2, 5376 }
  0x22   : > { %p1960_p6 = scmp.ne.s32.totalorder %s2388_s2, %s1959_s7  ;;  %p1966_p8 = scmp.lt.u32.totalorder %s1959_s7, %s2388_s2 }
  0x24   : > { %p1962_p2 = pnand %p1960_p6, %p1933_p7 }
  0x26   : > { %p1963_p3 = pneg %p1962_p2 }
  0x28   : > { %p1968_p9 = pnand %p1966_p8, %p1963_p3 }
  0x2a   : > { %1971 = shalt.err (!%p1968_p9)
}
  0x2b   : > { %s1972_s14 = scalar_lea.vmem %s2050_s18, 5376  ;;  %p1980_p13 = scmp.lt.s32.totalorder %s2050_s18, %s2050_s18 }
  0x2c   : > { %p1973_p10 = scmp.ne.s32.totalorder %s2050_s18, %s1972_s14  ;;  %p1981_p0 = scmp.lt.s32.totalorder %s1972_s14, %s1972_s14 }
  0x2e   : > { %p1975_p11 = pnand %p1973_p10, %p1933_p7  ;;  %p1982_p1 = por %p1981_p0, %p1980_p13 }
  0x30   : > { %p1976_p12 = pneg %p1975_p11 }
  0x32   : > { %p1983_p4 = pnand %p1982_p1, %p1976_p12 }
  0x34   : > { %1986 = shalt.err (!%p1983_p4)
}
  0x35   : > { %1914 = dma.hbm_to_vmem [thread:$0]  (!%p2046_p5), %s2388_s2, 5376, %s2050_s18, [#allocation5], %s2005_s28, %s2005_s28, %s2006_s29  }
  0x36   : > { %p2394_p6 = scmp.ne.s32.totalorder %s2392_s16, 0 }
  0x37   : > { %p2395_p2 = scmp.eq.s32.totalorder (!%p2394_p6), %s2033_s13, 0 }
  0x38   : > { %164 = sbr.rel (%p2394_p6) target bundleno = 597 (0x255), region = 32 }
  0x3f   : > { %1992 = dma.done.wait (%p2395_p2), [#allocation3], 256   ;;  %p2396_p7 = pmov %p2395_p2 }
  0x40   : > { %p2397_p3 = pmov %p2395_p2 }
  0x41   : > { %1994 = vsyncadd (%p2396_p7), [#allocation3], 4294967040 }
  0x42   : > { %1996 = dma.done.wait (%p2397_p3), [#allocation5], 5376   ;;  %p2398_p8 = pmov %p2395_p2 }
  0x43   : > { %s193_s19 = smul.u32 12, %s2033_s13  ;;  %vm220_vm0 = vcmask 130048   ;;  %v218_v0 = vld [vmem:[#allocation2] sm:$0xff]  ;;  %v219_v1 = vld [vmem:[#allocation2 + $0x8] sm:$0xff]  ;;  %v382_v15 = vld [vmem:[#allocation4] sm:$0xff]  ;;  %vm424_vm1 = vcmask 392192  }
  0x44   : > { %1998 = vsyncadd (%p2398_p8), [#allocation5], 4294961920  ;;  %v1869_v2 = vpack.c.bf16 %v219_v1, %v218_v0  ;;  %v383_v34 = vld [vmem:[#allocation4 + $0x8] sm:$0xff]  ;;  %v384_v35 = vld [vmem:[#allocation4 + $0x10] sm:$0xff]  ;;  %s1445_s22 = sshll.u32 %s2033_s13, 1  ;;  %vm826_vm2 = vcmask 916480  }
  0x45   : > { %p194_p9 = scmp.lt.s32.totalorder %s193_s19, 23  ;;  %v385_v36 = vld [vmem:[#allocation4 + $0x18] sm:$0xff]  ;;  %v386_v37 = vld [vmem:[#allocation4 + $0x20] sm:$0xff]  ;;  %v387_v38 = vld [vmem:[#allocation4 + $0x28] sm:$0xff]  ;;  %p200_p5 = scmp.lt.s32.totalorder %s1445_s22, 3 }
  0x46   : > { %1870 = vmatprep.subr.bf16.mxu0 %v1869_v2  ;;  %1897 = vmatprep.subr.bf16.mxu1 %v1869_v2  ;;  %v388_v39 = vld [vmem:[#allocation4 + $0x30] sm:$0xff]  ;;  %v389_v40 = vld [vmem:[#allocation4 + $0x38] sm:$0xff]  ;;  %v390_v41 = vld [vmem:[#allocation4 + $0x40] sm:$0xff] }
  0x47   : > { %s2400_s19 = smov (!%p194_p9, %s193_s19), 23  ;;  %1872 = vmatpush3.bf16.msra.mxu0 %v1869_v2  ;;  %1898 = vmatpush3.bf16.msra.mxu1 %v1869_v2  ;;  %v391_v42 = vld [vmem:[#allocation4 + $0x48] sm:$0xff]  ;;  %v392_v43 = vld [vmem:[#allocation4 + $0x50] sm:$0xff]  ;;  %v393_v44 = vld [vmem:[#allocation4 + $0x58] sm:$0xff]  ;;  %s2402_s22 = smov (!%p200_p5, %s1445_s22), 3 }
  0x48   : > { %s1444_s18 = sshll.u32 %s2400_s19, 3  ;;  %v394_v45 = vld [vmem:[#allocation4 + $0x60] sm:$0xff]  ;;  %v395_v46 = vld [vmem:[#allocation4 + $0x68] sm:$0xff]  ;;  %v396_v47 = vld [vmem:[#allocation4 + $0x70] sm:$0xff]  ;;  %s1899_s23 = smul.u32 336, %s2402_s22 }
  0x49   : > { %s197_s21 = scalar_lea.vmem %s2386_s0, %s1444_s18  ;;  %v397_v48 = vld [vmem:[#allocation4 + $0x78] sm:$0xff]  ;;  %v398_v49 = vld [vmem:[#allocation4 + $0x80] sm:$0xff]  ;;  %v399_v50 = vld [vmem:[#allocation4 + $0x88] sm:$0xff] }
  0x4a   : > { %v206_v3 = vld [vmem:[%s197_s21] sm:$0xff]  ;;  %v212_v4 = vld [vmem:[%s197_s21 + $0x30] sm:$0xff]  ;;  %v207_v5 = vld [vmem:[%s197_s21 + $0x8] sm:$0xff]  ;;  %s2213_s26 = scalar_lea.vmem %s2389_s3, %s1899_s23 }
  0x4b   : > { %1701 = vmatprep.mubr.msk.f32.mxu0 %vm220_vm0, %v206_v3  ;;  %1710 = vmatprep.mubr.msk.f32.mxu1 %vm220_vm0, %v212_v4  ;;  %v213_v6 = vld [vmem:[%s197_s21 + $0x38] sm:$0xff]  ;;  %v208_v7 = vld [vmem:[%s197_s21 + $0x10] sm:$0xff]  ;;  %v214_v8 = vld [vmem:[%s197_s21 + $0x40] sm:$0xff] }
  0x4c   : > { %1702 = vmatmul.mubr.msk.f32.vlgmr.msra.gmra.mrb[0].mxu0 %vm220_vm0, %v207_v5  ;;  %1711 = vmatmul.mubr.msk.f32.vlgmr.msra.gmra.mrb[0].mxu1 %vm220_vm0, %v213_v6  ;;  %v209_v9 = vld [vmem:[%s197_s21 + $0x18] sm:$0xff]  ;;  %v215_v10 = vld [vmem:[%s197_s21 + $0x48] sm:$0xff]  ;;  %v210_v11 = vld [vmem:[%s197_s21 + $0x20] sm:$0xff] }
  0x4d   : > { %1704 = vmatprep.mubr.msk.f32.mxu0 %vm220_vm0, %v208_v7  ;;  %1713 = vmatprep.mubr.msk.f32.mxu1 %vm220_vm0, %v214_v8  ;;  %v216_v12 = vld [vmem:[%s197_s21 + $0x50] sm:$0xff]  ;;  %v211_v13 = vld [vmem:[%s197_s21 + $0x28] sm:$0xff]  ;;  %v217_v14 = vld [vmem:[%s197_s21 + $0x58] sm:$0xff] }
  0x4e   : > { %v400_v51 = vld [vmem:[#allocation4 + $0x90] sm:$0xff]  ;;  %v401_v52 = vld [vmem:[#allocation4 + $0x98] sm:$0xff]  ;;  %v402_v53 = vld [vmem:[#allocation4 + $0xa0] sm:$0xff] }
  0x4f   : > { %v403_v54 = vld [vmem:[#allocation4 + $0xa8] sm:$0xff]  ;;  %v404_v55 = vld [vmem:[#allocation4 + $0xb0] sm:$0xff]  ;;  %v405_v56 = vld [vmem:[#allocation4 + $0xb8] sm:$0xff] }
  0x50   : > { %1705 = vmatmul.mubr.msk.f32.gmra.mrb[2].mxu0 %vm220_vm0, %v209_v9  ;;  %1714 = vmatmul.mubr.msk.f32.gmra.mrb[2].mxu1 %vm220_vm0, %v215_v10  ;;  %v406_v57 = vld [vmem:[#allocation4 + $0xc0] sm:$0xff]  ;;  %v407_v58 = vld [vmem:[#allocation4 + $0xc8] sm:$0xff]  ;;  %v408_v59 = vld [vmem:[#allocation4 + $0xd0] sm:$0xff] }
  0x51   : > { %1707 = vmatprep.mubr.msk.f32.mxu0 %vm220_vm0, %v210_v11  ;;  %1716 = vmatprep.mubr.msk.f32.mxu1 %vm220_vm0, %v216_v12  ;;  %v409_v60 = vld [vmem:[#allocation4 + $0xd8] sm:$0xff]  ;;  %v410_v61 = vld [vmem:[#allocation4 + $0xe0] sm:$0xff]  ;;  %v411_v62 = vld [vmem:[#allocation4 + $0xe8] sm:$0xff] }
  0x52   : > { %v412_v63 = vld [vmem:[#allocation4 + $0xf0] sm:$0xff]  ;;  %v413_v0 = vld [vmem:[#allocation4 + $0xf8] sm:$0xff]  ;;  %v414_v1 = vld [vmem:[#allocation4 + $0x100] sm:$0xff] }
  0x53   : > { %v415_v2 = vld [vmem:[#allocation4 + $0x108] sm:$0xff]  ;;  %v416_v3 = vld [vmem:[#allocation4 + $0x110] sm:$0xff]  ;;  %v417_v4 = vld [vmem:[#allocation4 + $0x118] sm:$0xff] }
  0x54   : > { %1708 = vmatmul.mubr.msk.f32.gmra.mrb[4].mxu0 %vm220_vm0, %v211_v13  ;;  %1717 = vmatmul.mubr.msk.f32.gmra.mrb[4].mxu1 %vm220_vm0, %v217_v14  ;;  %v418_v5 = vld [vmem:[#allocation4 + $0x120] sm:$0xff]  ;;  %v419_v6 = vld [vmem:[#allocation4 + $0x128] sm:$0xff]  ;;  %v420_v7 = vld [vmem:[#allocation4 + $0x130] sm:$0xff] }
  0x55   : > { %1731 = vmatprep.mubr.msk.f32.mxu1 %vm424_vm1, %v382_v15  ;;  %1806 = vmatprep.mubr.msk.f32.mxu0 %vm424_vm1, %v382_v15  ;;  %v421_v8 = vld [vmem:[#allocation4 + $0x138] sm:$0xff]  ;;  %v422_v9 = vld [vmem:[#allocation4 + $0x140] sm:$0xff]  ;;  %v423_v10 = vld [vmem:[#allocation4 + $0x148] sm:$0xff] }
 0x11f   : > { %v1703_v16 = vpop.f32.mrb[0].mxu0  ;;  %v1712_v17 = vpop.f32.mrb[0].mxu1 }
 0x120   : > { %v323_v18 = vpop.f32.mrb[1].mxu0  ;;  %v353_v19 = vpop.f32.mrb[1].mxu1 }
 0x121   : > { %v1873_v20 = vpack.c.bf16 %v1703_v16, %v323_v18  ;;  %v1885_v21 = vpack.c.bf16 %v1712_v17, %v353_v19 }
 0x123   : > { %v1706_v22 = vpop.f32.mrb[2].mxu0  ;;  %v1715_v23 = vpop.f32.mrb[2].mxu1  ;;  %1874 = vmatprep.subr.bf16.mxu1 %v1873_v20  ;;  %1886 = vmatprep.subr.bf16.mxu0 %v1885_v21 }
 0x124   : > { %v333_v24 = vpop.f32.mrb[3].mxu0  ;;  %v363_v25 = vpop.f32.mrb[3].mxu1  ;;  %1876 = vmatpush3.bf16.msra.mxu1 %v1873_v20  ;;  %1888 = vmatpush3.bf16.msra.mxu0 %v1885_v21 }
 0x125   : > { %v1877_v26 = vpack.c.bf16 %v1706_v22, %v333_v24  ;;  %v1889_v27 = vpack.c.bf16 %v1715_v23, %v363_v25 }
 0x127   : > { %v1709_v28 = vpop.f32.mrb[4].mxu0  ;;  %v1718_v29 = vpop.f32.mrb[4].mxu1  ;;  %1878 = vmatprep.subr.bf16.mxu1 %v1877_v26  ;;  %1890 = vmatprep.subr.bf16.mxu0 %v1889_v27 }
 0x128   : > { %v343_v30 = vpop.f32.mrb[5].mxu0  ;;  %v373_v31 = vpop.f32.mrb[5].mxu1  ;;  %1880 = vmatpush3.bf16.msra.mxu1 %v1877_v26  ;;  %1892 = vmatpush3.bf16.msra.mxu0 %v1889_v27 }
 0x129   : > { %v1881_v32 = vpack.c.bf16 %v1709_v28, %v343_v30  ;;  %v1893_v33 = vpack.c.bf16 %v1718_v29, %v373_v31 }
 0x12b   : > { %1882 = vmatprep.subr.bf16.mxu1 %v1881_v32  ;;  %1894 = vmatprep.subr.bf16.mxu0 %v1893_v33 }
 0x12c   : > { %1884 = vmatpush3.bf16.msra.mxu1 %v1881_v32  ;;  %1896 = vmatpush3.bf16.msra.mxu0 %v1893_v33 }
 0x12f   : > { %1732 = vmatmul.mubr.msk.f32.vlgmr.msra.gmra.mrb[6].mxu1 %vm424_vm1, %v383_v34  ;;  %1807 = vmatmul.mubr.msk.f32.vlgmr.msra.gmra.mrb[6].mxu0 %vm424_vm1, %v383_v34 }
 0x130   : > { %1734 = vmatprep.mubr.msk.f32.mxu1 %vm424_vm1, %v384_v35  ;;  %1809 = vmatprep.mubr.msk.f32.mxu0 %vm424_vm1, %v384_v35 }
 0x133   : > { %1735 = vmatmul.mubr.msk.f32.gmra.mrb[8].mxu1 %vm424_vm1, %v385_v36  ;;  %1810 = vmatmul.mubr.msk.f32.gmra.mrb[8].mxu0 %vm424_vm1, %v385_v36 }
 0x134   : > { %1737 = vmatprep.mubr.msk.f32.mxu1 %vm424_vm1, %v386_v37  ;;  %1812 = vmatprep.mubr.msk.f32.mxu0 %vm424_vm1, %v386_v37 }
 0x137   : > { %1738 = vmatmul.mubr.msk.f32.gmra.mrb[10].mxu1 %vm424_vm1, %v387_v38  ;;  %1813 = vmatmul.mubr.msk.f32.gmra.mrb[10].mxu0 %vm424_vm1, %v387_v38 }
 0x138   : > { %1740 = vmatprep.mubr.msk.f32.mxu1 %vm424_vm1, %v388_v39  ;;  %1815 = vmatprep.mubr.msk.f32.mxu0 %vm424_vm1, %v388_v39 }
 0x13b   : > { %1741 = vmatmul.mubr.msk.f32.gmra.mrb[12].mxu1 %vm424_vm1, %v389_v40  ;;  %1816 = vmatmul.mubr.msk.f32.gmra.mrb[12].mxu0 %vm424_vm1, %v389_v40 }
 0x13c   : > { %1743 = vmatprep.mubr.msk.f32.mxu1 %vm424_vm1, %v390_v41  ;;  %1818 = vmatprep.mubr.msk.f32.mxu0 %vm424_vm1, %v390_v41 }
 0x13f   : > { %1744 = vmatmul.mubr.msk.f32.gmra.mrb[14].mxu1 %vm424_vm1, %v391_v42  ;;  %1819 = vmatmul.mubr.msk.f32.gmra.mrb[14].mxu0 %vm424_vm1, %v391_v42 }
 0x140   : > { %1746 = vmatprep.mubr.msk.f32.mxu1 %vm424_vm1, %v392_v43  ;;  %1821 = vmatprep.mubr.msk.f32.mxu0 %vm424_vm1, %v392_v43 }
 0x143   : > { %1747 = vmatmul.mubr.msk.f32.gmra.mrb[16].mxu1 %vm424_vm1, %v393_v44  ;;  %1822 = vmatmul.mubr.msk.f32.gmra.mrb[16].mxu0 %vm424_vm1, %v393_v44 }
 0x144   : > { %1749 = vmatprep.mubr.msk.f32.mxu1 %vm424_vm1, %v394_v45  ;;  %1824 = vmatprep.mubr.msk.f32.mxu0 %vm424_vm1, %v394_v45 }
 0x147   : > { %1750 = vmatmul.mubr.msk.f32.gmra.mrb[18].mxu1 %vm424_vm1, %v395_v46  ;;  %1825 = vmatmul.mubr.msk.f32.gmra.mrb[18].mxu0 %vm424_vm1, %v395_v46 }
 0x148   : > { %1752 = vmatprep.mubr.msk.f32.mxu1 %vm424_vm1, %v396_v47  ;;  %1827 = vmatprep.mubr.msk.f32.mxu0 %vm424_vm1, %v396_v47 }
 0x14b   : > { %1753 = vmatmul.mubr.msk.f32.gmra.mrb[20].mxu1 %vm424_vm1, %v397_v48  ;;  %1828 = vmatmul.mubr.msk.f32.gmra.mrb[20].mxu0 %vm424_vm1, %v397_v48 }
 0x14c   : > { %1755 = vmatprep.mubr.msk.f32.mxu1 %vm424_vm1, %v398_v49  ;;  %1830 = vmatprep.mubr.msk.f32.mxu0 %vm424_vm1, %v398_v49 }
 0x14f   : > { %1756 = vmatmul.mubr.msk.f32.gmra.mrb[22].mxu1 %vm424_vm1, %v399_v50  ;;  %1831 = vmatmul.mubr.msk.f32.gmra.mrb[22].mxu0 %vm424_vm1, %v399_v50 }
 0x150   : > { %1758 = vmatprep.mubr.msk.f32.mxu1 %vm424_vm1, %v400_v51  ;;  %1833 = vmatprep.mubr.msk.f32.mxu0 %vm424_vm1, %v400_v51 }
 0x153   : > { %1759 = vmatmul.mubr.msk.f32.gmra.mrb[24].mxu1 %vm424_vm1, %v401_v52  ;;  %1834 = vmatmul.mubr.msk.f32.gmra.mrb[24].mxu0 %vm424_vm1, %v401_v52 }
 0x154   : > { %1761 = vmatprep.mubr.msk.f32.mxu1 %vm424_vm1, %v402_v53  ;;  %1836 = vmatprep.mubr.msk.f32.mxu0 %vm424_vm1, %v402_v53 }
 0x157   : > { %1762 = vmatmul.mubr.msk.f32.gmra.mrb[26].mxu1 %vm424_vm1, %v403_v54  ;;  %1837 = vmatmul.mubr.msk.f32.gmra.mrb[26].mxu0 %vm424_vm1, %v403_v54 }
 0x158   : > { %1764 = vmatprep.mubr.msk.f32.mxu1 %vm424_vm1, %v404_v55  ;;  %1839 = vmatprep.mubr.msk.f32.mxu0 %vm424_vm1, %v404_v55 }
 0x15b   : > { %1765 = vmatmul.mubr.msk.f32.gmra.mrb[28].mxu1 %vm424_vm1, %v405_v56  ;;  %1840 = vmatmul.mubr.msk.f32.gmra.mrb[28].mxu0 %vm424_vm1, %v405_v56 }
 0x15c   : > { %1767 = vmatprep.mubr.msk.f32.mxu1 %vm424_vm1, %v406_v57  ;;  %1842 = vmatprep.mubr.msk.f32.mxu0 %vm424_vm1, %v406_v57 }
 0x15f   : > { %1768 = vmatmul.mubr.msk.f32.gmra.mrb[30].mxu1 %vm424_vm1, %v407_v58  ;;  %1843 = vmatmul.mubr.msk.f32.gmra.mrb[30].mxu0 %vm424_vm1, %v407_v58 }
 0x160   : > { %1770 = vmatprep.mubr.msk.f32.mxu1 %vm424_vm1, %v408_v59  ;;  %1845 = vmatprep.mubr.msk.f32.mxu0 %vm424_vm1, %v408_v59 }
 0x163   : > { %1771 = vmatmul.mubr.msk.f32.gmra.mrb[32].mxu1 %vm424_vm1, %v409_v60  ;;  %1846 = vmatmul.mubr.msk.f32.gmra.mrb[32].mxu0 %vm424_vm1, %v409_v60 }
 0x164   : > { %1773 = vmatprep.mubr.msk.f32.mxu1 %vm424_vm1, %v410_v61  ;;  %1848 = vmatprep.mubr.msk.f32.mxu0 %vm424_vm1, %v410_v61 }
 0x167   : > { %1774 = vmatmul.mubr.msk.f32.gmra.mrb[34].mxu1 %vm424_vm1, %v411_v62  ;;  %1849 = vmatmul.mubr.msk.f32.gmra.mrb[34].mxu0 %vm424_vm1, %v411_v62 }
 0x168   : > { %1776 = vmatprep.mubr.msk.f32.mxu1 %vm424_vm1, %v412_v63  ;;  %1851 = vmatprep.mubr.msk.f32.mxu0 %vm424_vm1, %v412_v63 }
 0x16b   : > { %1777 = vmatmul.mubr.msk.f32.gmra.mrb[36].mxu1 %vm424_vm1, %v413_v0  ;;  %1852 = vmatmul.mubr.msk.f32.gmra.mrb[36].mxu0 %vm424_vm1, %v413_v0 }
 0x16c   : > { %1779 = vmatprep.mubr.msk.f32.mxu1 %vm424_vm1, %v414_v1  ;;  %1854 = vmatprep.mubr.msk.f32.mxu0 %vm424_vm1, %v414_v1 }
 0x16f   : > { %1780 = vmatmul.mubr.msk.f32.gmra.mrb[38].mxu1 %vm424_vm1, %v415_v2  ;;  %1855 = vmatmul.mubr.msk.f32.gmra.mrb[38].mxu0 %vm424_vm1, %v415_v2 }
 0x170   : > { %1782 = vmatprep.mubr.msk.f32.mxu1 %vm424_vm1, %v416_v3  ;;  %1857 = vmatprep.mubr.msk.f32.mxu0 %vm424_vm1, %v416_v3 }
 0x173   : > { %1783 = vmatmul.mubr.msk.f32.gmra.mrb[40].mxu1 %vm424_vm1, %v417_v4  ;;  %1858 = vmatmul.mubr.msk.f32.gmra.mrb[40].mxu0 %vm424_vm1, %v417_v4 }
 0x174   : > { %1785 = vmatprep.mubr.msk.f32.mxu1 %vm424_vm1, %v418_v5  ;;  %1860 = vmatprep.mubr.msk.f32.mxu0 %vm424_vm1, %v418_v5 }
 0x177   : > { %1786 = vmatmul.mubr.msk.f32.gmra.mrb[42].mxu1 %vm424_vm1, %v419_v6  ;;  %1861 = vmatmul.mubr.msk.f32.gmra.mrb[42].mxu0 %vm424_vm1, %v419_v6 }
 0x178   : > { %1788 = vmatprep.mubr.msk.f32.mxu1 %vm424_vm1, %v420_v7  ;;  %1863 = vmatprep.mubr.msk.f32.mxu0 %vm424_vm1, %v420_v7 }
 0x17b   : > { %1789 = vmatmul.mubr.msk.f32.gmra.mrb[44].mxu1 %vm424_vm1, %v421_v8  ;;  %1864 = vmatmul.mubr.msk.f32.gmra.mrb[44].mxu0 %vm424_vm1, %v421_v8 }
 0x17c   : > { %1791 = vmatprep.mubr.msk.f32.mxu1 %vm424_vm1, %v422_v9  ;;  %1866 = vmatprep.mubr.msk.f32.mxu0 %vm424_vm1, %v422_v9 }
 0x17f   : > { %1792 = vmatmul.mubr.msk.f32.gmra.mrb[46].mxu1 %vm424_vm1, %v423_v10  ;;  %1867 = vmatmul.mubr.msk.f32.gmra.mrb[46].mxu0 %vm424_vm1, %v423_v10 }
 0x202   : > { %v1733_v11 = vpop.f32.mrb[6].mxu1  ;;  %v1808_v12 = vpop.f32.mrb[6].mxu0 }
 0x203   : > { %828 = vst.msk [vmem:[%s2213_s26 + $0x8] sm:$0xff] %vm826_vm2, %v1733_v11  ;;  %v617_v13 = vpop.f32.mrb[7].mxu1  ;;  %v1103_v14 = vpop.f32.mrb[7].mxu0  ;;  %1544 = vst.msk [vmem:[%s2213_s26 + $0x158] sm:$0xff] %vm826_vm2, %v1808_v12 }
 0x204   : > { %827 = vst.msk [vmem:[%s2213_s26] sm:$0xff] %vm826_vm2, %v617_v13  ;;  %1543 = vst.msk [vmem:[%s2213_s26 + $0x150] sm:$0xff] %vm826_vm2, %v1103_v14 }
 0x206   : > { %v1736_v15 = vpop.f32.mrb[8].mxu1  ;;  %v1811_v16 = vpop.f32.mrb[8].mxu0 }
 0x207   : > { %830 = vst.msk [vmem:[%s2213_s26 + $0x18] sm:$0xff] %vm826_vm2, %v1736_v15  ;;  %v627_v17 = vpop.f32.mrb[9].mxu1  ;;  %v1113_v18 = vpop.f32.mrb[9].mxu0  ;;  %1546 = vst.msk [vmem:[%s2213_s26 + $0x168] sm:$0xff] %vm826_vm2, %v1811_v16 }
 0x208   : > { %829 = vst.msk [vmem:[%s2213_s26 + $0x10] sm:$0xff] %vm826_vm2, %v627_v17  ;;  %1545 = vst.msk [vmem:[%s2213_s26 + $0x160] sm:$0xff] %vm826_vm2, %v1113_v18 }
 0x20a   : > { %v1739_v19 = vpop.f32.mrb[10].mxu1  ;;  %v1814_v20 = vpop.f32.mrb[10].mxu0 }
 0x20b   : > { %832 = vst.msk [vmem:[%s2213_s26 + $0x28] sm:$0xff] %vm826_vm2, %v1739_v19  ;;  %v637_v21 = vpop.f32.mrb[11].mxu1  ;;  %v1123_v22 = vpop.f32.mrb[11].mxu0  ;;  %1548 = vst.msk [vmem:[%s2213_s26 + $0x178] sm:$0xff] %vm826_vm2, %v1814_v20 }
 0x20c   : > { %831 = vst.msk [vmem:[%s2213_s26 + $0x20] sm:$0xff] %vm826_vm2, %v637_v21  ;;  %1547 = vst.msk [vmem:[%s2213_s26 + $0x170] sm:$0xff] %vm826_vm2, %v1123_v22 }
 0x20e   : > { %v1742_v23 = vpop.f32.mrb[12].mxu1  ;;  %v1817_v24 = vpop.f32.mrb[12].mxu0 }
 0x20f   : > { %834 = vst.msk [vmem:[%s2213_s26 + $0x38] sm:$0xff] %vm826_vm2, %v1742_v23  ;;  %v647_v25 = vpop.f32.mrb[13].mxu1  ;;  %v1133_v26 = vpop.f32.mrb[13].mxu0  ;;  %1550 = vst.msk [vmem:[%s2213_s26 + $0x188] sm:$0xff] %vm826_vm2, %v1817_v24 }
 0x210   : > { %833 = vst.msk [vmem:[%s2213_s26 + $0x30] sm:$0xff] %vm826_vm2, %v647_v25  ;;  %1549 = vst.msk [vmem:[%s2213_s26 + $0x180] sm:$0xff] %vm826_vm2, %v1133_v26 }
 0x212   : > { %v1745_v27 = vpop.f32.mrb[14].mxu1  ;;  %v1820_v28 = vpop.f32.mrb[14].mxu0 }
 0x213   : > { %836 = vst.msk [vmem:[%s2213_s26 + $0x48] sm:$0xff] %vm826_vm2, %v1745_v27  ;;  %v657_v29 = vpop.f32.mrb[15].mxu1  ;;  %v1143_v30 = vpop.f32.mrb[15].mxu0  ;;  %1552 = vst.msk [vmem:[%s2213_s26 + $0x198] sm:$0xff] %vm826_vm2, %v1820_v28 }
 0x214   : > { %835 = vst.msk [vmem:[%s2213_s26 + $0x40] sm:$0xff] %vm826_vm2, %v657_v29  ;;  %1551 = vst.msk [vmem:[%s2213_s26 + $0x190] sm:$0xff] %vm826_vm2, %v1143_v30 }
 0x216   : > { %v1748_v31 = vpop.f32.mrb[16].mxu1  ;;  %v1823_v32 = vpop.f32.mrb[16].mxu0 }
 0x217   : > { %838 = vst.msk [vmem:[%s2213_s26 + $0x58] sm:$0xff] %vm826_vm2, %v1748_v31  ;;  %v667_v33 = vpop.f32.mrb[17].mxu1  ;;  %v1153_v34 = vpop.f32.mrb[17].mxu0  ;;  %1554 = vst.msk [vmem:[%s2213_s26 + $0x1a8] sm:$0xff] %vm826_vm2, %v1823_v32 }
 0x218   : > { %837 = vst.msk [vmem:[%s2213_s26 + $0x50] sm:$0xff] %vm826_vm2, %v667_v33  ;;  %1553 = vst.msk [vmem:[%s2213_s26 + $0x1a0] sm:$0xff] %vm826_vm2, %v1153_v34 }
 0x21a   : > { %v1751_v35 = vpop.f32.mrb[18].mxu1  ;;  %v1826_v36 = vpop.f32.mrb[18].mxu0 }
 0x21b   : > { %840 = vst.msk [vmem:[%s2213_s26 + $0x68] sm:$0xff] %vm826_vm2, %v1751_v35  ;;  %v677_v37 = vpop.f32.mrb[19].mxu1  ;;  %v1163_v38 = vpop.f32.mrb[19].mxu0  ;;  %1556 = vst.msk [vmem:[%s2213_s26 + $0x1b8] sm:$0xff] %vm826_vm2, %v1826_v36 }
 0x21c   : > { %839 = vst.msk [vmem:[%s2213_s26 + $0x60] sm:$0xff] %vm826_vm2, %v677_v37  ;;  %1555 = vst.msk [vmem:[%s2213_s26 + $0x1b0] sm:$0xff] %vm826_vm2, %v1163_v38 }
 0x21e   : > { %v1754_v39 = vpop.f32.mrb[20].mxu1  ;;  %v1829_v40 = vpop.f32.mrb[20].mxu0 }
 0x21f   : > { %842 = vst.msk [vmem:[%s2213_s26 + $0x78] sm:$0xff] %vm826_vm2, %v1754_v39  ;;  %v687_v41 = vpop.f32.mrb[21].mxu1  ;;  %v1173_v42 = vpop.f32.mrb[21].mxu0  ;;  %1558 = vst.msk [vmem:[%s2213_s26 + $0x1c8] sm:$0xff] %vm826_vm2, %v1829_v40 }
 0x220   : > { %841 = vst.msk [vmem:[%s2213_s26 + $0x70] sm:$0xff] %vm826_vm2, %v687_v41  ;;  %1557 = vst.msk [vmem:[%s2213_s26 + $0x1c0] sm:$0xff] %vm826_vm2, %v1173_v42 }
 0x222   : > { %v1757_v43 = vpop.f32.mrb[22].mxu1  ;;  %v1832_v44 = vpop.f32.mrb[22].mxu0 }
 0x223   : > { %844 = vst.msk [vmem:[%s2213_s26 + $0x88] sm:$0xff] %vm826_vm2, %v1757_v43  ;;  %v697_v45 = vpop.f32.mrb[23].mxu1  ;;  %v1183_v46 = vpop.f32.mrb[23].mxu0  ;;  %1560 = vst.msk [vmem:[%s2213_s26 + $0x1d8] sm:$0xff] %vm826_vm2, %v1832_v44 }
 0x224   : > { %843 = vst.msk [vmem:[%s2213_s26 + $0x80] sm:$0xff] %vm826_vm2, %v697_v45  ;;  %1559 = vst.msk [vmem:[%s2213_s26 + $0x1d0] sm:$0xff] %vm826_vm2, %v1183_v46 }
 0x226   : > { %v1760_v47 = vpop.f32.mrb[24].mxu1  ;;  %v1835_v48 = vpop.f32.mrb[24].mxu0 }
 0x227   : > { %846 = vst.msk [vmem:[%s2213_s26 + $0x98] sm:$0xff] %vm826_vm2, %v1760_v47  ;;  %v707_v49 = vpop.f32.mrb[25].mxu1  ;;  %v1193_v50 = vpop.f32.mrb[25].mxu0  ;;  %1562 = vst.msk [vmem:[%s2213_s26 + $0x1e8] sm:$0xff] %vm826_vm2, %v1835_v48 }
 0x228   : > { %845 = vst.msk [vmem:[%s2213_s26 + $0x90] sm:$0xff] %vm826_vm2, %v707_v49  ;;  %1561 = vst.msk [vmem:[%s2213_s26 + $0x1e0] sm:$0xff] %vm826_vm2, %v1193_v50 }
 0x22a   : > { %v1763_v51 = vpop.f32.mrb[26].mxu1  ;;  %v1838_v52 = vpop.f32.mrb[26].mxu0 }
 0x22b   : > { %848 = vst.msk [vmem:[%s2213_s26 + $0xa8] sm:$0xff] %vm826_vm2, %v1763_v51  ;;  %v717_v53 = vpop.f32.mrb[27].mxu1  ;;  %v1203_v54 = vpop.f32.mrb[27].mxu0  ;;  %1564 = vst.msk [vmem:[%s2213_s26 + $0x1f8] sm:$0xff] %vm826_vm2, %v1838_v52 }
 0x22c   : > { %847 = vst.msk [vmem:[%s2213_s26 + $0xa0] sm:$0xff] %vm826_vm2, %v717_v53  ;;  %1563 = vst.msk [vmem:[%s2213_s26 + $0x1f0] sm:$0xff] %vm826_vm2, %v1203_v54 }
 0x22e   : > { %v1766_v55 = vpop.f32.mrb[28].mxu1  ;;  %v1841_v56 = vpop.f32.mrb[28].mxu0 }
 0x22f   : > { %850 = vst.msk [vmem:[%s2213_s26 + $0xb8] sm:$0xff] %vm826_vm2, %v1766_v55  ;;  %v727_v57 = vpop.f32.mrb[29].mxu1  ;;  %v1213_v58 = vpop.f32.mrb[29].mxu0  ;;  %1566 = vst.msk [vmem:[%s2213_s26 + $0x208] sm:$0xff] %vm826_vm2, %v1841_v56 }
 0x230   : > { %849 = vst.msk [vmem:[%s2213_s26 + $0xb0] sm:$0xff] %vm826_vm2, %v727_v57  ;;  %1565 = vst.msk [vmem:[%s2213_s26 + $0x200] sm:$0xff] %vm826_vm2, %v1213_v58 }
 0x232   : > { %v1769_v59 = vpop.f32.mrb[30].mxu1  ;;  %v1844_v60 = vpop.f32.mrb[30].mxu0 }
 0x233   : > { %852 = vst.msk [vmem:[%s2213_s26 + $0xc8] sm:$0xff] %vm826_vm2, %v1769_v59  ;;  %v737_v61 = vpop.f32.mrb[31].mxu1  ;;  %v1223_v62 = vpop.f32.mrb[31].mxu0  ;;  %1568 = vst.msk [vmem:[%s2213_s26 + $0x218] sm:$0xff] %vm826_vm2, %v1844_v60 }
 0x234   : > { %851 = vst.msk [vmem:[%s2213_s26 + $0xc0] sm:$0xff] %vm826_vm2, %v737_v61  ;;  %1567 = vst.msk [vmem:[%s2213_s26 + $0x210] sm:$0xff] %vm826_vm2, %v1223_v62 }
 0x236   : > { %v1772_v63 = vpop.f32.mrb[32].mxu1  ;;  %v1847_v0 = vpop.f32.mrb[32].mxu0 }
 0x237   : > { %854 = vst.msk [vmem:[%s2213_s26 + $0xd8] sm:$0xff] %vm826_vm2, %v1772_v63  ;;  %v747_v1 = vpop.f32.mrb[33].mxu1  ;;  %v1233_v2 = vpop.f32.mrb[33].mxu0  ;;  %1570 = vst.msk [vmem:[%s2213_s26 + $0x228] sm:$0xff] %vm826_vm2, %v1847_v0 }
 0x238   : > { %853 = vst.msk [vmem:[%s2213_s26 + $0xd0] sm:$0xff] %vm826_vm2, %v747_v1  ;;  %1569 = vst.msk [vmem:[%s2213_s26 + $0x220] sm:$0xff] %vm826_vm2, %v1233_v2 }
 0x23a   : > { %v1775_v3 = vpop.f32.mrb[34].mxu1  ;;  %v1850_v4 = vpop.f32.mrb[34].mxu0 }
 0x23b   : > { %856 = vst.msk [vmem:[%s2213_s26 + $0xe8] sm:$0xff] %vm826_vm2, %v1775_v3  ;;  %v757_v5 = vpop.f32.mrb[35].mxu1  ;;  %v1243_v6 = vpop.f32.mrb[35].mxu0  ;;  %1572 = vst.msk [vmem:[%s2213_s26 + $0x238] sm:$0xff] %vm826_vm2, %v1850_v4 }
 0x23c   : > { %855 = vst.msk [vmem:[%s2213_s26 + $0xe0] sm:$0xff] %vm826_vm2, %v757_v5  ;;  %1571 = vst.msk [vmem:[%s2213_s26 + $0x230] sm:$0xff] %vm826_vm2, %v1243_v6 }
 0x23e   : > { %v1778_v7 = vpop.f32.mrb[36].mxu1  ;;  %v1853_v8 = vpop.f32.mrb[36].mxu0 }
 0x23f   : > { %858 = vst.msk [vmem:[%s2213_s26 + $0xf8] sm:$0xff] %vm826_vm2, %v1778_v7  ;;  %v767_v9 = vpop.f32.mrb[37].mxu1  ;;  %v1253_v10 = vpop.f32.mrb[37].mxu0  ;;  %1574 = vst.msk [vmem:[%s2213_s26 + $0x248] sm:$0xff] %vm826_vm2, %v1853_v8 }
 0x240   : > { %857 = vst.msk [vmem:[%s2213_s26 + $0xf0] sm:$0xff] %vm826_vm2, %v767_v9  ;;  %1573 = vst.msk [vmem:[%s2213_s26 + $0x240] sm:$0xff] %vm826_vm2, %v1253_v10 }
 0x242   : > { %v1781_v11 = vpop.f32.mrb[38].mxu1  ;;  %v1856_v12 = vpop.f32.mrb[38].mxu0 }
 0x243   : > { %860 = vst.msk [vmem:[%s2213_s26 + $0x108] sm:$0xff] %vm826_vm2, %v1781_v11  ;;  %v777_v13 = vpop.f32.mrb[39].mxu1  ;;  %v1263_v14 = vpop.f32.mrb[39].mxu0  ;;  %1576 = vst.msk [vmem:[%s2213_s26 + $0x258] sm:$0xff] %vm826_vm2, %v1856_v12 }
 0x244   : > { %859 = vst.msk [vmem:[%s2213_s26 + $0x100] sm:$0xff] %vm826_vm2, %v777_v13  ;;  %1575 = vst.msk [vmem:[%s2213_s26 + $0x250] sm:$0xff] %vm826_vm2, %v1263_v14 }
 0x246   : > { %v1784_v15 = vpop.f32.mrb[40].mxu1  ;;  %v1859_v16 = vpop.f32.mrb[40].mxu0 }
 0x247   : > { %862 = vst.msk [vmem:[%s2213_s26 + $0x118] sm:$0xff] %vm826_vm2, %v1784_v15  ;;  %v787_v17 = vpop.f32.mrb[41].mxu1  ;;  %v1273_v18 = vpop.f32.mrb[41].mxu0  ;;  %1578 = vst.msk [vmem:[%s2213_s26 + $0x268] sm:$0xff] %vm826_vm2, %v1859_v16 }
 0x248   : > { %861 = vst.msk [vmem:[%s2213_s26 + $0x110] sm:$0xff] %vm826_vm2, %v787_v17  ;;  %1577 = vst.msk [vmem:[%s2213_s26 + $0x260] sm:$0xff] %vm826_vm2, %v1273_v18 }
 0x24a   : > { %v1787_v19 = vpop.f32.mrb[42].mxu1  ;;  %v1862_v20 = vpop.f32.mrb[42].mxu0 }
 0x24b   : > { %864 = vst.msk [vmem:[%s2213_s26 + $0x128] sm:$0xff] %vm826_vm2, %v1787_v19  ;;  %v797_v21 = vpop.f32.mrb[43].mxu1  ;;  %v1283_v22 = vpop.f32.mrb[43].mxu0  ;;  %1580 = vst.msk [vmem:[%s2213_s26 + $0x278] sm:$0xff] %vm826_vm2, %v1862_v20 }
 0x24c   : > { %863 = vst.msk [vmem:[%s2213_s26 + $0x120] sm:$0xff] %vm826_vm2, %v797_v21  ;;  %1579 = vst.msk [vmem:[%s2213_s26 + $0x270] sm:$0xff] %vm826_vm2, %v1283_v22 }
 0x24e   : > { %v1790_v23 = vpop.f32.mrb[44].mxu1  ;;  %v1865_v24 = vpop.f32.mrb[44].mxu0 }
 0x24f   : > { %866 = vst.msk [vmem:[%s2213_s26 + $0x138] sm:$0xff] %vm826_vm2, %v1790_v23  ;;  %v807_v25 = vpop.f32.mrb[45].mxu1  ;;  %v1293_v26 = vpop.f32.mrb[45].mxu0  ;;  %1582 = vst.msk [vmem:[%s2213_s26 + $0x288] sm:$0xff] %vm826_vm2, %v1865_v24 }
 0x250   : > { %865 = vst.msk [vmem:[%s2213_s26 + $0x130] sm:$0xff] %vm826_vm2, %v807_v25  ;;  %1581 = vst.msk [vmem:[%s2213_s26 + $0x280] sm:$0xff] %vm826_vm2, %v1293_v26 }
 0x252   : > { %v1793_v27 = vpop.f32.mrb[46].mxu1  ;;  %v1868_v28 = vpop.f32.mrb[46].mxu0 }
 0x253   : > { %868 = vst.msk [vmem:[%s2213_s26 + $0x148] sm:$0xff] %vm826_vm2, %v1793_v27  ;;  %v817_v29 = vpop.f32.mrb[47].mxu1  ;;  %v1303_v30 = vpop.f32.mrb[47].mxu0  ;;  %1584 = vst.msk [vmem:[%s2213_s26 + $0x298] sm:$0xff] %vm826_vm2, %v1868_v28 }
 0x254   : > { %867 = vst.msk [vmem:[%s2213_s26 + $0x140] sm:$0xff] %vm826_vm2, %v817_v29  ;;  %1583 = vst.msk [vmem:[%s2213_s26 + $0x290] sm:$0xff] %vm826_vm2, %v1303_v30 }
 0x255 PF: > { %s15_s12 = sadd.s32 1, %s2001_s12  }
 0x256   : > { %p12_p10 = scmp.ge.s32.totalorder %s15_s12, 4  }
 0x258   :  { %14 = sbr.rel (!%p12_p10) target bundleno = 2 (0x2), region = 72 }
 0x25f   :  { %1379 = vsyncpa [#allocation3], 1 }
 0x260   :  { %1381 = vsyncpa [#allocation3 + $0x1], 1 }
 0x261   :  { %1382 = vsyncpa [#allocation5], 1 }

// kernel: id_loss.3
= control target key start
LH: loop header
LB: loop body
LE: loop exit
PB: predicated region body
PF: predicated region fallthrough
CT: control target
= control target key end

     0   :  { %8 = vsyncpa [#allocation4], 0  ;;  %s18900_s0 = inlined_call_operand.vmem [shape: f32[4,37632], index: 0, kind: input, shape index: {}]   ;;  %s18901_s1 = inlined_call_operand.hbm [shape: bf16[37632,128], index: 1, kind: input, shape index: {}]   ;;  %s18902_s2 = inlined_call_operand.hbm [shape: f32[1,128], index: 2, kind: input, shape index: {}]   ;;  %s18903_s3 = inlined_call_operand.vmem [shape: f32[2,1], index: 3, kind: output, shape index: {}]  }
   0x1   :  { %10 = vsyncpa [#allocation4 + $0x1], 0 }
   0x2   :  { %11 = vsyncpa [#allocation6], 0  ;;  %s17396_s12 = smov 0   ;;  %s17398_s13 = smov 0  }
   0x3   :  { %s17400_s14 = smov 0   ;;  %s17402_s15 = smov 0  }
   0x4 LB: > { %s17415_s16 = sadd.s32 4294967295, %s17367_s15   ;;  %s17418_s17 = sadd.s32 1, %s17367_s15   ;;  %s17367_s15 = sphi %s17402_s15, %s18922_s15   ;;  %s17363_s14 = sphi %s17400_s14, %s18921_s14   ;;  %s17359_s13 = sphi %s17398_s13, %s18920_s13   ;;  %s17355_s12 = sphi %s17396_s12, %s18919_s12  }
   0x5   : > { %s47_s18 = ssub.s32 %s17367_s15, %s17418_s17  ;;  %s50_s19 = sadd.s32 1, %s17363_s14 }
   0x6   : > { %p48_p0 = scmp.eq.s32.totalorder %s47_s18, 0  ;;  %p57_p1 = scmp.ne.s32.totalorder %s17363_s14, %s17359_s13 }
   0x7   : > { %p58_p2 = scmp.eq.s32.totalorder %s17367_s15, 0  ;;  %p63_p3 = scmp.ne.s32.totalorder %s17359_s13, %s17355_s12 }
   0x8   : > { %s17428_s20 = scalar_select %p48_p0, %s17363_s14, %s50_s19  }
   0x9   : > { %p17430_p4 = por %p58_p2, %p57_p1  ;;  %p18904_p5 = scmp.eq.s32.totalorder %s17415_s16, 0 }
   0xa   : > { %p13137_p6 = scmp.ge.s32.totalorder %s17367_s15, 1  ;;  %p116_p7 = scmp.lt.s32.totalorder %s17367_s15, 3 }
   0xb   : > { %p17439_p8 = por %p18904_p5, %p63_p3  ;;  %s17369_s24 = smov [#allocation5]  }
   0xc   : > { %p17444_p10 = pnand %p13137_p6, %p116_p7  ;;  %s129_s25 = sshll.u32 %s17369_s24, 4  ;;  %s130_s25 = int_to_ptr.vmem [resolvable:$true] %s129_s25 }
   0xd   : > { %s18909_s22 = scalar_select %p17439_p8, 1, 0 }
   0xe   : > { %s18910_s23 = scalar_select %p17444_p10, 1, 0 }
   0xf   : > { %p15969_p11 = pneg %p17444_p10  ;;  %p15978_p12 = scmp.lt.s32.totalorder %s17367_s15, 2 }
  0x10   : > { %s149_s26 = sand.u32 1, %s17363_s14   ;;  %s14325_s30 = smul.u32 150528, %s17367_s15 }
  0x11   : > { %p17454_p13 = pnand %p15969_p11, %p18904_p5  ;;  %p17460_p0 = pnand %p15978_p12, %p17430_p4 }
  0x12   : > { %s15961_s29 = smul.u32 9408, %s149_s26  ;;  %s17271_s6 = scalar_lea.hbm %s18902_s2, 16 }
  0x13   : > { %s18912_s28 = scalar_select %p17460_p0, 1, 0 }
  0x14   : > { %p17272_p1 = scmp.ne.s32.totalorder %s18902_s2, %s17271_s6  ;;  %p17273_p2 = pneg %p17454_p13 }
  0x15   : > { %p17278_p4 = scmp.lt.u32.totalorder %s17271_s6, %s18902_s2 }
  0x16   : > { %p17274_p3 = pnand %p17273_p2, %p17272_p1 }
  0x18   : > { %p17275_p6 = pneg %p17274_p3 }
  0x1a   : > { %p17280_p7 = pnand %p17278_p4, %p17275_p6 }
  0x1c   : > { %17283 = shalt.err (!%p17280_p7)
}
  0x1d   : > { %s17284_s11 = scalar_lea.vmem %s130_s25, 16  ;;  %s17291_s12 = scalar_lea.vmem %s130_s25, 32 }
  0x1e   : > { %p17285_p11 = scmp.ne.s32.totalorder %s130_s25, %s17284_s11  ;;  %p17292_p5 = scmp.lt.s32.totalorder %s130_s25, %s130_s25 }
  0x1f   : > { %p17293_p8 = scmp.lt.s32.totalorder %s17291_s12, %s17284_s11 }
  0x20   : > { %p17287_p12 = pnand %p17285_p11, %p17273_p2 }
  0x21   : > { %p17294_p10 = por %p17293_p8, %p17292_p5 }
  0x22   : > { %p17288_p9 = pneg %p17287_p12 }
  0x24   : > { %p17295_p0 = pnand %p17294_p10, %p17288_p9 }
  0x26   : > { %17298 = shalt.err (!%p17295_p0)
}
  0x27   : > { %15972 = dma.hbm_to_vmem [thread:$0]  (!%p17454_p13), %s18902_s2, 16, %s130_s25, [#allocation6]  }
  0x28   : > { %s17484_s24 = scalar_lea.hbm %s18901_s1, %s14325_s30  ;;  %s153_s4 = scalar_lea.vmem [#allocation3], %s15961_s29 }
  0x29   : > { %s160_s5 = sshll.u32 %s153_s4, 4  ;;  %s17488_s27 = scalar_lea.sflag [#allocation4], %s149_s26  ;;  %s17486_s5 = int_to_ptr.vmem [resolvable:$true] %s160_s5 }
  0x2a   : > { %s17299_s6 = scalar_lea.hbm %s17484_s24, 150528  ;;  %p18913_p8 = scmp.ne.s32.totalorder %s18912_s28, 0 }
  0x2b   : > { %p17300_p5 = scmp.ne.s32.totalorder %s17484_s24, %s17299_s6  ;;  %s17304_s7 = scalar_lea.hbm %s18901_s1, 301056 }
  0x2c   : > { %p17301_p9 = pneg %p18913_p8  ;;  %p17305_p0 = scmp.lt.u32.totalorder %s17484_s24, %s18901_s1 }
  0x2d   : > { %p17306_p1 = scmp.lt.u32.totalorder %s17304_s7, %s17299_s6  ;;  %p17308_p3 = scmp.lt.u32.totalorder %s17299_s6, %s17484_s24 }
  0x2e   : > { %p17302_p10 = pnand %p17301_p9, %p17300_p5 }
  0x2f   : > { %p17307_p2 = por %p17306_p1, %p17305_p0 }
  0x30   : > { %p17303_p13 = pneg %p17302_p10 }
  0x31   : > { %p17309_p6 = por %p17308_p3, %p17307_p2 }
  0x33   : > { %p17310_p4 = pnand %p17309_p6, %p17303_p13 }
  0x35   : > { %17313 = shalt.err (!%p17310_p4)
}
  0x36   : > { %s17314_s26 = scalar_lea.vmem %s17486_s5, 150528  ;;  %s17370_s29 = smov [#allocation3]  }
  0x37   : > { %p17315_p7 = scmp.ne.s32.totalorder %s17486_s5, %s17314_s26  ;;  %s17319_s10 = sshll.u32 %s17370_s29, 4  ;;  %s17320_s10 = int_to_ptr.vmem [resolvable:$false] %s17319_s10 }
  0x38   : > { %s17321_s11 = scalar_lea.vmem %s17320_s10, 301056  ;;  %p17322_p5 = scmp.lt.s32.totalorder %s17486_s5, %s17320_s10 }
  0x39   : > { %p17317_p11 = pnand %p17315_p7, %p17301_p9  ;;  %p17323_p10 = scmp.lt.s32.totalorder %s17321_s11, %s17314_s26 }
  0x3b   : > { %p17318_p12 = pneg %p17317_p11  ;;  %p17324_p0 = por %p17323_p10, %p17322_p5 }
  0x3d   : > { %p17325_p1 = pnand %p17324_p0, %p17318_p12 }
  0x3f   : > { %17328 = shalt.err (!%p17325_p1)
}
  0x40   : > { %s17371_s12 = smov 64   ;;  %s17372_s15 = smov 4  }
  0x41   : > { %15976 = dma.hbm_to_vmem [thread:$0]  (!%p18913_p8), %s17484_s24, 150528, %s17486_s5, %s17488_s27, %s17371_s12, %s17371_s12, %s17372_s15  }
  0x42   : > { %p18914_p9 = scmp.ne.s32.totalorder %s18910_s23, 0 }
  0x43   : > { %s174_s18 = sand.u32 (!%p18914_p9), 1, %s17359_s13   ;;  %p18915_p13 = scmp.ne.s32.totalorder (!%p18914_p9), %s18909_s22, 0 }
  0x44   : > { %172 = sbr.rel (%p18914_p9) target bundleno = 1689 (0x699), region = 32  ;;  %s175_s21 = scalar_lea.sflag (!%p18914_p9), [#allocation4], %s174_s18 }
  0x45   : > { %s15962_s19 = smul.u32 (!%p18914_p9), 9408, %s174_s18 }
  0x47   : > { %s17519_s4 = scalar_lea.vmem (!%p18914_p9), [#allocation3], %s15962_s19 }
  0x4b   : > { %17346 = dma.done.wait (%p18915_p13), %s175_s21, 150528  }
  0x4c   : > { %17348 = vsyncadd (%p18915_p13), %s175_s21, 4294816768  ;;  %p18916_p2 = scmp.eq.s32.totalorder %s17415_s16, 0 }
  0x4e   : > { %17350 = dma.done.wait (%p18916_p2), [#allocation6], 16   ;;  %p18917_p8 = pmov %p18916_p2 }
  0x4f   : > { %s205_s23 = smul.u32 147, %s17415_s16  ;;  %p18918_p6 = scmp.ne.s32.totalorder %s17415_s16, 0 }
  0x50   : > { %17352 = vsyncadd (%p18917_p8), [#allocation6], 4294967280  ;;  %v17373_v0 = vmov (!%p18918_p6), 0.0  }
  0x51   : > { %p206_p3 = scmp.lt.s32.totalorder %s205_s23, 293  ;;  %216 = sbr.rel (%p18918_p6) target bundleno = 88 (0x58), region = 44  ;;  %217 = vst [vmem:[#allocation2] sm:$0xf] (!%p18918_p6), %v17373_v0 }
  0x53   : > { %s18924_s23 = smov (!%p206_p3, %s205_s23), 293 }
  0x54   : > { %s13143_s28 = sshll.u32 %s18924_s23, 2 }
  0x55   : > { %s17533_s27 = scalar_lea.vmem %s18900_s0, %s13143_s28 }
  0x58 PF: > { %v16018_v1 = vld [vmem:[%s17519_s4 + $0x40] sm:$0xff]   ;;  %v16022_v5 = vld [vmem:[%s17519_s4 + $0x48] sm:$0xff]   ;;  %v16026_v9 = vld [vmem:[%s17519_s4 + $0x50] sm:$0xff]   ;;  %vm17375_vm0 = vmmov 0   ;;  %p14321_p4 = scmp.ne.s32.totalorder %s17415_s16, 1 }
  0x59   : > { %v16019_v2 = vld [vmem:[%s17519_s4 + $0xc0] sm:$0xff]   ;;  %14326 = vmatprep.subr.bf16.mxu0 %v16018_v1  ;;  %v16023_v6 = vld [vmem:[%s17519_s4 + $0xc8] sm:$0xff]   ;;  %v16027_v10 = vld [vmem:[%s17519_s4 + $0xd0] sm:$0xff]   ;;  %vm13054_vm1 = vcmask (!%p14321_p4), 1043458   ;;  %vm13046_vm2 = vcmask (!%p14321_p4), 1041408   ;;  %vm13073_vm5 = vcmask (!%p14321_p4), 1024  }
  0x5a   : > { %v16020_v3 = vld [vmem:[%s17519_s4] sm:$0xff]   ;;  %14348 = vmatprep.subr.bf16.mxu1 %v16019_v2  ;;  %v16024_v7 = vld [vmem:[%s17519_s4 + $0x8] sm:$0xff]   ;;  %v16028_v11 = vld [vmem:[%s17519_s4 + $0x10] sm:$0xff]  }
  0x5b   : > { %v16021_v4 = vld [vmem:[%s17519_s4 + $0x80] sm:$0xff]   ;;  %14327 = vmatpush3.bf16.msra.mxu0 %v16020_v3  ;;  %v16025_v8 = vld [vmem:[%s17519_s4 + $0x88] sm:$0xff]   ;;  %v16029_v12 = vld [vmem:[%s17519_s4 + $0x90] sm:$0xff]  }
  0x5c   : > { %14349 = vmatpush3.bf16.msra.mxu1 %v16021_v4  ;;  %14328 = vmatprep.subr.bf16.mxu0 %v16022_v5  ;;  %v16030_v13 = vld [vmem:[%s17519_s4 + $0x58] sm:$0xff]   ;;  %v16034_v17 = vld [vmem:[%s17519_s4 + $0x60] sm:$0xff]   ;;  %v16038_v21 = vld [vmem:[%s17519_s4 + $0x68] sm:$0xff]  }
  0x5d   : > { %14350 = vmatprep.subr.bf16.mxu1 %v16023_v6  ;;  %v16031_v14 = vld [vmem:[%s17519_s4 + $0xd8] sm:$0xff]   ;;  %v16035_v18 = vld [vmem:[%s17519_s4 + $0xe0] sm:$0xff]   ;;  %v16039_v22 = vld [vmem:[%s17519_s4 + $0xe8] sm:$0xff]  }
  0x5e   : > { %v16032_v15 = vld [vmem:[%s17519_s4 + $0x18] sm:$0xff]   ;;  %v16036_v19 = vld [vmem:[%s17519_s4 + $0x20] sm:$0xff]   ;;  %v16040_v23 = vld [vmem:[%s17519_s4 + $0x28] sm:$0xff]  }
  0x5f   : > { %14329 = vmatpush3.bf16.msra.mxu0 %v16024_v7  ;;  %v16033_v16 = vld [vmem:[%s17519_s4 + $0x98] sm:$0xff]   ;;  %v16037_v20 = vld [vmem:[%s17519_s4 + $0xa0] sm:$0xff]   ;;  %v16041_v24 = vld [vmem:[%s17519_s4 + $0xa8] sm:$0xff]  }
  0x60   : > { %14351 = vmatpush3.bf16.msra.mxu1 %v16025_v8  ;;  %14330 = vmatprep.subr.bf16.mxu0 %v16026_v9  ;;  %v16042_v25 = vld [vmem:[%s17519_s4 + $0x70] sm:$0xff]   ;;  %v16046_v29 = vld [vmem:[%s17519_s4 + $0x78] sm:$0xff]   ;;  %v220_v34 = vld [vmem:[%s17533_s27 + $0x8] sm:$0xff] }
  0x61   : > { %14352 = vmatprep.subr.bf16.mxu1 %v16027_v10  ;;  %v16043_v26 = vld [vmem:[%s17519_s4 + $0xf0] sm:$0xff]   ;;  %v16047_v30 = vld [vmem:[%s17519_s4 + $0xf8] sm:$0xff]   ;;  %v367_v36 = vcombine.high %v220_v34, %v220_v34  ;;  %v16052_v37 = vld [vmem:[%s17519_s4 + $0x140] sm:$0xff]   ;;  %v514_v39 = vpack.c.bf16 %v220_v34, %v220_v34 }
  0x62   : > { %v16044_v27 = vld [vmem:[%s17519_s4 + $0x30] sm:$0xff]   ;;  %v16048_v31 = vld [vmem:[%s17519_s4 + $0x38] sm:$0xff]   ;;  %v16053_v40 = vld [vmem:[%s17519_s4 + $0x100] sm:$0xff]  }
  0x63   : > { %14331 = vmatpush3.bf16.msra.mxu0 %v16028_v11  ;;  %v16045_v28 = vld [vmem:[%s17519_s4 + $0xb0] sm:$0xff]   ;;  %v16049_v32 = vld [vmem:[%s17519_s4 + $0xb8] sm:$0xff]   ;;  %v515_v42 = vpack.c.bf16 %v367_v36, %v367_v36  ;;  %v16054_v43 = vld [vmem:[%s17519_s4 + $0x1c0] sm:$0xff]  }
  0x64   : > { %14353 = vmatpush3.bf16.msra.mxu1 %v16029_v12  ;;  %14332 = vmatprep.subr.bf16.mxu0 %v16030_v13  ;;  %v219_v33 = vld [vmem:[%s17533_s27] sm:$0xff]  ;;  %v16056_v45 = vld [vmem:[%s17519_s4 + $0x148] sm:$0xff]   ;;  %v16060_v49 = vld [vmem:[%s17519_s4 + $0x150] sm:$0xff]  }
  0x65   : > { %14354 = vmatprep.subr.bf16.mxu1 %v16031_v14  ;;  %v366_v35 = vcombine.high %v219_v33, %v219_v33  ;;  %v512_v38 = vpack.c.bf16 %v219_v33, %v219_v33  ;;  %v16055_v44 = vld [vmem:[%s17519_s4 + $0x180] sm:$0xff]   ;;  %10139 = vmatprep.mubr.bf16.mxu1 %v515_v42  ;;  %v16057_v46 = vld [vmem:[%s17519_s4 + $0x108] sm:$0xff]   ;;  %v16061_v50 = vld [vmem:[%s17519_s4 + $0x110] sm:$0xff]  }
  0x66   : > { %v16058_v47 = vld [vmem:[%s17519_s4 + $0x1c8] sm:$0xff]   ;;  %v16062_v51 = vld [vmem:[%s17519_s4 + $0x1d0] sm:$0xff]   ;;  %v16064_v53 = vld [vmem:[%s17519_s4 + $0x158] sm:$0xff]  }
  0x67   : > { %14333 = vmatpush3.bf16.msra.mxu0 %v16032_v15  ;;  %v513_v41 = vpack.c.bf16 %v366_v35, %v366_v35  ;;  %v16059_v48 = vld [vmem:[%s17519_s4 + $0x188] sm:$0xff]   ;;  %v16063_v52 = vld [vmem:[%s17519_s4 + $0x190] sm:$0xff]   ;;  %v16065_v54 = vld [vmem:[%s17519_s4 + $0x118] sm:$0xff]  }
  0x68   : > { %14355 = vmatpush3.bf16.msra.mxu1 %v16033_v16  ;;  %14334 = vmatprep.subr.bf16.mxu0 %v16034_v17  ;;  %v16066_v55 = vld [vmem:[%s17519_s4 + $0x1d8] sm:$0xff]   ;;  %v16068_v57 = vld [vmem:[%s17519_s4 + $0x160] sm:$0xff]   ;;  %v16072_v61 = vld [vmem:[%s17519_s4 + $0x168] sm:$0xff]  }
  0x69   : > { %14356 = vmatprep.subr.bf16.mxu1 %v16035_v18  ;;  %10099 = vmatprep.mubr.bf16.mxu0 %v513_v41  ;;  %v16067_v56 = vld [vmem:[%s17519_s4 + $0x198] sm:$0xff]   ;;  %v16069_v58 = vld [vmem:[%s17519_s4 + $0x120] sm:$0xff]   ;;  %v16073_v62 = vld [vmem:[%s17519_s4 + $0x128] sm:$0xff]  }
  0x6a   : > { %v16070_v59 = vld [vmem:[%s17519_s4 + $0x1e0] sm:$0xff]   ;;  %v16074_v63 = vld [vmem:[%s17519_s4 + $0x1e8] sm:$0xff]   ;;  %v16076_v1 = vld [vmem:[%s17519_s4 + $0x170] sm:$0xff]  }
  0x6b   : > { %14335 = vmatpush3.bf16.msra.mxu0 %v16036_v19  ;;  %v16071_v60 = vld [vmem:[%s17519_s4 + $0x1a0] sm:$0xff]   ;;  %v16075_v0 = vld [vmem:[%s17519_s4 + $0x1a8] sm:$0xff]   ;;  %v16077_v2 = vld [vmem:[%s17519_s4 + $0x130] sm:$0xff]  }
  0x6c   : > { %14357 = vmatpush3.bf16.msra.mxu1 %v16037_v20  ;;  %14336 = vmatprep.subr.bf16.mxu0 %v16038_v21  ;;  %v16078_v3 = vld [vmem:[%s17519_s4 + $0x1f0] sm:$0xff]   ;;  %v16080_v5 = vld [vmem:[%s17519_s4 + $0x178] sm:$0xff]   ;;  %v16085_v11 = vld [vmem:[%s17519_s4 + $0x240] sm:$0xff]  }
  0x6d   : > { %14358 = vmatprep.subr.bf16.mxu1 %v16039_v22  ;;  %v16079_v4 = vld [vmem:[%s17519_s4 + $0x1b0] sm:$0xff]   ;;  %v16081_v6 = vld [vmem:[%s17519_s4 + $0x138] sm:$0xff]   ;;  %v16087_v16 = vld [vmem:[%s17519_s4 + $0x200] sm:$0xff]  }
  0x6e   : > { %v16082_v7 = vld [vmem:[%s17519_s4 + $0x1f8] sm:$0xff]   ;;  %v221_v8 = vld [vmem:[%s17533_s27 + $0x10] sm:$0xff]  ;;  %v16088_v18 = vld [vmem:[%s17519_s4 + $0x2c0] sm:$0xff]  }
  0x6f   : > { %14337 = vmatpush3.bf16.msra.mxu0 %v16040_v23  ;;  %v368_v9 = vcombine.high %v221_v8, %v221_v8  ;;  %v16084_v10 = vld [vmem:[%s17519_s4 + $0x1b8] sm:$0xff]   ;;  %v516_v12 = vpack.c.bf16 %v221_v8, %v221_v8  ;;  %v16089_v20 = vld [vmem:[%s17519_s4 + $0x280] sm:$0xff]   ;;  %v16090_v21 = vld [vmem:[%s17519_s4 + $0x248] sm:$0xff]  }
  0x70   : > { %14359 = vmatpush3.bf16.msra.mxu1 %v16041_v24  ;;  %14338 = vmatprep.subr.bf16.mxu0 %v16042_v25  ;;  %v222_v14 = vld [vmem:[%s17533_s27 + $0x18] sm:$0xff]  ;;  %v16091_v22 = vld [vmem:[%s17519_s4 + $0x208] sm:$0xff]   ;;  %v16102_v33 = vld [vmem:[%s17519_s4 + $0x260] sm:$0xff]  }
  0x71   : > { %14360 = vmatprep.subr.bf16.mxu1 %v16043_v26  ;;  %v517_v13 = vpack.c.bf16 %v368_v9, %v368_v9  ;;  %v369_v15 = vcombine.high %v222_v14, %v222_v14  ;;  %v518_v17 = vpack.c.bf16 %v222_v14, %v222_v14  ;;  %v16092_v23 = vld [vmem:[%s17519_s4 + $0x2c8] sm:$0xff]   ;;  %v16094_v25 = vld [vmem:[%s17519_s4 + $0x250] sm:$0xff]   ;;  %v16103_v34 = vld [vmem:[%s17519_s4 + $0x220] sm:$0xff]  }
  0x72   : > { %v16093_v24 = vld [vmem:[%s17519_s4 + $0x288] sm:$0xff]   ;;  %v16095_v26 = vld [vmem:[%s17519_s4 + $0x210] sm:$0xff]   ;;  %v16104_v35 = vld [vmem:[%s17519_s4 + $0x2e0] sm:$0xff]  }
  0x73   : > { %14339 = vmatpush3.bf16.msra.mxu0 %v16044_v27  ;;  %v519_v19 = vpack.c.bf16 %v369_v15, %v369_v15  ;;  %v16096_v27 = vld [vmem:[%s17519_s4 + $0x2d0] sm:$0xff]   ;;  %v16105_v36 = vld [vmem:[%s17519_s4 + $0x2a0] sm:$0xff]   ;;  %v16135_v8 = vld [vmem:[%s17519_s4 + $0x398] sm:$0xff]  }
  0x74   : > { %14361 = vmatpush3.bf16.msra.mxu1 %v16045_v28  ;;  %14340 = vmatprep.subr.bf16.mxu0 %v16046_v29  ;;  %v16097_v28 = vld [vmem:[%s17519_s4 + $0x290] sm:$0xff]   ;;  %v16098_v29 = vld [vmem:[%s17519_s4 + $0x258] sm:$0xff]   ;;  %v16136_v9 = vld [vmem:[%s17519_s4 + $0x360] sm:$0xff]  }
  0x75   : > { %14362 = vmatprep.subr.bf16.mxu1 %v16047_v30  ;;  %v16099_v30 = vld [vmem:[%s17519_s4 + $0x218] sm:$0xff]   ;;  %v16110_v41 = vld [vmem:[%s17519_s4 + $0x270] sm:$0xff]   ;;  %v16141_v14 = vld [vmem:[%s17519_s4 + $0x328] sm:$0xff]  }
  0x76   : > { %v16111_v42 = vld [vmem:[%s17519_s4 + $0x230] sm:$0xff]   ;;  %v16142_v15 = vld [vmem:[%s17519_s4 + $0x3e8] sm:$0xff]  }
  0x77   : > { %14341 = vmatpush3.bf16.msra.mxu0 %v16048_v31  ;;  %v16100_v31 = vld [vmem:[%s17519_s4 + $0x2d8] sm:$0xff]  }
  0x78   : > { %14363 = vmatpush3.bf16.msra.mxu1 %v16049_v32  ;;  %14370 = vmatprep.subr.bf16.mxu0 %v16052_v37  ;;  %v16101_v32 = vld [vmem:[%s17519_s4 + $0x298] sm:$0xff]   ;;  %v16106_v37 = vld [vmem:[%s17519_s4 + $0x268] sm:$0xff]  }
  0x79   : > { %14392 = vmatprep.subr.bf16.mxu1 %v16054_v43  ;;  %v16112_v43 = vld [vmem:[%s17519_s4 + $0x2f0] sm:$0xff]  }
  0x7a   : > { %10100 = vmatmul.mubr.bf16.vlgmr.msra.gmra.mrb[0].mxu0 %v512_v38  ;;  %v16107_v38 = vld [vmem:[%s17519_s4 + $0x228] sm:$0xff]  }
  0x7b   : > { %10140 = vmatmul.mubr.bf16.vlgmr.msra.gmra.mrb[0].mxu1 %v514_v39  ;;  %14371 = vmatpush3.bf16.msra.mxu0 %v16053_v40  ;;  %v16108_v39 = vld [vmem:[%s17519_s4 + $0x2e8] sm:$0xff]  }
  0x7c   : > { %14393 = vmatpush3.bf16.msra.mxu1 %v16055_v44  ;;  %14372 = vmatprep.subr.bf16.mxu0 %v16056_v45  ;;  %v16109_v40 = vld [vmem:[%s17519_s4 + $0x2a8] sm:$0xff]   ;;  %v16113_v44 = vld [vmem:[%s17519_s4 + $0x2b0] sm:$0xff]   ;;  %v16114_v45 = vld [vmem:[%s17519_s4 + $0x278] sm:$0xff]  }
  0x7d   : > { %14394 = vmatprep.subr.bf16.mxu1 %v16058_v47  ;;  %10179 = vmatprep.mubr.bf16.mxu0 %v517_v13  ;;  %v16116_v47 = vld [vmem:[%s17519_s4 + $0x2f8] sm:$0xff]   ;;  %v16140_v13 = vld [vmem:[%s17519_s4 + $0x368] sm:$0xff]  }
  0x7e   : > { %10219 = vmatprep.mubr.bf16.mxu1 %v519_v19  ;;  %v16146_v19 = vld [vmem:[%s17519_s4 + $0x3f0] sm:$0xff]  }
  0x7f   : > { %14373 = vmatpush3.bf16.msra.mxu0 %v16057_v46  ;;  %v16115_v46 = vld [vmem:[%s17519_s4 + $0x238] sm:$0xff]  }
  0x80   : > { %14395 = vmatpush3.bf16.msra.mxu1 %v16059_v48  ;;  %14374 = vmatprep.subr.bf16.mxu0 %v16060_v49  ;;  %v223_v48 = vld [vmem:[%s17533_s27 + $0x20] sm:$0xff] }
  0x81   : > { %14396 = vmatprep.subr.bf16.mxu1 %v16062_v51  ;;  %v370_v49 = vcombine.high %v223_v48, %v223_v48  ;;  %v520_v51 = vpack.c.bf16 %v223_v48, %v223_v48  ;;  %v16169_v48 = vld [vmem:[%s17519_s4 + $0x498] sm:$0xff]  }
  0x83   : > { %14375 = vmatpush3.bf16.msra.mxu0 %v16061_v50  ;;  %v16118_v50 = vld [vmem:[%s17519_s4 + $0x2b8] sm:$0xff]  }
  0x84   : > { %14397 = vmatpush3.bf16.msra.mxu1 %v16063_v52  ;;  %14376 = vmatprep.subr.bf16.mxu0 %v16064_v53  ;;  %v16119_v52 = vld [vmem:[%s17519_s4 + $0x340] sm:$0xff]  }
  0x85   : > { %14398 = vmatprep.subr.bf16.mxu1 %v16066_v55  ;;  %v224_v53 = vld [vmem:[%s17533_s27 + $0x28] sm:$0xff] }
  0x86   : > { %v371_v55 = vcombine.high %v224_v53, %v224_v53 }
  0x87   : > { %14377 = vmatpush3.bf16.msra.mxu0 %v16065_v54  ;;  %v521_v54 = vpack.c.bf16 %v370_v49, %v370_v49  ;;  %v16170_v49 = vld [vmem:[%s17519_s4 + $0x460] sm:$0xff]  }
  0x88   : > { %14399 = vmatpush3.bf16.msra.mxu1 %v16067_v56  ;;  %14378 = vmatprep.subr.bf16.mxu0 %v16068_v57  ;;  %v16121_v56 = vld [vmem:[%s17519_s4 + $0x300] sm:$0xff]   ;;  %v522_v57 = vpack.c.bf16 %v224_v53, %v224_v53  ;;  %v16174_v53 = vld [vmem:[%s17519_s4 + $0x468] sm:$0xff]  }
  0x89   : > { %14400 = vmatprep.subr.bf16.mxu1 %v16070_v59  ;;  %v523_v59 = vpack.c.bf16 %v371_v55, %v371_v55  ;;  %v16176_v55 = vld [vmem:[%s17519_s4 + $0x4e8] sm:$0xff]  }
  0x8b   : > { %14379 = vmatpush3.bf16.msra.mxu0 %v16069_v58  ;;  %v16122_v58 = vld [vmem:[%s17519_s4 + $0x3c0] sm:$0xff]  }
  0x8c   : > { %14401 = vmatpush3.bf16.msra.mxu1 %v16071_v60  ;;  %14380 = vmatprep.subr.bf16.mxu0 %v16072_v61  ;;  %v16123_v60 = vld [vmem:[%s17519_s4 + $0x380] sm:$0xff]   ;;  %v16124_v61 = vld [vmem:[%s17519_s4 + $0x348] sm:$0xff]  }
  0x8d   : > { %14402 = vmatprep.subr.bf16.mxu1 %v16074_v63  ;;  %v16126_v63 = vld [vmem:[%s17519_s4 + $0x3c8] sm:$0xff]  }
  0x8f   : > { %14381 = vmatpush3.bf16.msra.mxu0 %v16073_v62  ;;  %v16125_v62 = vld [vmem:[%s17519_s4 + $0x308] sm:$0xff]  }
  0x90   : > { %14403 = vmatpush3.bf16.msra.mxu1 %v16075_v0  ;;  %14382 = vmatprep.subr.bf16.mxu0 %v16076_v1  ;;  %v16127_v0 = vld [vmem:[%s17519_s4 + $0x388] sm:$0xff]   ;;  %v16128_v1 = vld [vmem:[%s17519_s4 + $0x350] sm:$0xff]  }
  0x91   : > { %14404 = vmatprep.subr.bf16.mxu1 %v16078_v3  ;;  %v16130_v3 = vld [vmem:[%s17519_s4 + $0x3d0] sm:$0xff]  }
  0x93   : > { %14383 = vmatpush3.bf16.msra.mxu0 %v16077_v2  ;;  %v16129_v2 = vld [vmem:[%s17519_s4 + $0x310] sm:$0xff]  }
  0x94   : > { %14405 = vmatpush3.bf16.msra.mxu1 %v16079_v4  ;;  %14384 = vmatprep.subr.bf16.mxu0 %v16080_v5  ;;  %v16131_v4 = vld [vmem:[%s17519_s4 + $0x390] sm:$0xff]   ;;  %v16132_v5 = vld [vmem:[%s17519_s4 + $0x358] sm:$0xff]  }
  0x95   : > { %14406 = vmatprep.subr.bf16.mxu1 %v16082_v7  ;;  %v16134_v7 = vld [vmem:[%s17519_s4 + $0x3d8] sm:$0xff]  }
  0x97   : > { %14385 = vmatpush3.bf16.msra.mxu0 %v16081_v6  ;;  %v16133_v6 = vld [vmem:[%s17519_s4 + $0x318] sm:$0xff]  }
  0x98   : > { %14407 = vmatpush3.bf16.msra.mxu1 %v16084_v10  ;;  %14414 = vmatprep.subr.bf16.mxu0 %v16085_v11  ;;  %v16137_v10 = vld [vmem:[%s17519_s4 + $0x320] sm:$0xff]  }
  0x99   : > { %14436 = vmatprep.subr.bf16.mxu1 %v16088_v18  ;;  %v16138_v11 = vld [vmem:[%s17519_s4 + $0x3e0] sm:$0xff]   ;;  %v16145_v18 = vld [vmem:[%s17519_s4 + $0x330] sm:$0xff]  }
  0x9a   : > { %10180 = vmatmul.mubr.bf16.vlgmr.msra.gmra.mrb[4].mxu0 %v516_v12  ;;  %v16139_v12 = vld [vmem:[%s17519_s4 + $0x3a0] sm:$0xff]  }
  0x9b   : > { %14415 = vmatpush3.bf16.msra.mxu0 %v16087_v16  ;;  %10220 = vmatmul.mubr.bf16.vlgmr.msra.gmra.mrb[4].mxu1 %v518_v17  ;;  %v16143_v16 = vld [vmem:[%s17519_s4 + $0x3a8] sm:$0xff]   ;;  %v16144_v17 = vld [vmem:[%s17519_s4 + $0x370] sm:$0xff]  }
  0x9c   : > { %14416 = vmatprep.subr.bf16.mxu0 %v16090_v21  ;;  %14437 = vmatpush3.bf16.msra.mxu1 %v16089_v20  ;;  %v16147_v20 = vld [vmem:[%s17519_s4 + $0x3b0] sm:$0xff]   ;;  %v16148_v21 = vld [vmem:[%s17519_s4 + $0x378] sm:$0xff]  }
  0x9d   : > { %14438 = vmatprep.subr.bf16.mxu1 %v16092_v23  ;;  %10259 = vmatprep.mubr.bf16.mxu0 %v521_v54  ;;  %v16150_v23 = vld [vmem:[%s17519_s4 + $0x3f8] sm:$0xff]   ;;  %v16175_v54 = vld [vmem:[%s17519_s4 + $0x428] sm:$0xff]  }
  0x9e   : > { %10299 = vmatprep.mubr.bf16.mxu1 %v523_v59  ;;  %v16180_v59 = vld [vmem:[%s17519_s4 + $0x4f0] sm:$0xff]  }
  0x9f   : > { %14417 = vmatpush3.bf16.msra.mxu0 %v16091_v22  ;;  %v16149_v22 = vld [vmem:[%s17519_s4 + $0x338] sm:$0xff]  }
  0xa0   : > { %14418 = vmatprep.subr.bf16.mxu0 %v16094_v25  ;;  %14439 = vmatpush3.bf16.msra.mxu1 %v16093_v24  ;;  %v225_v24 = vld [vmem:[%s17533_s27 + $0x30] sm:$0xff] }
  0xa1   : > { %14440 = vmatprep.subr.bf16.mxu1 %v16096_v27  ;;  %v372_v25 = vcombine.high %v225_v24, %v225_v24  ;;  %v524_v27 = vpack.c.bf16 %v225_v24, %v225_v24  ;;  %v16203_v24 = vld [vmem:[%s17519_s4 + $0x598] sm:$0xff]  }
  0xa3   : > { %14419 = vmatpush3.bf16.msra.mxu0 %v16095_v26  ;;  %v16152_v26 = vld [vmem:[%s17519_s4 + $0x3b8] sm:$0xff]  }
  0xa4   : > { %14420 = vmatprep.subr.bf16.mxu0 %v16098_v29  ;;  %14441 = vmatpush3.bf16.msra.mxu1 %v16097_v28  ;;  %v16153_v28 = vld [vmem:[%s17519_s4 + $0x440] sm:$0xff]   ;;  %v226_v29 = vld [vmem:[%s17533_s27 + $0x38] sm:$0xff] }
  0xa5   : > { %14442 = vmatprep.subr.bf16.mxu1 %v16100_v31  ;;  %v373_v31 = vcombine.high %v226_v29, %v226_v29 }
  0xa7   : > { %14421 = vmatpush3.bf16.msra.mxu0 %v16099_v30  ;;  %v525_v30 = vpack.c.bf16 %v372_v25, %v372_v25  ;;  %v16204_v25 = vld [vmem:[%s17519_s4 + $0x560] sm:$0xff]  }
  0xa8   : > { %14422 = vmatprep.subr.bf16.mxu0 %v16102_v33  ;;  %14443 = vmatpush3.bf16.msra.mxu1 %v16101_v32  ;;  %v16155_v32 = vld [vmem:[%s17519_s4 + $0x400] sm:$0xff]   ;;  %v526_v33 = vpack.c.bf16 %v226_v29, %v226_v29  ;;  %v16208_v29 = vld [vmem:[%s17519_s4 + $0x568] sm:$0xff]  }
  0xa9   : > { %14444 = vmatprep.subr.bf16.mxu1 %v16104_v35  ;;  %v527_v35 = vpack.c.bf16 %v373_v31, %v373_v31  ;;  %v16210_v31 = vld [vmem:[%s17519_s4 + $0x5e8] sm:$0xff]  }
  0xab   : > { %14423 = vmatpush3.bf16.msra.mxu0 %v16103_v34  ;;  %v16156_v34 = vld [vmem:[%s17519_s4 + $0x4c0] sm:$0xff]  }
  0xac   : > { %14424 = vmatprep.subr.bf16.mxu0 %v16106_v37  ;;  %14445 = vmatpush3.bf16.msra.mxu1 %v16105_v36  ;;  %v16157_v36 = vld [vmem:[%s17519_s4 + $0x480] sm:$0xff]   ;;  %v16158_v37 = vld [vmem:[%s17519_s4 + $0x448] sm:$0xff]  }
  0xad   : > { %14446 = vmatprep.subr.bf16.mxu1 %v16108_v39  ;;  %v16160_v39 = vld [vmem:[%s17519_s4 + $0x4c8] sm:$0xff]  }
  0xaf   : > { %14425 = vmatpush3.bf16.msra.mxu0 %v16107_v38  ;;  %v16159_v38 = vld [vmem:[%s17519_s4 + $0x408] sm:$0xff]  }
  0xb0   : > { %14426 = vmatprep.subr.bf16.mxu0 %v16110_v41  ;;  %14447 = vmatpush3.bf16.msra.mxu1 %v16109_v40  ;;  %v16161_v40 = vld [vmem:[%s17519_s4 + $0x488] sm:$0xff]   ;;  %v16162_v41 = vld [vmem:[%s17519_s4 + $0x450] sm:$0xff]  }
  0xb1   : > { %14448 = vmatprep.subr.bf16.mxu1 %v16112_v43  ;;  %v16164_v43 = vld [vmem:[%s17519_s4 + $0x4d0] sm:$0xff]  }
  0xb3   : > { %14427 = vmatpush3.bf16.msra.mxu0 %v16111_v42  ;;  %v16163_v42 = vld [vmem:[%s17519_s4 + $0x410] sm:$0xff]  }
  0xb4   : > { %14428 = vmatprep.subr.bf16.mxu0 %v16114_v45  ;;  %14449 = vmatpush3.bf16.msra.mxu1 %v16113_v44  ;;  %v16165_v44 = vld [vmem:[%s17519_s4 + $0x490] sm:$0xff]   ;;  %v16166_v45 = vld [vmem:[%s17519_s4 + $0x458] sm:$0xff]  }
  0xb5   : > { %14450 = vmatprep.subr.bf16.mxu1 %v16116_v47  ;;  %v16168_v47 = vld [vmem:[%s17519_s4 + $0x4d8] sm:$0xff]  }
  0xb7   : > { %14429 = vmatpush3.bf16.msra.mxu0 %v16115_v46  ;;  %v16167_v46 = vld [vmem:[%s17519_s4 + $0x418] sm:$0xff]  }
  0xb8   : > { %14458 = vmatprep.subr.bf16.mxu0 %v16119_v52  ;;  %14451 = vmatpush3.bf16.msra.mxu1 %v16118_v50  ;;  %v16171_v50 = vld [vmem:[%s17519_s4 + $0x420] sm:$0xff]  }
  0xb9   : > { %14480 = vmatprep.subr.bf16.mxu1 %v16122_v58  ;;  %v16173_v52 = vld [vmem:[%s17519_s4 + $0x4a0] sm:$0xff]   ;;  %v16179_v58 = vld [vmem:[%s17519_s4 + $0x430] sm:$0xff]  }
  0xba   : > { %10260 = vmatmul.mubr.bf16.vlgmr.msra.gmra.mrb[8].mxu0 %v520_v51  ;;  %v16172_v51 = vld [vmem:[%s17519_s4 + $0x4e0] sm:$0xff]  }
  0xbb   : > { %14459 = vmatpush3.bf16.msra.mxu0 %v16121_v56  ;;  %10300 = vmatmul.mubr.bf16.vlgmr.msra.gmra.mrb[8].mxu1 %v522_v57  ;;  %v16177_v56 = vld [vmem:[%s17519_s4 + $0x4a8] sm:$0xff]   ;;  %v16178_v57 = vld [vmem:[%s17519_s4 + $0x470] sm:$0xff]  }
  0xbc   : > { %14460 = vmatprep.subr.bf16.mxu0 %v16124_v61  ;;  %14481 = vmatpush3.bf16.msra.mxu1 %v16123_v60  ;;  %v16181_v60 = vld [vmem:[%s17519_s4 + $0x4b0] sm:$0xff]   ;;  %v16182_v61 = vld [vmem:[%s17519_s4 + $0x478] sm:$0xff]  }
  0xbd   : > { %14482 = vmatprep.subr.bf16.mxu1 %v16126_v63  ;;  %10339 = vmatprep.mubr.bf16.mxu0 %v525_v30  ;;  %v16184_v63 = vld [vmem:[%s17519_s4 + $0x4f8] sm:$0xff]   ;;  %v16209_v30 = vld [vmem:[%s17519_s4 + $0x528] sm:$0xff]  }
  0xbe   : > { %10379 = vmatprep.mubr.bf16.mxu1 %v527_v35  ;;  %v16214_v35 = vld [vmem:[%s17519_s4 + $0x5f0] sm:$0xff]  }
  0xbf   : > { %14461 = vmatpush3.bf16.msra.mxu0 %v16125_v62  ;;  %v16183_v62 = vld [vmem:[%s17519_s4 + $0x438] sm:$0xff]  }
  0xc0   : > { %14462 = vmatprep.subr.bf16.mxu0 %v16128_v1  ;;  %14483 = vmatpush3.bf16.msra.mxu1 %v16127_v0  ;;  %v227_v0 = vld [vmem:[%s17533_s27 + $0x40] sm:$0xff] }
  0xc1   : > { %14484 = vmatprep.subr.bf16.mxu1 %v16130_v3  ;;  %v374_v1 = vcombine.high %v227_v0, %v227_v0  ;;  %v528_v3 = vpack.c.bf16 %v227_v0, %v227_v0  ;;  %v16237_v0 = vld [vmem:[%s17519_s4 + $0x698] sm:$0xff]  }
  0xc3   : > { %14463 = vmatpush3.bf16.msra.mxu0 %v16129_v2  ;;  %v16186_v2 = vld [vmem:[%s17519_s4 + $0x4b8] sm:$0xff]  }
  0xc4   : > { %14464 = vmatprep.subr.bf16.mxu0 %v16132_v5  ;;  %14485 = vmatpush3.bf16.msra.mxu1 %v16131_v4  ;;  %v16187_v4 = vld [vmem:[%s17519_s4 + $0x540] sm:$0xff]   ;;  %v529_v5 = vpack.c.bf16 %v374_v1, %v374_v1 }
  0xc5   : > { %14486 = vmatprep.subr.bf16.mxu1 %v16134_v7  ;;  %v16238_v1 = vld [vmem:[%s17519_s4 + $0x660] sm:$0xff]  }
  0xc7   : > { %14465 = vmatpush3.bf16.msra.mxu0 %v16133_v6  ;;  %v228_v6 = vld [vmem:[%s17533_s27 + $0x48] sm:$0xff] }
  0xc8   : > { %14466 = vmatprep.subr.bf16.mxu0 %v16136_v9  ;;  %14487 = vmatpush3.bf16.msra.mxu1 %v16135_v8  ;;  %v375_v7 = vcombine.high %v228_v6, %v228_v6  ;;  %v16189_v8 = vld [vmem:[%s17519_s4 + $0x500] sm:$0xff]   ;;  %v530_v9 = vpack.c.bf16 %v228_v6, %v228_v6  ;;  %v16243_v6 = vld [vmem:[%s17519_s4 + $0x628] sm:$0xff]  }
  0xc9   : > { %14488 = vmatprep.subr.bf16.mxu1 %v16138_v11 }
  0xca   : > { %v531_v11 = vpack.c.bf16 %v375_v7, %v375_v7  ;;  %v16244_v7 = vld [vmem:[%s17519_s4 + $0x6e8] sm:$0xff]  }
  0xcb   : > { %14467 = vmatpush3.bf16.msra.mxu0 %v16137_v10  ;;  %v16190_v10 = vld [vmem:[%s17519_s4 + $0x5c0] sm:$0xff]  }
  0xcc   : > { %14468 = vmatprep.subr.bf16.mxu0 %v16140_v13  ;;  %14489 = vmatpush3.bf16.msra.mxu1 %v16139_v12  ;;  %v16191_v12 = vld [vmem:[%s17519_s4 + $0x580] sm:$0xff]   ;;  %v16192_v13 = vld [vmem:[%s17519_s4 + $0x548] sm:$0xff]  }
  0xcd   : > { %14490 = vmatprep.subr.bf16.mxu1 %v16142_v15  ;;  %v16194_v15 = vld [vmem:[%s17519_s4 + $0x5c8] sm:$0xff]  }
  0xcf   : > { %14469 = vmatpush3.bf16.msra.mxu0 %v16141_v14  ;;  %v16193_v14 = vld [vmem:[%s17519_s4 + $0x508] sm:$0xff]  }
  0xd0   : > { %14470 = vmatprep.subr.bf16.mxu0 %v16144_v17  ;;  %14491 = vmatpush3.bf16.msra.mxu1 %v16143_v16  ;;  %v16195_v16 = vld [vmem:[%s17519_s4 + $0x588] sm:$0xff]   ;;  %v16196_v17 = vld [vmem:[%s17519_s4 + $0x550] sm:$0xff]  }
  0xd1   : > { %14492 = vmatprep.subr.bf16.mxu1 %v16146_v19  ;;  %v16198_v19 = vld [vmem:[%s17519_s4 + $0x5d0] sm:$0xff]  }
  0xd3   : > { %14471 = vmatpush3.bf16.msra.mxu0 %v16145_v18  ;;  %v16197_v18 = vld [vmem:[%s17519_s4 + $0x510] sm:$0xff]  }
  0xd4   : > { %14472 = vmatprep.subr.bf16.mxu0 %v16148_v21  ;;  %14493 = vmatpush3.bf16.msra.mxu1 %v16147_v20  ;;  %v16199_v20 = vld [vmem:[%s17519_s4 + $0x590] sm:$0xff]   ;;  %v16200_v21 = vld [vmem:[%s17519_s4 + $0x558] sm:$0xff]  }
  0xd5   : > { %14494 = vmatprep.subr.bf16.mxu1 %v16150_v23  ;;  %v16202_v23 = vld [vmem:[%s17519_s4 + $0x5d8] sm:$0xff]  }
  0xd7   : > { %14473 = vmatpush3.bf16.msra.mxu0 %v16149_v22  ;;  %v16201_v22 = vld [vmem:[%s17519_s4 + $0x518] sm:$0xff]  }
  0xd8   : > { %14495 = vmatpush3.bf16.msra.mxu1 %v16152_v26  ;;  %14502 = vmatprep.subr.bf16.mxu0 %v16153_v28  ;;  %v16205_v26 = vld [vmem:[%s17519_s4 + $0x520] sm:$0xff]  }
  0xd9   : > { %14524 = vmatprep.subr.bf16.mxu1 %v16156_v34  ;;  %v16207_v28 = vld [vmem:[%s17519_s4 + $0x5a0] sm:$0xff]   ;;  %v16213_v34 = vld [vmem:[%s17519_s4 + $0x530] sm:$0xff]  }
  0xda   : > { %10340 = vmatmul.mubr.bf16.vlgmr.msra.gmra.mrb[12].mxu0 %v524_v27  ;;  %v16206_v27 = vld [vmem:[%s17519_s4 + $0x5e0] sm:$0xff]  }
  0xdb   : > { %14503 = vmatpush3.bf16.msra.mxu0 %v16155_v32  ;;  %10380 = vmatmul.mubr.bf16.vlgmr.msra.gmra.mrb[12].mxu1 %v526_v33  ;;  %v16211_v32 = vld [vmem:[%s17519_s4 + $0x5a8] sm:$0xff]   ;;  %v16212_v33 = vld [vmem:[%s17519_s4 + $0x570] sm:$0xff]  }
  0xdc   : > { %14504 = vmatprep.subr.bf16.mxu0 %v16158_v37  ;;  %14525 = vmatpush3.bf16.msra.mxu1 %v16157_v36  ;;  %v16215_v36 = vld [vmem:[%s17519_s4 + $0x5b0] sm:$0xff]   ;;  %v16216_v37 = vld [vmem:[%s17519_s4 + $0x578] sm:$0xff]  }
  0xdd   : > { %14526 = vmatprep.subr.bf16.mxu1 %v16160_v39  ;;  %10419 = vmatprep.mubr.bf16.mxu0 %v529_v5  ;;  %v16218_v39 = vld [vmem:[%s17519_s4 + $0x5f8] sm:$0xff]   ;;  %v16242_v5 = vld [vmem:[%s17519_s4 + $0x668] sm:$0xff]  }
  0xde   : > { %10459 = vmatprep.mubr.bf16.mxu1 %v531_v11  ;;  %v16248_v11 = vld [vmem:[%s17519_s4 + $0x6f0] sm:$0xff]  }
  0xdf   : > { %14505 = vmatpush3.bf16.msra.mxu0 %v16159_v38  ;;  %v16217_v38 = vld [vmem:[%s17519_s4 + $0x538] sm:$0xff]  }
  0xe0   : > { %14506 = vmatprep.subr.bf16.mxu0 %v16162_v41  ;;  %14527 = vmatpush3.bf16.msra.mxu1 %v16161_v40  ;;  %v229_v40 = vld [vmem:[%s17533_s27 + $0x50] sm:$0xff] }
  0xe1   : > { %14528 = vmatprep.subr.bf16.mxu1 %v16164_v43  ;;  %v376_v41 = vcombine.high %v229_v40, %v229_v40  ;;  %v532_v43 = vpack.c.bf16 %v229_v40, %v229_v40  ;;  %v16271_v40 = vld [vmem:[%s17519_s4 + $0x798] sm:$0xff]  }
  0xe3   : > { %14507 = vmatpush3.bf16.msra.mxu0 %v16163_v42  ;;  %v16220_v42 = vld [vmem:[%s17519_s4 + $0x5b8] sm:$0xff]  }
  0xe4   : > { %14508 = vmatprep.subr.bf16.mxu0 %v16166_v45  ;;  %14529 = vmatpush3.bf16.msra.mxu1 %v16165_v44  ;;  %v16221_v44 = vld [vmem:[%s17519_s4 + $0x640] sm:$0xff]   ;;  %v230_v45 = vld [vmem:[%s17533_s27 + $0x58] sm:$0xff] }
  0xe5   : > { %14530 = vmatprep.subr.bf16.mxu1 %v16168_v47  ;;  %v377_v47 = vcombine.high %v230_v45, %v230_v45 }
  0xe7   : > { %14509 = vmatpush3.bf16.msra.mxu0 %v16167_v46  ;;  %v533_v46 = vpack.c.bf16 %v376_v41, %v376_v41  ;;  %v16272_v41 = vld [vmem:[%s17519_s4 + $0x760] sm:$0xff]  }
  0xe8   : > { %14510 = vmatprep.subr.bf16.mxu0 %v16170_v49  ;;  %14531 = vmatpush3.bf16.msra.mxu1 %v16169_v48  ;;  %v16223_v48 = vld [vmem:[%s17519_s4 + $0x600] sm:$0xff]   ;;  %v534_v49 = vpack.c.bf16 %v230_v45, %v230_v45 }
  0xe9   : > { %14532 = vmatprep.subr.bf16.mxu1 %v16172_v51  ;;  %v535_v51 = vpack.c.bf16 %v377_v47, %v377_v47  ;;  %v16276_v47 = vld [vmem:[%s17519_s4 + $0x768] sm:$0xff]  }
  0xeb   : > { %14511 = vmatpush3.bf16.msra.mxu0 %v16171_v50  ;;  %v16224_v50 = vld [vmem:[%s17519_s4 + $0x6c0] sm:$0xff]  }
  0xec   : > { %14512 = vmatprep.subr.bf16.mxu0 %v16174_v53  ;;  %14533 = vmatpush3.bf16.msra.mxu1 %v16173_v52  ;;  %v16225_v52 = vld [vmem:[%s17519_s4 + $0x680] sm:$0xff]   ;;  %v16226_v53 = vld [vmem:[%s17519_s4 + $0x648] sm:$0xff]  }
  0xed   : > { %14534 = vmatprep.subr.bf16.mxu1 %v16176_v55  ;;  %v16228_v55 = vld [vmem:[%s17519_s4 + $0x6c8] sm:$0xff]  }
  0xef   : > { %14513 = vmatpush3.bf16.msra.mxu0 %v16175_v54  ;;  %v16227_v54 = vld [vmem:[%s17519_s4 + $0x608] sm:$0xff]  }
  0xf0   : > { %14514 = vmatprep.subr.bf16.mxu0 %v16178_v57  ;;  %14535 = vmatpush3.bf16.msra.mxu1 %v16177_v56  ;;  %v16229_v56 = vld [vmem:[%s17519_s4 + $0x688] sm:$0xff]   ;;  %v16230_v57 = vld [vmem:[%s17519_s4 + $0x650] sm:$0xff]  }
  0xf1   : > { %14536 = vmatprep.subr.bf16.mxu1 %v16180_v59  ;;  %v16232_v59 = vld [vmem:[%s17519_s4 + $0x6d0] sm:$0xff]  }
  0xf3   : > { %14515 = vmatpush3.bf16.msra.mxu0 %v16179_v58  ;;  %v16231_v58 = vld [vmem:[%s17519_s4 + $0x610] sm:$0xff]  }
  0xf4   : > { %14516 = vmatprep.subr.bf16.mxu0 %v16182_v61  ;;  %14537 = vmatpush3.bf16.msra.mxu1 %v16181_v60  ;;  %v16233_v60 = vld [vmem:[%s17519_s4 + $0x690] sm:$0xff]   ;;  %v16234_v61 = vld [vmem:[%s17519_s4 + $0x658] sm:$0xff]  }
  0xf5   : > { %14538 = vmatprep.subr.bf16.mxu1 %v16184_v63  ;;  %v16236_v63 = vld [vmem:[%s17519_s4 + $0x6d8] sm:$0xff]  }
  0xf7   : > { %14517 = vmatpush3.bf16.msra.mxu0 %v16183_v62  ;;  %v16235_v62 = vld [vmem:[%s17519_s4 + $0x618] sm:$0xff]  }
  0xf8   : > { %14546 = vmatprep.subr.bf16.mxu0 %v16187_v4  ;;  %14539 = vmatpush3.bf16.msra.mxu1 %v16186_v2  ;;  %v16239_v2 = vld [vmem:[%s17519_s4 + $0x620] sm:$0xff]  }
  0xf9   : > { %14568 = vmatprep.subr.bf16.mxu1 %v16190_v10  ;;  %v16241_v4 = vld [vmem:[%s17519_s4 + $0x6a0] sm:$0xff]   ;;  %v16247_v10 = vld [vmem:[%s17519_s4 + $0x630] sm:$0xff]  }
  0xfa   : > { %10420 = vmatmul.mubr.bf16.vlgmr.msra.gmra.mrb[16].mxu0 %v528_v3  ;;  %v16240_v3 = vld [vmem:[%s17519_s4 + $0x6e0] sm:$0xff]  }
  0xfb   : > { %14547 = vmatpush3.bf16.msra.mxu0 %v16189_v8  ;;  %10460 = vmatmul.mubr.bf16.vlgmr.msra.gmra.mrb[16].mxu1 %v530_v9  ;;  %v16245_v8 = vld [vmem:[%s17519_s4 + $0x6a8] sm:$0xff]   ;;  %v16246_v9 = vld [vmem:[%s17519_s4 + $0x670] sm:$0xff]  }
  0xfc   : > { %14548 = vmatprep.subr.bf16.mxu0 %v16192_v13  ;;  %14569 = vmatpush3.bf16.msra.mxu1 %v16191_v12  ;;  %v16249_v12 = vld [vmem:[%s17519_s4 + $0x6b0] sm:$0xff]   ;;  %v16250_v13 = vld [vmem:[%s17519_s4 + $0x678] sm:$0xff]  }
  0xfd   : > { %14570 = vmatprep.subr.bf16.mxu1 %v16194_v15  ;;  %10499 = vmatprep.mubr.bf16.mxu0 %v533_v46  ;;  %v16252_v15 = vld [vmem:[%s17519_s4 + $0x6f8] sm:$0xff]  }
  0xfe   : > { %10539 = vmatprep.mubr.bf16.mxu1 %v535_v51 }
  0xff   : > { %14549 = vmatpush3.bf16.msra.mxu0 %v16193_v14  ;;  %v16251_v14 = vld [vmem:[%s17519_s4 + $0x638] sm:$0xff]  }
 0x100   : > { %14550 = vmatprep.subr.bf16.mxu0 %v16196_v17  ;;  %14571 = vmatpush3.bf16.msra.mxu1 %v16195_v16  ;;  %v231_v16 = vld [vmem:[%s17533_s27 + $0x60] sm:$0xff] }
 0x101   : > { %14572 = vmatprep.subr.bf16.mxu1 %v16198_v19  ;;  %v378_v17 = vcombine.high %v231_v16, %v231_v16  ;;  %v536_v19 = vpack.c.bf16 %v231_v16, %v231_v16  ;;  %v16294_v16 = vld [vmem:[%s17519_s4 + $0x848] sm:$0xff]  }
 0x103   : > { %14551 = vmatpush3.bf16.msra.mxu0 %v16197_v18  ;;  %v16254_v18 = vld [vmem:[%s17519_s4 + $0x6b8] sm:$0xff]  }
 0x104   : > { %14552 = vmatprep.subr.bf16.mxu0 %v16200_v21  ;;  %14573 = vmatpush3.bf16.msra.mxu1 %v16199_v20  ;;  %v16255_v20 = vld [vmem:[%s17519_s4 + $0x740] sm:$0xff]  }
 0x105   : > { %14574 = vmatprep.subr.bf16.mxu1 %v16202_v23  ;;  %v232_v21 = vld [vmem:[%s17533_s27 + $0x68] sm:$0xff] }
 0x106   : > { %v379_v23 = vcombine.high %v232_v21, %v232_v21 }
 0x107   : > { %14553 = vmatpush3.bf16.msra.mxu0 %v16201_v22  ;;  %v537_v22 = vpack.c.bf16 %v378_v17, %v378_v17  ;;  %v16295_v17 = vld [vmem:[%s17519_s4 + $0x808] sm:$0xff]  }
 0x108   : > { %14554 = vmatprep.subr.bf16.mxu0 %v16204_v25  ;;  %14575 = vmatpush3.bf16.msra.mxu1 %v16203_v24  ;;  %v16257_v24 = vld [vmem:[%s17519_s4 + $0x700] sm:$0xff]   ;;  %v538_v25 = vpack.c.bf16 %v232_v21, %v232_v21  ;;  %v16299_v21 = vld [vmem:[%s17519_s4 + $0x810] sm:$0xff]  }
 0x109   : > { %14576 = vmatprep.subr.bf16.mxu1 %v16206_v27  ;;  %v539_v27 = vpack.c.bf16 %v379_v23, %v379_v23  ;;  %v16301_v23 = vld [vmem:[%s17519_s4 + $0x890] sm:$0xff]  }
 0x10b   : > { %14555 = vmatpush3.bf16.msra.mxu0 %v16205_v26  ;;  %v16258_v26 = vld [vmem:[%s17519_s4 + $0x7c0] sm:$0xff]  }
 0x10c   : > { %14556 = vmatprep.subr.bf16.mxu0 %v16208_v29  ;;  %14577 = vmatpush3.bf16.msra.mxu1 %v16207_v28  ;;  %v16259_v28 = vld [vmem:[%s17519_s4 + $0x780] sm:$0xff]   ;;  %v16260_v29 = vld [vmem:[%s17519_s4 + $0x748] sm:$0xff]  }
 0x10d   : > { %14578 = vmatprep.subr.bf16.mxu1 %v16210_v31  ;;  %v16262_v31 = vld [vmem:[%s17519_s4 + $0x7c8] sm:$0xff]  }
 0x10f   : > { %14557 = vmatpush3.bf16.msra.mxu0 %v16209_v30  ;;  %v16261_v30 = vld [vmem:[%s17519_s4 + $0x708] sm:$0xff]  }
 0x110   : > { %14558 = vmatprep.subr.bf16.mxu0 %v16212_v33  ;;  %14579 = vmatpush3.bf16.msra.mxu1 %v16211_v32  ;;  %v16263_v32 = vld [vmem:[%s17519_s4 + $0x788] sm:$0xff]   ;;  %v16264_v33 = vld [vmem:[%s17519_s4 + $0x750] sm:$0xff]  }
 0x111   : > { %14580 = vmatprep.subr.bf16.mxu1 %v16214_v35  ;;  %v16266_v35 = vld [vmem:[%s17519_s4 + $0x7d0] sm:$0xff]  }
 0x113   : > { %14559 = vmatpush3.bf16.msra.mxu0 %v16213_v34  ;;  %v16265_v34 = vld [vmem:[%s17519_s4 + $0x710] sm:$0xff]  }
 0x114   : > { %14560 = vmatprep.subr.bf16.mxu0 %v16216_v37  ;;  %14581 = vmatpush3.bf16.msra.mxu1 %v16215_v36  ;;  %v16267_v36 = vld [vmem:[%s17519_s4 + $0x790] sm:$0xff]   ;;  %v16268_v37 = vld [vmem:[%s17519_s4 + $0x758] sm:$0xff]  }
 0x115   : > { %14582 = vmatprep.subr.bf16.mxu1 %v16218_v39  ;;  %v16270_v39 = vld [vmem:[%s17519_s4 + $0x7d8] sm:$0xff]  }
 0x117   : > { %14561 = vmatpush3.bf16.msra.mxu0 %v16217_v38  ;;  %v16269_v38 = vld [vmem:[%s17519_s4 + $0x718] sm:$0xff]  }
 0x118   : > { %14590 = vmatprep.subr.bf16.mxu0 %v16221_v44  ;;  %14583 = vmatpush3.bf16.msra.mxu1 %v16220_v42  ;;  %v16273_v42 = vld [vmem:[%s17519_s4 + $0x720] sm:$0xff]  }
 0x119   : > { %14612 = vmatprep.subr.bf16.mxu1 %v16224_v50  ;;  %v16275_v44 = vld [vmem:[%s17519_s4 + $0x7a0] sm:$0xff]  }
 0x11a   : > { %10500 = vmatmul.mubr.bf16.vlgmr.msra.gmra.mrb[20].mxu0 %v532_v43  ;;  %v16274_v43 = vld [vmem:[%s17519_s4 + $0x7e0] sm:$0xff]  }
 0x11b   : > { %14591 = vmatpush3.bf16.msra.mxu0 %v16223_v48  ;;  %10540 = vmatmul.mubr.bf16.vlgmr.msra.gmra.mrb[20].mxu1 %v534_v49  ;;  %v16277_v48 = vld [vmem:[%s17519_s4 + $0x728] sm:$0xff]  }
 0x11c   : > { %14592 = vmatprep.subr.bf16.mxu0 %v16226_v53  ;;  %14613 = vmatpush3.bf16.msra.mxu1 %v16225_v52 }
 0x11d   : > { %14614 = vmatprep.subr.bf16.mxu1 %v16228_v55  ;;  %10579 = vmatprep.mubr.bf16.mxu0 %v537_v22  ;;  %v16300_v22 = vld [vmem:[%s17519_s4 + $0x8d0] sm:$0xff]  }
 0x11e   : > { %10619 = vmatprep.mubr.bf16.mxu1 %v539_v27  ;;  %v16305_v27 = vld [vmem:[%s17519_s4 + $0x898] sm:$0xff]  }
 0x11f   : > { %14593 = vmatpush3.bf16.msra.mxu0 %v16227_v54  ;;  %v16278_v54 = vld [vmem:[%s17519_s4 + $0x7e8] sm:$0xff]  }
 0x120   : > { %14594 = vmatprep.subr.bf16.mxu0 %v16230_v57  ;;  %14615 = vmatpush3.bf16.msra.mxu1 %v16229_v56  ;;  %v16279_v56 = vld [vmem:[%s17519_s4 + $0x7a8] sm:$0xff]  }
 0x121   : > { %14616 = vmatprep.subr.bf16.mxu1 %v16232_v59  ;;  %v16280_v59 = vld [vmem:[%s17519_s4 + $0x770] sm:$0xff]  }
 0x123   : > { %14595 = vmatpush3.bf16.msra.mxu0 %v16231_v58 }
 0x124   : > { %14596 = vmatprep.subr.bf16.mxu0 %v16234_v61  ;;  %14617 = vmatpush3.bf16.msra.mxu1 %v16233_v60  ;;  %v16281_v61 = vld [vmem:[%s17519_s4 + $0x730] sm:$0xff]  }
 0x125   : > { %14618 = vmatprep.subr.bf16.mxu1 %v16236_v63  ;;  %v16283_v63 = vld [vmem:[%s17519_s4 + $0x7b0] sm:$0xff]  }
 0x127   : > { %14597 = vmatpush3.bf16.msra.mxu0 %v16235_v62  ;;  %v16282_v62 = vld [vmem:[%s17519_s4 + $0x7f0] sm:$0xff]  }
 0x128   : > { %14598 = vmatprep.subr.bf16.mxu0 %v16238_v1  ;;  %14619 = vmatpush3.bf16.msra.mxu1 %v16237_v0  ;;  %v16284_v0 = vld [vmem:[%s17519_s4 + $0x778] sm:$0xff]  }
 0x129   : > { %14620 = vmatprep.subr.bf16.mxu1 %v16240_v3  ;;  %v16285_v1 = vld [vmem:[%s17519_s4 + $0x738] sm:$0xff]   ;;  %v233_v3 = vld [vmem:[%s17533_s27 + $0x70] sm:$0xff] }
 0x12b   : > { %14599 = vmatpush3.bf16.msra.mxu0 %v16239_v2  ;;  %v16286_v2 = vld [vmem:[%s17519_s4 + $0x7f8] sm:$0xff]  }
 0x12c   : > { %14600 = vmatprep.subr.bf16.mxu0 %v16242_v5  ;;  %14621 = vmatpush3.bf16.msra.mxu1 %v16241_v4  ;;  %v380_v4 = vcombine.high %v233_v3, %v233_v3  ;;  %v16288_v5 = vld [vmem:[%s17519_s4 + $0x7b8] sm:$0xff]  }
 0x12d   : > { %14622 = vmatprep.subr.bf16.mxu1 %v16244_v7  ;;  %v16289_v7 = vld [vmem:[%s17519_s4 + $0x840] sm:$0xff]  }
 0x12f   : > { %14601 = vmatpush3.bf16.msra.mxu0 %v16243_v6  ;;  %v540_v6 = vpack.c.bf16 %v233_v3, %v233_v3  ;;  %v16327_v3 = vld [vmem:[%s17519_s4 + $0x980] sm:$0xff]  }
 0x130   : > { %14602 = vmatprep.subr.bf16.mxu0 %v16246_v9  ;;  %14623 = vmatpush3.bf16.msra.mxu1 %v16245_v8  ;;  %v234_v8 = vld [vmem:[%s17533_s27 + $0x78] sm:$0xff]  ;;  %v541_v9 = vpack.c.bf16 %v380_v4, %v380_v4  ;;  %v16328_v4 = vld [vmem:[%s17519_s4 + $0x948] sm:$0xff]  }
 0x131   : > { %14624 = vmatprep.subr.bf16.mxu1 %v16248_v11  ;;  %v16291_v11 = vld [vmem:[%s17519_s4 + $0x800] sm:$0xff]  }
 0x133   : > { %14603 = vmatpush3.bf16.msra.mxu0 %v16247_v10  ;;  %v381_v10 = vcombine.high %v234_v8, %v234_v8 }
 0x134   : > { %14604 = vmatprep.subr.bf16.mxu0 %v16250_v13  ;;  %14625 = vmatpush3.bf16.msra.mxu1 %v16249_v12  ;;  %v542_v12 = vpack.c.bf16 %v234_v8, %v234_v8  ;;  %v16292_v13 = vld [vmem:[%s17519_s4 + $0x8c0] sm:$0xff]   ;;  %v16332_v8 = vld [vmem:[%s17519_s4 + $0x950] sm:$0xff]  }
 0x135   : > { %14626 = vmatprep.subr.bf16.mxu1 %v16252_v15  ;;  %v16293_v15 = vld [vmem:[%s17519_s4 + $0x880] sm:$0xff]  }
 0x137   : > { %14605 = vmatpush3.bf16.msra.mxu0 %v16251_v14  ;;  %v543_v14 = vpack.c.bf16 %v381_v10, %v381_v10  ;;  %v16334_v10 = vld [vmem:[%s17519_s4 + $0x9d0] sm:$0xff]  }
 0x138   : > { %14627 = vmatpush3.bf16.msra.mxu1 %v16254_v18  ;;  %14634 = vmatprep.subr.bf16.mxu0 %v16255_v20  ;;  %v16296_v18 = vld [vmem:[%s17519_s4 + $0x8c8] sm:$0xff]   ;;  %v16298_v20 = vld [vmem:[%s17519_s4 + $0x850] sm:$0xff]  }
 0x139   : > { %14656 = vmatprep.subr.bf16.mxu1 %v16258_v26  ;;  %v16304_v26 = vld [vmem:[%s17519_s4 + $0x8d8] sm:$0xff]  }
 0x13a   : > { %10580 = vmatmul.mubr.bf16.vlgmr.msra.gmra.mrb[24].mxu0 %v536_v19  ;;  %v16297_v19 = vld [vmem:[%s17519_s4 + $0x888] sm:$0xff]  }
 0x13b   : > { %14635 = vmatpush3.bf16.msra.mxu0 %v16257_v24  ;;  %10620 = vmatmul.mubr.bf16.vlgmr.msra.gmra.mrb[24].mxu1 %v538_v25  ;;  %v16302_v24 = vld [vmem:[%s17519_s4 + $0x858] sm:$0xff]  }
 0x13c   : > { %14636 = vmatprep.subr.bf16.mxu0 %v16260_v29  ;;  %14657 = vmatpush3.bf16.msra.mxu1 %v16259_v28  ;;  %v16303_v25 = vld [vmem:[%s17519_s4 + $0x818] sm:$0xff]   ;;  %v16306_v28 = vld [vmem:[%s17519_s4 + $0x860] sm:$0xff]  }
 0x13d   : > { %14658 = vmatprep.subr.bf16.mxu1 %v16262_v31  ;;  %10659 = vmatprep.mubr.bf16.mxu0 %v541_v9  ;;  %v16307_v29 = vld [vmem:[%s17519_s4 + $0x820] sm:$0xff]   ;;  %v16333_v9 = vld [vmem:[%s17519_s4 + $0x910] sm:$0xff]  }
 0x13e   : > { %10699 = vmatprep.mubr.bf16.mxu1 %v543_v14  ;;  %v16338_v14 = vld [vmem:[%s17519_s4 + $0x9d8] sm:$0xff]  }
 0x13f   : > { %14637 = vmatpush3.bf16.msra.mxu0 %v16261_v30  ;;  %v16308_v30 = vld [vmem:[%s17519_s4 + $0x8e0] sm:$0xff]  }
 0x140   : > { %14638 = vmatprep.subr.bf16.mxu0 %v16264_v33  ;;  %14659 = vmatpush3.bf16.msra.mxu1 %v16263_v32  ;;  %v16309_v32 = vld [vmem:[%s17519_s4 + $0x8a0] sm:$0xff]  }
 0x141   : > { %14660 = vmatprep.subr.bf16.mxu1 %v16266_v35 }
 0x143   : > { %14639 = vmatpush3.bf16.msra.mxu0 %v16265_v34  ;;  %v16310_v34 = vld [vmem:[%s17519_s4 + $0x868] sm:$0xff]  }
 0x144   : > { %14640 = vmatprep.subr.bf16.mxu0 %v16268_v37  ;;  %14661 = vmatpush3.bf16.msra.mxu1 %v16267_v36 }
 0x145   : > { %14662 = vmatprep.subr.bf16.mxu1 %v16270_v39  ;;  %v16312_v39 = vld [vmem:[%s17519_s4 + $0x8e8] sm:$0xff]  }
 0x147   : > { %14641 = vmatpush3.bf16.msra.mxu0 %v16269_v38  ;;  %v16311_v38 = vld [vmem:[%s17519_s4 + $0x828] sm:$0xff]  }
 0x148   : > { %14642 = vmatprep.subr.bf16.mxu0 %v16272_v41  ;;  %14663 = vmatpush3.bf16.msra.mxu1 %v16271_v40 }
 0x149   : > { %14664 = vmatprep.subr.bf16.mxu1 %v16274_v43 }
 0x14b   : > { %14643 = vmatpush3.bf16.msra.mxu0 %v16273_v42 }
 0x14c   : > { %14644 = vmatprep.subr.bf16.mxu0 %v16276_v47  ;;  %14665 = vmatpush3.bf16.msra.mxu1 %v16275_v44  ;;  %v16313_v44 = vld [vmem:[%s17519_s4 + $0x8a8] sm:$0xff]  }
 0x14d   : > { %v14342_v45 = vpop.f32.mrb[0].mxu0  ;;  %14666 = vmatprep.subr.bf16.mxu1 %v16278_v54  ;;  %v16320_v54 = vld [vmem:[%s17519_s4 + $0x8f8] sm:$0xff]  }
 0x14e   : > { %v14364_v46 = vpop.f32.mrb[0].mxu1  ;;  %v14343_v49 = vpop.f32.mrb[1].mxu0 }
 0x14f   : > { %v14365_v50 = vpop.f32.mrb[1].mxu1  ;;  %v14344_v51 = vadd.f32 %v14343_v49, %v14342_v45  ;;  %v14345_v53 = vpop.f32.mrb[2].mxu0  ;;  %14645 = vmatpush3.bf16.msra.mxu0 %v16277_v48  ;;  %v16315_v49 = vld [vmem:[%s17519_s4 + $0x830] sm:$0xff]  }
 0x150   : > { %v14366_v52 = vadd.f32 %v14365_v50, %v14364_v46  ;;  %v14346_v55 = vpop.f32.mrb[3].mxu0  ;;  %v14367_v58 = vpop.f32.mrb[2].mxu1  ;;  %14646 = vmatprep.subr.bf16.mxu0 %v16280_v59  ;;  %14667 = vmatpush3.bf16.msra.mxu1 %v16279_v56  ;;  %v16314_v46 = vld [vmem:[%s17519_s4 + $0x870] sm:$0xff]   ;;  %v16319_v53 = vld [vmem:[%s17519_s4 + $0x838] sm:$0xff]   ;;  %v16323_v59 = vld [vmem:[%s17519_s4 + $0x940] sm:$0xff]  }
 0x151   : > { %v14368_v60 = vpop.f32.mrb[3].mxu1  ;;  %14668 = vmatprep.subr.bf16.mxu1 %v16282_v62  ;;  %v16316_v50 = vld [vmem:[%s17519_s4 + $0x8f0] sm:$0xff]   ;;  %v235_v55 = vld [vmem:[%s17533_s27 + $0x80] sm:$0xff] }
 0x152   : > { %v17799_v57 = vadd.f32 %v14366_v52, %v14344_v51  ;;  %v16317_v51 = vld [vmem:[%s17519_s4 + $0x8b0] sm:$0xff]   ;;  %v16318_v52 = vld [vmem:[%s17519_s4 + $0x878] sm:$0xff]   ;;  %v382_v56 = vcombine.high %v235_v55, %v235_v55  ;;  %v544_v58 = vpack.c.bf16 %v235_v55, %v235_v55  ;;  %v236_v60 = vld [vmem:[%s17533_s27 + $0x88] sm:$0xff] }
 0x153   : > { %14647 = vmatpush3.bf16.msra.mxu0 %v16281_v61  ;;  %v383_v62 = vcombine.high %v236_v60, %v236_v60  ;;  %v16361_v55 = vld [vmem:[%s17519_s4 + $0xa80] sm:$0xff]  }
 0x154   : > { %14648 = vmatprep.subr.bf16.mxu0 %v16284_v0  ;;  %14669 = vmatpush3.bf16.msra.mxu1 %v16283_v63  ;;  %v545_v61 = vpack.c.bf16 %v382_v56, %v382_v56  ;;  %v16325_v63 = vld [vmem:[%s17519_s4 + $0x900] sm:$0xff]   ;;  %v546_v0 = vpack.c.bf16 %v236_v60, %v236_v60  ;;  %v16362_v56 = vld [vmem:[%s17519_s4 + $0xa48] sm:$0xff]   ;;  %v16366_v60 = vld [vmem:[%s17519_s4 + $0xa50] sm:$0xff]  }
 0x155   : > { %14670 = vmatprep.subr.bf16.mxu1 %v16286_v2  ;;  %v547_v2 = vpack.c.bf16 %v383_v62, %v383_v62  ;;  %v16368_v62 = vld [vmem:[%s17519_s4 + $0xad0] sm:$0xff]  }
 0x157   : > { %14649 = vmatpush3.bf16.msra.mxu0 %v16285_v1  ;;  %v16326_v1 = vld [vmem:[%s17519_s4 + $0x9c0] sm:$0xff]  }
 0x158   : > { %14671 = vmatpush3.bf16.msra.mxu1 %v16288_v5  ;;  %14678 = vmatprep.subr.bf16.mxu0 %v16289_v7  ;;  %v16329_v5 = vld [vmem:[%s17519_s4 + $0x908] sm:$0xff]  }
 0x159   : > { %14700 = vmatprep.subr.bf16.mxu1 %v16292_v13  ;;  %v16331_v7 = vld [vmem:[%s17519_s4 + $0x988] sm:$0xff]   ;;  %v16337_v13 = vld [vmem:[%s17519_s4 + $0x918] sm:$0xff]  }
 0x15a   : > { %10660 = vmatmul.mubr.bf16.vlgmr.msra.gmra.mrb[28].mxu0 %v540_v6  ;;  %v16330_v6 = vld [vmem:[%s17519_s4 + $0x9c8] sm:$0xff]  }
 0x15b   : > { %14679 = vmatpush3.bf16.msra.mxu0 %v16291_v11  ;;  %10700 = vmatmul.mubr.bf16.vlgmr.msra.gmra.mrb[28].mxu1 %v542_v12  ;;  %v16335_v11 = vld [vmem:[%s17519_s4 + $0x990] sm:$0xff]   ;;  %v16336_v12 = vld [vmem:[%s17519_s4 + $0x958] sm:$0xff]  }
 0x15c   : > { %14680 = vmatprep.subr.bf16.mxu0 %v16294_v16  ;;  %14701 = vmatpush3.bf16.msra.mxu1 %v16293_v15  ;;  %v16339_v15 = vld [vmem:[%s17519_s4 + $0x998] sm:$0xff]   ;;  %v16340_v16 = vld [vmem:[%s17519_s4 + $0x960] sm:$0xff]  }
 0x15d   : > { %14702 = vmatprep.subr.bf16.mxu1 %v16296_v18  ;;  %10739 = vmatprep.mubr.bf16.mxu0 %v545_v61  ;;  %v16342_v18 = vld [vmem:[%s17519_s4 + $0x9e0] sm:$0xff]   ;;  %v16367_v61 = vld [vmem:[%s17519_s4 + $0xa10] sm:$0xff]  }
 0x15e   : > { %10779 = vmatprep.mubr.bf16.mxu1 %v547_v2  ;;  %v16372_v2 = vld [vmem:[%s17519_s4 + $0xad8] sm:$0xff]  }
 0x15f   : > { %14681 = vmatpush3.bf16.msra.mxu0 %v16295_v17  ;;  %v16341_v17 = vld [vmem:[%s17519_s4 + $0x920] sm:$0xff]  }
 0x160   : > { %14682 = vmatprep.subr.bf16.mxu0 %v16298_v20  ;;  %14703 = vmatpush3.bf16.msra.mxu1 %v16297_v19  ;;  %v16343_v20 = vld [vmem:[%s17519_s4 + $0x9a0] sm:$0xff]  }
 0x161   : > { %14704 = vmatprep.subr.bf16.mxu1 %v16300_v22 }
 0x163   : > { %14683 = vmatpush3.bf16.msra.mxu0 %v16299_v21 }
 0x164   : > { %14684 = vmatprep.subr.bf16.mxu0 %v16302_v24  ;;  %14705 = vmatpush3.bf16.msra.mxu1 %v16301_v23  ;;  %v16344_v23 = vld [vmem:[%s17519_s4 + $0x968] sm:$0xff]  }
 0x165   : > { %14706 = vmatprep.subr.bf16.mxu1 %v16304_v26  ;;  %v16345_v26 = vld [vmem:[%s17519_s4 + $0x928] sm:$0xff]  }
 0x167   : > { %14685 = vmatpush3.bf16.msra.mxu0 %v16303_v25 }
 0x168   : > { %14686 = vmatprep.subr.bf16.mxu0 %v16306_v28  ;;  %14707 = vmatpush3.bf16.msra.mxu1 %v16305_v27 }
 0x169   : > { %14708 = vmatprep.subr.bf16.mxu1 %v16308_v30 }
 0x16b   : > { %14687 = vmatpush3.bf16.msra.mxu0 %v16307_v29 }
 0x16c   : > { %14688 = vmatprep.subr.bf16.mxu0 %v16310_v34  ;;  %14709 = vmatpush3.bf16.msra.mxu1 %v16309_v32 }
 0x16d   : > { %v14386_v31 = vpop.f32.mrb[4].mxu0  ;;  %14710 = vmatprep.subr.bf16.mxu1 %v16312_v39  ;;  %v16351_v39 = vld [vmem:[%s17519_s4 + $0x9b0] sm:$0xff]  }
 0x16e   : > { %v14387_v33 = vpop.f32.mrb[5].mxu0  ;;  %v14408_v37 = vpop.f32.mrb[4].mxu1 }
 0x16f   : > { %v14388_v35 = vadd.f32 %v14387_v33, %v14386_v31  ;;  %v14389_v36 = vpop.f32.mrb[6].mxu0  ;;  %v14409_v41 = vpop.f32.mrb[5].mxu1  ;;  %14689 = vmatpush3.bf16.msra.mxu0 %v16311_v38  ;;  %v16346_v31 = vld [vmem:[%s17519_s4 + $0x9e8] sm:$0xff]   ;;  %v16350_v38 = vld [vmem:[%s17519_s4 + $0x9f0] sm:$0xff]  }
 0x170   : > { %v14390_v40 = vpop.f32.mrb[7].mxu0  ;;  %v14410_v43 = vadd.f32 %v14409_v41, %v14408_v37  ;;  %v14411_v45 = vpop.f32.mrb[6].mxu1  ;;  %14690 = vmatprep.subr.bf16.mxu0 %v16314_v46  ;;  %14711 = vmatpush3.bf16.msra.mxu1 %v16313_v44  ;;  %v16347_v33 = vld [vmem:[%s17519_s4 + $0x9a8] sm:$0xff]   ;;  %v16348_v36 = vld [vmem:[%s17519_s4 + $0x970] sm:$0xff]   ;;  %v16353_v41 = vld [vmem:[%s17519_s4 + $0x938] sm:$0xff]  }
 0x171   : > { %v10182_v42 = vadd.f32 %v14388_v35, %v17799_v57  ;;  %v14412_v47 = vpop.f32.mrb[7].mxu1  ;;  %14712 = vmatprep.subr.bf16.mxu1 %v16316_v50  ;;  %v16322_v57 = vld [vmem:[%s17519_s4 + $0x8b8] sm:$0xff]   ;;  %v16349_v37 = vld [vmem:[%s17519_s4 + $0x930] sm:$0xff]  }
 0x172   : > { %v16352_v40 = vld [vmem:[%s17519_s4 + $0x978] sm:$0xff]   ;;  %v16357_v47 = vld [vmem:[%s17519_s4 + $0xa40] sm:$0xff]  }
 0x173   : > { %v17837_v48 = vadd.f32 %v14410_v43, %v10182_v42  ;;  %14691 = vmatpush3.bf16.msra.mxu0 %v16315_v49  ;;  %v16354_v42 = vld [vmem:[%s17519_s4 + $0x9f8] sm:$0xff]   ;;  %v237_v43 = vld [vmem:[%s17533_s27 + $0x90] sm:$0xff] }
 0x174   : > { %14692 = vmatprep.subr.bf16.mxu0 %v16318_v52  ;;  %14713 = vmatpush3.bf16.msra.mxu1 %v16317_v51  ;;  %v384_v44 = vcombine.high %v237_v43, %v237_v43  ;;  %v16356_v45 = vld [vmem:[%s17519_s4 + $0x9b8] sm:$0xff]   ;;  %v548_v46 = vpack.c.bf16 %v237_v43, %v237_v43  ;;  %v16359_v51 = vld [vmem:[%s17519_s4 + $0xa00] sm:$0xff]  }
 0x175   : > { %14714 = vmatprep.subr.bf16.mxu1 %v16320_v54  ;;  %v16395_v43 = vld [vmem:[%s17519_s4 + $0xb80] sm:$0xff]  }
 0x176   : > { %v549_v49 = vpack.c.bf16 %v384_v44, %v384_v44  ;;  %v16396_v44 = vld [vmem:[%s17519_s4 + $0xb48] sm:$0xff]  }
 0x177   : > { %14693 = vmatpush3.bf16.msra.mxu0 %v16319_v53  ;;  %v16360_v53 = vld [vmem:[%s17519_s4 + $0xac0] sm:$0xff]  }
 0x178   : > { %14715 = vmatpush3.bf16.msra.mxu1 %v16322_v57  ;;  %14722 = vmatprep.subr.bf16.mxu0 %v16323_v59  ;;  %v16363_v57 = vld [vmem:[%s17519_s4 + $0xa08] sm:$0xff]  }
 0x179   : > { %14744 = vmatprep.subr.bf16.mxu1 %v16326_v1  ;;  %v16365_v59 = vld [vmem:[%s17519_s4 + $0xa88] sm:$0xff]   ;;  %v16371_v1 = vld [vmem:[%s17519_s4 + $0xa18] sm:$0xff]  }
 0x17a   : > { %10740 = vmatmul.mubr.bf16.vlgmr.msra.gmra.mrb[32].mxu0 %v544_v58  ;;  %v16364_v58 = vld [vmem:[%s17519_s4 + $0xac8] sm:$0xff]  }
 0x17b   : > { %14723 = vmatpush3.bf16.msra.mxu0 %v16325_v63  ;;  %10780 = vmatmul.mubr.bf16.vlgmr.msra.gmra.mrb[32].mxu1 %v546_v0  ;;  %v16369_v63 = vld [vmem:[%s17519_s4 + $0xa90] sm:$0xff]   ;;  %v16370_v0 = vld [vmem:[%s17519_s4 + $0xa58] sm:$0xff]  }
 0x17c   : > { %14724 = vmatprep.subr.bf16.mxu0 %v16328_v4  ;;  %14745 = vmatpush3.bf16.msra.mxu1 %v16327_v3  ;;  %v16373_v3 = vld [vmem:[%s17519_s4 + $0xa98] sm:$0xff]   ;;  %v16374_v4 = vld [vmem:[%s17519_s4 + $0xa60] sm:$0xff]  }
 0x17d   : > { %14746 = vmatprep.subr.bf16.mxu1 %v16330_v6  ;;  %10819 = vmatprep.mubr.bf16.mxu0 %v549_v49  ;;  %v16376_v6 = vld [vmem:[%s17519_s4 + $0xae0] sm:$0xff]   ;;  %v16401_v49 = vld [vmem:[%s17519_s4 + $0xb10] sm:$0xff]  }
 0x17f   : > { %14725 = vmatpush3.bf16.msra.mxu0 %v16329_v5  ;;  %v16375_v5 = vld [vmem:[%s17519_s4 + $0xa20] sm:$0xff]  }
 0x180   : > { %14726 = vmatprep.subr.bf16.mxu0 %v16332_v8  ;;  %14747 = vmatpush3.bf16.msra.mxu1 %v16331_v7  ;;  %v16377_v8 = vld [vmem:[%s17519_s4 + $0xaa0] sm:$0xff]  }
 0x181   : > { %14748 = vmatprep.subr.bf16.mxu1 %v16334_v10 }
 0x183   : > { %14727 = vmatpush3.bf16.msra.mxu0 %v16333_v9 }
 0x184   : > { %14728 = vmatprep.subr.bf16.mxu0 %v16336_v12  ;;  %14749 = vmatpush3.bf16.msra.mxu1 %v16335_v11  ;;  %v16378_v11 = vld [vmem:[%s17519_s4 + $0xa68] sm:$0xff]  }
 0x185   : > { %14750 = vmatprep.subr.bf16.mxu1 %v16338_v14  ;;  %v16379_v14 = vld [vmem:[%s17519_s4 + $0xa28] sm:$0xff]  }
 0x187   : > { %14729 = vmatpush3.bf16.msra.mxu0 %v16337_v13 }
 0x188   : > { %14730 = vmatprep.subr.bf16.mxu0 %v16340_v16  ;;  %14751 = vmatpush3.bf16.msra.mxu1 %v16339_v15 }
 0x189   : > { %14752 = vmatprep.subr.bf16.mxu1 %v16342_v18 }
 0x18b   : > { %14731 = vmatpush3.bf16.msra.mxu0 %v16341_v17 }
 0x18c   : > { %14732 = vmatprep.subr.bf16.mxu0 %v16344_v23  ;;  %14753 = vmatpush3.bf16.msra.mxu1 %v16343_v20 }
 0x18d   : > { %v14430_v19 = vpop.f32.mrb[8].mxu0  ;;  %14754 = vmatprep.subr.bf16.mxu1 %v16346_v31  ;;  %v239_v31 = vld [vmem:[%s17533_s27 + $0xa0] sm:$0xff] }
 0x18e   : > { %v14431_v21 = vpop.f32.mrb[9].mxu0  ;;  %v14452_v25 = vpop.f32.mrb[8].mxu1 }
 0x18f   : > { %v14432_v22 = vadd.f32 %v14431_v21, %v14430_v19  ;;  %v14433_v24 = vpop.f32.mrb[10].mxu0  ;;  %v14453_v28 = vpop.f32.mrb[9].mxu1  ;;  %14733 = vmatpush3.bf16.msra.mxu0 %v16345_v26  ;;  %v16380_v19 = vld [vmem:[%s17519_s4 + $0xae8] sm:$0xff]   ;;  %v16384_v26 = vld [vmem:[%s17519_s4 + $0xaf0] sm:$0xff]  }
 0x190   : > { %v14434_v27 = vpop.f32.mrb[11].mxu0  ;;  %v14454_v30 = vadd.f32 %v14453_v28, %v14452_v25  ;;  %v14455_v32 = vpop.f32.mrb[10].mxu1  ;;  %14734 = vmatprep.subr.bf16.mxu0 %v16348_v36  ;;  %14755 = vmatpush3.bf16.msra.mxu1 %v16347_v33  ;;  %v16381_v21 = vld [vmem:[%s17519_s4 + $0xaa8] sm:$0xff]   ;;  %v16382_v24 = vld [vmem:[%s17519_s4 + $0xa70] sm:$0xff]   ;;  %v16386_v28 = vld [vmem:[%s17519_s4 + $0xa78] sm:$0xff]  }
 0x191   : > { %v10262_v29 = vadd.f32 %v14432_v22, %v17837_v48  ;;  %v14456_v34 = vpop.f32.mrb[11].mxu1  ;;  %14756 = vmatprep.subr.bf16.mxu1 %v16350_v38  ;;  %v238_v48 = vld [vmem:[%s17533_s27 + $0x98] sm:$0xff]  ;;  %v386_v32 = vcombine.high %v239_v31, %v239_v31  ;;  %v240_v36 = vld [vmem:[%s17533_s27 + $0xa8] sm:$0xff] }
 0x192   : > { %v385_v50 = vcombine.high %v238_v48, %v238_v48  ;;  %v550_v52 = vpack.c.bf16 %v238_v48, %v238_v48  ;;  %v16383_v25 = vld [vmem:[%s17519_s4 + $0xa30] sm:$0xff]   ;;  %v16390_v33 = vld [vmem:[%s17519_s4 + $0xab8] sm:$0xff]   ;;  %v552_v34 = vpack.c.bf16 %v239_v31, %v239_v31  ;;  %v387_v38 = vcombine.high %v240_v36, %v240_v36  ;;  %v16429_v31 = vld [vmem:[%s17519_s4 + $0xc80] sm:$0xff]  }
 0x193   : > { %v17873_v35 = vadd.f32 %v14454_v30, %v10262_v29  ;;  %14735 = vmatpush3.bf16.msra.mxu0 %v16349_v37  ;;  %v16385_v27 = vld [vmem:[%s17519_s4 + $0xab0] sm:$0xff]   ;;  %v16387_v29 = vld [vmem:[%s17519_s4 + $0xa38] sm:$0xff]   ;;  %v553_v37 = vpack.c.bf16 %v386_v32, %v386_v32  ;;  %v16430_v32 = vld [vmem:[%s17519_s4 + $0xc48] sm:$0xff]  }
 0x194   : > { %14736 = vmatprep.subr.bf16.mxu0 %v16352_v40  ;;  %14757 = vmatpush3.bf16.msra.mxu1 %v16351_v39  ;;  %v551_v54 = vpack.c.bf16 %v385_v50, %v385_v50  ;;  %v16388_v30 = vld [vmem:[%s17519_s4 + $0xaf8] sm:$0xff]   ;;  %v16393_v39 = vld [vmem:[%s17519_s4 + $0xb00] sm:$0xff]   ;;  %v554_v40 = vpack.c.bf16 %v240_v36, %v240_v36  ;;  %v16400_v48 = vld [vmem:[%s17519_s4 + $0xb50] sm:$0xff]  }
 0x195   : > { %14758 = vmatprep.subr.bf16.mxu1 %v16354_v42  ;;  %v555_v42 = vpack.c.bf16 %v387_v38, %v387_v38  ;;  %v16402_v50 = vld [vmem:[%s17519_s4 + $0xbd0] sm:$0xff]  }
 0x196   : > { %10859 = vmatprep.mubr.bf16.mxu1 %v551_v54  ;;  %v16406_v54 = vld [vmem:[%s17519_s4 + $0xbd8] sm:$0xff]   ;;  %v16434_v36 = vld [vmem:[%s17519_s4 + $0xc50] sm:$0xff]  }
 0x197   : > { %14737 = vmatpush3.bf16.msra.mxu0 %v16353_v41  ;;  %v16394_v41 = vld [vmem:[%s17519_s4 + $0xbc0] sm:$0xff]   ;;  %v16436_v38 = vld [vmem:[%s17519_s4 + $0xcd0] sm:$0xff]  }
 0x198   : > { %14759 = vmatpush3.bf16.msra.mxu1 %v16356_v45  ;;  %14766 = vmatprep.subr.bf16.mxu0 %v16357_v47  ;;  %v16397_v45 = vld [vmem:[%s17519_s4 + $0xb08] sm:$0xff]  }
 0x199   : > { %14788 = vmatprep.subr.bf16.mxu1 %v16360_v53  ;;  %v16399_v47 = vld [vmem:[%s17519_s4 + $0xb88] sm:$0xff]   ;;  %v16405_v53 = vld [vmem:[%s17519_s4 + $0xb18] sm:$0xff]  }
 0x19a   : > { %10820 = vmatmul.mubr.bf16.vlgmr.msra.gmra.mrb[36].mxu0 %v548_v46  ;;  %v16398_v46 = vld [vmem:[%s17519_s4 + $0xbc8] sm:$0xff]  }
 0x19b   : > { %14767 = vmatpush3.bf16.msra.mxu0 %v16359_v51  ;;  %10860 = vmatmul.mubr.bf16.vlgmr.msra.gmra.mrb[36].mxu1 %v550_v52  ;;  %v16403_v51 = vld [vmem:[%s17519_s4 + $0xb90] sm:$0xff]   ;;  %v16404_v52 = vld [vmem:[%s17519_s4 + $0xb58] sm:$0xff]  }
 0x19c   : > { %14768 = vmatprep.subr.bf16.mxu0 %v16362_v56  ;;  %14789 = vmatpush3.bf16.msra.mxu1 %v16361_v55  ;;  %v16407_v55 = vld [vmem:[%s17519_s4 + $0xb98] sm:$0xff]   ;;  %v16408_v56 = vld [vmem:[%s17519_s4 + $0xb60] sm:$0xff]  }
 0x19d   : > { %14790 = vmatprep.subr.bf16.mxu1 %v16364_v58  ;;  %10899 = vmatprep.mubr.bf16.mxu0 %v553_v37  ;;  %v16435_v37 = vld [vmem:[%s17519_s4 + $0xc10] sm:$0xff]  }
 0x19e   : > { %10939 = vmatprep.mubr.bf16.mxu1 %v555_v42  ;;  %v16440_v42 = vld [vmem:[%s17519_s4 + $0xcd8] sm:$0xff]  }
 0x19f   : > { %14769 = vmatpush3.bf16.msra.mxu0 %v16363_v57  ;;  %v16409_v57 = vld [vmem:[%s17519_s4 + $0xb20] sm:$0xff]  }
 0x1a0   : > { %14770 = vmatprep.subr.bf16.mxu0 %v16366_v60  ;;  %14791 = vmatpush3.bf16.msra.mxu1 %v16365_v59  ;;  %v16410_v59 = vld [vmem:[%s17519_s4 + $0xbe0] sm:$0xff]  }
 0x1a1   : > { %14792 = vmatprep.subr.bf16.mxu1 %v16368_v62 }
 0x1a3   : > { %14771 = vmatpush3.bf16.msra.mxu0 %v16367_v61  ;;  %v16411_v61 = vld [vmem:[%s17519_s4 + $0xba0] sm:$0xff]  }
 0x1a4   : > { %14772 = vmatprep.subr.bf16.mxu0 %v16370_v0  ;;  %14793 = vmatpush3.bf16.msra.mxu1 %v16369_v63  ;;  %v16412_v0 = vld [vmem:[%s17519_s4 + $0xb68] sm:$0xff]  }
 0x1a5   : > { %14794 = vmatprep.subr.bf16.mxu1 %v16372_v2 }
 0x1a7   : > { %14773 = vmatpush3.bf16.msra.mxu0 %v16371_v1 }
 0x1a8   : > { %14774 = vmatprep.subr.bf16.mxu0 %v16374_v4  ;;  %14795 = vmatpush3.bf16.msra.mxu1 %v16373_v3  ;;  %v16413_v3 = vld [vmem:[%s17519_s4 + $0xb28] sm:$0xff]  }
 0x1a9   : > { %14796 = vmatprep.subr.bf16.mxu1 %v16376_v6  ;;  %v16414_v6 = vld [vmem:[%s17519_s4 + $0xbe8] sm:$0xff]  }
 0x1ab   : > { %14775 = vmatpush3.bf16.msra.mxu0 %v16375_v5 }
 0x1ac   : > { %14776 = vmatprep.subr.bf16.mxu0 %v16378_v11  ;;  %14797 = vmatpush3.bf16.msra.mxu1 %v16377_v8  ;;  %v16415_v8 = vld [vmem:[%s17519_s4 + $0xba8] sm:$0xff]   ;;  %v16416_v11 = vld [vmem:[%s17519_s4 + $0xb70] sm:$0xff]  }
 0x1ad   : > { %v14474_v7 = vpop.f32.mrb[12].mxu0  ;;  %14798 = vmatprep.subr.bf16.mxu1 %v16380_v19  ;;  %v241_v19 = vld [vmem:[%s17533_s27 + $0xb0] sm:$0xff] }
 0x1ae   : > { %v14475_v9 = vpop.f32.mrb[13].mxu0  ;;  %v14496_v13 = vpop.f32.mrb[12].mxu1 }
 0x1af   : > { %v14476_v10 = vadd.f32 %v14475_v9, %v14474_v7  ;;  %v14477_v12 = vpop.f32.mrb[14].mxu0  ;;  %v14497_v16 = vpop.f32.mrb[13].mxu1  ;;  %14777 = vmatpush3.bf16.msra.mxu0 %v16379_v14  ;;  %v16418_v14 = vld [vmem:[%s17519_s4 + $0xbf0] sm:$0xff]  }
 0x1b0   : > { %v14478_v15 = vpop.f32.mrb[15].mxu0  ;;  %v14498_v18 = vadd.f32 %v14497_v16, %v14496_v13  ;;  %v14499_v20 = vpop.f32.mrb[14].mxu1  ;;  %14778 = vmatprep.subr.bf16.mxu0 %v16382_v24  ;;  %14799 = vmatpush3.bf16.msra.mxu1 %v16381_v21  ;;  %v16417_v13 = vld [vmem:[%s17519_s4 + $0xb30] sm:$0xff]   ;;  %v16420_v16 = vld [vmem:[%s17519_s4 + $0xb78] sm:$0xff]  }
 0x1b1   : > { %v10342_v17 = vadd.f32 %v14476_v10, %v17873_v35  ;;  %v14500_v22 = vpop.f32.mrb[15].mxu1  ;;  %14800 = vmatprep.subr.bf16.mxu1 %v16384_v26  ;;  %v16391_v35 = vld [vmem:[%s17519_s4 + $0xb40] sm:$0xff]   ;;  %v16419_v15 = vld [vmem:[%s17519_s4 + $0xbb0] sm:$0xff]   ;;  %v388_v20 = vcombine.high %v241_v19, %v241_v19  ;;  %v16424_v21 = vld [vmem:[%s17519_s4 + $0xbb8] sm:$0xff]  }
 0x1b2   : > { %v556_v22 = vpack.c.bf16 %v241_v19, %v241_v19  ;;  %v16463_v19 = vld [vmem:[%s17519_s4 + $0xd80] sm:$0xff]  }
 0x1b3   : > { %v17910_v23 = vadd.f32 %v14498_v18, %v10342_v17  ;;  %14779 = vmatpush3.bf16.msra.mxu0 %v16383_v25  ;;  %v16421_v17 = vld [vmem:[%s17519_s4 + $0xb38] sm:$0xff]   ;;  %v557_v24 = vpack.c.bf16 %v388_v20, %v388_v20  ;;  %v16464_v20 = vld [vmem:[%s17519_s4 + $0xd48] sm:$0xff]  }
 0x1b4   : > { %14780 = vmatprep.subr.bf16.mxu0 %v16386_v28  ;;  %14801 = vmatpush3.bf16.msra.mxu1 %v16385_v27  ;;  %v16422_v18 = vld [vmem:[%s17519_s4 + $0xbf8] sm:$0xff]   ;;  %v16427_v27 = vld [vmem:[%s17519_s4 + $0xc00] sm:$0xff]  }
 0x1b5   : > { %14802 = vmatprep.subr.bf16.mxu1 %v16388_v30  ;;  %v242_v25 = vld [vmem:[%s17533_s27 + $0xb8] sm:$0xff] }
 0x1b6   : > { %v389_v26 = vcombine.high %v242_v25, %v242_v25  ;;  %v558_v28 = vpack.c.bf16 %v242_v25, %v242_v25  ;;  %v16469_v25 = vld [vmem:[%s17519_s4 + $0xd10] sm:$0xff]  }
 0x1b7   : > { %14781 = vmatpush3.bf16.msra.mxu0 %v16387_v29  ;;  %v16428_v29 = vld [vmem:[%s17519_s4 + $0xcc0] sm:$0xff]  }
 0x1b8   : > { %14803 = vmatpush3.bf16.msra.mxu1 %v16390_v33  ;;  %14810 = vmatprep.subr.bf16.mxu0 %v16391_v35  ;;  %v559_v30 = vpack.c.bf16 %v389_v26, %v389_v26  ;;  %v16431_v33 = vld [vmem:[%s17519_s4 + $0xc08] sm:$0xff]   ;;  %v16470_v26 = vld [vmem:[%s17519_s4 + $0xdd0] sm:$0xff]  }
 0x1b9   : > { %14832 = vmatprep.subr.bf16.mxu1 %v16394_v41  ;;  %v16433_v35 = vld [vmem:[%s17519_s4 + $0xc88] sm:$0xff]   ;;  %v16439_v41 = vld [vmem:[%s17519_s4 + $0xc18] sm:$0xff]  }
 0x1ba   : > { %10900 = vmatmul.mubr.bf16.vlgmr.msra.gmra.mrb[40].mxu0 %v552_v34  ;;  %v16432_v34 = vld [vmem:[%s17519_s4 + $0xcc8] sm:$0xff]  }
 0x1bb   : > { %14811 = vmatpush3.bf16.msra.mxu0 %v16393_v39  ;;  %10940 = vmatmul.mubr.bf16.vlgmr.msra.gmra.mrb[40].mxu1 %v554_v40  ;;  %v16437_v39 = vld [vmem:[%s17519_s4 + $0xc90] sm:$0xff]   ;;  %v16438_v40 = vld [vmem:[%s17519_s4 + $0xc58] sm:$0xff]  }
 0x1bc   : > { %14812 = vmatprep.subr.bf16.mxu0 %v16396_v44  ;;  %14833 = vmatpush3.bf16.msra.mxu1 %v16395_v43  ;;  %v16441_v43 = vld [vmem:[%s17519_s4 + $0xc98] sm:$0xff]   ;;  %v16442_v44 = vld [vmem:[%s17519_s4 + $0xc60] sm:$0xff]  }
 0x1bd   : > { %14834 = vmatprep.subr.bf16.mxu1 %v16398_v46  ;;  %10979 = vmatprep.mubr.bf16.mxu0 %v557_v24  ;;  %v16468_v24 = vld [vmem:[%s17519_s4 + $0xd50] sm:$0xff]  }
 0x1be   : > { %11019 = vmatprep.mubr.bf16.mxu1 %v559_v30  ;;  %v16474_v30 = vld [vmem:[%s17519_s4 + $0xdd8] sm:$0xff]  }
 0x1bf   : > { %14813 = vmatpush3.bf16.msra.mxu0 %v16397_v45  ;;  %v16443_v45 = vld [vmem:[%s17519_s4 + $0xc20] sm:$0xff]  }
 0x1c0   : > { %14814 = vmatprep.subr.bf16.mxu0 %v16400_v48  ;;  %14835 = vmatpush3.bf16.msra.mxu1 %v16399_v47  ;;  %v16444_v47 = vld [vmem:[%s17519_s4 + $0xce0] sm:$0xff]  }
 0x1c1   : > { %14836 = vmatprep.subr.bf16.mxu1 %v16402_v50 }
 0x1c3   : > { %14815 = vmatpush3.bf16.msra.mxu0 %v16401_v49  ;;  %v16445_v49 = vld [vmem:[%s17519_s4 + $0xca0] sm:$0xff]  }
 0x1c4   : > { %14816 = vmatprep.subr.bf16.mxu0 %v16404_v52  ;;  %14837 = vmatpush3.bf16.msra.mxu1 %v16403_v51  ;;  %v16446_v52 = vld [vmem:[%s17519_s4 + $0xc68] sm:$0xff]  }
 0x1c5   : > { %14838 = vmatprep.subr.bf16.mxu1 %v16406_v54 }
 0x1c7   : > { %14817 = vmatpush3.bf16.msra.mxu0 %v16405_v53 }
 0x1c8   : > { %14818 = vmatprep.subr.bf16.mxu0 %v16408_v56  ;;  %14839 = vmatpush3.bf16.msra.mxu1 %v16407_v55  ;;  %v16447_v55 = vld [vmem:[%s17519_s4 + $0xc28] sm:$0xff]  }
 0x1c9   : > { %14840 = vmatprep.subr.bf16.mxu1 %v16410_v59 }
 0x1cb   : > { %14819 = vmatpush3.bf16.msra.mxu0 %v16409_v57 }
 0x1cc   : > { %14820 = vmatprep.subr.bf16.mxu0 %v16412_v0  ;;  %14841 = vmatpush3.bf16.msra.mxu1 %v16411_v61 }
 0x1cd   : > { %v14518_v58 = vpop.f32.mrb[16].mxu0  ;;  %14842 = vmatprep.subr.bf16.mxu1 %v16414_v6  ;;  %v16456_v6 = vld [vmem:[%s17519_s4 + $0xcf8] sm:$0xff]  }
 0x1ce   : > { %v14519_v60 = vpop.f32.mrb[17].mxu0  ;;  %v14540_v1 = vpop.f32.mrb[16].mxu1 }
 0x1cf   : > { %v14520_v62 = vadd.f32 %v14519_v60, %v14518_v58  ;;  %v14521_v63 = vpop.f32.mrb[18].mxu0  ;;  %v14541_v5 = vpop.f32.mrb[17].mxu1  ;;  %14821 = vmatpush3.bf16.msra.mxu0 %v16413_v3  ;;  %v16448_v58 = vld [vmem:[%s17519_s4 + $0xce8] sm:$0xff]   ;;  %v16453_v3 = vld [vmem:[%s17519_s4 + $0xcb0] sm:$0xff]  }
 0x1d0   : > { %v14522_v4 = vpop.f32.mrb[19].mxu0  ;;  %v14542_v7 = vadd.f32 %v14541_v5, %v14540_v1  ;;  %v14543_v9 = vpop.f32.mrb[18].mxu1  ;;  %14822 = vmatprep.subr.bf16.mxu0 %v16416_v11  ;;  %14843 = vmatpush3.bf16.msra.mxu1 %v16415_v8  ;;  %v16449_v60 = vld [vmem:[%s17519_s4 + $0xca8] sm:$0xff]   ;;  %v16450_v63 = vld [vmem:[%s17519_s4 + $0xc70] sm:$0xff]   ;;  %v16455_v5 = vld [vmem:[%s17519_s4 + $0xc38] sm:$0xff]  }
 0x1d1   : > { %v10422_v2 = vadd.f32 %v14520_v62, %v17910_v23  ;;  %v14544_v12 = vpop.f32.mrb[19].mxu1  ;;  %14844 = vmatprep.subr.bf16.mxu1 %v16418_v14  ;;  %v16425_v23 = vld [vmem:[%s17519_s4 + $0xc40] sm:$0xff]   ;;  %v16451_v1 = vld [vmem:[%s17519_s4 + $0xc30] sm:$0xff]   ;;  %v16454_v4 = vld [vmem:[%s17519_s4 + $0xc78] sm:$0xff]  }
 0x1d2   : > { %v16458_v9 = vld [vmem:[%s17519_s4 + $0xcb8] sm:$0xff]   ;;  %v16459_v11 = vld [vmem:[%s17519_s4 + $0xd40] sm:$0xff]  }
 0x1d3   : > { %v17947_v10 = vadd.f32 %v14542_v7, %v10422_v2  ;;  %14823 = vmatpush3.bf16.msra.mxu0 %v16417_v13  ;;  %v16452_v2 = vld [vmem:[%s17519_s4 + $0xcf0] sm:$0xff]   ;;  %v243_v7 = vld [vmem:[%s17533_s27 + $0xc0] sm:$0xff]  ;;  %v244_v12 = vld [vmem:[%s17533_s27 + $0xc8] sm:$0xff] }
 0x1d4   : > { %14824 = vmatprep.subr.bf16.mxu0 %v16420_v16  ;;  %14845 = vmatpush3.bf16.msra.mxu1 %v16419_v15  ;;  %v390_v8 = vcombine.high %v243_v7, %v243_v7  ;;  %v391_v14 = vcombine.high %v244_v12, %v244_v12  ;;  %v16461_v15 = vld [vmem:[%s17519_s4 + $0xd00] sm:$0xff]   ;;  %v562_v16 = vpack.c.bf16 %v244_v12, %v244_v12  ;;  %v16502_v12 = vld [vmem:[%s17519_s4 + $0xe50] sm:$0xff]  }
 0x1d5   : > { %14846 = vmatprep.subr.bf16.mxu1 %v16422_v18 }
 0x1d6   : > { %v561_v13 = vpack.c.bf16 %v390_v8, %v390_v8  ;;  %v563_v18 = vpack.c.bf16 %v391_v14, %v391_v14  ;;  %v16498_v8 = vld [vmem:[%s17519_s4 + $0xe48] sm:$0xff]   ;;  %v16504_v14 = vld [vmem:[%s17519_s4 + $0xed0] sm:$0xff]  }
 0x1d7   : > { %14825 = vmatpush3.bf16.msra.mxu0 %v16421_v17  ;;  %v16462_v17 = vld [vmem:[%s17519_s4 + $0xdc0] sm:$0xff]  }
 0x1d8   : > { %14854 = vmatprep.subr.bf16.mxu0 %v16425_v23  ;;  %14847 = vmatpush3.bf16.msra.mxu1 %v16424_v21  ;;  %v16465_v21 = vld [vmem:[%s17519_s4 + $0xd08] sm:$0xff]  }
 0x1d9   : > { %14876 = vmatprep.subr.bf16.mxu1 %v16428_v29  ;;  %v16467_v23 = vld [vmem:[%s17519_s4 + $0xd88] sm:$0xff]   ;;  %v16473_v29 = vld [vmem:[%s17519_s4 + $0xd18] sm:$0xff]  }
 0x1da   : > { %10980 = vmatmul.mubr.bf16.vlgmr.msra.gmra.mrb[44].mxu0 %v556_v22  ;;  %v16466_v22 = vld [vmem:[%s17519_s4 + $0xdc8] sm:$0xff]  }
 0x1db   : > { %14855 = vmatpush3.bf16.msra.mxu0 %v16427_v27  ;;  %11020 = vmatmul.mubr.bf16.vlgmr.msra.gmra.mrb[44].mxu1 %v558_v28  ;;  %v16471_v27 = vld [vmem:[%s17519_s4 + $0xd90] sm:$0xff]   ;;  %v16472_v28 = vld [vmem:[%s17519_s4 + $0xd58] sm:$0xff]  }
 0x1dc   : > { %14856 = vmatprep.subr.bf16.mxu0 %v16430_v32  ;;  %14877 = vmatpush3.bf16.msra.mxu1 %v16429_v31  ;;  %v16475_v31 = vld [vmem:[%s17519_s4 + $0xd98] sm:$0xff]   ;;  %v16476_v32 = vld [vmem:[%s17519_s4 + $0xd60] sm:$0xff]  }
 0x1dd   : > { %14878 = vmatprep.subr.bf16.mxu1 %v16432_v34  ;;  %11059 = vmatprep.mubr.bf16.mxu0 %v561_v13  ;;  %v16478_v34 = vld [vmem:[%s17519_s4 + $0xde0] sm:$0xff]   ;;  %v16503_v13 = vld [vmem:[%s17519_s4 + $0xe10] sm:$0xff]  }
 0x1de   : > { %11099 = vmatprep.mubr.bf16.mxu1 %v563_v18  ;;  %v16508_v18 = vld [vmem:[%s17519_s4 + $0xed8] sm:$0xff]  }
 0x1df   : > { %14857 = vmatpush3.bf16.msra.mxu0 %v16431_v33  ;;  %v16477_v33 = vld [vmem:[%s17519_s4 + $0xd20] sm:$0xff]  }
 0x1e0   : > { %14858 = vmatprep.subr.bf16.mxu0 %v16434_v36  ;;  %14879 = vmatpush3.bf16.msra.mxu1 %v16433_v35  ;;  %v16479_v36 = vld [vmem:[%s17519_s4 + $0xda0] sm:$0xff]  }
 0x1e1   : > { %14880 = vmatprep.subr.bf16.mxu1 %v16436_v38 }
 0x1e3   : > { %14859 = vmatpush3.bf16.msra.mxu0 %v16435_v37 }
 0x1e4   : > { %14860 = vmatprep.subr.bf16.mxu0 %v16438_v40  ;;  %14881 = vmatpush3.bf16.msra.mxu1 %v16437_v39  ;;  %v16480_v39 = vld [vmem:[%s17519_s4 + $0xd68] sm:$0xff]  }
 0x1e5   : > { %14882 = vmatprep.subr.bf16.mxu1 %v16440_v42  ;;  %v16481_v42 = vld [vmem:[%s17519_s4 + $0xd28] sm:$0xff]  }
 0x1e7   : > { %14861 = vmatpush3.bf16.msra.mxu0 %v16439_v41 }
 0x1e8   : > { %14862 = vmatprep.subr.bf16.mxu0 %v16442_v44  ;;  %14883 = vmatpush3.bf16.msra.mxu1 %v16441_v43 }
 0x1e9   : > { %14884 = vmatprep.subr.bf16.mxu1 %v16444_v47  ;;  %v16482_v47 = vld [vmem:[%s17519_s4 + $0xde8] sm:$0xff]  }
 0x1eb   : > { %14863 = vmatpush3.bf16.msra.mxu0 %v16443_v45 }
 0x1ec   : > { %14864 = vmatprep.subr.bf16.mxu0 %v16446_v52  ;;  %14885 = vmatpush3.bf16.msra.mxu1 %v16445_v49  ;;  %v16483_v49 = vld [vmem:[%s17519_s4 + $0xda8] sm:$0xff]   ;;  %v16484_v52 = vld [vmem:[%s17519_s4 + $0xd70] sm:$0xff]  }
 0x1ed   : > { %v14562_v46 = vpop.f32.mrb[20].mxu0  ;;  %14886 = vmatprep.subr.bf16.mxu1 %v16448_v58  ;;  %v16490_v58 = vld [vmem:[%s17519_s4 + $0xdf8] sm:$0xff]  }
 0x1ee   : > { %v14563_v48 = vpop.f32.mrb[21].mxu0  ;;  %v14584_v53 = vpop.f32.mrb[20].mxu1 }
 0x1ef   : > { %v14564_v50 = vadd.f32 %v14563_v48, %v14562_v46  ;;  %v14565_v51 = vpop.f32.mrb[22].mxu0  ;;  %v14585_v57 = vpop.f32.mrb[21].mxu1  ;;  %14865 = vmatpush3.bf16.msra.mxu0 %v16447_v55  ;;  %v16487_v55 = vld [vmem:[%s17519_s4 + $0xdb0] sm:$0xff]  }
 0x1f0   : > { %v14566_v56 = vpop.f32.mrb[23].mxu0  ;;  %v14586_v59 = vadd.f32 %v14585_v57, %v14584_v53  ;;  %v14587_v61 = vpop.f32.mrb[22].mxu1  ;;  %14866 = vmatprep.subr.bf16.mxu0 %v16450_v63  ;;  %14887 = vmatpush3.bf16.msra.mxu1 %v16449_v60  ;;  %v16485_v53 = vld [vmem:[%s17519_s4 + $0xd30] sm:$0xff]   ;;  %v16489_v57 = vld [vmem:[%s17519_s4 + $0xd38] sm:$0xff]   ;;  %v16493_v63 = vld [vmem:[%s17519_s4 + $0xe40] sm:$0xff]  }
 0x1f1   : > { %v10502_v54 = vadd.f32 %v14564_v50, %v17947_v10  ;;  %v14588_v0 = vpop.f32.mrb[23].mxu1  ;;  %14888 = vmatprep.subr.bf16.mxu1 %v16452_v2  ;;  %v560_v10 = vpack.c.bf16 %v243_v7, %v243_v7  ;;  %v16488_v56 = vld [vmem:[%s17519_s4 + $0xd78] sm:$0xff]   ;;  %v16497_v7 = vld [vmem:[%s17519_s4 + $0xe80] sm:$0xff]  }
 0x1f2   : > { %v16492_v61 = vld [vmem:[%s17519_s4 + $0xdb8] sm:$0xff]  }
 0x1f3   : > { %v17984_v62 = vadd.f32 %v14586_v59, %v10502_v54  ;;  %14867 = vmatpush3.bf16.msra.mxu0 %v16451_v1  ;;  %v16486_v54 = vld [vmem:[%s17519_s4 + $0xdf0] sm:$0xff]  }
 0x1f4   : > { %14868 = vmatprep.subr.bf16.mxu0 %v16454_v4  ;;  %14889 = vmatpush3.bf16.msra.mxu1 %v16453_v3  ;;  %v245_v59 = vld [vmem:[%s17533_s27 + $0xd0] sm:$0xff]  ;;  %v246_v0 = vld [vmem:[%s17533_s27 + $0xd8] sm:$0xff]  ;;  %v16495_v3 = vld [vmem:[%s17519_s4 + $0xe00] sm:$0xff]  }
 0x1f5   : > { %14890 = vmatprep.subr.bf16.mxu1 %v16456_v6  ;;  %v392_v60 = vcombine.high %v245_v59, %v245_v59  ;;  %v393_v2 = vcombine.high %v246_v0, %v246_v0  ;;  %v566_v4 = vpack.c.bf16 %v246_v0, %v246_v0  ;;  %v16536_v0 = vld [vmem:[%s17519_s4 + $0xf50] sm:$0xff]  }
 0x1f7   : > { %14869 = vmatpush3.bf16.msra.mxu0 %v16455_v5  ;;  %v565_v1 = vpack.c.bf16 %v392_v60, %v392_v60  ;;  %v16496_v5 = vld [vmem:[%s17519_s4 + $0xec0] sm:$0xff]   ;;  %v567_v6 = vpack.c.bf16 %v393_v2, %v393_v2  ;;  %v16532_v60 = vld [vmem:[%s17519_s4 + $0xf48] sm:$0xff]   ;;  %v16538_v2 = vld [vmem:[%s17519_s4 + $0xfd0] sm:$0xff]  }
 0x1f8   : > { %14898 = vmatprep.subr.bf16.mxu0 %v16459_v11  ;;  %14891 = vmatpush3.bf16.msra.mxu1 %v16458_v9  ;;  %v16499_v9 = vld [vmem:[%s17519_s4 + $0xe08] sm:$0xff]  }
 0x1f9   : > { %14920 = vmatprep.subr.bf16.mxu1 %v16462_v17  ;;  %v16501_v11 = vld [vmem:[%s17519_s4 + $0xe88] sm:$0xff]   ;;  %v16507_v17 = vld [vmem:[%s17519_s4 + $0xe18] sm:$0xff]  }
 0x1fa   : > { %11060 = vmatmul.mubr.bf16.vlgmr.msra.gmra.mrb[48].mxu0 %v560_v10  ;;  %v16500_v10 = vld [vmem:[%s17519_s4 + $0xec8] sm:$0xff]  }
 0x1fb   : > { %14899 = vmatpush3.bf16.msra.mxu0 %v16461_v15  ;;  %11100 = vmatmul.mubr.bf16.vlgmr.msra.gmra.mrb[48].mxu1 %v562_v16  ;;  %v16505_v15 = vld [vmem:[%s17519_s4 + $0xe90] sm:$0xff]   ;;  %v16506_v16 = vld [vmem:[%s17519_s4 + $0xe58] sm:$0xff]  }
 0x1fc   : > { %14900 = vmatprep.subr.bf16.mxu0 %v16464_v20  ;;  %14921 = vmatpush3.bf16.msra.mxu1 %v16463_v19  ;;  %v16509_v19 = vld [vmem:[%s17519_s4 + $0xe98] sm:$0xff]   ;;  %v16510_v20 = vld [vmem:[%s17519_s4 + $0xe60] sm:$0xff]  }
 0x1fd   : > { %14922 = vmatprep.subr.bf16.mxu1 %v16466_v22  ;;  %11139 = vmatprep.mubr.bf16.mxu0 %v565_v1  ;;  %v16512_v22 = vld [vmem:[%s17519_s4 + $0xee0] sm:$0xff]   ;;  %v16537_v1 = vld [vmem:[%s17519_s4 + $0xf10] sm:$0xff]  }
 0x1fe   : > { %11179 = vmatprep.mubr.bf16.mxu1 %v567_v6  ;;  %v16542_v6 = vld [vmem:[%s17519_s4 + $0xfd8] sm:$0xff]  }
 0x1ff   : > { %14901 = vmatpush3.bf16.msra.mxu0 %v16465_v21  ;;  %v16511_v21 = vld [vmem:[%s17519_s4 + $0xe20] sm:$0xff]  }
 0x200   : > { %14902 = vmatprep.subr.bf16.mxu0 %v16468_v24  ;;  %14923 = vmatpush3.bf16.msra.mxu1 %v16467_v23  ;;  %v16513_v24 = vld [vmem:[%s17519_s4 + $0xea0] sm:$0xff]  }
 0x201   : > { %14924 = vmatprep.subr.bf16.mxu1 %v16470_v26 }
 0x203   : > { %14903 = vmatpush3.bf16.msra.mxu0 %v16469_v25 }
 0x204   : > { %14904 = vmatprep.subr.bf16.mxu0 %v16472_v28  ;;  %14925 = vmatpush3.bf16.msra.mxu1 %v16471_v27  ;;  %v16514_v27 = vld [vmem:[%s17519_s4 + $0xe68] sm:$0xff]  }
 0x205   : > { %14926 = vmatprep.subr.bf16.mxu1 %v16474_v30  ;;  %v16515_v30 = vld [vmem:[%s17519_s4 + $0xe28] sm:$0xff]  }
 0x207   : > { %14905 = vmatpush3.bf16.msra.mxu0 %v16473_v29 }
 0x208   : > { %14906 = vmatprep.subr.bf16.mxu0 %v16476_v32  ;;  %14927 = vmatpush3.bf16.msra.mxu1 %v16475_v31 }
 0x209   : > { %14928 = vmatprep.subr.bf16.mxu1 %v16478_v34 }
 0x20b   : > { %14907 = vmatpush3.bf16.msra.mxu0 %v16477_v33 }
 0x20c   : > { %14908 = vmatprep.subr.bf16.mxu0 %v16480_v39  ;;  %14929 = vmatpush3.bf16.msra.mxu1 %v16479_v36 }
 0x20d   : > { %v14606_v35 = vpop.f32.mrb[24].mxu0  ;;  %14930 = vmatprep.subr.bf16.mxu1 %v16482_v47  ;;  %v247_v47 = vld [vmem:[%s17533_s27 + $0xe0] sm:$0xff] }
 0x20e   : > { %v14607_v37 = vpop.f32.mrb[25].mxu0  ;;  %v14628_v41 = vpop.f32.mrb[24].mxu1 }
 0x20f   : > { %v14608_v38 = vadd.f32 %v14607_v37, %v14606_v35  ;;  %v14609_v40 = vpop.f32.mrb[26].mxu0  ;;  %v14629_v45 = vpop.f32.mrb[25].mxu1  ;;  %14909 = vmatpush3.bf16.msra.mxu0 %v16481_v42  ;;  %v16516_v35 = vld [vmem:[%s17519_s4 + $0xee8] sm:$0xff]   ;;  %v16520_v42 = vld [vmem:[%s17519_s4 + $0xef0] sm:$0xff]  }
 0x210   : > { %v14610_v44 = vpop.f32.mrb[27].mxu0  ;;  %v14630_v46 = vadd.f32 %v14629_v45, %v14628_v41  ;;  %v14631_v48 = vpop.f32.mrb[26].mxu1  ;;  %14931 = vmatpush3.bf16.msra.mxu1 %v16483_v49  ;;  %14910 = vmatprep.subr.bf16.mxu0 %v16484_v52  ;;  %v16517_v37 = vld [vmem:[%s17519_s4 + $0xea8] sm:$0xff]   ;;  %v16518_v40 = vld [vmem:[%s17519_s4 + $0xe70] sm:$0xff]   ;;  %v16523_v45 = vld [vmem:[%s17519_s4 + $0xe38] sm:$0xff]  }
 0x211   : > { %v10582_v43 = vadd.f32 %v14608_v38, %v17984_v62  ;;  %v14632_v50 = vpop.f32.mrb[27].mxu1  ;;  %14932 = vmatprep.subr.bf16.mxu1 %v16486_v54  ;;  %v564_v62 = vpack.c.bf16 %v245_v59, %v245_v59  ;;  %v16519_v41 = vld [vmem:[%s17519_s4 + $0xe30] sm:$0xff]   ;;  %v16522_v44 = vld [vmem:[%s17519_s4 + $0xe78] sm:$0xff]   ;;  %v394_v48 = vcombine.high %v247_v47, %v247_v47  ;;  %v248_v52 = vld [vmem:[%s17533_s27 + $0xe8] sm:$0xff] }
 0x212   : > { %v16526_v49 = vld [vmem:[%s17519_s4 + $0xeb8] sm:$0xff]   ;;  %v568_v50 = vpack.c.bf16 %v247_v47, %v247_v47  ;;  %v395_v54 = vcombine.high %v248_v52, %v248_v52  ;;  %v16531_v59 = vld [vmem:[%s17519_s4 + $0xf80] sm:$0xff]  }
 0x213   : > { %v18021_v51 = vadd.f32 %v14630_v46, %v10582_v43  ;;  %14911 = vmatpush3.bf16.msra.mxu0 %v16485_v53  ;;  %v16521_v43 = vld [vmem:[%s17519_s4 + $0xeb0] sm:$0xff]   ;;  %v16524_v46 = vld [vmem:[%s17519_s4 + $0xef8] sm:$0xff]   ;;  %v569_v53 = vpack.c.bf16 %v394_v48, %v394_v48  ;;  %v16565_v47 = vld [vmem:[%s17519_s4 + $0x1080] sm:$0xff]  }
 0x214   : > { %14933 = vmatpush3.bf16.msra.mxu1 %v16487_v55  ;;  %14912 = vmatprep.subr.bf16.mxu0 %v16488_v56  ;;  %v16529_v55 = vld [vmem:[%s17519_s4 + $0xf00] sm:$0xff]   ;;  %v570_v56 = vpack.c.bf16 %v248_v52, %v248_v52  ;;  %v16566_v48 = vld [vmem:[%s17519_s4 + $0x1048] sm:$0xff]   ;;  %v16570_v52 = vld [vmem:[%s17519_s4 + $0x1050] sm:$0xff]  }
 0x215   : > { %14934 = vmatprep.subr.bf16.mxu1 %v16490_v58  ;;  %v571_v58 = vpack.c.bf16 %v395_v54, %v395_v54  ;;  %v16572_v54 = vld [vmem:[%s17519_s4 + $0x10d0] sm:$0xff]  }
 0x217   : > { %14913 = vmatpush3.bf16.msra.mxu0 %v16489_v57  ;;  %v16530_v57 = vld [vmem:[%s17519_s4 + $0xfc0] sm:$0xff]  }
 0x218   : > { %14935 = vmatpush3.bf16.msra.mxu1 %v16492_v61  ;;  %14942 = vmatprep.subr.bf16.mxu0 %v16493_v63  ;;  %v16533_v61 = vld [vmem:[%s17519_s4 + $0xf08] sm:$0xff]  }
 0x219   : > { %14964 = vmatprep.subr.bf16.mxu1 %v16496_v5  ;;  %v16535_v63 = vld [vmem:[%s17519_s4 + $0xf88] sm:$0xff]   ;;  %v16541_v5 = vld [vmem:[%s17519_s4 + $0xf18] sm:$0xff]  }
 0x21a   : > { %11140 = vmatmul.mubr.bf16.vlgmr.msra.gmra.mrb[52].mxu0 %v564_v62  ;;  %v16534_v62 = vld [vmem:[%s17519_s4 + $0xfc8] sm:$0xff]  }
 0x21b   : > { %14943 = vmatpush3.bf16.msra.mxu0 %v16495_v3  ;;  %11180 = vmatmul.mubr.bf16.vlgmr.msra.gmra.mrb[52].mxu1 %v566_v4  ;;  %v16539_v3 = vld [vmem:[%s17519_s4 + $0xf90] sm:$0xff]   ;;  %v16540_v4 = vld [vmem:[%s17519_s4 + $0xf58] sm:$0xff]  }
 0x21c   : > { %14944 = vmatprep.subr.bf16.mxu0 %v16498_v8  ;;  %14965 = vmatpush3.bf16.msra.mxu1 %v16497_v7  ;;  %v16543_v7 = vld [vmem:[%s17519_s4 + $0xf98] sm:$0xff]   ;;  %v16544_v8 = vld [vmem:[%s17519_s4 + $0xf60] sm:$0xff]  }
 0x21d   : > { %14966 = vmatprep.subr.bf16.mxu1 %v16500_v10  ;;  %11219 = vmatprep.mubr.bf16.mxu0 %v569_v53  ;;  %v16546_v10 = vld [vmem:[%s17519_s4 + $0xfe0] sm:$0xff]   ;;  %v16571_v53 = vld [vmem:[%s17519_s4 + $0x1010] sm:$0xff]  }
 0x21e   : > { %11259 = vmatprep.mubr.bf16.mxu1 %v571_v58  ;;  %v16576_v58 = vld [vmem:[%s17519_s4 + $0x10d8] sm:$0xff]  }
 0x21f   : > { %14945 = vmatpush3.bf16.msra.mxu0 %v16499_v9  ;;  %v16545_v9 = vld [vmem:[%s17519_s4 + $0xf20] sm:$0xff]  }
 0x220   : > { %14946 = vmatprep.subr.bf16.mxu0 %v16502_v12  ;;  %14967 = vmatpush3.bf16.msra.mxu1 %v16501_v11  ;;  %v16547_v12 = vld [vmem:[%s17519_s4 + $0xfa0] sm:$0xff]  }
 0x221   : > { %14968 = vmatprep.subr.bf16.mxu1 %v16504_v14 }
 0x223   : > { %14947 = vmatpush3.bf16.msra.mxu0 %v16503_v13 }
 0x224   : > { %14948 = vmatprep.subr.bf16.mxu0 %v16506_v16  ;;  %14969 = vmatpush3.bf16.msra.mxu1 %v16505_v15  ;;  %v16548_v15 = vld [vmem:[%s17519_s4 + $0xf68] sm:$0xff]  }
 0x225   : > { %14970 = vmatprep.subr.bf16.mxu1 %v16508_v18  ;;  %v16549_v18 = vld [vmem:[%s17519_s4 + $0xf28] sm:$0xff]  }
 0x227   : > { %14949 = vmatpush3.bf16.msra.mxu0 %v16507_v17 }
 0x228   : > { %14950 = vmatprep.subr.bf16.mxu0 %v16510_v20  ;;  %14971 = vmatpush3.bf16.msra.mxu1 %v16509_v19 }
 0x229   : > { %14972 = vmatprep.subr.bf16.mxu1 %v16512_v22 }
 0x22b   : > { %14951 = vmatpush3.bf16.msra.mxu0 %v16511_v21 }
 0x22c   : > { %14952 = vmatprep.subr.bf16.mxu0 %v16514_v27  ;;  %14973 = vmatpush3.bf16.msra.mxu1 %v16513_v24 }
 0x22d   : > { %v14650_v23 = vpop.f32.mrb[28].mxu0  ;;  %14974 = vmatprep.subr.bf16.mxu1 %v16516_v35  ;;  %v249_v35 = vld [vmem:[%s17533_s27 + $0xf0] sm:$0xff] }
 0x22e   : > { %v14651_v25 = vpop.f32.mrb[29].mxu0  ;;  %v14672_v29 = vpop.f32.mrb[28].mxu1 }
 0x22f   : > { %v14652_v26 = vadd.f32 %v14651_v25, %v14650_v23  ;;  %v14653_v28 = vpop.f32.mrb[30].mxu0  ;;  %v14673_v33 = vpop.f32.mrb[29].mxu1  ;;  %14953 = vmatpush3.bf16.msra.mxu0 %v16515_v30  ;;  %v16550_v23 = vld [vmem:[%s17519_s4 + $0xfe8] sm:$0xff]   ;;  %v16554_v30 = vld [vmem:[%s17519_s4 + $0xff0] sm:$0xff]  }
 0x230   : > { %v14654_v32 = vpop.f32.mrb[31].mxu0  ;;  %v14674_v34 = vadd.f32 %v14673_v33, %v14672_v29  ;;  %v14675_v36 = vpop.f32.mrb[30].mxu1  ;;  %14975 = vmatpush3.bf16.msra.mxu1 %v16517_v37  ;;  %14954 = vmatprep.subr.bf16.mxu0 %v16518_v40  ;;  %v16551_v25 = vld [vmem:[%s17519_s4 + $0xfa8] sm:$0xff]   ;;  %v16552_v28 = vld [vmem:[%s17519_s4 + $0xf70] sm:$0xff]   ;;  %v16557_v33 = vld [vmem:[%s17519_s4 + $0xf38] sm:$0xff]  }
 0x231   : > { %v10662_v31 = vadd.f32 %v14652_v26, %v18021_v51  ;;  %v14676_v38 = vpop.f32.mrb[31].mxu1  ;;  %14976 = vmatprep.subr.bf16.mxu1 %v16520_v42  ;;  %v16527_v51 = vld [vmem:[%s17519_s4 + $0xf40] sm:$0xff]   ;;  %v16553_v29 = vld [vmem:[%s17519_s4 + $0xf30] sm:$0xff]   ;;  %v16556_v32 = vld [vmem:[%s17519_s4 + $0xf78] sm:$0xff]   ;;  %v396_v36 = vcombine.high %v249_v35, %v249_v35 }
 0x232   : > { %v16560_v37 = vld [vmem:[%s17519_s4 + $0xfb8] sm:$0xff]   ;;  %v572_v38 = vpack.c.bf16 %v249_v35, %v249_v35  ;;  %v16599_v35 = vld [vmem:[%s17519_s4 + $0x1180] sm:$0xff]  }
 0x233   : > { %v18058_v39 = vadd.f32 %v14674_v34, %v10662_v31  ;;  %14955 = vmatpush3.bf16.msra.mxu0 %v16519_v41  ;;  %v16555_v31 = vld [vmem:[%s17519_s4 + $0xfb0] sm:$0xff]   ;;  %v16558_v34 = vld [vmem:[%s17519_s4 + $0xff8] sm:$0xff]   ;;  %v573_v41 = vpack.c.bf16 %v396_v36, %v396_v36  ;;  %v16600_v36 = vld [vmem:[%s17519_s4 + $0x1148] sm:$0xff]  }
 0x234   : > { %14977 = vmatpush3.bf16.msra.mxu1 %v16521_v43  ;;  %14956 = vmatprep.subr.bf16.mxu0 %v16522_v44  ;;  %v250_v40 = vld [vmem:[%s17533_s27 + $0xf8] sm:$0xff]  ;;  %v16563_v43 = vld [vmem:[%s17519_s4 + $0x1000] sm:$0xff]  }
 0x235   : > { %14978 = vmatprep.subr.bf16.mxu1 %v16524_v46  ;;  %v397_v42 = vcombine.high %v250_v40, %v250_v40  ;;  %v574_v44 = vpack.c.bf16 %v250_v40, %v250_v40  ;;  %v16604_v40 = vld [vmem:[%s17519_s4 + $0x1150] sm:$0xff]  }
 0x237   : > { %14957 = vmatpush3.bf16.msra.mxu0 %v16523_v45  ;;  %v16564_v45 = vld [vmem:[%s17519_s4 + $0x10c0] sm:$0xff]   ;;  %v575_v46 = vpack.c.bf16 %v397_v42, %v397_v42  ;;  %v16606_v42 = vld [vmem:[%s17519_s4 + $0x11d0] sm:$0xff]  }
 0x238   : > { %14979 = vmatpush3.bf16.msra.mxu1 %v16526_v49  ;;  %14986 = vmatprep.subr.bf16.mxu0 %v16527_v51  ;;  %v16567_v49 = vld [vmem:[%s17519_s4 + $0x1008] sm:$0xff]  }
 0x239   : > { %15008 = vmatprep.subr.bf16.mxu1 %v16530_v57  ;;  %v16569_v51 = vld [vmem:[%s17519_s4 + $0x1088] sm:$0xff]   ;;  %v16575_v57 = vld [vmem:[%s17519_s4 + $0x1018] sm:$0xff]  }
 0x23a   : > { %11220 = vmatmul.mubr.bf16.vlgmr.msra.gmra.mrb[56].mxu0 %v568_v50  ;;  %v16568_v50 = vld [vmem:[%s17519_s4 + $0x10c8] sm:$0xff]  }
 0x23b   : > { %14987 = vmatpush3.bf16.msra.mxu0 %v16529_v55  ;;  %11260 = vmatmul.mubr.bf16.vlgmr.msra.gmra.mrb[56].mxu1 %v570_v56  ;;  %v16573_v55 = vld [vmem:[%s17519_s4 + $0x1090] sm:$0xff]   ;;  %v16574_v56 = vld [vmem:[%s17519_s4 + $0x1058] sm:$0xff]  }
 0x23c   : > { %14988 = vmatprep.subr.bf16.mxu0 %v16532_v60  ;;  %15009 = vmatpush3.bf16.msra.mxu1 %v16531_v59  ;;  %v16577_v59 = vld [vmem:[%s17519_s4 + $0x1098] sm:$0xff]   ;;  %v16578_v60 = vld [vmem:[%s17519_s4 + $0x1060] sm:$0xff]  }
 0x23d   : > { %15010 = vmatprep.subr.bf16.mxu1 %v16534_v62  ;;  %11299 = vmatprep.mubr.bf16.mxu0 %v573_v41  ;;  %v16580_v62 = vld [vmem:[%s17519_s4 + $0x10e0] sm:$0xff]   ;;  %v16605_v41 = vld [vmem:[%s17519_s4 + $0x1110] sm:$0xff]  }
 0x23e   : > { %11339 = vmatprep.mubr.bf16.mxu1 %v575_v46  ;;  %v16610_v46 = vld [vmem:[%s17519_s4 + $0x11d8] sm:$0xff]  }
 0x23f   : > { %14989 = vmatpush3.bf16.msra.mxu0 %v16533_v61  ;;  %v16579_v61 = vld [vmem:[%s17519_s4 + $0x1020] sm:$0xff]  }
 0x240   : > { %14990 = vmatprep.subr.bf16.mxu0 %v16536_v0  ;;  %15011 = vmatpush3.bf16.msra.mxu1 %v16535_v63  ;;  %v16581_v0 = vld [vmem:[%s17519_s4 + $0x10a0] sm:$0xff]  }
 0x241   : > { %15012 = vmatprep.subr.bf16.mxu1 %v16538_v2 }
 0x243   : > { %14991 = vmatpush3.bf16.msra.mxu0 %v16537_v1 }
 0x244   : > { %14992 = vmatprep.subr.bf16.mxu0 %v16540_v4  ;;  %15013 = vmatpush3.bf16.msra.mxu1 %v16539_v3  ;;  %v16582_v3 = vld [vmem:[%s17519_s4 + $0x1068] sm:$0xff]  }
 0x245   : > { %15014 = vmatprep.subr.bf16.mxu1 %v16542_v6  ;;  %v16583_v6 = vld [vmem:[%s17519_s4 + $0x1028] sm:$0xff]  }
 0x247   : > { %14993 = vmatpush3.bf16.msra.mxu0 %v16541_v5 }
 0x248   : > { %14994 = vmatprep.subr.bf16.mxu0 %v16544_v8  ;;  %15015 = vmatpush3.bf16.msra.mxu1 %v16543_v7 }
 0x249   : > { %15016 = vmatprep.subr.bf16.mxu1 %v16546_v10 }
 0x24b   : > { %14995 = vmatpush3.bf16.msra.mxu0 %v16545_v9 }
 0x24c   : > { %14996 = vmatprep.subr.bf16.mxu0 %v16548_v15  ;;  %15017 = vmatpush3.bf16.msra.mxu1 %v16547_v12 }
 0x24d   : > { %v14694_v11 = vpop.f32.mrb[32].mxu0  ;;  %15018 = vmatprep.subr.bf16.mxu1 %v16550_v23  ;;  %v251_v23 = vld [vmem:[%s17533_s27 + $0x100] sm:$0xff] }
 0x24e   : > { %v14695_v13 = vpop.f32.mrb[33].mxu0  ;;  %v14716_v17 = vpop.f32.mrb[32].mxu1 }
 0x24f   : > { %v14696_v14 = vadd.f32 %v14695_v13, %v14694_v11  ;;  %v14697_v16 = vpop.f32.mrb[34].mxu0  ;;  %v14717_v21 = vpop.f32.mrb[33].mxu1  ;;  %14997 = vmatpush3.bf16.msra.mxu0 %v16549_v18  ;;  %v16584_v11 = vld [vmem:[%s17519_s4 + $0x10e8] sm:$0xff]   ;;  %v16588_v18 = vld [vmem:[%s17519_s4 + $0x10f0] sm:$0xff]  }
 0x250   : > { %v14698_v20 = vpop.f32.mrb[35].mxu0  ;;  %v14718_v22 = vadd.f32 %v14717_v21, %v14716_v17  ;;  %v14719_v24 = vpop.f32.mrb[34].mxu1  ;;  %15019 = vmatpush3.bf16.msra.mxu1 %v16551_v25  ;;  %14998 = vmatprep.subr.bf16.mxu0 %v16552_v28  ;;  %v16585_v13 = vld [vmem:[%s17519_s4 + $0x10a8] sm:$0xff]   ;;  %v16586_v16 = vld [vmem:[%s17519_s4 + $0x1070] sm:$0xff]   ;;  %v16591_v21 = vld [vmem:[%s17519_s4 + $0x1038] sm:$0xff]  }
 0x251   : > { %v10742_v19 = vadd.f32 %v14696_v14, %v18058_v39  ;;  %v14720_v26 = vpop.f32.mrb[35].mxu1  ;;  %15020 = vmatprep.subr.bf16.mxu1 %v16554_v30  ;;  %v16561_v39 = vld [vmem:[%s17519_s4 + $0x1040] sm:$0xff]   ;;  %v16587_v17 = vld [vmem:[%s17519_s4 + $0x1030] sm:$0xff]   ;;  %v16590_v20 = vld [vmem:[%s17519_s4 + $0x1078] sm:$0xff]   ;;  %v398_v24 = vcombine.high %v251_v23, %v251_v23 }
 0x252   : > { %v16594_v25 = vld [vmem:[%s17519_s4 + $0x10b8] sm:$0xff]   ;;  %v576_v26 = vpack.c.bf16 %v251_v23, %v251_v23  ;;  %v252_v28 = vld [vmem:[%s17533_s27 + $0x108] sm:$0xff] }
 0x253   : > { %v18095_v27 = vadd.f32 %v14718_v22, %v10742_v19  ;;  %14999 = vmatpush3.bf16.msra.mxu0 %v16553_v29  ;;  %v16589_v19 = vld [vmem:[%s17519_s4 + $0x10b0] sm:$0xff]   ;;  %v16592_v22 = vld [vmem:[%s17519_s4 + $0x10f8] sm:$0xff]   ;;  %v577_v29 = vpack.c.bf16 %v398_v24, %v398_v24  ;;  %v399_v30 = vcombine.high %v252_v28, %v252_v28  ;;  %v16633_v23 = vld [vmem:[%s17519_s4 + $0x1280] sm:$0xff]  }
 0x254   : > { %15021 = vmatpush3.bf16.msra.mxu1 %v16555_v31  ;;  %15000 = vmatprep.subr.bf16.mxu0 %v16556_v32  ;;  %v16597_v31 = vld [vmem:[%s17519_s4 + $0x1100] sm:$0xff]   ;;  %v578_v32 = vpack.c.bf16 %v252_v28, %v252_v28  ;;  %v16634_v24 = vld [vmem:[%s17519_s4 + $0x1248] sm:$0xff]   ;;  %v16638_v28 = vld [vmem:[%s17519_s4 + $0x1250] sm:$0xff]  }
 0x255   : > { %15022 = vmatprep.subr.bf16.mxu1 %v16558_v34  ;;  %v579_v34 = vpack.c.bf16 %v399_v30, %v399_v30  ;;  %v16640_v30 = vld [vmem:[%s17519_s4 + $0x12d0] sm:$0xff]  }
 0x257   : > { %15001 = vmatpush3.bf16.msra.mxu0 %v16557_v33  ;;  %v16598_v33 = vld [vmem:[%s17519_s4 + $0x11c0] sm:$0xff]  }
 0x258   : > { %15023 = vmatpush3.bf16.msra.mxu1 %v16560_v37  ;;  %15030 = vmatprep.subr.bf16.mxu0 %v16561_v39  ;;  %v16601_v37 = vld [vmem:[%s17519_s4 + $0x1108] sm:$0xff]  }
 0x259   : > { %15052 = vmatprep.subr.bf16.mxu1 %v16564_v45  ;;  %v16603_v39 = vld [vmem:[%s17519_s4 + $0x1188] sm:$0xff]   ;;  %v16609_v45 = vld [vmem:[%s17519_s4 + $0x1118] sm:$0xff]  }
 0x25a   : > { %11300 = vmatmul.mubr.bf16.vlgmr.msra.gmra.mrb[60].mxu0 %v572_v38  ;;  %v16602_v38 = vld [vmem:[%s17519_s4 + $0x11c8] sm:$0xff]  }
 0x25b   : > { %15031 = vmatpush3.bf16.msra.mxu0 %v16563_v43  ;;  %11340 = vmatmul.mubr.bf16.vlgmr.msra.gmra.mrb[60].mxu1 %v574_v44  ;;  %v16607_v43 = vld [vmem:[%s17519_s4 + $0x1190] sm:$0xff]   ;;  %v16608_v44 = vld [vmem:[%s17519_s4 + $0x1158] sm:$0xff]  }
 0x25c   : > { %15032 = vmatprep.subr.bf16.mxu0 %v16566_v48  ;;  %15053 = vmatpush3.bf16.msra.mxu1 %v16565_v47  ;;  %v16611_v47 = vld [vmem:[%s17519_s4 + $0x1198] sm:$0xff]   ;;  %v16612_v48 = vld [vmem:[%s17519_s4 + $0x1160] sm:$0xff]  }
 0x25d   : > { %15054 = vmatprep.subr.bf16.mxu1 %v16568_v50  ;;  %11379 = vmatprep.mubr.bf16.mxu0 %v577_v29  ;;  %v16614_v50 = vld [vmem:[%s17519_s4 + $0x11e0] sm:$0xff]   ;;  %v16639_v29 = vld [vmem:[%s17519_s4 + $0x1210] sm:$0xff]  }
 0x25e   : > { %11419 = vmatprep.mubr.bf16.mxu1 %v579_v34  ;;  %v16644_v34 = vld [vmem:[%s17519_s4 + $0x12d8] sm:$0xff]  }
 0x25f   : > { %15033 = vmatpush3.bf16.msra.mxu0 %v16567_v49  ;;  %v16613_v49 = vld [vmem:[%s17519_s4 + $0x1120] sm:$0xff]  }
 0x260   : > { %15034 = vmatprep.subr.bf16.mxu0 %v16570_v52  ;;  %15055 = vmatpush3.bf16.msra.mxu1 %v16569_v51  ;;  %v16615_v52 = vld [vmem:[%s17519_s4 + $0x11a0] sm:$0xff]  }
 0x261   : > { %15056 = vmatprep.subr.bf16.mxu1 %v16572_v54 }
 0x263   : > { %15035 = vmatpush3.bf16.msra.mxu0 %v16571_v53 }
 0x264   : > { %15036 = vmatprep.subr.bf16.mxu0 %v16574_v56  ;;  %15057 = vmatpush3.bf16.msra.mxu1 %v16573_v55  ;;  %v16616_v55 = vld [vmem:[%s17519_s4 + $0x1168] sm:$0xff]  }
 0x265   : > { %15058 = vmatprep.subr.bf16.mxu1 %v16576_v58  ;;  %v16617_v58 = vld [vmem:[%s17519_s4 + $0x1128] sm:$0xff]  }
 0x267   : > { %15037 = vmatpush3.bf16.msra.mxu0 %v16575_v57 }
 0x268   : > { %15038 = vmatprep.subr.bf16.mxu0 %v16578_v60  ;;  %15059 = vmatpush3.bf16.msra.mxu1 %v16577_v59 }
 0x269   : > { %15060 = vmatprep.subr.bf16.mxu1 %v16580_v62 }
 0x26b   : > { %15039 = vmatpush3.bf16.msra.mxu0 %v16579_v61 }
 0x26c   : > { %15040 = vmatprep.subr.bf16.mxu0 %v16582_v3  ;;  %15061 = vmatpush3.bf16.msra.mxu1 %v16581_v0 }
 0x26d   : > { %v14738_v63 = vpop.f32.mrb[36].mxu0  ;;  %15062 = vmatprep.subr.bf16.mxu1 %v16584_v11  ;;  %v253_v11 = vld [vmem:[%s17533_s27 + $0x110] sm:$0xff] }
 0x26e   : > { %v14739_v1 = vpop.f32.mrb[37].mxu0  ;;  %v14760_v5 = vpop.f32.mrb[36].mxu1 }
 0x26f   : > { %v14740_v2 = vadd.f32 %v14739_v1, %v14738_v63  ;;  %v14741_v4 = vpop.f32.mrb[38].mxu0  ;;  %v14761_v9 = vpop.f32.mrb[37].mxu1  ;;  %15041 = vmatpush3.bf16.msra.mxu0 %v16583_v6  ;;  %v16618_v63 = vld [vmem:[%s17519_s4 + $0x11e8] sm:$0xff]   ;;  %v16622_v6 = vld [vmem:[%s17519_s4 + $0x11f0] sm:$0xff]  }
 0x270   : > { %v14742_v8 = vpop.f32.mrb[39].mxu0  ;;  %v14762_v10 = vadd.f32 %v14761_v9, %v14760_v5  ;;  %v14763_v12 = vpop.f32.mrb[38].mxu1  ;;  %15063 = vmatpush3.bf16.msra.mxu1 %v16585_v13  ;;  %15042 = vmatprep.subr.bf16.mxu0 %v16586_v16  ;;  %v16619_v1 = vld [vmem:[%s17519_s4 + $0x11a8] sm:$0xff]   ;;  %v16620_v4 = vld [vmem:[%s17519_s4 + $0x1170] sm:$0xff]   ;;  %v16625_v9 = vld [vmem:[%s17519_s4 + $0x1138] sm:$0xff]  }
 0x271   : > { %v10822_v7 = vadd.f32 %v14740_v2, %v18095_v27  ;;  %v14764_v14 = vpop.f32.mrb[39].mxu1  ;;  %15064 = vmatprep.subr.bf16.mxu1 %v16588_v18  ;;  %v16595_v27 = vld [vmem:[%s17519_s4 + $0x1140] sm:$0xff]   ;;  %v16621_v5 = vld [vmem:[%s17519_s4 + $0x1130] sm:$0xff]   ;;  %v16624_v8 = vld [vmem:[%s17519_s4 + $0x1178] sm:$0xff]   ;;  %v400_v12 = vcombine.high %v253_v11, %v253_v11 }
 0x272   : > { %v16628_v13 = vld [vmem:[%s17519_s4 + $0x11b8] sm:$0xff]   ;;  %v580_v14 = vpack.c.bf16 %v253_v11, %v253_v11  ;;  %v16667_v11 = vld [vmem:[%s17519_s4 + $0x1380] sm:$0xff]  }
 0x273   : > { %v18132_v15 = vadd.f32 %v14762_v10, %v10822_v7  ;;  %15043 = vmatpush3.bf16.msra.mxu0 %v16587_v17  ;;  %v16623_v7 = vld [vmem:[%s17519_s4 + $0x11b0] sm:$0xff]   ;;  %v16626_v10 = vld [vmem:[%s17519_s4 + $0x11f8] sm:$0xff]   ;;  %v581_v17 = vpack.c.bf16 %v400_v12, %v400_v12  ;;  %v16668_v12 = vld [vmem:[%s17519_s4 + $0x1348] sm:$0xff]  }
 0x274   : > { %15065 = vmatpush3.bf16.msra.mxu1 %v16589_v19  ;;  %15044 = vmatprep.subr.bf16.mxu0 %v16590_v20  ;;  %v254_v16 = vld [vmem:[%s17533_s27 + $0x118] sm:$0xff]  ;;  %v16631_v19 = vld [vmem:[%s17519_s4 + $0x1200] sm:$0xff]  }
 0x275   : > { %15066 = vmatprep.subr.bf16.mxu1 %v16592_v22  ;;  %v401_v18 = vcombine.high %v254_v16, %v254_v16  ;;  %v582_v20 = vpack.c.bf16 %v254_v16, %v254_v16  ;;  %v16672_v16 = vld [vmem:[%s17519_s4 + $0x1350] sm:$0xff]  }
 0x277   : > { %15045 = vmatpush3.bf16.msra.mxu0 %v16591_v21  ;;  %v16632_v21 = vld [vmem:[%s17519_s4 + $0x12c0] sm:$0xff]   ;;  %v583_v22 = vpack.c.bf16 %v401_v18, %v401_v18  ;;  %v16674_v18 = vld [vmem:[%s17519_s4 + $0x13d0] sm:$0xff]  }
 0x278   : > { %15067 = vmatpush3.bf16.msra.mxu1 %v16594_v25  ;;  %15074 = vmatprep.subr.bf16.mxu0 %v16595_v27  ;;  %v16635_v25 = vld [vmem:[%s17519_s4 + $0x1208] sm:$0xff]  }
 0x279   : > { %15096 = vmatprep.subr.bf16.mxu1 %v16598_v33  ;;  %v16637_v27 = vld [vmem:[%s17519_s4 + $0x1288] sm:$0xff]   ;;  %v16643_v33 = vld [vmem:[%s17519_s4 + $0x1218] sm:$0xff]  }
 0x27a   : > { %11380 = vmatmul.mubr.bf16.vlgmr.msra.gmra.mrb[64].mxu0 %v576_v26  ;;  %v16636_v26 = vld [vmem:[%s17519_s4 + $0x12c8] sm:$0xff]  }
 0x27b   : > { %15075 = vmatpush3.bf16.msra.mxu0 %v16597_v31  ;;  %11420 = vmatmul.mubr.bf16.vlgmr.msra.gmra.mrb[64].mxu1 %v578_v32  ;;  %v16641_v31 = vld [vmem:[%s17519_s4 + $0x1290] sm:$0xff]   ;;  %v16642_v32 = vld [vmem:[%s17519_s4 + $0x1258] sm:$0xff]  }
 0x27c   : > { %15076 = vmatprep.subr.bf16.mxu0 %v16600_v36  ;;  %15097 = vmatpush3.bf16.msra.mxu1 %v16599_v35  ;;  %v16645_v35 = vld [vmem:[%s17519_s4 + $0x1298] sm:$0xff]   ;;  %v16646_v36 = vld [vmem:[%s17519_s4 + $0x1260] sm:$0xff]  }
 0x27d   : > { %15098 = vmatprep.subr.bf16.mxu1 %v16602_v38  ;;  %11459 = vmatprep.mubr.bf16.mxu0 %v581_v17  ;;  %v16673_v17 = vld [vmem:[%s17519_s4 + $0x1310] sm:$0xff]  }
 0x27e   : > { %11499 = vmatprep.mubr.bf16.mxu1 %v583_v22  ;;  %v16678_v22 = vld [vmem:[%s17519_s4 + $0x13d8] sm:$0xff]  }
 0x27f   : > { %15077 = vmatpush3.bf16.msra.mxu0 %v16601_v37  ;;  %v16647_v37 = vld [vmem:[%s17519_s4 + $0x1220] sm:$0xff]  }
 0x280   : > { %15078 = vmatprep.subr.bf16.mxu0 %v16604_v40  ;;  %15099 = vmatpush3.bf16.msra.mxu1 %v16603_v39  ;;  %v16648_v39 = vld [vmem:[%s17519_s4 + $0x12e0] sm:$0xff]  }
 0x281   : > { %15100 = vmatprep.subr.bf16.mxu1 %v16606_v42 }
 0x283   : > { %15079 = vmatpush3.bf16.msra.mxu0 %v16605_v41  ;;  %v16649_v41 = vld [vmem:[%s17519_s4 + $0x12a0] sm:$0xff]  }
 0x284   : > { %15080 = vmatprep.subr.bf16.mxu0 %v16608_v44  ;;  %15101 = vmatpush3.bf16.msra.mxu1 %v16607_v43  ;;  %v16650_v44 = vld [vmem:[%s17519_s4 + $0x1268] sm:$0xff]  }
 0x285   : > { %15102 = vmatprep.subr.bf16.mxu1 %v16610_v46 }
 0x287   : > { %15081 = vmatpush3.bf16.msra.mxu0 %v16609_v45 }
 0x288   : > { %15082 = vmatprep.subr.bf16.mxu0 %v16612_v48  ;;  %15103 = vmatpush3.bf16.msra.mxu1 %v16611_v47  ;;  %v16651_v47 = vld [vmem:[%s17519_s4 + $0x1228] sm:$0xff]  }
 0x289   : > { %15104 = vmatprep.subr.bf16.mxu1 %v16614_v50  ;;  %v16652_v50 = vld [vmem:[%s17519_s4 + $0x12e8] sm:$0xff]  }
 0x28b   : > { %15083 = vmatpush3.bf16.msra.mxu0 %v16613_v49 }
 0x28c   : > { %15084 = vmatprep.subr.bf16.mxu0 %v16616_v55  ;;  %15105 = vmatpush3.bf16.msra.mxu1 %v16615_v52  ;;  %v16653_v52 = vld [vmem:[%s17519_s4 + $0x12a8] sm:$0xff]  }
 0x28d   : > { %v14782_v51 = vpop.f32.mrb[40].mxu0  ;;  %15106 = vmatprep.subr.bf16.mxu1 %v16618_v63  ;;  %v255_v63 = vld [vmem:[%s17533_s27 + $0x120] sm:$0xff] }
 0x28e   : > { %v14783_v53 = vpop.f32.mrb[41].mxu0  ;;  %v14804_v57 = vpop.f32.mrb[40].mxu1 }
 0x28f   : > { %v14784_v54 = vadd.f32 %v14783_v53, %v14782_v51  ;;  %v14785_v56 = vpop.f32.mrb[42].mxu0  ;;  %v14805_v61 = vpop.f32.mrb[41].mxu1  ;;  %15085 = vmatpush3.bf16.msra.mxu0 %v16617_v58  ;;  %v16656_v58 = vld [vmem:[%s17519_s4 + $0x12f0] sm:$0xff]  }
 0x290   : > { %v14786_v60 = vpop.f32.mrb[43].mxu0  ;;  %v14806_v62 = vadd.f32 %v14805_v61, %v14804_v57  ;;  %v14807_v0 = vpop.f32.mrb[42].mxu1  ;;  %15107 = vmatpush3.bf16.msra.mxu1 %v16619_v1  ;;  %15086 = vmatprep.subr.bf16.mxu0 %v16620_v4  ;;  %v16655_v57 = vld [vmem:[%s17519_s4 + $0x1230] sm:$0xff]   ;;  %v16659_v61 = vld [vmem:[%s17519_s4 + $0x1238] sm:$0xff]   ;;  %v256_v4 = vld [vmem:[%s17533_s27 + $0x128] sm:$0xff] }
 0x291   : > { %v10902_v59 = vadd.f32 %v14784_v54, %v18132_v15  ;;  %v14808_v2 = vpop.f32.mrb[43].mxu1  ;;  %15108 = vmatprep.subr.bf16.mxu1 %v16622_v6  ;;  %v16629_v15 = vld [vmem:[%s17519_s4 + $0x1240] sm:$0xff]   ;;  %v16654_v54 = vld [vmem:[%s17519_s4 + $0x1270] sm:$0xff]   ;;  %v16658_v60 = vld [vmem:[%s17519_s4 + $0x1278] sm:$0xff]   ;;  %v402_v0 = vcombine.high %v255_v63, %v255_v63  ;;  %v403_v6 = vcombine.high %v256_v4, %v256_v4 }
 0x292   : > { %v16662_v1 = vld [vmem:[%s17519_s4 + $0x12b8] sm:$0xff]   ;;  %v584_v2 = vpack.c.bf16 %v255_v63, %v255_v63  ;;  %v16701_v63 = vld [vmem:[%s17519_s4 + $0x1480] sm:$0xff]  }
 0x293   : > { %v18169_v3 = vadd.f32 %v14806_v62, %v10902_v59  ;;  %15087 = vmatpush3.bf16.msra.mxu0 %v16621_v5  ;;  %v16657_v59 = vld [vmem:[%s17519_s4 + $0x12b0] sm:$0xff]   ;;  %v16660_v62 = vld [vmem:[%s17519_s4 + $0x12f8] sm:$0xff]   ;;  %v585_v5 = vpack.c.bf16 %v402_v0, %v402_v0  ;;  %v16702_v0 = vld [vmem:[%s17519_s4 + $0x1448] sm:$0xff]  }
 0x294   : > { %15109 = vmatpush3.bf16.msra.mxu1 %v16623_v7  ;;  %15088 = vmatprep.subr.bf16.mxu0 %v16624_v8  ;;  %v16665_v7 = vld [vmem:[%s17519_s4 + $0x1300] sm:$0xff]   ;;  %v586_v8 = vpack.c.bf16 %v256_v4, %v256_v4  ;;  %v16706_v4 = vld [vmem:[%s17519_s4 + $0x1450] sm:$0xff]  }
 0x295   : > { %15110 = vmatprep.subr.bf16.mxu1 %v16626_v10  ;;  %v587_v10 = vpack.c.bf16 %v403_v6, %v403_v6  ;;  %v16708_v6 = vld [vmem:[%s17519_s4 + $0x14d0] sm:$0xff]  }
 0x297   : > { %15089 = vmatpush3.bf16.msra.mxu0 %v16625_v9  ;;  %v16666_v9 = vld [vmem:[%s17519_s4 + $0x13c0] sm:$0xff]  }
 0x298   : > { %15111 = vmatpush3.bf16.msra.mxu1 %v16628_v13  ;;  %15118 = vmatprep.subr.bf16.mxu0 %v16629_v15  ;;  %v16669_v13 = vld [vmem:[%s17519_s4 + $0x1308] sm:$0xff]  }
 0x299   : > { %15140 = vmatprep.subr.bf16.mxu1 %v16632_v21  ;;  %v16671_v15 = vld [vmem:[%s17519_s4 + $0x1388] sm:$0xff]   ;;  %v16677_v21 = vld [vmem:[%s17519_s4 + $0x1318] sm:$0xff]  }
 0x29a   : > { %11460 = vmatmul.mubr.bf16.vlgmr.msra.gmra.mrb[68].mxu0 %v580_v14  ;;  %v16670_v14 = vld [vmem:[%s17519_s4 + $0x13c8] sm:$0xff]  }
 0x29b   : > { %15119 = vmatpush3.bf16.msra.mxu0 %v16631_v19  ;;  %11500 = vmatmul.mubr.bf16.vlgmr.msra.gmra.mrb[68].mxu1 %v582_v20  ;;  %v16675_v19 = vld [vmem:[%s17519_s4 + $0x1390] sm:$0xff]   ;;  %v16676_v20 = vld [vmem:[%s17519_s4 + $0x1358] sm:$0xff]  }
 0x29c   : > { %15120 = vmatprep.subr.bf16.mxu0 %v16634_v24  ;;  %15141 = vmatpush3.bf16.msra.mxu1 %v16633_v23  ;;  %v16679_v23 = vld [vmem:[%s17519_s4 + $0x1398] sm:$0xff]   ;;  %v16680_v24 = vld [vmem:[%s17519_s4 + $0x1360] sm:$0xff]  }
 0x29d   : > { %15142 = vmatprep.subr.bf16.mxu1 %v16636_v26  ;;  %11539 = vmatprep.mubr.bf16.mxu0 %v585_v5  ;;  %v16707_v5 = vld [vmem:[%s17519_s4 + $0x1410] sm:$0xff]  }
 0x29e   : > { %11579 = vmatprep.mubr.bf16.mxu1 %v587_v10  ;;  %v16712_v10 = vld [vmem:[%s17519_s4 + $0x14d8] sm:$0xff]  }
 0x29f   : > { %15121 = vmatpush3.bf16.msra.mxu0 %v16635_v25  ;;  %v16681_v25 = vld [vmem:[%s17519_s4 + $0x1320] sm:$0xff]  }
 0x2a0   : > { %15122 = vmatprep.subr.bf16.mxu0 %v16638_v28  ;;  %15143 = vmatpush3.bf16.msra.mxu1 %v16637_v27  ;;  %v16682_v27 = vld [vmem:[%s17519_s4 + $0x13e0] sm:$0xff]  }
 0x2a1   : > { %15144 = vmatprep.subr.bf16.mxu1 %v16640_v30 }
 0x2a3   : > { %15123 = vmatpush3.bf16.msra.mxu0 %v16639_v29  ;;  %v16683_v29 = vld [vmem:[%s17519_s4 + $0x13a0] sm:$0xff]  }
 0x2a4   : > { %15124 = vmatprep.subr.bf16.mxu0 %v16642_v32  ;;  %15145 = vmatpush3.bf16.msra.mxu1 %v16641_v31  ;;  %v16684_v32 = vld [vmem:[%s17519_s4 + $0x1368] sm:$0xff]  }
 0x2a5   : > { %15146 = vmatprep.subr.bf16.mxu1 %v16644_v34 }
 0x2a7   : > { %15125 = vmatpush3.bf16.msra.mxu0 %v16643_v33 }
 0x2a8   : > { %15126 = vmatprep.subr.bf16.mxu0 %v16646_v36  ;;  %15147 = vmatpush3.bf16.msra.mxu1 %v16645_v35  ;;  %v16685_v35 = vld [vmem:[%s17519_s4 + $0x1328] sm:$0xff]  }
 0x2a9   : > { %15148 = vmatprep.subr.bf16.mxu1 %v16648_v39 }
 0x2ab   : > { %15127 = vmatpush3.bf16.msra.mxu0 %v16647_v37 }
 0x2ac   : > { %15128 = vmatprep.subr.bf16.mxu0 %v16650_v44  ;;  %15149 = vmatpush3.bf16.msra.mxu1 %v16649_v41 }
 0x2ad   : > { %v14826_v38 = vpop.f32.mrb[44].mxu0  ;;  %15150 = vmatprep.subr.bf16.mxu1 %v16652_v50  ;;  %v16694_v50 = vld [vmem:[%s17519_s4 + $0x13f8] sm:$0xff]  }
 0x2ae   : > { %v14827_v40 = vpop.f32.mrb[45].mxu0  ;;  %v14848_v45 = vpop.f32.mrb[44].mxu1 }
 0x2af   : > { %v14828_v42 = vadd.f32 %v14827_v40, %v14826_v38  ;;  %v14829_v43 = vpop.f32.mrb[46].mxu0  ;;  %v14849_v49 = vpop.f32.mrb[45].mxu1  ;;  %15129 = vmatpush3.bf16.msra.mxu0 %v16651_v47  ;;  %v16686_v38 = vld [vmem:[%s17519_s4 + $0x13e8] sm:$0xff]   ;;  %v16691_v47 = vld [vmem:[%s17519_s4 + $0x13b0] sm:$0xff]  }
 0x2b0   : > { %v14830_v48 = vpop.f32.mrb[47].mxu0  ;;  %v14850_v51 = vadd.f32 %v14849_v49, %v14848_v45  ;;  %v14851_v53 = vpop.f32.mrb[46].mxu1  ;;  %15130 = vmatprep.subr.bf16.mxu0 %v16654_v54  ;;  %15151 = vmatpush3.bf16.msra.mxu1 %v16653_v52  ;;  %v16687_v40 = vld [vmem:[%s17519_s4 + $0x13a8] sm:$0xff]   ;;  %v16688_v43 = vld [vmem:[%s17519_s4 + $0x1370] sm:$0xff]   ;;  %v16693_v49 = vld [vmem:[%s17519_s4 + $0x1338] sm:$0xff]  }
 0x2b1   : > { %v10982_v46 = vadd.f32 %v14828_v42, %v18169_v3  ;;  %v14852_v55 = vpop.f32.mrb[47].mxu1  ;;  %15152 = vmatprep.subr.bf16.mxu1 %v16656_v58  ;;  %v16663_v3 = vld [vmem:[%s17519_s4 + $0x1340] sm:$0xff]   ;;  %v16689_v45 = vld [vmem:[%s17519_s4 + $0x1330] sm:$0xff]   ;;  %v16692_v48 = vld [vmem:[%s17519_s4 + $0x1378] sm:$0xff]  }
 0x2b2   : > { %v16696_v53 = vld [vmem:[%s17519_s4 + $0x13b8] sm:$0xff]   ;;  %v16697_v55 = vld [vmem:[%s17519_s4 + $0x1440] sm:$0xff]  }
 0x2b3   : > { %v18207_v56 = vadd.f32 %v14850_v51, %v10982_v46  ;;  %15131 = vmatpush3.bf16.msra.mxu0 %v16655_v57  ;;  %v16690_v46 = vld [vmem:[%s17519_s4 + $0x13f0] sm:$0xff]  }
 0x2b4   : > { %15132 = vmatprep.subr.bf16.mxu0 %v16658_v60  ;;  %15153 = vmatpush3.bf16.msra.mxu1 %v16657_v59  ;;  %v257_v51 = vld [vmem:[%s17533_s27 + $0x130] sm:$0xff]  ;;  %v258_v57 = vld [vmem:[%s17533_s27 + $0x138] sm:$0xff]  ;;  %v16699_v59 = vld [vmem:[%s17519_s4 + $0x1400] sm:$0xff]  }
 0x2b5   : > { %15154 = vmatprep.subr.bf16.mxu1 %v16660_v62  ;;  %v404_v52 = vcombine.high %v257_v51, %v257_v51  ;;  %v588_v54 = vpack.c.bf16 %v257_v51, %v257_v51  ;;  %v405_v58 = vcombine.high %v258_v57, %v258_v57  ;;  %v590_v60 = vpack.c.bf16 %v258_v57, %v258_v57  ;;  %v16735_v51 = vld [vmem:[%s17519_s4 + $0x1580] sm:$0xff]   ;;  %v16741_v57 = vld [vmem:[%s17519_s4 + $0x1510] sm:$0xff]  }
 0x2b7   : > { %15133 = vmatpush3.bf16.msra.mxu0 %v16659_v61  ;;  %v16700_v61 = vld [vmem:[%s17519_s4 + $0x14c0] sm:$0xff]   ;;  %v591_v62 = vpack.c.bf16 %v405_v58, %v405_v58  ;;  %v16742_v58 = vld [vmem:[%s17519_s4 + $0x15d0] sm:$0xff]  }
 0x2b8   : > { %15155 = vmatpush3.bf16.msra.mxu1 %v16662_v1  ;;  %15162 = vmatprep.subr.bf16.mxu0 %v16663_v3  ;;  %v16703_v1 = vld [vmem:[%s17519_s4 + $0x1408] sm:$0xff]  }
 0x2b9   : > { %15184 = vmatprep.subr.bf16.mxu1 %v16666_v9  ;;  %v16705_v3 = vld [vmem:[%s17519_s4 + $0x1488] sm:$0xff]   ;;  %v16711_v9 = vld [vmem:[%s17519_s4 + $0x1418] sm:$0xff]  }
 0x2ba   : > { %11540 = vmatmul.mubr.bf16.vlgmr.msra.gmra.mrb[72].mxu0 %v584_v2  ;;  %v16704_v2 = vld [vmem:[%s17519_s4 + $0x14c8] sm:$0xff]  }
 0x2bb   : > { %15163 = vmatpush3.bf16.msra.mxu0 %v16665_v7  ;;  %11580 = vmatmul.mubr.bf16.vlgmr.msra.gmra.mrb[72].mxu1 %v586_v8  ;;  %v16709_v7 = vld [vmem:[%s17519_s4 + $0x1490] sm:$0xff]   ;;  %v16710_v8 = vld [vmem:[%s17519_s4 + $0x1458] sm:$0xff]  }
 0x2bc   : > { %15164 = vmatprep.subr.bf16.mxu0 %v16668_v12  ;;  %15185 = vmatpush3.bf16.msra.mxu1 %v16667_v11  ;;  %v16713_v11 = vld [vmem:[%s17519_s4 + $0x1498] sm:$0xff]   ;;  %v16714_v12 = vld [vmem:[%s17519_s4 + $0x1460] sm:$0xff]  }
 0x2bd   : > { %15186 = vmatprep.subr.bf16.mxu1 %v16670_v14  ;;  %11659 = vmatprep.mubr.bf16.mxu1 %v591_v62  ;;  %v16746_v62 = vld [vmem:[%s17519_s4 + $0x15d8] sm:$0xff]  }
 0x2bf   : > { %15165 = vmatpush3.bf16.msra.mxu0 %v16669_v13  ;;  %v16715_v13 = vld [vmem:[%s17519_s4 + $0x1420] sm:$0xff]  }
 0x2c0   : > { %15166 = vmatprep.subr.bf16.mxu0 %v16672_v16  ;;  %15187 = vmatpush3.bf16.msra.mxu1 %v16671_v15  ;;  %v16716_v15 = vld [vmem:[%s17519_s4 + $0x14e0] sm:$0xff]  }
 0x2c1   : > { %15188 = vmatprep.subr.bf16.mxu1 %v16674_v18 }
 0x2c3   : > { %15167 = vmatpush3.bf16.msra.mxu0 %v16673_v17  ;;  %v16717_v17 = vld [vmem:[%s17519_s4 + $0x14a0] sm:$0xff]  }
 0x2c4   : > { %15168 = vmatprep.subr.bf16.mxu0 %v16676_v20  ;;  %15189 = vmatpush3.bf16.msra.mxu1 %v16675_v19  ;;  %v16718_v20 = vld [vmem:[%s17519_s4 + $0x1468] sm:$0xff]  }
 0x2c5   : > { %15190 = vmatprep.subr.bf16.mxu1 %v16678_v22 }
 0x2c7   : > { %15169 = vmatpush3.bf16.msra.mxu0 %v16677_v21 }
 0x2c8   : > { %15170 = vmatprep.subr.bf16.mxu0 %v16680_v24  ;;  %15191 = vmatpush3.bf16.msra.mxu1 %v16679_v23  ;;  %v16719_v23 = vld [vmem:[%s17519_s4 + $0x1428] sm:$0xff]  }
 0x2c9   : > { %15192 = vmatprep.subr.bf16.mxu1 %v16682_v27 }
 0x2cb   : > { %15171 = vmatpush3.bf16.msra.mxu0 %v16681_v25 }
 0x2cc   : > { %15172 = vmatprep.subr.bf16.mxu0 %v16684_v32  ;;  %15193 = vmatpush3.bf16.msra.mxu1 %v16683_v29 }
 0x2cd   : > { %v14870_v26 = vpop.f32.mrb[48].mxu0  ;;  %15194 = vmatprep.subr.bf16.mxu1 %v16686_v38  ;;  %v16728_v38 = vld [vmem:[%s17519_s4 + $0x14f8] sm:$0xff]  }
 0x2ce   : > { %v14871_v28 = vpop.f32.mrb[49].mxu0  ;;  %v14892_v33 = vpop.f32.mrb[48].mxu1 }
 0x2cf   : > { %v14872_v30 = vadd.f32 %v14871_v28, %v14870_v26  ;;  %v14873_v31 = vpop.f32.mrb[50].mxu0  ;;  %v14893_v37 = vpop.f32.mrb[49].mxu1  ;;  %15173 = vmatpush3.bf16.msra.mxu0 %v16685_v35  ;;  %v16720_v26 = vld [vmem:[%s17519_s4 + $0x14e8] sm:$0xff]   ;;  %v16725_v35 = vld [vmem:[%s17519_s4 + $0x14b0] sm:$0xff]  }
 0x2d0   : > { %v14874_v36 = vpop.f32.mrb[51].mxu0  ;;  %v14894_v39 = vadd.f32 %v14893_v37, %v14892_v33  ;;  %v14895_v41 = vpop.f32.mrb[50].mxu1  ;;  %15174 = vmatprep.subr.bf16.mxu0 %v16688_v43  ;;  %15195 = vmatpush3.bf16.msra.mxu1 %v16687_v40  ;;  %v16721_v28 = vld [vmem:[%s17519_s4 + $0x14a8] sm:$0xff]   ;;  %v16722_v31 = vld [vmem:[%s17519_s4 + $0x1470] sm:$0xff]   ;;  %v16727_v37 = vld [vmem:[%s17519_s4 + $0x1438] sm:$0xff]  }
 0x2d1   : > { %v11062_v34 = vadd.f32 %v14872_v30, %v18207_v56  ;;  %v14896_v44 = vpop.f32.mrb[51].mxu1  ;;  %15196 = vmatprep.subr.bf16.mxu1 %v16690_v46  ;;  %v589_v56 = vpack.c.bf16 %v404_v52, %v404_v52  ;;  %v16723_v33 = vld [vmem:[%s17519_s4 + $0x1430] sm:$0xff]   ;;  %v16726_v36 = vld [vmem:[%s17519_s4 + $0x1478] sm:$0xff]   ;;  %v16731_v43 = vld [vmem:[%s17519_s4 + $0x1540] sm:$0xff]  }
 0x2d2   : > { %v16730_v41 = vld [vmem:[%s17519_s4 + $0x14b8] sm:$0xff]   ;;  %v260_v44 = vld [vmem:[%s17533_s27 + $0x148] sm:$0xff] }
 0x2d3   : > { %v18243_v42 = vadd.f32 %v14894_v39, %v11062_v34  ;;  %15175 = vmatpush3.bf16.msra.mxu0 %v16689_v45  ;;  %11619 = vmatprep.mubr.bf16.mxu0 %v589_v56  ;;  %v16724_v34 = vld [vmem:[%s17519_s4 + $0x14f0] sm:$0xff]   ;;  %v259_v39 = vld [vmem:[%s17533_s27 + $0x140] sm:$0xff]  ;;  %v407_v46 = vcombine.high %v260_v44, %v260_v44  ;;  %v16736_v52 = vld [vmem:[%s17519_s4 + $0x1548] sm:$0xff]  }
 0x2d4   : > { %15176 = vmatprep.subr.bf16.mxu0 %v16692_v48  ;;  %15197 = vmatpush3.bf16.msra.mxu1 %v16691_v47  ;;  %v406_v40 = vcombine.high %v259_v39, %v259_v39  ;;  %v16733_v47 = vld [vmem:[%s17519_s4 + $0x1500] sm:$0xff]   ;;  %v594_v48 = vpack.c.bf16 %v260_v44, %v260_v44  ;;  %v16740_v56 = vld [vmem:[%s17519_s4 + $0x1550] sm:$0xff]  }
 0x2d5   : > { %15198 = vmatprep.subr.bf16.mxu1 %v16694_v50  ;;  %v595_v50 = vpack.c.bf16 %v407_v46, %v407_v46  ;;  %v16774_v44 = vld [vmem:[%s17519_s4 + $0x1650] sm:$0xff]  }
 0x2d6   : > { %v593_v45 = vpack.c.bf16 %v406_v40, %v406_v40  ;;  %v16770_v40 = vld [vmem:[%s17519_s4 + $0x1648] sm:$0xff]   ;;  %v16776_v46 = vld [vmem:[%s17519_s4 + $0x16d0] sm:$0xff]  }
 0x2d7   : > { %15177 = vmatpush3.bf16.msra.mxu0 %v16693_v49  ;;  %v16734_v49 = vld [vmem:[%s17519_s4 + $0x15c0] sm:$0xff]  }
 0x2d8   : > { %15206 = vmatprep.subr.bf16.mxu0 %v16697_v55  ;;  %15199 = vmatpush3.bf16.msra.mxu1 %v16696_v53  ;;  %v16737_v53 = vld [vmem:[%s17519_s4 + $0x1508] sm:$0xff]  }
 0x2d9   : > { %15228 = vmatprep.subr.bf16.mxu1 %v16700_v61  ;;  %v16739_v55 = vld [vmem:[%s17519_s4 + $0x1588] sm:$0xff]   ;;  %v16745_v61 = vld [vmem:[%s17519_s4 + $0x1518] sm:$0xff]  }
 0x2da   : > { %11620 = vmatmul.mubr.bf16.vlgmr.msra.gmra.mrb[76].mxu0 %v588_v54  ;;  %v16738_v54 = vld [vmem:[%s17519_s4 + $0x15c8] sm:$0xff]  }
 0x2db   : > { %15207 = vmatpush3.bf16.msra.mxu0 %v16699_v59  ;;  %11660 = vmatmul.mubr.bf16.vlgmr.msra.gmra.mrb[76].mxu1 %v590_v60  ;;  %v16743_v59 = vld [vmem:[%s17519_s4 + $0x1590] sm:$0xff]   ;;  %v16744_v60 = vld [vmem:[%s17519_s4 + $0x1558] sm:$0xff]  }
 0x2dc   : > { %15208 = vmatprep.subr.bf16.mxu0 %v16702_v0  ;;  %15229 = vmatpush3.bf16.msra.mxu1 %v16701_v63  ;;  %v16747_v63 = vld [vmem:[%s17519_s4 + $0x1598] sm:$0xff]   ;;  %v16748_v0 = vld [vmem:[%s17519_s4 + $0x1560] sm:$0xff]  }
 0x2dd   : > { %15230 = vmatprep.subr.bf16.mxu1 %v16704_v2  ;;  %11699 = vmatprep.mubr.bf16.mxu0 %v593_v45  ;;  %v16750_v2 = vld [vmem:[%s17519_s4 + $0x15e0] sm:$0xff]   ;;  %v16775_v45 = vld [vmem:[%s17519_s4 + $0x1610] sm:$0xff]  }
 0x2de   : > { %11739 = vmatprep.mubr.bf16.mxu1 %v595_v50  ;;  %v16780_v50 = vld [vmem:[%s17519_s4 + $0x16d8] sm:$0xff]  }
 0x2df   : > { %15209 = vmatpush3.bf16.msra.mxu0 %v16703_v1  ;;  %v16749_v1 = vld [vmem:[%s17519_s4 + $0x1520] sm:$0xff]  }
 0x2e0   : > { %15210 = vmatprep.subr.bf16.mxu0 %v16706_v4  ;;  %15231 = vmatpush3.bf16.msra.mxu1 %v16705_v3  ;;  %v16751_v4 = vld [vmem:[%s17519_s4 + $0x15a0] sm:$0xff]  }
 0x2e1   : > { %15232 = vmatprep.subr.bf16.mxu1 %v16708_v6 }
 0x2e3   : > { %15211 = vmatpush3.bf16.msra.mxu0 %v16707_v5 }
 0x2e4   : > { %15212 = vmatprep.subr.bf16.mxu0 %v16710_v8  ;;  %15233 = vmatpush3.bf16.msra.mxu1 %v16709_v7  ;;  %v16752_v7 = vld [vmem:[%s17519_s4 + $0x1568] sm:$0xff]  }
 0x2e5   : > { %15234 = vmatprep.subr.bf16.mxu1 %v16712_v10  ;;  %v16753_v10 = vld [vmem:[%s17519_s4 + $0x1528] sm:$0xff]  }
 0x2e7   : > { %15213 = vmatpush3.bf16.msra.mxu0 %v16711_v9 }
 0x2e8   : > { %15214 = vmatprep.subr.bf16.mxu0 %v16714_v12  ;;  %15235 = vmatpush3.bf16.msra.mxu1 %v16713_v11 }
 0x2e9   : > { %15236 = vmatprep.subr.bf16.mxu1 %v16716_v15  ;;  %v16754_v15 = vld [vmem:[%s17519_s4 + $0x15e8] sm:$0xff]  }
 0x2eb   : > { %15215 = vmatpush3.bf16.msra.mxu0 %v16715_v13 }
 0x2ec   : > { %15216 = vmatprep.subr.bf16.mxu0 %v16718_v20  ;;  %15237 = vmatpush3.bf16.msra.mxu1 %v16717_v17  ;;  %v16755_v17 = vld [vmem:[%s17519_s4 + $0x15a8] sm:$0xff]   ;;  %v16756_v20 = vld [vmem:[%s17519_s4 + $0x1570] sm:$0xff]  }
 0x2ed   : > { %v14914_v14 = vpop.f32.mrb[52].mxu0  ;;  %15238 = vmatprep.subr.bf16.mxu1 %v16720_v26  ;;  %v16762_v26 = vld [vmem:[%s17519_s4 + $0x15f8] sm:$0xff]  }
 0x2ee   : > { %v14915_v16 = vpop.f32.mrb[53].mxu0  ;;  %v14936_v21 = vpop.f32.mrb[52].mxu1 }
 0x2ef   : > { %v14916_v18 = vadd.f32 %v14915_v16, %v14914_v14  ;;  %v14917_v19 = vpop.f32.mrb[54].mxu0  ;;  %v14937_v25 = vpop.f32.mrb[53].mxu1  ;;  %15217 = vmatpush3.bf16.msra.mxu0 %v16719_v23  ;;  %v16759_v23 = vld [vmem:[%s17519_s4 + $0x15b0] sm:$0xff]  }
 0x2f0   : > { %v14918_v24 = vpop.f32.mrb[55].mxu0  ;;  %v14938_v27 = vadd.f32 %v14937_v25, %v14936_v21  ;;  %v14939_v29 = vpop.f32.mrb[54].mxu1  ;;  %15218 = vmatprep.subr.bf16.mxu0 %v16722_v31  ;;  %15239 = vmatpush3.bf16.msra.mxu1 %v16721_v28  ;;  %v16757_v21 = vld [vmem:[%s17519_s4 + $0x1530] sm:$0xff]   ;;  %v16761_v25 = vld [vmem:[%s17519_s4 + $0x1538] sm:$0xff]   ;;  %v16765_v31 = vld [vmem:[%s17519_s4 + $0x1640] sm:$0xff]  }
 0x2f1   : > { %v11142_v22 = vadd.f32 %v14916_v18, %v18243_v42  ;;  %v14940_v32 = vpop.f32.mrb[55].mxu1  ;;  %15240 = vmatprep.subr.bf16.mxu1 %v16724_v34  ;;  %v592_v42 = vpack.c.bf16 %v259_v39, %v259_v39  ;;  %v16760_v24 = vld [vmem:[%s17519_s4 + $0x1578] sm:$0xff]   ;;  %v16769_v39 = vld [vmem:[%s17519_s4 + $0x1680] sm:$0xff]  }
 0x2f2   : > { %v16764_v29 = vld [vmem:[%s17519_s4 + $0x15b8] sm:$0xff]  }
 0x2f3   : > { %v18280_v30 = vadd.f32 %v14938_v27, %v11142_v22  ;;  %15219 = vmatpush3.bf16.msra.mxu0 %v16723_v33  ;;  %v16758_v22 = vld [vmem:[%s17519_s4 + $0x15f0] sm:$0xff]  }
 0x2f4   : > { %15220 = vmatprep.subr.bf16.mxu0 %v16726_v36  ;;  %15241 = vmatpush3.bf16.msra.mxu1 %v16725_v35  ;;  %v261_v27 = vld [vmem:[%s17533_s27 + $0x150] sm:$0xff]  ;;  %v262_v32 = vld [vmem:[%s17533_s27 + $0x158] sm:$0xff]  ;;  %v16767_v35 = vld [vmem:[%s17519_s4 + $0x1600] sm:$0xff]  }
 0x2f5   : > { %15242 = vmatprep.subr.bf16.mxu1 %v16728_v38  ;;  %v408_v28 = vcombine.high %v261_v27, %v261_v27  ;;  %v409_v34 = vcombine.high %v262_v32, %v262_v32  ;;  %v598_v36 = vpack.c.bf16 %v262_v32, %v262_v32  ;;  %v16808_v32 = vld [vmem:[%s17519_s4 + $0x1750] sm:$0xff]  }
 0x2f7   : > { %15221 = vmatpush3.bf16.msra.mxu0 %v16727_v37  ;;  %v597_v33 = vpack.c.bf16 %v408_v28, %v408_v28  ;;  %v16768_v37 = vld [vmem:[%s17519_s4 + $0x16c0] sm:$0xff]   ;;  %v599_v38 = vpack.c.bf16 %v409_v34, %v409_v34  ;;  %v16804_v28 = vld [vmem:[%s17519_s4 + $0x1748] sm:$0xff]   ;;  %v16810_v34 = vld [vmem:[%s17519_s4 + $0x17d0] sm:$0xff]  }
 0x2f8   : > { %15250 = vmatprep.subr.bf16.mxu0 %v16731_v43  ;;  %15243 = vmatpush3.bf16.msra.mxu1 %v16730_v41  ;;  %v16771_v41 = vld [vmem:[%s17519_s4 + $0x1608] sm:$0xff]  }
 0x2f9   : > { %15272 = vmatprep.subr.bf16.mxu1 %v16734_v49  ;;  %v16773_v43 = vld [vmem:[%s17519_s4 + $0x1688] sm:$0xff]   ;;  %v16779_v49 = vld [vmem:[%s17519_s4 + $0x1618] sm:$0xff]  }
 0x2fa   : > { %11700 = vmatmul.mubr.bf16.vlgmr.msra.gmra.mrb[80].mxu0 %v592_v42  ;;  %v16772_v42 = vld [vmem:[%s17519_s4 + $0x16c8] sm:$0xff]  }
 0x2fb   : > { %15251 = vmatpush3.bf16.msra.mxu0 %v16733_v47  ;;  %11740 = vmatmul.mubr.bf16.vlgmr.msra.gmra.mrb[80].mxu1 %v594_v48  ;;  %v16777_v47 = vld [vmem:[%s17519_s4 + $0x1690] sm:$0xff]   ;;  %v16778_v48 = vld [vmem:[%s17519_s4 + $0x1658] sm:$0xff]  }
 0x2fc   : > { %15252 = vmatprep.subr.bf16.mxu0 %v16736_v52  ;;  %15273 = vmatpush3.bf16.msra.mxu1 %v16735_v51  ;;  %v16781_v51 = vld [vmem:[%s17519_s4 + $0x1698] sm:$0xff]   ;;  %v16782_v52 = vld [vmem:[%s17519_s4 + $0x1660] sm:$0xff]  }
 0x2fd   : > { %15274 = vmatprep.subr.bf16.mxu1 %v16738_v54  ;;  %11779 = vmatprep.mubr.bf16.mxu0 %v597_v33  ;;  %v16784_v54 = vld [vmem:[%s17519_s4 + $0x16e0] sm:$0xff]   ;;  %v16809_v33 = vld [vmem:[%s17519_s4 + $0x1710] sm:$0xff]  }
 0x2fe   : > { %11819 = vmatprep.mubr.bf16.mxu1 %v599_v38  ;;  %v16814_v38 = vld [vmem:[%s17519_s4 + $0x17d8] sm:$0xff]  }
 0x2ff   : > { %15253 = vmatpush3.bf16.msra.mxu0 %v16737_v53  ;;  %v16783_v53 = vld [vmem:[%s17519_s4 + $0x1620] sm:$0xff]  }
 0x300   : > { %15254 = vmatprep.subr.bf16.mxu0 %v16740_v56  ;;  %15275 = vmatpush3.bf16.msra.mxu1 %v16739_v55  ;;  %v16785_v56 = vld [vmem:[%s17519_s4 + $0x16a0] sm:$0xff]  }
 0x301   : > { %15276 = vmatprep.subr.bf16.mxu1 %v16742_v58 }
 0x303   : > { %15255 = vmatpush3.bf16.msra.mxu0 %v16741_v57 }
 0x304   : > { %15256 = vmatprep.subr.bf16.mxu0 %v16744_v60  ;;  %15277 = vmatpush3.bf16.msra.mxu1 %v16743_v59  ;;  %v16786_v59 = vld [vmem:[%s17519_s4 + $0x1668] sm:$0xff]  }
 0x305   : > { %15278 = vmatprep.subr.bf16.mxu1 %v16746_v62  ;;  %v16787_v62 = vld [vmem:[%s17519_s4 + $0x1628] sm:$0xff]  }
 0x307   : > { %15257 = vmatpush3.bf16.msra.mxu0 %v16745_v61 }
 0x308   : > { %15258 = vmatprep.subr.bf16.mxu0 %v16748_v0  ;;  %15279 = vmatpush3.bf16.msra.mxu1 %v16747_v63 }
 0x309   : > { %15280 = vmatprep.subr.bf16.mxu1 %v16750_v2 }
 0x30b   : > { %15259 = vmatpush3.bf16.msra.mxu0 %v16749_v1 }
 0x30c   : > { %15260 = vmatprep.subr.bf16.mxu0 %v16752_v7  ;;  %15281 = vmatpush3.bf16.msra.mxu1 %v16751_v4 }
 0x30d   : > { %v14958_v3 = vpop.f32.mrb[56].mxu0  ;;  %15282 = vmatprep.subr.bf16.mxu1 %v16754_v15  ;;  %v263_v15 = vld [vmem:[%s17533_s27 + $0x160] sm:$0xff] }
 0x30e   : > { %v14959_v5 = vpop.f32.mrb[57].mxu0  ;;  %v14980_v9 = vpop.f32.mrb[56].mxu1 }
 0x30f   : > { %v14960_v6 = vadd.f32 %v14959_v5, %v14958_v3  ;;  %v14961_v8 = vpop.f32.mrb[58].mxu0  ;;  %v14981_v13 = vpop.f32.mrb[57].mxu1  ;;  %15261 = vmatpush3.bf16.msra.mxu0 %v16753_v10  ;;  %v16788_v3 = vld [vmem:[%s17519_s4 + $0x16e8] sm:$0xff]   ;;  %v16792_v10 = vld [vmem:[%s17519_s4 + $0x16f0] sm:$0xff]  }
 0x310   : > { %v14962_v12 = vpop.f32.mrb[59].mxu0  ;;  %v14982_v14 = vadd.f32 %v14981_v13, %v14980_v9  ;;  %v14983_v16 = vpop.f32.mrb[58].mxu1  ;;  %15283 = vmatpush3.bf16.msra.mxu1 %v16755_v17  ;;  %15262 = vmatprep.subr.bf16.mxu0 %v16756_v20  ;;  %v16789_v5 = vld [vmem:[%s17519_s4 + $0x16a8] sm:$0xff]   ;;  %v16790_v8 = vld [vmem:[%s17519_s4 + $0x1670] sm:$0xff]   ;;  %v16795_v13 = vld [vmem:[%s17519_s4 + $0x1638] sm:$0xff]  }
 0x311   : > { %v11222_v11 = vadd.f32 %v14960_v6, %v18280_v30  ;;  %v14984_v18 = vpop.f32.mrb[59].mxu1  ;;  %15284 = vmatprep.subr.bf16.mxu1 %v16758_v22  ;;  %v596_v30 = vpack.c.bf16 %v261_v27, %v261_v27  ;;  %v16791_v9 = vld [vmem:[%s17519_s4 + $0x1630] sm:$0xff]   ;;  %v16794_v12 = vld [vmem:[%s17519_s4 + $0x1678] sm:$0xff]   ;;  %v410_v16 = vcombine.high %v263_v15, %v263_v15  ;;  %v264_v20 = vld [vmem:[%s17533_s27 + $0x168] sm:$0xff] }
 0x312   : > { %v16798_v17 = vld [vmem:[%s17519_s4 + $0x16b8] sm:$0xff]   ;;  %v600_v18 = vpack.c.bf16 %v263_v15, %v263_v15  ;;  %v411_v22 = vcombine.high %v264_v20, %v264_v20  ;;  %v16803_v27 = vld [vmem:[%s17519_s4 + $0x1780] sm:$0xff]  }
 0x313   : > { %v18317_v19 = vadd.f32 %v14982_v14, %v11222_v11  ;;  %15263 = vmatpush3.bf16.msra.mxu0 %v16757_v21  ;;  %v16793_v11 = vld [vmem:[%s17519_s4 + $0x16b0] sm:$0xff]   ;;  %v16796_v14 = vld [vmem:[%s17519_s4 + $0x16f8] sm:$0xff]   ;;  %v601_v21 = vpack.c.bf16 %v410_v16, %v410_v16  ;;  %v16837_v15 = vld [vmem:[%s17519_s4 + $0x1880] sm:$0xff]  }
 0x314   : > { %15285 = vmatpush3.bf16.msra.mxu1 %v16759_v23  ;;  %15264 = vmatprep.subr.bf16.mxu0 %v16760_v24  ;;  %v16801_v23 = vld [vmem:[%s17519_s4 + $0x1700] sm:$0xff]   ;;  %v602_v24 = vpack.c.bf16 %v264_v20, %v264_v20  ;;  %v16838_v16 = vld [vmem:[%s17519_s4 + $0x1848] sm:$0xff]   ;;  %v16842_v20 = vld [vmem:[%s17519_s4 + $0x1850] sm:$0xff]  }
 0x315   : > { %15286 = vmatprep.subr.bf16.mxu1 %v16762_v26  ;;  %v603_v26 = vpack.c.bf16 %v411_v22, %v411_v22  ;;  %v16844_v22 = vld [vmem:[%s17519_s4 + $0x18d0] sm:$0xff]  }
 0x317   : > { %15265 = vmatpush3.bf16.msra.mxu0 %v16761_v25  ;;  %v16802_v25 = vld [vmem:[%s17519_s4 + $0x17c0] sm:$0xff]  }
 0x318   : > { %15287 = vmatpush3.bf16.msra.mxu1 %v16764_v29  ;;  %15294 = vmatprep.subr.bf16.mxu0 %v16765_v31  ;;  %v16805_v29 = vld [vmem:[%s17519_s4 + $0x1708] sm:$0xff]  }
 0x319   : > { %15316 = vmatprep.subr.bf16.mxu1 %v16768_v37  ;;  %v16807_v31 = vld [vmem:[%s17519_s4 + $0x1788] sm:$0xff]   ;;  %v16813_v37 = vld [vmem:[%s17519_s4 + $0x1718] sm:$0xff]  }
 0x31a   : > { %11780 = vmatmul.mubr.bf16.vlgmr.msra.gmra.mrb[84].mxu0 %v596_v30  ;;  %v16806_v30 = vld [vmem:[%s17519_s4 + $0x17c8] sm:$0xff]  }
 0x31b   : > { %15295 = vmatpush3.bf16.msra.mxu0 %v16767_v35  ;;  %11820 = vmatmul.mubr.bf16.vlgmr.msra.gmra.mrb[84].mxu1 %v598_v36  ;;  %v16811_v35 = vld [vmem:[%s17519_s4 + $0x1790] sm:$0xff]   ;;  %v16812_v36 = vld [vmem:[%s17519_s4 + $0x1758] sm:$0xff]  }
 0x31c   : > { %15296 = vmatprep.subr.bf16.mxu0 %v16770_v40  ;;  %15317 = vmatpush3.bf16.msra.mxu1 %v16769_v39  ;;  %v16815_v39 = vld [vmem:[%s17519_s4 + $0x1798] sm:$0xff]   ;;  %v16816_v40 = vld [vmem:[%s17519_s4 + $0x1760] sm:$0xff]  }
 0x31d   : > { %15318 = vmatprep.subr.bf16.mxu1 %v16772_v42  ;;  %11859 = vmatprep.mubr.bf16.mxu0 %v601_v21  ;;  %v16818_v42 = vld [vmem:[%s17519_s4 + $0x17e0] sm:$0xff]   ;;  %v16843_v21 = vld [vmem:[%s17519_s4 + $0x1810] sm:$0xff]  }
 0x31e   : > { %11899 = vmatprep.mubr.bf16.mxu1 %v603_v26  ;;  %v16848_v26 = vld [vmem:[%s17519_s4 + $0x18d8] sm:$0xff]  }
 0x31f   : > { %15297 = vmatpush3.bf16.msra.mxu0 %v16771_v41  ;;  %v16817_v41 = vld [vmem:[%s17519_s4 + $0x1720] sm:$0xff]  }
 0x320   : > { %15298 = vmatprep.subr.bf16.mxu0 %v16774_v44  ;;  %15319 = vmatpush3.bf16.msra.mxu1 %v16773_v43  ;;  %v16819_v44 = vld [vmem:[%s17519_s4 + $0x17a0] sm:$0xff]  }
 0x321   : > { %15320 = vmatprep.subr.bf16.mxu1 %v16776_v46 }
 0x323   : > { %15299 = vmatpush3.bf16.msra.mxu0 %v16775_v45 }
 0x324   : > { %15300 = vmatprep.subr.bf16.mxu0 %v16778_v48  ;;  %15321 = vmatpush3.bf16.msra.mxu1 %v16777_v47  ;;  %v16820_v47 = vld [vmem:[%s17519_s4 + $0x1768] sm:$0xff]  }
 0x325   : > { %15322 = vmatprep.subr.bf16.mxu1 %v16780_v50  ;;  %v16821_v50 = vld [vmem:[%s17519_s4 + $0x1728] sm:$0xff]  }
 0x327   : > { %15301 = vmatpush3.bf16.msra.mxu0 %v16779_v49 }
 0x328   : > { %15302 = vmatprep.subr.bf16.mxu0 %v16782_v52  ;;  %15323 = vmatpush3.bf16.msra.mxu1 %v16781_v51 }
 0x329   : > { %15324 = vmatprep.subr.bf16.mxu1 %v16784_v54 }
 0x32b   : > { %15303 = vmatpush3.bf16.msra.mxu0 %v16783_v53 }
 0x32c   : > { %15304 = vmatprep.subr.bf16.mxu0 %v16786_v59  ;;  %15325 = vmatpush3.bf16.msra.mxu1 %v16785_v56 }
 0x32d   : > { %v15002_v55 = vpop.f32.mrb[60].mxu0  ;;  %15326 = vmatprep.subr.bf16.mxu1 %v16788_v3  ;;  %v265_v3 = vld [vmem:[%s17533_s27 + $0x170] sm:$0xff] }
 0x32e   : > { %v15003_v57 = vpop.f32.mrb[61].mxu0  ;;  %v15024_v61 = vpop.f32.mrb[60].mxu1 }
 0x32f   : > { %v15004_v58 = vadd.f32 %v15003_v57, %v15002_v55  ;;  %v15005_v60 = vpop.f32.mrb[62].mxu0  ;;  %v15025_v1 = vpop.f32.mrb[61].mxu1  ;;  %15305 = vmatpush3.bf16.msra.mxu0 %v16787_v62  ;;  %v16822_v55 = vld [vmem:[%s17519_s4 + $0x17e8] sm:$0xff]   ;;  %v16826_v62 = vld [vmem:[%s17519_s4 + $0x17f0] sm:$0xff]  }
 0x330   : > { %v15006_v0 = vpop.f32.mrb[63].mxu0  ;;  %v15026_v2 = vadd.f32 %v15025_v1, %v15024_v61  ;;  %v15027_v4 = vpop.f32.mrb[62].mxu1  ;;  %15327 = vmatpush3.bf16.msra.mxu1 %v16789_v5  ;;  %15306 = vmatprep.subr.bf16.mxu0 %v16790_v8  ;;  %v16823_v57 = vld [vmem:[%s17519_s4 + $0x17a8] sm:$0xff]   ;;  %v16824_v60 = vld [vmem:[%s17519_s4 + $0x1770] sm:$0xff]   ;;  %v16829_v1 = vld [vmem:[%s17519_s4 + $0x1738] sm:$0xff]  }
 0x331   : > { %v11302_v63 = vadd.f32 %v15004_v58, %v18317_v19  ;;  %v15028_v6 = vpop.f32.mrb[63].mxu1  ;;  %15328 = vmatprep.subr.bf16.mxu1 %v16792_v10  ;;  %v16799_v19 = vld [vmem:[%s17519_s4 + $0x1740] sm:$0xff]   ;;  %v16825_v61 = vld [vmem:[%s17519_s4 + $0x1730] sm:$0xff]   ;;  %v16828_v0 = vld [vmem:[%s17519_s4 + $0x1778] sm:$0xff]   ;;  %v412_v4 = vcombine.high %v265_v3, %v265_v3 }
 0x332   : > { %v16832_v5 = vld [vmem:[%s17519_s4 + $0x17b8] sm:$0xff]   ;;  %v604_v6 = vpack.c.bf16 %v265_v3, %v265_v3  ;;  %v16871_v3 = vld [vmem:[%s17519_s4 + $0x1980] sm:$0xff]  }
 0x333   : > { %v18354_v7 = vadd.f32 %v15026_v2, %v11302_v63  ;;  %15307 = vmatpush3.bf16.msra.mxu0 %v16791_v9  ;;  %v16827_v63 = vld [vmem:[%s17519_s4 + $0x17b0] sm:$0xff]   ;;  %v16830_v2 = vld [vmem:[%s17519_s4 + $0x17f8] sm:$0xff]   ;;  %v605_v9 = vpack.c.bf16 %v412_v4, %v412_v4  ;;  %v16872_v4 = vld [vmem:[%s17519_s4 + $0x1948] sm:$0xff]  }
 0x334   : > { %15329 = vmatpush3.bf16.msra.mxu1 %v16793_v11  ;;  %15308 = vmatprep.subr.bf16.mxu0 %v16794_v12  ;;  %v266_v8 = vld [vmem:[%s17533_s27 + $0x178] sm:$0xff]  ;;  %v16835_v11 = vld [vmem:[%s17519_s4 + $0x1800] sm:$0xff]  }
 0x335   : > { %15330 = vmatprep.subr.bf16.mxu1 %v16796_v14  ;;  %v413_v10 = vcombine.high %v266_v8, %v266_v8  ;;  %v606_v12 = vpack.c.bf16 %v266_v8, %v266_v8  ;;  %v16876_v8 = vld [vmem:[%s17519_s4 + $0x1950] sm:$0xff]  }
 0x337   : > { %15309 = vmatpush3.bf16.msra.mxu0 %v16795_v13  ;;  %v16836_v13 = vld [vmem:[%s17519_s4 + $0x18c0] sm:$0xff]   ;;  %v607_v14 = vpack.c.bf16 %v413_v10, %v413_v10  ;;  %v16878_v10 = vld [vmem:[%s17519_s4 + $0x19d0] sm:$0xff]  }
 0x338   : > { %15331 = vmatpush3.bf16.msra.mxu1 %v16798_v17  ;;  %15338 = vmatprep.subr.bf16.mxu0 %v16799_v19  ;;  %v16839_v17 = vld [vmem:[%s17519_s4 + $0x1808] sm:$0xff]  }
 0x339   : > { %15360 = vmatprep.subr.bf16.mxu1 %v16802_v25  ;;  %v16841_v19 = vld [vmem:[%s17519_s4 + $0x1888] sm:$0xff]   ;;  %v16847_v25 = vld [vmem:[%s17519_s4 + $0x1818] sm:$0xff]  }
 0x33a   : > { %11860 = vmatmul.mubr.bf16.vlgmr.msra.gmra.mrb[88].mxu0 %v600_v18  ;;  %v16840_v18 = vld [vmem:[%s17519_s4 + $0x18c8] sm:$0xff]  }
 0x33b   : > { %15339 = vmatpush3.bf16.msra.mxu0 %v16801_v23  ;;  %11900 = vmatmul.mubr.bf16.vlgmr.msra.gmra.mrb[88].mxu1 %v602_v24  ;;  %v16845_v23 = vld [vmem:[%s17519_s4 + $0x1890] sm:$0xff]   ;;  %v16846_v24 = vld [vmem:[%s17519_s4 + $0x1858] sm:$0xff]  }
 0x33c   : > { %15340 = vmatprep.subr.bf16.mxu0 %v16804_v28  ;;  %15361 = vmatpush3.bf16.msra.mxu1 %v16803_v27  ;;  %v16849_v27 = vld [vmem:[%s17519_s4 + $0x1898] sm:$0xff]   ;;  %v16850_v28 = vld [vmem:[%s17519_s4 + $0x1860] sm:$0xff]  }
 0x33d   : > { %15362 = vmatprep.subr.bf16.mxu1 %v16806_v30  ;;  %11939 = vmatprep.mubr.bf16.mxu0 %v605_v9  ;;  %v16852_v30 = vld [vmem:[%s17519_s4 + $0x18e0] sm:$0xff]   ;;  %v16877_v9 = vld [vmem:[%s17519_s4 + $0x1910] sm:$0xff]  }
 0x33e   : > { %11979 = vmatprep.mubr.bf16.mxu1 %v607_v14  ;;  %v16882_v14 = vld [vmem:[%s17519_s4 + $0x19d8] sm:$0xff]  }
 0x33f   : > { %15341 = vmatpush3.bf16.msra.mxu0 %v16805_v29  ;;  %v16851_v29 = vld [vmem:[%s17519_s4 + $0x1820] sm:$0xff]  }
 0x340   : > { %15342 = vmatprep.subr.bf16.mxu0 %v16808_v32  ;;  %15363 = vmatpush3.bf16.msra.mxu1 %v16807_v31  ;;  %v16853_v32 = vld [vmem:[%s17519_s4 + $0x18a0] sm:$0xff]  }
 0x341   : > { %15364 = vmatprep.subr.bf16.mxu1 %v16810_v34 }
 0x343   : > { %15343 = vmatpush3.bf16.msra.mxu0 %v16809_v33 }
 0x344   : > { %15344 = vmatprep.subr.bf16.mxu0 %v16812_v36  ;;  %15365 = vmatpush3.bf16.msra.mxu1 %v16811_v35  ;;  %v16854_v35 = vld [vmem:[%s17519_s4 + $0x1868] sm:$0xff]  }
 0x345   : > { %15366 = vmatprep.subr.bf16.mxu1 %v16814_v38  ;;  %v16855_v38 = vld [vmem:[%s17519_s4 + $0x1828] sm:$0xff]  }
 0x347   : > { %15345 = vmatpush3.bf16.msra.mxu0 %v16813_v37 }
 0x348   : > { %15346 = vmatprep.subr.bf16.mxu0 %v16816_v40  ;;  %15367 = vmatpush3.bf16.msra.mxu1 %v16815_v39 }
 0x349   : > { %15368 = vmatprep.subr.bf16.mxu1 %v16818_v42 }
 0x34b   : > { %15347 = vmatpush3.bf16.msra.mxu0 %v16817_v41 }
 0x34c   : > { %15348 = vmatprep.subr.bf16.mxu0 %v16820_v47  ;;  %15369 = vmatpush3.bf16.msra.mxu1 %v16819_v44 }
 0x34d   : > { %v15046_v43 = vpop.f32.mrb[64].mxu0  ;;  %15370 = vmatprep.subr.bf16.mxu1 %v16822_v55  ;;  %v267_v55 = vld [vmem:[%s17533_s27 + $0x180] sm:$0xff] }
 0x34e   : > { %v15047_v45 = vpop.f32.mrb[65].mxu0  ;;  %v15068_v49 = vpop.f32.mrb[64].mxu1 }
 0x34f   : > { %v15048_v46 = vadd.f32 %v15047_v45, %v15046_v43  ;;  %v15049_v48 = vpop.f32.mrb[66].mxu0  ;;  %v15069_v53 = vpop.f32.mrb[65].mxu1  ;;  %15349 = vmatpush3.bf16.msra.mxu0 %v16821_v50  ;;  %v16856_v43 = vld [vmem:[%s17519_s4 + $0x18e8] sm:$0xff]   ;;  %v16860_v50 = vld [vmem:[%s17519_s4 + $0x18f0] sm:$0xff]  }
 0x350   : > { %v15050_v52 = vpop.f32.mrb[67].mxu0  ;;  %v15070_v54 = vadd.f32 %v15069_v53, %v15068_v49  ;;  %v15071_v56 = vpop.f32.mrb[66].mxu1  ;;  %15371 = vmatpush3.bf16.msra.mxu1 %v16823_v57  ;;  %15350 = vmatprep.subr.bf16.mxu0 %v16824_v60  ;;  %v16857_v45 = vld [vmem:[%s17519_s4 + $0x18a8] sm:$0xff]   ;;  %v16858_v48 = vld [vmem:[%s17519_s4 + $0x1870] sm:$0xff]   ;;  %v16863_v53 = vld [vmem:[%s17519_s4 + $0x1838] sm:$0xff]  }
 0x351   : > { %v11382_v51 = vadd.f32 %v15048_v46, %v18354_v7  ;;  %v15072_v58 = vpop.f32.mrb[67].mxu1  ;;  %15372 = vmatprep.subr.bf16.mxu1 %v16826_v62  ;;  %v16833_v7 = vld [vmem:[%s17519_s4 + $0x1840] sm:$0xff]   ;;  %v16859_v49 = vld [vmem:[%s17519_s4 + $0x1830] sm:$0xff]   ;;  %v16862_v52 = vld [vmem:[%s17519_s4 + $0x1878] sm:$0xff]   ;;  %v414_v56 = vcombine.high %v267_v55, %v267_v55 }
 0x352   : > { %v16866_v57 = vld [vmem:[%s17519_s4 + $0x18b8] sm:$0xff]   ;;  %v608_v58 = vpack.c.bf16 %v267_v55, %v267_v55  ;;  %v268_v60 = vld [vmem:[%s17533_s27 + $0x188] sm:$0xff] }
 0x353   : > { %v18391_v59 = vadd.f32 %v15070_v54, %v11382_v51  ;;  %15351 = vmatpush3.bf16.msra.mxu0 %v16825_v61  ;;  %v16861_v51 = vld [vmem:[%s17519_s4 + $0x18b0] sm:$0xff]   ;;  %v16864_v54 = vld [vmem:[%s17519_s4 + $0x18f8] sm:$0xff]   ;;  %v609_v61 = vpack.c.bf16 %v414_v56, %v414_v56  ;;  %v415_v62 = vcombine.high %v268_v60, %v268_v60  ;;  %v16905_v55 = vld [vmem:[%s17519_s4 + $0x1a80] sm:$0xff]  }
 0x354   : > { %15373 = vmatpush3.bf16.msra.mxu1 %v16827_v63  ;;  %15352 = vmatprep.subr.bf16.mxu0 %v16828_v0  ;;  %v16869_v63 = vld [vmem:[%s17519_s4 + $0x1900] sm:$0xff]   ;;  %v610_v0 = vpack.c.bf16 %v268_v60, %v268_v60  ;;  %v16906_v56 = vld [vmem:[%s17519_s4 + $0x1a48] sm:$0xff]   ;;  %v16910_v60 = vld [vmem:[%s17519_s4 + $0x1a50] sm:$0xff]  }
 0x355   : > { %15374 = vmatprep.subr.bf16.mxu1 %v16830_v2  ;;  %v611_v2 = vpack.c.bf16 %v415_v62, %v415_v62  ;;  %v16912_v62 = vld [vmem:[%s17519_s4 + $0x1ad0] sm:$0xff]  }
 0x357   : > { %15353 = vmatpush3.bf16.msra.mxu0 %v16829_v1  ;;  %v16870_v1 = vld [vmem:[%s17519_s4 + $0x19c0] sm:$0xff]  }
 0x358   : > { %15375 = vmatpush3.bf16.msra.mxu1 %v16832_v5  ;;  %15382 = vmatprep.subr.bf16.mxu0 %v16833_v7  ;;  %v16873_v5 = vld [vmem:[%s17519_s4 + $0x1908] sm:$0xff]  }
 0x359   : > { %15404 = vmatprep.subr.bf16.mxu1 %v16836_v13  ;;  %v16875_v7 = vld [vmem:[%s17519_s4 + $0x1988] sm:$0xff]   ;;  %v16881_v13 = vld [vmem:[%s17519_s4 + $0x1918] sm:$0xff]  }
 0x35a   : > { %11940 = vmatmul.mubr.bf16.vlgmr.msra.gmra.mrb[92].mxu0 %v604_v6  ;;  %v16874_v6 = vld [vmem:[%s17519_s4 + $0x19c8] sm:$0xff]  }
 0x35b   : > { %15383 = vmatpush3.bf16.msra.mxu0 %v16835_v11  ;;  %11980 = vmatmul.mubr.bf16.vlgmr.msra.gmra.mrb[92].mxu1 %v606_v12  ;;  %v16879_v11 = vld [vmem:[%s17519_s4 + $0x1990] sm:$0xff]   ;;  %v16880_v12 = vld [vmem:[%s17519_s4 + $0x1958] sm:$0xff]  }
 0x35c   : > { %15384 = vmatprep.subr.bf16.mxu0 %v16838_v16  ;;  %15405 = vmatpush3.bf16.msra.mxu1 %v16837_v15  ;;  %v16883_v15 = vld [vmem:[%s17519_s4 + $0x1998] sm:$0xff]   ;;  %v16884_v16 = vld [vmem:[%s17519_s4 + $0x1960] sm:$0xff]  }
 0x35d   : > { %15406 = vmatprep.subr.bf16.mxu1 %v16840_v18  ;;  %12019 = vmatprep.mubr.bf16.mxu0 %v609_v61  ;;  %v16886_v18 = vld [vmem:[%s17519_s4 + $0x19e0] sm:$0xff]   ;;  %v16911_v61 = vld [vmem:[%s17519_s4 + $0x1a10] sm:$0xff]  }
 0x35e   : > { %12059 = vmatprep.mubr.bf16.mxu1 %v611_v2  ;;  %v16916_v2 = vld [vmem:[%s17519_s4 + $0x1ad8] sm:$0xff]  }
 0x35f   : > { %15385 = vmatpush3.bf16.msra.mxu0 %v16839_v17  ;;  %v16885_v17 = vld [vmem:[%s17519_s4 + $0x1920] sm:$0xff]  }
 0x360   : > { %15386 = vmatprep.subr.bf16.mxu0 %v16842_v20  ;;  %15407 = vmatpush3.bf16.msra.mxu1 %v16841_v19  ;;  %v16887_v20 = vld [vmem:[%s17519_s4 + $0x19a0] sm:$0xff]  }
 0x361   : > { %15408 = vmatprep.subr.bf16.mxu1 %v16844_v22 }
 0x363   : > { %15387 = vmatpush3.bf16.msra.mxu0 %v16843_v21 }
 0x364   : > { %15388 = vmatprep.subr.bf16.mxu0 %v16846_v24  ;;  %15409 = vmatpush3.bf16.msra.mxu1 %v16845_v23  ;;  %v16888_v23 = vld [vmem:[%s17519_s4 + $0x1968] sm:$0xff]  }
 0x365   : > { %15410 = vmatprep.subr.bf16.mxu1 %v16848_v26  ;;  %v16889_v26 = vld [vmem:[%s17519_s4 + $0x1928] sm:$0xff]  }
 0x367   : > { %15389 = vmatpush3.bf16.msra.mxu0 %v16847_v25 }
 0x368   : > { %15390 = vmatprep.subr.bf16.mxu0 %v16850_v28  ;;  %15411 = vmatpush3.bf16.msra.mxu1 %v16849_v27 }
 0x369   : > { %15412 = vmatprep.subr.bf16.mxu1 %v16852_v30 }
 0x36b   : > { %15391 = vmatpush3.bf16.msra.mxu0 %v16851_v29 }
 0x36c   : > { %15392 = vmatprep.subr.bf16.mxu0 %v16854_v35  ;;  %15413 = vmatpush3.bf16.msra.mxu1 %v16853_v32 }
 0x36d   : > { %v15090_v31 = vpop.f32.mrb[68].mxu0  ;;  %15414 = vmatprep.subr.bf16.mxu1 %v16856_v43  ;;  %v269_v43 = vld [vmem:[%s17533_s27 + $0x190] sm:$0xff] }
 0x36e   : > { %v15091_v33 = vpop.f32.mrb[69].mxu0  ;;  %v15112_v37 = vpop.f32.mrb[68].mxu1 }
 0x36f   : > { %v15092_v34 = vadd.f32 %v15091_v33, %v15090_v31  ;;  %v15093_v36 = vpop.f32.mrb[70].mxu0  ;;  %v15113_v41 = vpop.f32.mrb[69].mxu1  ;;  %15393 = vmatpush3.bf16.msra.mxu0 %v16855_v38  ;;  %v16890_v31 = vld [vmem:[%s17519_s4 + $0x19e8] sm:$0xff]   ;;  %v16894_v38 = vld [vmem:[%s17519_s4 + $0x19f0] sm:$0xff]  }
 0x370   : > { %v15094_v40 = vpop.f32.mrb[71].mxu0  ;;  %v15114_v42 = vadd.f32 %v15113_v41, %v15112_v37  ;;  %v15115_v44 = vpop.f32.mrb[70].mxu1  ;;  %15415 = vmatpush3.bf16.msra.mxu1 %v16857_v45  ;;  %15394 = vmatprep.subr.bf16.mxu0 %v16858_v48  ;;  %v16891_v33 = vld [vmem:[%s17519_s4 + $0x19a8] sm:$0xff]   ;;  %v16892_v36 = vld [vmem:[%s17519_s4 + $0x1970] sm:$0xff]   ;;  %v16897_v41 = vld [vmem:[%s17519_s4 + $0x1938] sm:$0xff]  }
 0x371   : > { %v11462_v39 = vadd.f32 %v15092_v34, %v18391_v59  ;;  %v15116_v46 = vpop.f32.mrb[71].mxu1  ;;  %15416 = vmatprep.subr.bf16.mxu1 %v16860_v50  ;;  %v16867_v59 = vld [vmem:[%s17519_s4 + $0x1940] sm:$0xff]   ;;  %v16893_v37 = vld [vmem:[%s17519_s4 + $0x1930] sm:$0xff]   ;;  %v16896_v40 = vld [vmem:[%s17519_s4 + $0x1978] sm:$0xff]   ;;  %v416_v44 = vcombine.high %v269_v43, %v269_v43 }
 0x372   : > { %v16900_v45 = vld [vmem:[%s17519_s4 + $0x19b8] sm:$0xff]   ;;  %v612_v46 = vpack.c.bf16 %v269_v43, %v269_v43  ;;  %v16939_v43 = vld [vmem:[%s17519_s4 + $0x1b80] sm:$0xff]  }
 0x373   : > { %v18428_v47 = vadd.f32 %v15114_v42, %v11462_v39  ;;  %15395 = vmatpush3.bf16.msra.mxu0 %v16859_v49  ;;  %v16895_v39 = vld [vmem:[%s17519_s4 + $0x19b0] sm:$0xff]   ;;  %v16898_v42 = vld [vmem:[%s17519_s4 + $0x19f8] sm:$0xff]   ;;  %v613_v49 = vpack.c.bf16 %v416_v44, %v416_v44  ;;  %v16940_v44 = vld [vmem:[%s17519_s4 + $0x1b48] sm:$0xff]  }
 0x374   : > { %15417 = vmatpush3.bf16.msra.mxu1 %v16861_v51  ;;  %15396 = vmatprep.subr.bf16.mxu0 %v16862_v52  ;;  %v270_v48 = vld [vmem:[%s17533_s27 + $0x198] sm:$0xff]  ;;  %v16903_v51 = vld [vmem:[%s17519_s4 + $0x1a00] sm:$0xff]  }
 0x375   : > { %15418 = vmatprep.subr.bf16.mxu1 %v16864_v54  ;;  %v417_v50 = vcombine.high %v270_v48, %v270_v48  ;;  %v614_v52 = vpack.c.bf16 %v270_v48, %v270_v48  ;;  %v16944_v48 = vld [vmem:[%s17519_s4 + $0x1b50] sm:$0xff]  }
 0x377   : > { %15397 = vmatpush3.bf16.msra.mxu0 %v16863_v53  ;;  %v16904_v53 = vld [vmem:[%s17519_s4 + $0x1ac0] sm:$0xff]   ;;  %v615_v54 = vpack.c.bf16 %v417_v50, %v417_v50  ;;  %v16946_v50 = vld [vmem:[%s17519_s4 + $0x1bd0] sm:$0xff]  }
 0x378   : > { %15419 = vmatpush3.bf16.msra.mxu1 %v16866_v57  ;;  %15426 = vmatprep.subr.bf16.mxu0 %v16867_v59  ;;  %v16907_v57 = vld [vmem:[%s17519_s4 + $0x1a08] sm:$0xff]  }
 0x379   : > { %15448 = vmatprep.subr.bf16.mxu1 %v16870_v1  ;;  %v16909_v59 = vld [vmem:[%s17519_s4 + $0x1a88] sm:$0xff]   ;;  %v16915_v1 = vld [vmem:[%s17519_s4 + $0x1a18] sm:$0xff]  }
 0x37a   : > { %12020 = vmatmul.mubr.bf16.vlgmr.msra.gmra.mrb[96].mxu0 %v608_v58  ;;  %v16908_v58 = vld [vmem:[%s17519_s4 + $0x1ac8] sm:$0xff]  }
 0x37b   : > { %15427 = vmatpush3.bf16.msra.mxu0 %v16869_v63  ;;  %12060 = vmatmul.mubr.bf16.vlgmr.msra.gmra.mrb[96].mxu1 %v610_v0  ;;  %v16913_v63 = vld [vmem:[%s17519_s4 + $0x1a90] sm:$0xff]   ;;  %v16914_v0 = vld [vmem:[%s17519_s4 + $0x1a58] sm:$0xff]  }
 0x37c   : > { %15428 = vmatprep.subr.bf16.mxu0 %v16872_v4  ;;  %15449 = vmatpush3.bf16.msra.mxu1 %v16871_v3  ;;  %v16917_v3 = vld [vmem:[%s17519_s4 + $0x1a98] sm:$0xff]   ;;  %v16918_v4 = vld [vmem:[%s17519_s4 + $0x1a60] sm:$0xff]  }
 0x37d   : > { %15450 = vmatprep.subr.bf16.mxu1 %v16874_v6  ;;  %12099 = vmatprep.mubr.bf16.mxu0 %v613_v49  ;;  %v16945_v49 = vld [vmem:[%s17519_s4 + $0x1b10] sm:$0xff]  }
 0x37e   : > { %12139 = vmatprep.mubr.bf16.mxu1 %v615_v54  ;;  %v16950_v54 = vld [vmem:[%s17519_s4 + $0x1bd8] sm:$0xff]  }
 0x37f   : > { %15429 = vmatpush3.bf16.msra.mxu0 %v16873_v5  ;;  %v16919_v5 = vld [vmem:[%s17519_s4 + $0x1a20] sm:$0xff]  }
 0x380   : > { %15430 = vmatprep.subr.bf16.mxu0 %v16876_v8  ;;  %15451 = vmatpush3.bf16.msra.mxu1 %v16875_v7  ;;  %v16920_v7 = vld [vmem:[%s17519_s4 + $0x1ae0] sm:$0xff]  }
 0x381   : > { %15452 = vmatprep.subr.bf16.mxu1 %v16878_v10 }
 0x383   : > { %15431 = vmatpush3.bf16.msra.mxu0 %v16877_v9  ;;  %v16921_v9 = vld [vmem:[%s17519_s4 + $0x1aa0] sm:$0xff]  }
 0x384   : > { %15432 = vmatprep.subr.bf16.mxu0 %v16880_v12  ;;  %15453 = vmatpush3.bf16.msra.mxu1 %v16879_v11  ;;  %v16922_v12 = vld [vmem:[%s17519_s4 + $0x1a68] sm:$0xff]  }
 0x385   : > { %15454 = vmatprep.subr.bf16.mxu1 %v16882_v14 }
 0x387   : > { %15433 = vmatpush3.bf16.msra.mxu0 %v16881_v13 }
 0x388   : > { %15434 = vmatprep.subr.bf16.mxu0 %v16884_v16  ;;  %15455 = vmatpush3.bf16.msra.mxu1 %v16883_v15  ;;  %v16923_v15 = vld [vmem:[%s17519_s4 + $0x1a28] sm:$0xff]  }
 0x389   : > { %15456 = vmatprep.subr.bf16.mxu1 %v16886_v18  ;;  %v16924_v18 = vld [vmem:[%s17519_s4 + $0x1ae8] sm:$0xff]  }
 0x38b   : > { %15435 = vmatpush3.bf16.msra.mxu0 %v16885_v17 }
 0x38c   : > { %15436 = vmatprep.subr.bf16.mxu0 %v16888_v23  ;;  %15457 = vmatpush3.bf16.msra.mxu1 %v16887_v20  ;;  %v16925_v20 = vld [vmem:[%s17519_s4 + $0x1aa8] sm:$0xff]  }
 0x38d   : > { %v15134_v19 = vpop.f32.mrb[72].mxu0  ;;  %15458 = vmatprep.subr.bf16.mxu1 %v16890_v31  ;;  %v271_v31 = vld [vmem:[%s17533_s27 + $0x1a0] sm:$0xff] }
 0x38e   : > { %v15135_v21 = vpop.f32.mrb[73].mxu0  ;;  %v15156_v25 = vpop.f32.mrb[72].mxu1 }
 0x38f   : > { %v15136_v22 = vadd.f32 %v15135_v21, %v15134_v19  ;;  %v15137_v24 = vpop.f32.mrb[74].mxu0  ;;  %v15157_v29 = vpop.f32.mrb[73].mxu1  ;;  %15437 = vmatpush3.bf16.msra.mxu0 %v16889_v26  ;;  %v16928_v26 = vld [vmem:[%s17519_s4 + $0x1af0] sm:$0xff]  }
 0x390   : > { %v15138_v28 = vpop.f32.mrb[75].mxu0  ;;  %v15158_v30 = vadd.f32 %v15157_v29, %v15156_v25  ;;  %v15159_v32 = vpop.f32.mrb[74].mxu1  ;;  %15459 = vmatpush3.bf16.msra.mxu1 %v16891_v33  ;;  %15438 = vmatprep.subr.bf16.mxu0 %v16892_v36  ;;  %v16927_v25 = vld [vmem:[%s17519_s4 + $0x1a30] sm:$0xff]   ;;  %v16931_v29 = vld [vmem:[%s17519_s4 + $0x1a38] sm:$0xff]   ;;  %v272_v36 = vld [vmem:[%s17533_s27 + $0x1a8] sm:$0xff] }
 0x391   : > { %v11542_v27 = vadd.f32 %v15136_v22, %v18428_v47  ;;  %v15160_v34 = vpop.f32.mrb[75].mxu1  ;;  %15460 = vmatprep.subr.bf16.mxu1 %v16894_v38  ;;  %v16901_v47 = vld [vmem:[%s17519_s4 + $0x1a40] sm:$0xff]   ;;  %v16926_v22 = vld [vmem:[%s17519_s4 + $0x1a70] sm:$0xff]   ;;  %v16930_v28 = vld [vmem:[%s17519_s4 + $0x1a78] sm:$0xff]   ;;  %v418_v32 = vcombine.high %v271_v31, %v271_v31  ;;  %v419_v38 = vcombine.high %v272_v36, %v272_v36 }
 0x392   : > { %v16934_v33 = vld [vmem:[%s17519_s4 + $0x1ab8] sm:$0xff]   ;;  %v616_v34 = vpack.c.bf16 %v271_v31, %v271_v31  ;;  %v16973_v31 = vld [vmem:[%s17519_s4 + $0x1c80] sm:$0xff]  }
 0x393   : > { %v18465_v35 = vadd.f32 %v15158_v30, %v11542_v27  ;;  %15439 = vmatpush3.bf16.msra.mxu0 %v16893_v37  ;;  %v16929_v27 = vld [vmem:[%s17519_s4 + $0x1ab0] sm:$0xff]   ;;  %v16932_v30 = vld [vmem:[%s17519_s4 + $0x1af8] sm:$0xff]   ;;  %v617_v37 = vpack.c.bf16 %v418_v32, %v418_v32  ;;  %v16974_v32 = vld [vmem:[%s17519_s4 + $0x1c48] sm:$0xff]  }
 0x394   : > { %15461 = vmatpush3.bf16.msra.mxu1 %v16895_v39  ;;  %15440 = vmatprep.subr.bf16.mxu0 %v16896_v40  ;;  %v16937_v39 = vld [vmem:[%s17519_s4 + $0x1b00] sm:$0xff]   ;;  %v618_v40 = vpack.c.bf16 %v272_v36, %v272_v36  ;;  %v16978_v36 = vld [vmem:[%s17519_s4 + $0x1c50] sm:$0xff]  }
 0x395   : > { %15462 = vmatprep.subr.bf16.mxu1 %v16898_v42  ;;  %v619_v42 = vpack.c.bf16 %v419_v38, %v419_v38  ;;  %v16980_v38 = vld [vmem:[%s17519_s4 + $0x1cd0] sm:$0xff]  }
 0x397   : > { %15441 = vmatpush3.bf16.msra.mxu0 %v16897_v41  ;;  %v16938_v41 = vld [vmem:[%s17519_s4 + $0x1bc0] sm:$0xff]  }
 0x398   : > { %15463 = vmatpush3.bf16.msra.mxu1 %v16900_v45  ;;  %15470 = vmatprep.subr.bf16.mxu0 %v16901_v47  ;;  %v16941_v45 = vld [vmem:[%s17519_s4 + $0x1b08] sm:$0xff]  }
 0x399   : > { %15492 = vmatprep.subr.bf16.mxu1 %v16904_v53  ;;  %v16943_v47 = vld [vmem:[%s17519_s4 + $0x1b88] sm:$0xff]   ;;  %v16949_v53 = vld [vmem:[%s17519_s4 + $0x1b18] sm:$0xff]  }
 0x39a   : > { %12100 = vmatmul.mubr.bf16.vlgmr.msra.gmra.mrb[100].mxu0 %v612_v46  ;;  %v16942_v46 = vld [vmem:[%s17519_s4 + $0x1bc8] sm:$0xff]  }
 0x39b   : > { %15471 = vmatpush3.bf16.msra.mxu0 %v16903_v51  ;;  %12140 = vmatmul.mubr.bf16.vlgmr.msra.gmra.mrb[100].mxu1 %v614_v52  ;;  %v16947_v51 = vld [vmem:[%s17519_s4 + $0x1b90] sm:$0xff]   ;;  %v16948_v52 = vld [vmem:[%s17519_s4 + $0x1b58] sm:$0xff]  }
 0x39c   : > { %15472 = vmatprep.subr.bf16.mxu0 %v16906_v56  ;;  %15493 = vmatpush3.bf16.msra.mxu1 %v16905_v55  ;;  %v16951_v55 = vld [vmem:[%s17519_s4 + $0x1b98] sm:$0xff]   ;;  %v16952_v56 = vld [vmem:[%s17519_s4 + $0x1b60] sm:$0xff]  }
 0x39d   : > { %15494 = vmatprep.subr.bf16.mxu1 %v16908_v58  ;;  %12179 = vmatprep.mubr.bf16.mxu0 %v617_v37  ;;  %v16979_v37 = vld [vmem:[%s17519_s4 + $0x1c10] sm:$0xff]  }
 0x39e   : > { %12219 = vmatprep.mubr.bf16.mxu1 %v619_v42  ;;  %v16984_v42 = vld [vmem:[%s17519_s4 + $0x1cd8] sm:$0xff]  }
 0x39f   : > { %15473 = vmatpush3.bf16.msra.mxu0 %v16907_v57  ;;  %v16953_v57 = vld [vmem:[%s17519_s4 + $0x1b20] sm:$0xff]  }
 0x3a0   : > { %15474 = vmatprep.subr.bf16.mxu0 %v16910_v60  ;;  %15495 = vmatpush3.bf16.msra.mxu1 %v16909_v59  ;;  %v16954_v59 = vld [vmem:[%s17519_s4 + $0x1be0] sm:$0xff]  }
 0x3a1   : > { %15496 = vmatprep.subr.bf16.mxu1 %v16912_v62 }
 0x3a3   : > { %15475 = vmatpush3.bf16.msra.mxu0 %v16911_v61  ;;  %v16955_v61 = vld [vmem:[%s17519_s4 + $0x1ba0] sm:$0xff]  }
 0x3a4   : > { %15476 = vmatprep.subr.bf16.mxu0 %v16914_v0  ;;  %15497 = vmatpush3.bf16.msra.mxu1 %v16913_v63  ;;  %v16956_v0 = vld [vmem:[%s17519_s4 + $0x1b68] sm:$0xff]  }
 0x3a5   : > { %15498 = vmatprep.subr.bf16.mxu1 %v16916_v2 }
 0x3a7   : > { %15477 = vmatpush3.bf16.msra.mxu0 %v16915_v1 }
 0x3a8   : > { %15478 = vmatprep.subr.bf16.mxu0 %v16918_v4  ;;  %15499 = vmatpush3.bf16.msra.mxu1 %v16917_v3  ;;  %v16957_v3 = vld [vmem:[%s17519_s4 + $0x1b28] sm:$0xff]  }
 0x3a9   : > { %15500 = vmatprep.subr.bf16.mxu1 %v16920_v7 }
 0x3ab   : > { %15479 = vmatpush3.bf16.msra.mxu0 %v16919_v5 }
 0x3ac   : > { %15480 = vmatprep.subr.bf16.mxu0 %v16922_v12  ;;  %15501 = vmatpush3.bf16.msra.mxu1 %v16921_v9 }
 0x3ad   : > { %v15178_v6 = vpop.f32.mrb[76].mxu0  ;;  %15502 = vmatprep.subr.bf16.mxu1 %v16924_v18  ;;  %v16966_v18 = vld [vmem:[%s17519_s4 + $0x1bf8] sm:$0xff]  }
 0x3ae   : > { %v15179_v8 = vpop.f32.mrb[77].mxu0  ;;  %v15200_v13 = vpop.f32.mrb[76].mxu1 }
 0x3af   : > { %v15180_v10 = vadd.f32 %v15179_v8, %v15178_v6  ;;  %v15181_v11 = vpop.f32.mrb[78].mxu0  ;;  %v15201_v17 = vpop.f32.mrb[77].mxu1  ;;  %15481 = vmatpush3.bf16.msra.mxu0 %v16923_v15  ;;  %v16958_v6 = vld [vmem:[%s17519_s4 + $0x1be8] sm:$0xff]   ;;  %v16963_v15 = vld [vmem:[%s17519_s4 + $0x1bb0] sm:$0xff]  }
 0x3b0   : > { %v15182_v16 = vpop.f32.mrb[79].mxu0  ;;  %v15202_v19 = vadd.f32 %v15201_v17, %v15200_v13  ;;  %v15203_v21 = vpop.f32.mrb[78].mxu1  ;;  %15482 = vmatprep.subr.bf16.mxu0 %v16926_v22  ;;  %15503 = vmatpush3.bf16.msra.mxu1 %v16925_v20  ;;  %v16959_v8 = vld [vmem:[%s17519_s4 + $0x1ba8] sm:$0xff]   ;;  %v16960_v11 = vld [vmem:[%s17519_s4 + $0x1b70] sm:$0xff]   ;;  %v16965_v17 = vld [vmem:[%s17519_s4 + $0x1b38] sm:$0xff]  }
 0x3b1   : > { %v11622_v14 = vadd.f32 %v15180_v10, %v18465_v35  ;;  %v15204_v23 = vpop.f32.mrb[79].mxu1  ;;  %15504 = vmatprep.subr.bf16.mxu1 %v16928_v26  ;;  %v16935_v35 = vld [vmem:[%s17519_s4 + $0x1b40] sm:$0xff]   ;;  %v16961_v13 = vld [vmem:[%s17519_s4 + $0x1b30] sm:$0xff]   ;;  %v16964_v16 = vld [vmem:[%s17519_s4 + $0x1b78] sm:$0xff]  }
 0x3b2   : > { %v16968_v21 = vld [vmem:[%s17519_s4 + $0x1bb8] sm:$0xff]   ;;  %v16969_v23 = vld [vmem:[%s17519_s4 + $0x1c40] sm:$0xff]  }
 0x3b3   : > { %v18503_v24 = vadd.f32 %v15202_v19, %v11622_v14  ;;  %15483 = vmatpush3.bf16.msra.mxu0 %v16927_v25  ;;  %v16962_v14 = vld [vmem:[%s17519_s4 + $0x1bf0] sm:$0xff]  }
 0x3b4   : > { %15484 = vmatprep.subr.bf16.mxu0 %v16930_v28  ;;  %15505 = vmatpush3.bf16.msra.mxu1 %v16929_v27  ;;  %v273_v19 = vld [vmem:[%s17533_s27 + $0x1b0] sm:$0xff]  ;;  %v274_v25 = vld [vmem:[%s17533_s27 + $0x1b8] sm:$0xff]  ;;  %v16971_v27 = vld [vmem:[%s17519_s4 + $0x1c00] sm:$0xff]  }
 0x3b5   : > { %15506 = vmatprep.subr.bf16.mxu1 %v16932_v30  ;;  %v420_v20 = vcombine.high %v273_v19, %v273_v19  ;;  %v620_v22 = vpack.c.bf16 %v273_v19, %v273_v19  ;;  %v421_v26 = vcombine.high %v274_v25, %v274_v25  ;;  %v622_v28 = vpack.c.bf16 %v274_v25, %v274_v25  ;;  %v17007_v19 = vld [vmem:[%s17519_s4 + $0x1d80] sm:$0xff]   ;;  %v17013_v25 = vld [vmem:[%s17519_s4 + $0x1d10] sm:$0xff]  }
 0x3b7   : > { %15485 = vmatpush3.bf16.msra.mxu0 %v16931_v29  ;;  %v16972_v29 = vld [vmem:[%s17519_s4 + $0x1cc0] sm:$0xff]   ;;  %v623_v30 = vpack.c.bf16 %v421_v26, %v421_v26  ;;  %v17014_v26 = vld [vmem:[%s17519_s4 + $0x1dd0] sm:$0xff]  }
 0x3b8   : > { %15507 = vmatpush3.bf16.msra.mxu1 %v16934_v33  ;;  %15514 = vmatprep.subr.bf16.mxu0 %v16935_v35  ;;  %v16975_v33 = vld [vmem:[%s17519_s4 + $0x1c08] sm:$0xff]  }
 0x3b9   : > { %15536 = vmatprep.subr.bf16.mxu1 %v16938_v41  ;;  %v16977_v35 = vld [vmem:[%s17519_s4 + $0x1c88] sm:$0xff]   ;;  %v16983_v41 = vld [vmem:[%s17519_s4 + $0x1c18] sm:$0xff]  }
 0x3ba   : > { %12180 = vmatmul.mubr.bf16.vlgmr.msra.gmra.mrb[104].mxu0 %v616_v34  ;;  %v16976_v34 = vld [vmem:[%s17519_s4 + $0x1cc8] sm:$0xff]  }
 0x3bb   : > { %15515 = vmatpush3.bf16.msra.mxu0 %v16937_v39  ;;  %12220 = vmatmul.mubr.bf16.vlgmr.msra.gmra.mrb[104].mxu1 %v618_v40  ;;  %v16981_v39 = vld [vmem:[%s17519_s4 + $0x1c90] sm:$0xff]   ;;  %v16982_v40 = vld [vmem:[%s17519_s4 + $0x1c58] sm:$0xff]  }
 0x3bc   : > { %15516 = vmatprep.subr.bf16.mxu0 %v16940_v44  ;;  %15537 = vmatpush3.bf16.msra.mxu1 %v16939_v43  ;;  %v16985_v43 = vld [vmem:[%s17519_s4 + $0x1c98] sm:$0xff]   ;;  %v16986_v44 = vld [vmem:[%s17519_s4 + $0x1c60] sm:$0xff]  }
 0x3bd   : > { %15538 = vmatprep.subr.bf16.mxu1 %v16942_v46  ;;  %12299 = vmatprep.mubr.bf16.mxu1 %v623_v30  ;;  %v17018_v30 = vld [vmem:[%s17519_s4 + $0x1dd8] sm:$0xff]  }
 0x3bf   : > { %15517 = vmatpush3.bf16.msra.mxu0 %v16941_v45  ;;  %v16987_v45 = vld [vmem:[%s17519_s4 + $0x1c20] sm:$0xff]  }
 0x3c0   : > { %15518 = vmatprep.subr.bf16.mxu0 %v16944_v48  ;;  %15539 = vmatpush3.bf16.msra.mxu1 %v16943_v47  ;;  %v16988_v47 = vld [vmem:[%s17519_s4 + $0x1ce0] sm:$0xff]  }
 0x3c1   : > { %15540 = vmatprep.subr.bf16.mxu1 %v16946_v50 }
 0x3c3   : > { %15519 = vmatpush3.bf16.msra.mxu0 %v16945_v49  ;;  %v16989_v49 = vld [vmem:[%s17519_s4 + $0x1ca0] sm:$0xff]  }
 0x3c4   : > { %15520 = vmatprep.subr.bf16.mxu0 %v16948_v52  ;;  %15541 = vmatpush3.bf16.msra.mxu1 %v16947_v51  ;;  %v16990_v52 = vld [vmem:[%s17519_s4 + $0x1c68] sm:$0xff]  }
 0x3c5   : > { %15542 = vmatprep.subr.bf16.mxu1 %v16950_v54 }
 0x3c7   : > { %15521 = vmatpush3.bf16.msra.mxu0 %v16949_v53 }
 0x3c8   : > { %15522 = vmatprep.subr.bf16.mxu0 %v16952_v56  ;;  %15543 = vmatpush3.bf16.msra.mxu1 %v16951_v55  ;;  %v16991_v55 = vld [vmem:[%s17519_s4 + $0x1c28] sm:$0xff]  }
 0x3c9   : > { %15544 = vmatprep.subr.bf16.mxu1 %v16954_v59 }
 0x3cb   : > { %15523 = vmatpush3.bf16.msra.mxu0 %v16953_v57 }
 0x3cc   : > { %15524 = vmatprep.subr.bf16.mxu0 %v16956_v0  ;;  %15545 = vmatpush3.bf16.msra.mxu1 %v16955_v61 }
 0x3cd   : > { %v15222_v58 = vpop.f32.mrb[80].mxu0  ;;  %15546 = vmatprep.subr.bf16.mxu1 %v16958_v6  ;;  %v17000_v6 = vld [vmem:[%s17519_s4 + $0x1cf8] sm:$0xff]  }
 0x3ce   : > { %v15223_v60 = vpop.f32.mrb[81].mxu0  ;;  %v15244_v1 = vpop.f32.mrb[80].mxu1 }
 0x3cf   : > { %v15224_v62 = vadd.f32 %v15223_v60, %v15222_v58  ;;  %v15225_v63 = vpop.f32.mrb[82].mxu0  ;;  %v15245_v5 = vpop.f32.mrb[81].mxu1  ;;  %15525 = vmatpush3.bf16.msra.mxu0 %v16957_v3  ;;  %v16992_v58 = vld [vmem:[%s17519_s4 + $0x1ce8] sm:$0xff]   ;;  %v16997_v3 = vld [vmem:[%s17519_s4 + $0x1cb0] sm:$0xff]  }
 0x3d0   : > { %v15226_v4 = vpop.f32.mrb[83].mxu0  ;;  %v15246_v7 = vadd.f32 %v15245_v5, %v15244_v1  ;;  %v15247_v9 = vpop.f32.mrb[82].mxu1  ;;  %15526 = vmatprep.subr.bf16.mxu0 %v16960_v11  ;;  %15547 = vmatpush3.bf16.msra.mxu1 %v16959_v8  ;;  %v16993_v60 = vld [vmem:[%s17519_s4 + $0x1ca8] sm:$0xff]   ;;  %v16994_v63 = vld [vmem:[%s17519_s4 + $0x1c70] sm:$0xff]   ;;  %v16999_v5 = vld [vmem:[%s17519_s4 + $0x1c38] sm:$0xff]  }
 0x3d1   : > { %v11702_v2 = vadd.f32 %v15224_v62, %v18503_v24  ;;  %v15248_v12 = vpop.f32.mrb[83].mxu1  ;;  %15548 = vmatprep.subr.bf16.mxu1 %v16962_v14  ;;  %v621_v24 = vpack.c.bf16 %v420_v20, %v420_v20  ;;  %v16995_v1 = vld [vmem:[%s17519_s4 + $0x1c30] sm:$0xff]   ;;  %v16998_v4 = vld [vmem:[%s17519_s4 + $0x1c78] sm:$0xff]   ;;  %v17003_v11 = vld [vmem:[%s17519_s4 + $0x1d40] sm:$0xff]  }
 0x3d2   : > { %v17002_v9 = vld [vmem:[%s17519_s4 + $0x1cb8] sm:$0xff]   ;;  %v276_v12 = vld [vmem:[%s17533_s27 + $0x1c8] sm:$0xff] }
 0x3d3   : > { %v18539_v10 = vadd.f32 %v15246_v7, %v11702_v2  ;;  %15527 = vmatpush3.bf16.msra.mxu0 %v16961_v13  ;;  %12259 = vmatprep.mubr.bf16.mxu0 %v621_v24  ;;  %v16996_v2 = vld [vmem:[%s17519_s4 + $0x1cf0] sm:$0xff]   ;;  %v275_v7 = vld [vmem:[%s17533_s27 + $0x1c0] sm:$0xff]  ;;  %v423_v14 = vcombine.high %v276_v12, %v276_v12  ;;  %v17008_v20 = vld [vmem:[%s17519_s4 + $0x1d48] sm:$0xff]  }
 0x3d4   : > { %15528 = vmatprep.subr.bf16.mxu0 %v16964_v16  ;;  %15549 = vmatpush3.bf16.msra.mxu1 %v16963_v15  ;;  %v422_v8 = vcombine.high %v275_v7, %v275_v7  ;;  %v17005_v15 = vld [vmem:[%s17519_s4 + $0x1d00] sm:$0xff]   ;;  %v626_v16 = vpack.c.bf16 %v276_v12, %v276_v12  ;;  %v17012_v24 = vld [vmem:[%s17519_s4 + $0x1d50] sm:$0xff]  }
 0x3d5   : > { %15550 = vmatprep.subr.bf16.mxu1 %v16966_v18  ;;  %v627_v18 = vpack.c.bf16 %v423_v14, %v423_v14  ;;  %v17046_v12 = vld [vmem:[%s17519_s4 + $0x1e50] sm:$0xff]  }
 0x3d6   : > { %v625_v13 = vpack.c.bf16 %v422_v8, %v422_v8  ;;  %v17042_v8 = vld [vmem:[%s17519_s4 + $0x1e48] sm:$0xff]   ;;  %v17048_v14 = vld [vmem:[%s17519_s4 + $0x1ed0] sm:$0xff]  }
 0x3d7   : > { %15529 = vmatpush3.bf16.msra.mxu0 %v16965_v17  ;;  %v17006_v17 = vld [vmem:[%s17519_s4 + $0x1dc0] sm:$0xff]  }
 0x3d8   : > { %15558 = vmatprep.subr.bf16.mxu0 %v16969_v23  ;;  %15551 = vmatpush3.bf16.msra.mxu1 %v16968_v21  ;;  %v17009_v21 = vld [vmem:[%s17519_s4 + $0x1d08] sm:$0xff]  }
 0x3d9   : > { %15580 = vmatprep.subr.bf16.mxu1 %v16972_v29  ;;  %v17011_v23 = vld [vmem:[%s17519_s4 + $0x1d88] sm:$0xff]   ;;  %v17017_v29 = vld [vmem:[%s17519_s4 + $0x1d18] sm:$0xff]  }
 0x3da   : > { %12260 = vmatmul.mubr.bf16.vlgmr.msra.gmra.mrb[108].mxu0 %v620_v22  ;;  %v17010_v22 = vld [vmem:[%s17519_s4 + $0x1dc8] sm:$0xff]  }
 0x3db   : > { %15559 = vmatpush3.bf16.msra.mxu0 %v16971_v27  ;;  %12300 = vmatmul.mubr.bf16.vlgmr.msra.gmra.mrb[108].mxu1 %v622_v28  ;;  %v17015_v27 = vld [vmem:[%s17519_s4 + $0x1d90] sm:$0xff]   ;;  %v17016_v28 = vld [vmem:[%s17519_s4 + $0x1d58] sm:$0xff]  }
 0x3dc   : > { %15560 = vmatprep.subr.bf16.mxu0 %v16974_v32  ;;  %15581 = vmatpush3.bf16.msra.mxu1 %v16973_v31  ;;  %v17019_v31 = vld [vmem:[%s17519_s4 + $0x1d98] sm:$0xff]   ;;  %v17020_v32 = vld [vmem:[%s17519_s4 + $0x1d60] sm:$0xff]  }
 0x3dd   : > { %15582 = vmatprep.subr.bf16.mxu1 %v16976_v34  ;;  %12339 = vmatprep.mubr.bf16.mxu0 %v625_v13  ;;  %v17022_v34 = vld [vmem:[%s17519_s4 + $0x1de0] sm:$0xff]   ;;  %v17047_v13 = vld [vmem:[%s17519_s4 + $0x1e10] sm:$0xff]  }
 0x3de   : > { %12379 = vmatprep.mubr.bf16.mxu1 %v627_v18  ;;  %v17052_v18 = vld [vmem:[%s17519_s4 + $0x1ed8] sm:$0xff]  }
 0x3df   : > { %15561 = vmatpush3.bf16.msra.mxu0 %v16975_v33  ;;  %v17021_v33 = vld [vmem:[%s17519_s4 + $0x1d20] sm:$0xff]  }
 0x3e0   : > { %15562 = vmatprep.subr.bf16.mxu0 %v16978_v36  ;;  %15583 = vmatpush3.bf16.msra.mxu1 %v16977_v35  ;;  %v17023_v36 = vld [vmem:[%s17519_s4 + $0x1da0] sm:$0xff]  }
 0x3e1   : > { %15584 = vmatprep.subr.bf16.mxu1 %v16980_v38 }
 0x3e3   : > { %15563 = vmatpush3.bf16.msra.mxu0 %v16979_v37 }
 0x3e4   : > { %15564 = vmatprep.subr.bf16.mxu0 %v16982_v40  ;;  %15585 = vmatpush3.bf16.msra.mxu1 %v16981_v39  ;;  %v17024_v39 = vld [vmem:[%s17519_s4 + $0x1d68] sm:$0xff]  }
 0x3e5   : > { %15586 = vmatprep.subr.bf16.mxu1 %v16984_v42  ;;  %v17025_v42 = vld [vmem:[%s17519_s4 + $0x1d28] sm:$0xff]  }
 0x3e7   : > { %15565 = vmatpush3.bf16.msra.mxu0 %v16983_v41 }
 0x3e8   : > { %15566 = vmatprep.subr.bf16.mxu0 %v16986_v44  ;;  %15587 = vmatpush3.bf16.msra.mxu1 %v16985_v43 }
 0x3e9   : > { %15588 = vmatprep.subr.bf16.mxu1 %v16988_v47  ;;  %v17026_v47 = vld [vmem:[%s17519_s4 + $0x1de8] sm:$0xff]  }
 0x3eb   : > { %15567 = vmatpush3.bf16.msra.mxu0 %v16987_v45 }
 0x3ec   : > { %15568 = vmatprep.subr.bf16.mxu0 %v16990_v52  ;;  %15589 = vmatpush3.bf16.msra.mxu1 %v16989_v49  ;;  %v17027_v49 = vld [vmem:[%s17519_s4 + $0x1da8] sm:$0xff]   ;;  %v17028_v52 = vld [vmem:[%s17519_s4 + $0x1d70] sm:$0xff]  }
 0x3ed   : > { %v15266_v46 = vpop.f32.mrb[84].mxu0  ;;  %15590 = vmatprep.subr.bf16.mxu1 %v16992_v58  ;;  %v17034_v58 = vld [vmem:[%s17519_s4 + $0x1df8] sm:$0xff]  }
 0x3ee   : > { %v15267_v48 = vpop.f32.mrb[85].mxu0  ;;  %v15288_v53 = vpop.f32.mrb[84].mxu1 }
 0x3ef   : > { %v15268_v50 = vadd.f32 %v15267_v48, %v15266_v46  ;;  %v15269_v51 = vpop.f32.mrb[86].mxu0  ;;  %v15289_v57 = vpop.f32.mrb[85].mxu1  ;;  %15569 = vmatpush3.bf16.msra.mxu0 %v16991_v55  ;;  %v17031_v55 = vld [vmem:[%s17519_s4 + $0x1db0] sm:$0xff]  }
 0x3f0   : > { %v15270_v56 = vpop.f32.mrb[87].mxu0  ;;  %v15290_v59 = vadd.f32 %v15289_v57, %v15288_v53  ;;  %v15291_v61 = vpop.f32.mrb[86].mxu1  ;;  %15570 = vmatprep.subr.bf16.mxu0 %v16994_v63  ;;  %15591 = vmatpush3.bf16.msra.mxu1 %v16993_v60  ;;  %v17029_v53 = vld [vmem:[%s17519_s4 + $0x1d30] sm:$0xff]   ;;  %v17033_v57 = vld [vmem:[%s17519_s4 + $0x1d38] sm:$0xff]   ;;  %v17037_v63 = vld [vmem:[%s17519_s4 + $0x1e40] sm:$0xff]  }
 0x3f1   : > { %v11782_v54 = vadd.f32 %v15268_v50, %v18539_v10  ;;  %v15292_v0 = vpop.f32.mrb[87].mxu1  ;;  %15592 = vmatprep.subr.bf16.mxu1 %v16996_v2  ;;  %v624_v10 = vpack.c.bf16 %v275_v7, %v275_v7  ;;  %v17032_v56 = vld [vmem:[%s17519_s4 + $0x1d78] sm:$0xff]   ;;  %v17041_v7 = vld [vmem:[%s17519_s4 + $0x1e80] sm:$0xff]  }
 0x3f2   : > { %v17036_v61 = vld [vmem:[%s17519_s4 + $0x1db8] sm:$0xff]  }
 0x3f3   : > { %v18576_v62 = vadd.f32 %v15290_v59, %v11782_v54  ;;  %15571 = vmatpush3.bf16.msra.mxu0 %v16995_v1  ;;  %v17030_v54 = vld [vmem:[%s17519_s4 + $0x1df0] sm:$0xff]  }
 0x3f4   : > { %15572 = vmatprep.subr.bf16.mxu0 %v16998_v4  ;;  %15593 = vmatpush3.bf16.msra.mxu1 %v16997_v3  ;;  %v277_v59 = vld [vmem:[%s17533_s27 + $0x1d0] sm:$0xff]  ;;  %v278_v0 = vld [vmem:[%s17533_s27 + $0x1d8] sm:$0xff]  ;;  %v17039_v3 = vld [vmem:[%s17519_s4 + $0x1e00] sm:$0xff]  }
 0x3f5   : > { %15594 = vmatprep.subr.bf16.mxu1 %v17000_v6  ;;  %v424_v60 = vcombine.high %v277_v59, %v277_v59  ;;  %v425_v2 = vcombine.high %v278_v0, %v278_v0  ;;  %v630_v4 = vpack.c.bf16 %v278_v0, %v278_v0  ;;  %v17080_v0 = vld [vmem:[%s17519_s4 + $0x1f50] sm:$0xff]  }
 0x3f7   : > { %15573 = vmatpush3.bf16.msra.mxu0 %v16999_v5  ;;  %v629_v1 = vpack.c.bf16 %v424_v60, %v424_v60  ;;  %v17040_v5 = vld [vmem:[%s17519_s4 + $0x1ec0] sm:$0xff]   ;;  %v631_v6 = vpack.c.bf16 %v425_v2, %v425_v2  ;;  %v17076_v60 = vld [vmem:[%s17519_s4 + $0x1f48] sm:$0xff]   ;;  %v17082_v2 = vld [vmem:[%s17519_s4 + $0x1fd0] sm:$0xff]  }
 0x3f8   : > { %15602 = vmatprep.subr.bf16.mxu0 %v17003_v11  ;;  %15595 = vmatpush3.bf16.msra.mxu1 %v17002_v9  ;;  %v17043_v9 = vld [vmem:[%s17519_s4 + $0x1e08] sm:$0xff]  }
 0x3f9   : > { %15624 = vmatprep.subr.bf16.mxu1 %v17006_v17  ;;  %v17045_v11 = vld [vmem:[%s17519_s4 + $0x1e88] sm:$0xff]   ;;  %v17051_v17 = vld [vmem:[%s17519_s4 + $0x1e18] sm:$0xff]  }
 0x3fa   : > { %12340 = vmatmul.mubr.bf16.vlgmr.msra.gmra.mrb[112].mxu0 %v624_v10  ;;  %v17044_v10 = vld [vmem:[%s17519_s4 + $0x1ec8] sm:$0xff]  }
 0x3fb   : > { %15603 = vmatpush3.bf16.msra.mxu0 %v17005_v15  ;;  %12380 = vmatmul.mubr.bf16.vlgmr.msra.gmra.mrb[112].mxu1 %v626_v16  ;;  %v17049_v15 = vld [vmem:[%s17519_s4 + $0x1e90] sm:$0xff]   ;;  %v17050_v16 = vld [vmem:[%s17519_s4 + $0x1e58] sm:$0xff]  }
 0x3fc   : > { %15604 = vmatprep.subr.bf16.mxu0 %v17008_v20  ;;  %15625 = vmatpush3.bf16.msra.mxu1 %v17007_v19  ;;  %v17053_v19 = vld [vmem:[%s17519_s4 + $0x1e98] sm:$0xff]   ;;  %v17054_v20 = vld [vmem:[%s17519_s4 + $0x1e60] sm:$0xff]  }
 0x3fd   : > { %15626 = vmatprep.subr.bf16.mxu1 %v17010_v22  ;;  %12419 = vmatprep.mubr.bf16.mxu0 %v629_v1  ;;  %v17056_v22 = vld [vmem:[%s17519_s4 + $0x1ee0] sm:$0xff]   ;;  %v17081_v1 = vld [vmem:[%s17519_s4 + $0x1f10] sm:$0xff]  }
 0x3fe   : > { %12459 = vmatprep.mubr.bf16.mxu1 %v631_v6  ;;  %v17086_v6 = vld [vmem:[%s17519_s4 + $0x1fd8] sm:$0xff]  }
 0x3ff   : > { %15605 = vmatpush3.bf16.msra.mxu0 %v17009_v21  ;;  %v17055_v21 = vld [vmem:[%s17519_s4 + $0x1e20] sm:$0xff]  }
 0x400   : > { %15606 = vmatprep.subr.bf16.mxu0 %v17012_v24  ;;  %15627 = vmatpush3.bf16.msra.mxu1 %v17011_v23  ;;  %v17057_v24 = vld [vmem:[%s17519_s4 + $0x1ea0] sm:$0xff]  }
 0x401   : > { %15628 = vmatprep.subr.bf16.mxu1 %v17014_v26 }
 0x403   : > { %15607 = vmatpush3.bf16.msra.mxu0 %v17013_v25 }
 0x404   : > { %15608 = vmatprep.subr.bf16.mxu0 %v17016_v28  ;;  %15629 = vmatpush3.bf16.msra.mxu1 %v17015_v27  ;;  %v17058_v27 = vld [vmem:[%s17519_s4 + $0x1e68] sm:$0xff]  }
 0x405   : > { %15630 = vmatprep.subr.bf16.mxu1 %v17018_v30  ;;  %v17059_v30 = vld [vmem:[%s17519_s4 + $0x1e28] sm:$0xff]  }
 0x407   : > { %15609 = vmatpush3.bf16.msra.mxu0 %v17017_v29 }
 0x408   : > { %15610 = vmatprep.subr.bf16.mxu0 %v17020_v32  ;;  %15631 = vmatpush3.bf16.msra.mxu1 %v17019_v31 }
 0x409   : > { %15632 = vmatprep.subr.bf16.mxu1 %v17022_v34 }
 0x40b   : > { %15611 = vmatpush3.bf16.msra.mxu0 %v17021_v33 }
 0x40c   : > { %15612 = vmatprep.subr.bf16.mxu0 %v17024_v39  ;;  %15633 = vmatpush3.bf16.msra.mxu1 %v17023_v36 }
 0x40d   : > { %v15310_v35 = vpop.f32.mrb[88].mxu0  ;;  %15634 = vmatprep.subr.bf16.mxu1 %v17026_v47  ;;  %v279_v47 = vld [vmem:[%s17533_s27 + $0x1e0] sm:$0xff] }
 0x40e   : > { %v15311_v37 = vpop.f32.mrb[89].mxu0  ;;  %v15332_v41 = vpop.f32.mrb[88].mxu1 }
 0x40f   : > { %v15312_v38 = vadd.f32 %v15311_v37, %v15310_v35  ;;  %v15313_v40 = vpop.f32.mrb[90].mxu0  ;;  %v15333_v45 = vpop.f32.mrb[89].mxu1  ;;  %15613 = vmatpush3.bf16.msra.mxu0 %v17025_v42  ;;  %v17060_v35 = vld [vmem:[%s17519_s4 + $0x1ee8] sm:$0xff]   ;;  %v17064_v42 = vld [vmem:[%s17519_s4 + $0x1ef0] sm:$0xff]  }
 0x410   : > { %v15314_v44 = vpop.f32.mrb[91].mxu0  ;;  %v15334_v46 = vadd.f32 %v15333_v45, %v15332_v41  ;;  %v15335_v48 = vpop.f32.mrb[90].mxu1  ;;  %15635 = vmatpush3.bf16.msra.mxu1 %v17027_v49  ;;  %15614 = vmatprep.subr.bf16.mxu0 %v17028_v52  ;;  %v17061_v37 = vld [vmem:[%s17519_s4 + $0x1ea8] sm:$0xff]   ;;  %v17062_v40 = vld [vmem:[%s17519_s4 + $0x1e70] sm:$0xff]   ;;  %v17067_v45 = vld [vmem:[%s17519_s4 + $0x1e38] sm:$0xff]  }
 0x411   : > { %v11862_v43 = vadd.f32 %v15312_v38, %v18576_v62  ;;  %v15336_v50 = vpop.f32.mrb[91].mxu1  ;;  %15636 = vmatprep.subr.bf16.mxu1 %v17030_v54  ;;  %v628_v62 = vpack.c.bf16 %v277_v59, %v277_v59  ;;  %v17063_v41 = vld [vmem:[%s17519_s4 + $0x1e30] sm:$0xff]   ;;  %v17066_v44 = vld [vmem:[%s17519_s4 + $0x1e78] sm:$0xff]   ;;  %v426_v48 = vcombine.high %v279_v47, %v279_v47  ;;  %v280_v52 = vld [vmem:[%s17533_s27 + $0x1e8] sm:$0xff] }
 0x412   : > { %v17070_v49 = vld [vmem:[%s17519_s4 + $0x1eb8] sm:$0xff]   ;;  %v632_v50 = vpack.c.bf16 %v279_v47, %v279_v47  ;;  %v427_v54 = vcombine.high %v280_v52, %v280_v52  ;;  %v17075_v59 = vld [vmem:[%s17519_s4 + $0x1f80] sm:$0xff]  }
 0x413   : > { %v18613_v51 = vadd.f32 %v15334_v46, %v11862_v43  ;;  %15615 = vmatpush3.bf16.msra.mxu0 %v17029_v53  ;;  %v17065_v43 = vld [vmem:[%s17519_s4 + $0x1eb0] sm:$0xff]   ;;  %v17068_v46 = vld [vmem:[%s17519_s4 + $0x1ef8] sm:$0xff]   ;;  %v633_v53 = vpack.c.bf16 %v426_v48, %v426_v48  ;;  %v17109_v47 = vld [vmem:[%s17519_s4 + $0x2080] sm:$0xff]  }
 0x414   : > { %15637 = vmatpush3.bf16.msra.mxu1 %v17031_v55  ;;  %15616 = vmatprep.subr.bf16.mxu0 %v17032_v56  ;;  %v17073_v55 = vld [vmem:[%s17519_s4 + $0x1f00] sm:$0xff]   ;;  %v634_v56 = vpack.c.bf16 %v280_v52, %v280_v52  ;;  %v17110_v48 = vld [vmem:[%s17519_s4 + $0x2048] sm:$0xff]   ;;  %v17114_v52 = vld [vmem:[%s17519_s4 + $0x2050] sm:$0xff]  }
 0x415   : > { %15638 = vmatprep.subr.bf16.mxu1 %v17034_v58  ;;  %v635_v58 = vpack.c.bf16 %v427_v54, %v427_v54  ;;  %v17116_v54 = vld [vmem:[%s17519_s4 + $0x20d0] sm:$0xff]  }
 0x417   : > { %15617 = vmatpush3.bf16.msra.mxu0 %v17033_v57  ;;  %v17074_v57 = vld [vmem:[%s17519_s4 + $0x1fc0] sm:$0xff]  }
 0x418   : > { %15639 = vmatpush3.bf16.msra.mxu1 %v17036_v61  ;;  %15646 = vmatprep.subr.bf16.mxu0 %v17037_v63  ;;  %v17077_v61 = vld [vmem:[%s17519_s4 + $0x1f08] sm:$0xff]  }
 0x419   : > { %15668 = vmatprep.subr.bf16.mxu1 %v17040_v5  ;;  %v17079_v63 = vld [vmem:[%s17519_s4 + $0x1f88] sm:$0xff]   ;;  %v17085_v5 = vld [vmem:[%s17519_s4 + $0x1f18] sm:$0xff]  }
 0x41a   : > { %12420 = vmatmul.mubr.bf16.vlgmr.msra.gmra.mrb[116].mxu0 %v628_v62  ;;  %v17078_v62 = vld [vmem:[%s17519_s4 + $0x1fc8] sm:$0xff]  }
 0x41b   : > { %15647 = vmatpush3.bf16.msra.mxu0 %v17039_v3  ;;  %12460 = vmatmul.mubr.bf16.vlgmr.msra.gmra.mrb[116].mxu1 %v630_v4  ;;  %v17083_v3 = vld [vmem:[%s17519_s4 + $0x1f90] sm:$0xff]   ;;  %v17084_v4 = vld [vmem:[%s17519_s4 + $0x1f58] sm:$0xff]  }
 0x41c   : > { %15648 = vmatprep.subr.bf16.mxu0 %v17042_v8  ;;  %15669 = vmatpush3.bf16.msra.mxu1 %v17041_v7  ;;  %v17087_v7 = vld [vmem:[%s17519_s4 + $0x1f98] sm:$0xff]   ;;  %v17088_v8 = vld [vmem:[%s17519_s4 + $0x1f60] sm:$0xff]  }
 0x41d   : > { %15670 = vmatprep.subr.bf16.mxu1 %v17044_v10  ;;  %12499 = vmatprep.mubr.bf16.mxu0 %v633_v53  ;;  %v17090_v10 = vld [vmem:[%s17519_s4 + $0x1fe0] sm:$0xff]   ;;  %v17115_v53 = vld [vmem:[%s17519_s4 + $0x2010] sm:$0xff]  }
 0x41e   : > { %12539 = vmatprep.mubr.bf16.mxu1 %v635_v58  ;;  %v17120_v58 = vld [vmem:[%s17519_s4 + $0x20d8] sm:$0xff]  }
 0x41f   : > { %15649 = vmatpush3.bf16.msra.mxu0 %v17043_v9  ;;  %v17089_v9 = vld [vmem:[%s17519_s4 + $0x1f20] sm:$0xff]  }
 0x420   : > { %15650 = vmatprep.subr.bf16.mxu0 %v17046_v12  ;;  %15671 = vmatpush3.bf16.msra.mxu1 %v17045_v11  ;;  %v17091_v12 = vld [vmem:[%s17519_s4 + $0x1fa0] sm:$0xff]  }
 0x421   : > { %15672 = vmatprep.subr.bf16.mxu1 %v17048_v14 }
 0x423   : > { %15651 = vmatpush3.bf16.msra.mxu0 %v17047_v13 }
 0x424   : > { %15652 = vmatprep.subr.bf16.mxu0 %v17050_v16  ;;  %15673 = vmatpush3.bf16.msra.mxu1 %v17049_v15  ;;  %v17092_v15 = vld [vmem:[%s17519_s4 + $0x1f68] sm:$0xff]  }
 0x425   : > { %15674 = vmatprep.subr.bf16.mxu1 %v17052_v18  ;;  %v17093_v18 = vld [vmem:[%s17519_s4 + $0x1f28] sm:$0xff]  }
 0x427   : > { %15653 = vmatpush3.bf16.msra.mxu0 %v17051_v17 }
 0x428   : > { %15654 = vmatprep.subr.bf16.mxu0 %v17054_v20  ;;  %15675 = vmatpush3.bf16.msra.mxu1 %v17053_v19 }
 0x429   : > { %15676 = vmatprep.subr.bf16.mxu1 %v17056_v22 }
 0x42b   : > { %15655 = vmatpush3.bf16.msra.mxu0 %v17055_v21 }
 0x42c   : > { %15656 = vmatprep.subr.bf16.mxu0 %v17058_v27  ;;  %15677 = vmatpush3.bf16.msra.mxu1 %v17057_v24 }
 0x42d   : > { %v15354_v23 = vpop.f32.mrb[92].mxu0  ;;  %15678 = vmatprep.subr.bf16.mxu1 %v17060_v35  ;;  %v281_v35 = vld [vmem:[%s17533_s27 + $0x1f0] sm:$0xff] }
 0x42e   : > { %v15355_v25 = vpop.f32.mrb[93].mxu0  ;;  %v15376_v29 = vpop.f32.mrb[92].mxu1 }
 0x42f   : > { %v15356_v26 = vadd.f32 %v15355_v25, %v15354_v23  ;;  %v15357_v28 = vpop.f32.mrb[94].mxu0  ;;  %v15377_v33 = vpop.f32.mrb[93].mxu1  ;;  %15657 = vmatpush3.bf16.msra.mxu0 %v17059_v30  ;;  %v17094_v23 = vld [vmem:[%s17519_s4 + $0x1fe8] sm:$0xff]   ;;  %v17098_v30 = vld [vmem:[%s17519_s4 + $0x1ff0] sm:$0xff]  }
 0x430   : > { %v15358_v32 = vpop.f32.mrb[95].mxu0  ;;  %v15378_v34 = vadd.f32 %v15377_v33, %v15376_v29  ;;  %v15379_v36 = vpop.f32.mrb[94].mxu1  ;;  %15679 = vmatpush3.bf16.msra.mxu1 %v17061_v37  ;;  %15658 = vmatprep.subr.bf16.mxu0 %v17062_v40  ;;  %v17095_v25 = vld [vmem:[%s17519_s4 + $0x1fa8] sm:$0xff]   ;;  %v17096_v28 = vld [vmem:[%s17519_s4 + $0x1f70] sm:$0xff]   ;;  %v17101_v33 = vld [vmem:[%s17519_s4 + $0x1f38] sm:$0xff]  }
 0x431   : > { %v11942_v31 = vadd.f32 %v15356_v26, %v18613_v51  ;;  %v15380_v38 = vpop.f32.mrb[95].mxu1  ;;  %15680 = vmatprep.subr.bf16.mxu1 %v17064_v42  ;;  %v17071_v51 = vld [vmem:[%s17519_s4 + $0x1f40] sm:$0xff]   ;;  %v17097_v29 = vld [vmem:[%s17519_s4 + $0x1f30] sm:$0xff]   ;;  %v17100_v32 = vld [vmem:[%s17519_s4 + $0x1f78] sm:$0xff]   ;;  %v428_v36 = vcombine.high %v281_v35, %v281_v35 }
 0x432   : > { %v17104_v37 = vld [vmem:[%s17519_s4 + $0x1fb8] sm:$0xff]   ;;  %v636_v38 = vpack.c.bf16 %v281_v35, %v281_v35  ;;  %v17143_v35 = vld [vmem:[%s17519_s4 + $0x2180] sm:$0xff]  }
 0x433   : > { %v18650_v39 = vadd.f32 %v15378_v34, %v11942_v31  ;;  %15659 = vmatpush3.bf16.msra.mxu0 %v17063_v41  ;;  %v17099_v31 = vld [vmem:[%s17519_s4 + $0x1fb0] sm:$0xff]   ;;  %v17102_v34 = vld [vmem:[%s17519_s4 + $0x1ff8] sm:$0xff]   ;;  %v637_v41 = vpack.c.bf16 %v428_v36, %v428_v36  ;;  %v17144_v36 = vld [vmem:[%s17519_s4 + $0x2148] sm:$0xff]  }
 0x434   : > { %15681 = vmatpush3.bf16.msra.mxu1 %v17065_v43  ;;  %15660 = vmatprep.subr.bf16.mxu0 %v17066_v44  ;;  %v282_v40 = vld [vmem:[%s17533_s27 + $0x1f8] sm:$0xff]  ;;  %v17107_v43 = vld [vmem:[%s17519_s4 + $0x2000] sm:$0xff]  }
 0x435   : > { %15682 = vmatprep.subr.bf16.mxu1 %v17068_v46  ;;  %v429_v42 = vcombine.high %v282_v40, %v282_v40  ;;  %v638_v44 = vpack.c.bf16 %v282_v40, %v282_v40  ;;  %v17148_v40 = vld [vmem:[%s17519_s4 + $0x2150] sm:$0xff]  }
 0x437   : > { %15661 = vmatpush3.bf16.msra.mxu0 %v17067_v45  ;;  %v17108_v45 = vld [vmem:[%s17519_s4 + $0x20c0] sm:$0xff]   ;;  %v639_v46 = vpack.c.bf16 %v429_v42, %v429_v42  ;;  %v17150_v42 = vld [vmem:[%s17519_s4 + $0x21d0] sm:$0xff]  }
 0x438   : > { %15683 = vmatpush3.bf16.msra.mxu1 %v17070_v49  ;;  %15690 = vmatprep.subr.bf16.mxu0 %v17071_v51  ;;  %v17111_v49 = vld [vmem:[%s17519_s4 + $0x2008] sm:$0xff]  }
 0x439   : > { %15712 = vmatprep.subr.bf16.mxu1 %v17074_v57  ;;  %v17113_v51 = vld [vmem:[%s17519_s4 + $0x2088] sm:$0xff]   ;;  %v17119_v57 = vld [vmem:[%s17519_s4 + $0x2018] sm:$0xff]  }
 0x43a   : > { %12500 = vmatmul.mubr.bf16.vlgmr.msra.gmra.mrb[120].mxu0 %v632_v50  ;;  %v17112_v50 = vld [vmem:[%s17519_s4 + $0x20c8] sm:$0xff]  }
 0x43b   : > { %15691 = vmatpush3.bf16.msra.mxu0 %v17073_v55  ;;  %12540 = vmatmul.mubr.bf16.vlgmr.msra.gmra.mrb[120].mxu1 %v634_v56  ;;  %v17117_v55 = vld [vmem:[%s17519_s4 + $0x2090] sm:$0xff]   ;;  %v17118_v56 = vld [vmem:[%s17519_s4 + $0x2058] sm:$0xff]  }
 0x43c   : > { %15692 = vmatprep.subr.bf16.mxu0 %v17076_v60  ;;  %15713 = vmatpush3.bf16.msra.mxu1 %v17075_v59  ;;  %v17121_v59 = vld [vmem:[%s17519_s4 + $0x2098] sm:$0xff]   ;;  %v17122_v60 = vld [vmem:[%s17519_s4 + $0x2060] sm:$0xff]  }
 0x43d   : > { %15714 = vmatprep.subr.bf16.mxu1 %v17078_v62  ;;  %12579 = vmatprep.mubr.bf16.mxu0 %v637_v41  ;;  %v17124_v62 = vld [vmem:[%s17519_s4 + $0x20e0] sm:$0xff]   ;;  %v17149_v41 = vld [vmem:[%s17519_s4 + $0x2110] sm:$0xff]  }
 0x43e   : > { %12619 = vmatprep.mubr.bf16.mxu1 %v639_v46  ;;  %v17154_v46 = vld [vmem:[%s17519_s4 + $0x21d8] sm:$0xff]  }
 0x43f   : > { %15693 = vmatpush3.bf16.msra.mxu0 %v17077_v61  ;;  %v17123_v61 = vld [vmem:[%s17519_s4 + $0x2020] sm:$0xff]  }
 0x440   : > { %15694 = vmatprep.subr.bf16.mxu0 %v17080_v0  ;;  %15715 = vmatpush3.bf16.msra.mxu1 %v17079_v63  ;;  %v17125_v0 = vld [vmem:[%s17519_s4 + $0x20a0] sm:$0xff]  }
 0x441   : > { %15716 = vmatprep.subr.bf16.mxu1 %v17082_v2 }
 0x443   : > { %15695 = vmatpush3.bf16.msra.mxu0 %v17081_v1 }
 0x444   : > { %15696 = vmatprep.subr.bf16.mxu0 %v17084_v4  ;;  %15717 = vmatpush3.bf16.msra.mxu1 %v17083_v3  ;;  %v17126_v3 = vld [vmem:[%s17519_s4 + $0x2068] sm:$0xff]  }
 0x445   : > { %15718 = vmatprep.subr.bf16.mxu1 %v17086_v6  ;;  %v17127_v6 = vld [vmem:[%s17519_s4 + $0x2028] sm:$0xff]  }
 0x447   : > { %15697 = vmatpush3.bf16.msra.mxu0 %v17085_v5 }
 0x448   : > { %15698 = vmatprep.subr.bf16.mxu0 %v17088_v8  ;;  %15719 = vmatpush3.bf16.msra.mxu1 %v17087_v7 }
 0x449   : > { %15720 = vmatprep.subr.bf16.mxu1 %v17090_v10 }
 0x44b   : > { %15699 = vmatpush3.bf16.msra.mxu0 %v17089_v9 }
 0x44c   : > { %15700 = vmatprep.subr.bf16.mxu0 %v17092_v15  ;;  %15721 = vmatpush3.bf16.msra.mxu1 %v17091_v12 }
 0x44d   : > { %v15398_v11 = vpop.f32.mrb[96].mxu0  ;;  %15722 = vmatprep.subr.bf16.mxu1 %v17094_v23  ;;  %v283_v23 = vld [vmem:[%s17533_s27 + $0x200] sm:$0xff] }
 0x44e   : > { %v15399_v13 = vpop.f32.mrb[97].mxu0  ;;  %v15420_v17 = vpop.f32.mrb[96].mxu1 }
 0x44f   : > { %v15400_v14 = vadd.f32 %v15399_v13, %v15398_v11  ;;  %v15401_v16 = vpop.f32.mrb[98].mxu0  ;;  %v15421_v21 = vpop.f32.mrb[97].mxu1  ;;  %15701 = vmatpush3.bf16.msra.mxu0 %v17093_v18  ;;  %v17128_v11 = vld [vmem:[%s17519_s4 + $0x20e8] sm:$0xff]   ;;  %v17132_v18 = vld [vmem:[%s17519_s4 + $0x20f0] sm:$0xff]  }
 0x450   : > { %v15402_v20 = vpop.f32.mrb[99].mxu0  ;;  %v15422_v22 = vadd.f32 %v15421_v21, %v15420_v17  ;;  %v15423_v24 = vpop.f32.mrb[98].mxu1  ;;  %15723 = vmatpush3.bf16.msra.mxu1 %v17095_v25  ;;  %15702 = vmatprep.subr.bf16.mxu0 %v17096_v28  ;;  %v17129_v13 = vld [vmem:[%s17519_s4 + $0x20a8] sm:$0xff]   ;;  %v17130_v16 = vld [vmem:[%s17519_s4 + $0x2070] sm:$0xff]   ;;  %v17135_v21 = vld [vmem:[%s17519_s4 + $0x2038] sm:$0xff]  }
 0x451   : > { %v12022_v19 = vadd.f32 %v15400_v14, %v18650_v39  ;;  %v15424_v26 = vpop.f32.mrb[99].mxu1  ;;  %15724 = vmatprep.subr.bf16.mxu1 %v17098_v30  ;;  %v17105_v39 = vld [vmem:[%s17519_s4 + $0x2040] sm:$0xff]   ;;  %v17131_v17 = vld [vmem:[%s17519_s4 + $0x2030] sm:$0xff]   ;;  %v17134_v20 = vld [vmem:[%s17519_s4 + $0x2078] sm:$0xff]   ;;  %v430_v24 = vcombine.high %v283_v23, %v283_v23 }
 0x452   : > { %v17138_v25 = vld [vmem:[%s17519_s4 + $0x20b8] sm:$0xff]   ;;  %v640_v26 = vpack.c.bf16 %v283_v23, %v283_v23  ;;  %v284_v28 = vld [vmem:[%s17533_s27 + $0x208] sm:$0xff] }
 0x453   : > { %v18687_v27 = vadd.f32 %v15422_v22, %v12022_v19  ;;  %15703 = vmatpush3.bf16.msra.mxu0 %v17097_v29  ;;  %v17133_v19 = vld [vmem:[%s17519_s4 + $0x20b0] sm:$0xff]   ;;  %v17136_v22 = vld [vmem:[%s17519_s4 + $0x20f8] sm:$0xff]   ;;  %v641_v29 = vpack.c.bf16 %v430_v24, %v430_v24  ;;  %v431_v30 = vcombine.high %v284_v28, %v284_v28  ;;  %v17177_v23 = vld [vmem:[%s17519_s4 + $0x2280] sm:$0xff]  }
 0x454   : > { %15725 = vmatpush3.bf16.msra.mxu1 %v17099_v31  ;;  %15704 = vmatprep.subr.bf16.mxu0 %v17100_v32  ;;  %v17141_v31 = vld [vmem:[%s17519_s4 + $0x2100] sm:$0xff]   ;;  %v642_v32 = vpack.c.bf16 %v284_v28, %v284_v28  ;;  %v17178_v24 = vld [vmem:[%s17519_s4 + $0x2248] sm:$0xff]   ;;  %v17182_v28 = vld [vmem:[%s17519_s4 + $0x2250] sm:$0xff]  }
 0x455   : > { %15726 = vmatprep.subr.bf16.mxu1 %v17102_v34  ;;  %v643_v34 = vpack.c.bf16 %v431_v30, %v431_v30  ;;  %v17184_v30 = vld [vmem:[%s17519_s4 + $0x22d0] sm:$0xff]  }
 0x457   : > { %15705 = vmatpush3.bf16.msra.mxu0 %v17101_v33  ;;  %v17142_v33 = vld [vmem:[%s17519_s4 + $0x21c0] sm:$0xff]  }
 0x458   : > { %15727 = vmatpush3.bf16.msra.mxu1 %v17104_v37  ;;  %15734 = vmatprep.subr.bf16.mxu0 %v17105_v39  ;;  %v17145_v37 = vld [vmem:[%s17519_s4 + $0x2108] sm:$0xff]  }
 0x459   : > { %15756 = vmatprep.subr.bf16.mxu1 %v17108_v45  ;;  %v17147_v39 = vld [vmem:[%s17519_s4 + $0x2188] sm:$0xff]   ;;  %v17153_v45 = vld [vmem:[%s17519_s4 + $0x2118] sm:$0xff]  }
 0x45a   : > { %12580 = vmatmul.mubr.bf16.vlgmr.msra.gmra.mrb[124].mxu0 %v636_v38  ;;  %v17146_v38 = vld [vmem:[%s17519_s4 + $0x21c8] sm:$0xff]  }
 0x45b   : > { %15735 = vmatpush3.bf16.msra.mxu0 %v17107_v43  ;;  %12620 = vmatmul.mubr.bf16.vlgmr.msra.gmra.mrb[124].mxu1 %v638_v44  ;;  %v17151_v43 = vld [vmem:[%s17519_s4 + $0x2190] sm:$0xff]   ;;  %v17152_v44 = vld [vmem:[%s17519_s4 + $0x2158] sm:$0xff]  }
 0x45c   : > { %15736 = vmatprep.subr.bf16.mxu0 %v17110_v48  ;;  %15757 = vmatpush3.bf16.msra.mxu1 %v17109_v47  ;;  %v17155_v47 = vld [vmem:[%s17519_s4 + $0x2198] sm:$0xff]   ;;  %v17156_v48 = vld [vmem:[%s17519_s4 + $0x2160] sm:$0xff]  }
 0x45d   : > { %15758 = vmatprep.subr.bf16.mxu1 %v17112_v50  ;;  %12659 = vmatprep.mubr.bf16.mxu0 %v641_v29  ;;  %v17158_v50 = vld [vmem:[%s17519_s4 + $0x21e0] sm:$0xff]   ;;  %v17183_v29 = vld [vmem:[%s17519_s4 + $0x2210] sm:$0xff]  }
 0x45e   : > { %12699 = vmatprep.mubr.bf16.mxu1 %v643_v34  ;;  %v17188_v34 = vld [vmem:[%s17519_s4 + $0x22d8] sm:$0xff]  }
 0x45f   : > { %15737 = vmatpush3.bf16.msra.mxu0 %v17111_v49  ;;  %v17157_v49 = vld [vmem:[%s17519_s4 + $0x2120] sm:$0xff]  }
 0x460   : > { %15738 = vmatprep.subr.bf16.mxu0 %v17114_v52  ;;  %15759 = vmatpush3.bf16.msra.mxu1 %v17113_v51  ;;  %v17159_v52 = vld [vmem:[%s17519_s4 + $0x21a0] sm:$0xff]  }
 0x461   : > { %15760 = vmatprep.subr.bf16.mxu1 %v17116_v54 }
 0x463   : > { %15739 = vmatpush3.bf16.msra.mxu0 %v17115_v53 }
 0x464   : > { %15740 = vmatprep.subr.bf16.mxu0 %v17118_v56  ;;  %15761 = vmatpush3.bf16.msra.mxu1 %v17117_v55  ;;  %v17160_v55 = vld [vmem:[%s17519_s4 + $0x2168] sm:$0xff]  }
 0x465   : > { %15762 = vmatprep.subr.bf16.mxu1 %v17120_v58  ;;  %v17161_v58 = vld [vmem:[%s17519_s4 + $0x2128] sm:$0xff]  }
 0x467   : > { %15741 = vmatpush3.bf16.msra.mxu0 %v17119_v57 }
 0x468   : > { %15742 = vmatprep.subr.bf16.mxu0 %v17122_v60  ;;  %15763 = vmatpush3.bf16.msra.mxu1 %v17121_v59 }
 0x469   : > { %15764 = vmatprep.subr.bf16.mxu1 %v17124_v62 }
 0x46b   : > { %15743 = vmatpush3.bf16.msra.mxu0 %v17123_v61 }
 0x46c   : > { %15744 = vmatprep.subr.bf16.mxu0 %v17126_v3  ;;  %15765 = vmatpush3.bf16.msra.mxu1 %v17125_v0 }
 0x46d   : > { %v15442_v63 = vpop.f32.mrb[100].mxu0  ;;  %15766 = vmatprep.subr.bf16.mxu1 %v17128_v11  ;;  %v285_v11 = vld [vmem:[%s17533_s27 + $0x210] sm:$0xff] }
 0x46e   : > { %v15443_v1 = vpop.f32.mrb[101].mxu0  ;;  %v15464_v5 = vpop.f32.mrb[100].mxu1 }
 0x46f   : > { %v15444_v2 = vadd.f32 %v15443_v1, %v15442_v63  ;;  %v15445_v4 = vpop.f32.mrb[102].mxu0  ;;  %v15465_v9 = vpop.f32.mrb[101].mxu1  ;;  %15745 = vmatpush3.bf16.msra.mxu0 %v17127_v6  ;;  %v17162_v63 = vld [vmem:[%s17519_s4 + $0x21e8] sm:$0xff]   ;;  %v17166_v6 = vld [vmem:[%s17519_s4 + $0x21f0] sm:$0xff]  }
 0x470   : > { %v15446_v8 = vpop.f32.mrb[103].mxu0  ;;  %v15466_v10 = vadd.f32 %v15465_v9, %v15464_v5  ;;  %v15467_v12 = vpop.f32.mrb[102].mxu1  ;;  %15767 = vmatpush3.bf16.msra.mxu1 %v17129_v13  ;;  %15746 = vmatprep.subr.bf16.mxu0 %v17130_v16  ;;  %v17163_v1 = vld [vmem:[%s17519_s4 + $0x21a8] sm:$0xff]   ;;  %v17164_v4 = vld [vmem:[%s17519_s4 + $0x2170] sm:$0xff]   ;;  %v17169_v9 = vld [vmem:[%s17519_s4 + $0x2138] sm:$0xff]  }
 0x471   : > { %v12102_v7 = vadd.f32 %v15444_v2, %v18687_v27  ;;  %v15468_v14 = vpop.f32.mrb[103].mxu1  ;;  %15768 = vmatprep.subr.bf16.mxu1 %v17132_v18  ;;  %v17139_v27 = vld [vmem:[%s17519_s4 + $0x2140] sm:$0xff]   ;;  %v17165_v5 = vld [vmem:[%s17519_s4 + $0x2130] sm:$0xff]   ;;  %v17168_v8 = vld [vmem:[%s17519_s4 + $0x2178] sm:$0xff]   ;;  %v432_v12 = vcombine.high %v285_v11, %v285_v11 }
 0x472   : > { %v17172_v13 = vld [vmem:[%s17519_s4 + $0x21b8] sm:$0xff]   ;;  %v644_v14 = vpack.c.bf16 %v285_v11, %v285_v11  ;;  %v17211_v11 = vld [vmem:[%s17519_s4 + $0x2380] sm:$0xff]  }
 0x473   : > { %v18724_v15 = vadd.f32 %v15466_v10, %v12102_v7  ;;  %15747 = vmatpush3.bf16.msra.mxu0 %v17131_v17  ;;  %v17167_v7 = vld [vmem:[%s17519_s4 + $0x21b0] sm:$0xff]   ;;  %v17170_v10 = vld [vmem:[%s17519_s4 + $0x21f8] sm:$0xff]   ;;  %v645_v17 = vpack.c.bf16 %v432_v12, %v432_v12  ;;  %v17212_v12 = vld [vmem:[%s17519_s4 + $0x2348] sm:$0xff]  }
 0x474   : > { %15769 = vmatpush3.bf16.msra.mxu1 %v17133_v19  ;;  %15748 = vmatprep.subr.bf16.mxu0 %v17134_v20  ;;  %v286_v16 = vld [vmem:[%s17533_s27 + $0x218] sm:$0xff]  ;;  %v17175_v19 = vld [vmem:[%s17519_s4 + $0x2200] sm:$0xff]  }
 0x475   : > { %15770 = vmatprep.subr.bf16.mxu1 %v17136_v22  ;;  %v433_v18 = vcombine.high %v286_v16, %v286_v16  ;;  %v646_v20 = vpack.c.bf16 %v286_v16, %v286_v16  ;;  %v17216_v16 = vld [vmem:[%s17519_s4 + $0x2350] sm:$0xff]  }
 0x477   : > { %15749 = vmatpush3.bf16.msra.mxu0 %v17135_v21  ;;  %v17176_v21 = vld [vmem:[%s17519_s4 + $0x22c0] sm:$0xff]   ;;  %v647_v22 = vpack.c.bf16 %v433_v18, %v433_v18  ;;  %v17218_v18 = vld [vmem:[%s17519_s4 + $0x23d0] sm:$0xff]  }
 0x478   : > { %15771 = vmatpush3.bf16.msra.mxu1 %v17138_v25  ;;  %15778 = vmatprep.subr.bf16.mxu0 %v17139_v27  ;;  %v17179_v25 = vld [vmem:[%s17519_s4 + $0x2208] sm:$0xff]  }
 0x479   : > { %15800 = vmatprep.subr.bf16.mxu1 %v17142_v33  ;;  %v17181_v27 = vld [vmem:[%s17519_s4 + $0x2288] sm:$0xff]   ;;  %v17187_v33 = vld [vmem:[%s17519_s4 + $0x2218] sm:$0xff]  }
 0x47a   : > { %12660 = vmatmul.mubr.bf16.vlgmr.msra.gmra.mrb[128].mxu0 %v640_v26  ;;  %v17180_v26 = vld [vmem:[%s17519_s4 + $0x22c8] sm:$0xff]  }
 0x47b   : > { %15779 = vmatpush3.bf16.msra.mxu0 %v17141_v31  ;;  %12700 = vmatmul.mubr.bf16.vlgmr.msra.gmra.mrb[128].mxu1 %v642_v32  ;;  %v17185_v31 = vld [vmem:[%s17519_s4 + $0x2290] sm:$0xff]   ;;  %v17186_v32 = vld [vmem:[%s17519_s4 + $0x2258] sm:$0xff]  }
 0x47c   : > { %15780 = vmatprep.subr.bf16.mxu0 %v17144_v36  ;;  %15801 = vmatpush3.bf16.msra.mxu1 %v17143_v35  ;;  %v17189_v35 = vld [vmem:[%s17519_s4 + $0x2298] sm:$0xff]   ;;  %v17190_v36 = vld [vmem:[%s17519_s4 + $0x2260] sm:$0xff]  }
 0x47d   : > { %15802 = vmatprep.subr.bf16.mxu1 %v17146_v38  ;;  %12739 = vmatprep.mubr.bf16.mxu0 %v645_v17  ;;  %v17217_v17 = vld [vmem:[%s17519_s4 + $0x2310] sm:$0xff]  }
 0x47e   : > { %12779 = vmatprep.mubr.bf16.mxu1 %v647_v22  ;;  %v17222_v22 = vld [vmem:[%s17519_s4 + $0x23d8] sm:$0xff]  }
 0x47f   : > { %15781 = vmatpush3.bf16.msra.mxu0 %v17145_v37  ;;  %v17191_v37 = vld [vmem:[%s17519_s4 + $0x2220] sm:$0xff]  }
 0x480   : > { %15782 = vmatprep.subr.bf16.mxu0 %v17148_v40  ;;  %15803 = vmatpush3.bf16.msra.mxu1 %v17147_v39  ;;  %v17192_v39 = vld [vmem:[%s17519_s4 + $0x22e0] sm:$0xff]  }
 0x481   : > { %15804 = vmatprep.subr.bf16.mxu1 %v17150_v42 }
 0x483   : > { %15783 = vmatpush3.bf16.msra.mxu0 %v17149_v41  ;;  %v17193_v41 = vld [vmem:[%s17519_s4 + $0x22a0] sm:$0xff]  }
 0x484   : > { %15784 = vmatprep.subr.bf16.mxu0 %v17152_v44  ;;  %15805 = vmatpush3.bf16.msra.mxu1 %v17151_v43  ;;  %v17194_v44 = vld [vmem:[%s17519_s4 + $0x2268] sm:$0xff]  }
 0x485   : > { %15806 = vmatprep.subr.bf16.mxu1 %v17154_v46 }
 0x487   : > { %15785 = vmatpush3.bf16.msra.mxu0 %v17153_v45 }
 0x488   : > { %15786 = vmatprep.subr.bf16.mxu0 %v17156_v48  ;;  %15807 = vmatpush3.bf16.msra.mxu1 %v17155_v47  ;;  %v17195_v47 = vld [vmem:[%s17519_s4 + $0x2228] sm:$0xff]  }
 0x489   : > { %15808 = vmatprep.subr.bf16.mxu1 %v17158_v50  ;;  %v17196_v50 = vld [vmem:[%s17519_s4 + $0x22e8] sm:$0xff]  }
 0x48b   : > { %15787 = vmatpush3.bf16.msra.mxu0 %v17157_v49 }
 0x48c   : > { %15788 = vmatprep.subr.bf16.mxu0 %v17160_v55  ;;  %15809 = vmatpush3.bf16.msra.mxu1 %v17159_v52  ;;  %v17197_v52 = vld [vmem:[%s17519_s4 + $0x22a8] sm:$0xff]  }
 0x48d   : > { %v15486_v51 = vpop.f32.mrb[104].mxu0  ;;  %15810 = vmatprep.subr.bf16.mxu1 %v17162_v63  ;;  %v287_v63 = vld [vmem:[%s17533_s27 + $0x220] sm:$0xff] }
 0x48e   : > { %v15487_v53 = vpop.f32.mrb[105].mxu0  ;;  %v15508_v57 = vpop.f32.mrb[104].mxu1 }
 0x48f   : > { %v15488_v54 = vadd.f32 %v15487_v53, %v15486_v51  ;;  %v15489_v56 = vpop.f32.mrb[106].mxu0  ;;  %v15509_v61 = vpop.f32.mrb[105].mxu1  ;;  %15789 = vmatpush3.bf16.msra.mxu0 %v17161_v58  ;;  %v17200_v58 = vld [vmem:[%s17519_s4 + $0x22f0] sm:$0xff]  }
 0x490   : > { %v15490_v60 = vpop.f32.mrb[107].mxu0  ;;  %v15510_v62 = vadd.f32 %v15509_v61, %v15508_v57  ;;  %v15511_v0 = vpop.f32.mrb[106].mxu1  ;;  %15811 = vmatpush3.bf16.msra.mxu1 %v17163_v1  ;;  %15790 = vmatprep.subr.bf16.mxu0 %v17164_v4  ;;  %v17199_v57 = vld [vmem:[%s17519_s4 + $0x2230] sm:$0xff]   ;;  %v17203_v61 = vld [vmem:[%s17519_s4 + $0x2238] sm:$0xff]   ;;  %v288_v4 = vld [vmem:[%s17533_s27 + $0x228] sm:$0xff] }
 0x491   : > { %v12182_v59 = vadd.f32 %v15488_v54, %v18724_v15  ;;  %v15512_v2 = vpop.f32.mrb[107].mxu1  ;;  %15812 = vmatprep.subr.bf16.mxu1 %v17166_v6  ;;  %v17173_v15 = vld [vmem:[%s17519_s4 + $0x2240] sm:$0xff]   ;;  %v17198_v54 = vld [vmem:[%s17519_s4 + $0x2270] sm:$0xff]   ;;  %v17202_v60 = vld [vmem:[%s17519_s4 + $0x2278] sm:$0xff]   ;;  %v434_v0 = vcombine.high %v287_v63, %v287_v63  ;;  %v435_v6 = vcombine.high %v288_v4, %v288_v4 }
 0x492   : > { %v17206_v1 = vld [vmem:[%s17519_s4 + $0x22b8] sm:$0xff]   ;;  %v648_v2 = vpack.c.bf16 %v287_v63, %v287_v63  ;;  %v17374_v63 = vmov 0.0  }
 0x493   : > { %v18761_v3 = vadd.f32 %v15510_v62, %v12182_v59  ;;  %15791 = vmatpush3.bf16.msra.mxu0 %v17165_v5  ;;  %v17201_v59 = vld [vmem:[%s17519_s4 + $0x22b0] sm:$0xff]   ;;  %v17204_v62 = vld [vmem:[%s17519_s4 + $0x22f8] sm:$0xff]   ;;  %v649_v5 = vpack.c.bf16 %v434_v0, %v434_v0  ;;  %v17245_v0 = vld [vmem:[%s17519_s4 + $0x2448] sm:$0xff]  }
 0x494   : > { %15813 = vmatpush3.bf16.msra.mxu1 %v17167_v7  ;;  %15792 = vmatprep.subr.bf16.mxu0 %v17168_v8  ;;  %v17209_v7 = vld [vmem:[%s17519_s4 + $0x2300] sm:$0xff]   ;;  %v650_v8 = vpack.c.bf16 %v288_v4, %v288_v4  ;;  %v17249_v4 = vld [vmem:[%s17519_s4 + $0x2410] sm:$0xff]  }
 0x495   : > { %15814 = vmatprep.subr.bf16.mxu1 %v17170_v10  ;;  %v651_v10 = vpack.c.bf16 %v435_v6, %v435_v6  ;;  %v17250_v6 = vld [vmem:[%s17519_s4 + $0x2490] sm:$0xff]  }
 0x497   : > { %15793 = vmatpush3.bf16.msra.mxu0 %v17169_v9  ;;  %v17210_v9 = vld [vmem:[%s17519_s4 + $0x23c0] sm:$0xff]  }
 0x498   : > { %15815 = vmatpush3.bf16.msra.mxu1 %v17172_v13  ;;  %15822 = vmatprep.subr.bf16.mxu0 %v17173_v15  ;;  %v17213_v13 = vld [vmem:[%s17519_s4 + $0x2308] sm:$0xff]  }
 0x499   : > { %15844 = vmatprep.subr.bf16.mxu1 %v17176_v21  ;;  %v17215_v15 = vld [vmem:[%s17519_s4 + $0x2388] sm:$0xff]   ;;  %v17221_v21 = vld [vmem:[%s17519_s4 + $0x2318] sm:$0xff]  }
 0x49a   : > { %12740 = vmatmul.mubr.bf16.vlgmr.msra.gmra.mrb[132].mxu0 %v644_v14  ;;  %v17214_v14 = vld [vmem:[%s17519_s4 + $0x23c8] sm:$0xff]  }
 0x49b   : > { %15823 = vmatpush3.bf16.msra.mxu0 %v17175_v19  ;;  %12780 = vmatmul.mubr.bf16.vlgmr.msra.gmra.mrb[132].mxu1 %v646_v20  ;;  %v17219_v19 = vld [vmem:[%s17519_s4 + $0x2390] sm:$0xff]   ;;  %v17220_v20 = vld [vmem:[%s17519_s4 + $0x2358] sm:$0xff]  }
 0x49c   : > { %15824 = vmatprep.subr.bf16.mxu0 %v17178_v24  ;;  %15845 = vmatpush3.bf16.msra.mxu1 %v17177_v23  ;;  %v17223_v23 = vld [vmem:[%s17519_s4 + $0x2398] sm:$0xff]   ;;  %v17224_v24 = vld [vmem:[%s17519_s4 + $0x2360] sm:$0xff]  }
 0x49d   : > { %15846 = vmatprep.subr.bf16.mxu1 %v17180_v26  ;;  %12819 = vmatprep.mubr.bf16.mxu0 %v649_v5  ;;  %v17251_v5 = vld [vmem:[%s17519_s4 + $0x2458] sm:$0xff]  }
 0x49e   : > { %12859 = vmatprep.mubr.bf16.mxu1 %v651_v10  ;;  %v17255_v10 = vld [vmem:[%s17519_s4 + $0x2420] sm:$0xff]  }
 0x49f   : > { %15825 = vmatpush3.bf16.msra.mxu0 %v17179_v25  ;;  %v17225_v25 = vld [vmem:[%s17519_s4 + $0x2320] sm:$0xff]  }
 0x4a0   : > { %15826 = vmatprep.subr.bf16.mxu0 %v17182_v28  ;;  %15847 = vmatpush3.bf16.msra.mxu1 %v17181_v27  ;;  %v17226_v27 = vld [vmem:[%s17519_s4 + $0x23e0] sm:$0xff]  }
 0x4a1   : > { %15848 = vmatprep.subr.bf16.mxu1 %v17184_v30 }
 0x4a3   : > { %15827 = vmatpush3.bf16.msra.mxu0 %v17183_v29  ;;  %v17227_v29 = vld [vmem:[%s17519_s4 + $0x23a0] sm:$0xff]  }
 0x4a4   : > { %15828 = vmatprep.subr.bf16.mxu0 %v17186_v32  ;;  %15849 = vmatpush3.bf16.msra.mxu1 %v17185_v31  ;;  %v17228_v32 = vld [vmem:[%s17519_s4 + $0x2368] sm:$0xff]  }
 0x4a5   : > { %15850 = vmatprep.subr.bf16.mxu1 %v17188_v34 }
 0x4a7   : > { %15829 = vmatpush3.bf16.msra.mxu0 %v17187_v33 }
 0x4a8   : > { %15830 = vmatprep.subr.bf16.mxu0 %v17190_v36  ;;  %15851 = vmatpush3.bf16.msra.mxu1 %v17189_v35  ;;  %v17229_v35 = vld [vmem:[%s17519_s4 + $0x2328] sm:$0xff]  }
 0x4a9   : > { %15852 = vmatprep.subr.bf16.mxu1 %v17192_v39 }
 0x4ab   : > { %15831 = vmatpush3.bf16.msra.mxu0 %v17191_v37 }
 0x4ac   : > { %15832 = vmatprep.subr.bf16.mxu0 %v17194_v44  ;;  %15853 = vmatpush3.bf16.msra.mxu1 %v17193_v41 }
 0x4ad   : > { %v15530_v38 = vpop.f32.mrb[108].mxu0  ;;  %15854 = vmatprep.subr.bf16.mxu1 %v17196_v50  ;;  %v17238_v50 = vld [vmem:[%s17519_s4 + $0x23f8] sm:$0xff]  }
 0x4ae   : > { %v15531_v40 = vpop.f32.mrb[109].mxu0  ;;  %v15552_v45 = vpop.f32.mrb[108].mxu1 }
 0x4af   : > { %v15532_v42 = vadd.f32 %v15531_v40, %v15530_v38  ;;  %v15533_v43 = vpop.f32.mrb[110].mxu0  ;;  %v15553_v49 = vpop.f32.mrb[109].mxu1  ;;  %15833 = vmatpush3.bf16.msra.mxu0 %v17195_v47  ;;  %v17230_v38 = vld [vmem:[%s17519_s4 + $0x23e8] sm:$0xff]   ;;  %v17235_v47 = vld [vmem:[%s17519_s4 + $0x23b0] sm:$0xff]  }
 0x4b0   : > { %v15534_v48 = vpop.f32.mrb[111].mxu0  ;;  %v15554_v51 = vadd.f32 %v15553_v49, %v15552_v45  ;;  %v15555_v53 = vpop.f32.mrb[110].mxu1  ;;  %15834 = vmatprep.subr.bf16.mxu0 %v17198_v54  ;;  %15855 = vmatpush3.bf16.msra.mxu1 %v17197_v52  ;;  %v17231_v40 = vld [vmem:[%s17519_s4 + $0x23a8] sm:$0xff]   ;;  %v17232_v43 = vld [vmem:[%s17519_s4 + $0x2370] sm:$0xff]   ;;  %v17237_v49 = vld [vmem:[%s17519_s4 + $0x2338] sm:$0xff]  }
 0x4b1   : > { %v12262_v46 = vadd.f32 %v15532_v42, %v18761_v3  ;;  %v15556_v55 = vpop.f32.mrb[111].mxu1  ;;  %15856 = vmatprep.subr.bf16.mxu1 %v17200_v58  ;;  %v17207_v3 = vld [vmem:[%s17519_s4 + $0x2340] sm:$0xff]   ;;  %v17233_v45 = vld [vmem:[%s17519_s4 + $0x2330] sm:$0xff]   ;;  %v17236_v48 = vld [vmem:[%s17519_s4 + $0x2378] sm:$0xff]  }
 0x4b2   : > { %v17240_v53 = vld [vmem:[%s17519_s4 + $0x23b8] sm:$0xff]   ;;  %v17241_v55 = vld [vmem:[%s17519_s4 + $0x2440] sm:$0xff]  }
 0x4b3   : > { %v18799_v56 = vadd.f32 %v15554_v51, %v12262_v46  ;;  %15835 = vmatpush3.bf16.msra.mxu0 %v17199_v57  ;;  %v17234_v46 = vld [vmem:[%s17519_s4 + $0x23f0] sm:$0xff]  }
 0x4b4   : > { %15836 = vmatprep.subr.bf16.mxu0 %v17202_v60  ;;  %15857 = vmatpush3.bf16.msra.mxu1 %v17201_v59  ;;  %v289_v51 = vld [vmem:[%s17533_s27 + $0x230] sm:$0xff]  ;;  %v290_v57 = vld [vmem:[%s17533_s27 + $0x238] sm:$0xff]  ;;  %v17243_v59 = vld [vmem:[%s17519_s4 + $0x2400] sm:$0xff]  }
 0x4b5   : > { %15858 = vmatprep.subr.bf16.mxu1 %v17204_v62  ;;  %v436_v52 = vcombine.high %v289_v51, %v289_v51  ;;  %v652_v54 = vpack.c.bf16 %v289_v51, %v289_v51  ;;  %v437_v58 = vcombine.high %v290_v57, %v290_v57  ;;  %v654_v60 = vpack.c.bf16 %v290_v57, %v290_v57 }
 0x4b7   : > { %15837 = vmatpush3.bf16.msra.mxu0 %v17203_v61  ;;  %v17244_v61 = vld [vmem:[%s17519_s4 + $0x2480] sm:$0xff]   ;;  %v655_v62 = vpack.c.bf16 %v437_v58, %v437_v58 }
 0x4b8   : > { %15859 = vmatpush3.bf16.msra.mxu1 %v17206_v1  ;;  %15866 = vmatprep.subr.bf16.mxu0 %v17207_v3  ;;  %v17246_v1 = vld [vmem:[%s17519_s4 + $0x2408] sm:$0xff]  }
 0x4b9   : > { %15888 = vmatprep.subr.bf16.mxu1 %v17210_v9  ;;  %v17247_v3 = vld [vmem:[%s17519_s4 + $0x2488] sm:$0xff]   ;;  %v17253_v9 = vld [vmem:[%s17519_s4 + $0x2498] sm:$0xff]  }
 0x4ba   : > { %12820 = vmatmul.mubr.bf16.vlgmr.msra.gmra.mrb[136].mxu0 %v648_v2  ;;  %v17248_v2 = vld [vmem:[%s17519_s4 + $0x2450] sm:$0xff]  }
 0x4bb   : > { %15867 = vmatpush3.bf16.msra.mxu0 %v17209_v7  ;;  %12860 = vmatmul.mubr.bf16.vlgmr.msra.gmra.mrb[136].mxu1 %v650_v8  ;;  %v17252_v7 = vld [vmem:[%s17519_s4 + $0x2418] sm:$0xff]   ;;  %v17254_v8 = vld [vmem:[%s17519_s4 + $0x2460] sm:$0xff]  }
 0x4bc   : > { %15868 = vmatprep.subr.bf16.mxu0 %v17212_v12  ;;  %15889 = vmatpush3.bf16.msra.mxu1 %v17211_v11  ;;  %v17257_v12 = vld [vmem:[%s17519_s4 + $0x2468] sm:$0xff]  }
 0x4bd   : > { %15890 = vmatprep.subr.bf16.mxu1 %v17214_v14  ;;  %12939 = vmatprep.mubr.bf16.mxu1 %v655_v62  ;;  %v17256_v14 = vld [vmem:[%s17519_s4 + $0x24a0] sm:$0xff]  }
 0x4bf   : > { %15869 = vmatpush3.bf16.msra.mxu0 %v17213_v13 }
 0x4c0   : > { %15870 = vmatprep.subr.bf16.mxu0 %v17216_v16  ;;  %15891 = vmatpush3.bf16.msra.mxu1 %v17215_v15 }
 0x4c1   : > { %15892 = vmatprep.subr.bf16.mxu1 %v17218_v18  ;;  %v17258_v18 = vld [vmem:[%s17519_s4 + $0x2428] sm:$0xff]  }
 0x4c3   : > { %15871 = vmatpush3.bf16.msra.mxu0 %v17217_v17 }
 0x4c4   : > { %15872 = vmatprep.subr.bf16.mxu0 %v17220_v20  ;;  %15893 = vmatpush3.bf16.msra.mxu1 %v17219_v19 }
 0x4c5   : > { %15894 = vmatprep.subr.bf16.mxu1 %v17222_v22 }
 0x4c7   : > { %15873 = vmatpush3.bf16.msra.mxu0 %v17221_v21 }
 0x4c8   : > { %15874 = vmatprep.subr.bf16.mxu0 %v17224_v24  ;;  %15895 = vmatpush3.bf16.msra.mxu1 %v17223_v23  ;;  %v17260_v24 = vld [vmem:[%s17519_s4 + $0x2470] sm:$0xff]  }
 0x4c9   : > { %15896 = vmatprep.subr.bf16.mxu1 %v17226_v27 }
 0x4cb   : > { %15875 = vmatpush3.bf16.msra.mxu0 %v17225_v25 }
 0x4cc   : > { %15876 = vmatprep.subr.bf16.mxu0 %v17228_v32  ;;  %15897 = vmatpush3.bf16.msra.mxu1 %v17227_v29 }
 0x4cd   : > { %v15574_v26 = vpop.f32.mrb[112].mxu0  ;;  %15898 = vmatprep.subr.bf16.mxu1 %v17230_v38 }
 0x4ce   : > { %v15575_v28 = vpop.f32.mrb[113].mxu0  ;;  %v15596_v33 = vpop.f32.mrb[112].mxu1 }
 0x4cf   : > { %v15576_v30 = vadd.f32 %v15575_v28, %v15574_v26  ;;  %v15577_v31 = vpop.f32.mrb[114].mxu0  ;;  %v15597_v37 = vpop.f32.mrb[113].mxu1  ;;  %15877 = vmatpush3.bf16.msra.mxu0 %v17229_v35  ;;  %v291_v26 = vld [vmem:[%s17533_s27 + $0x240] sm:$0xff]  ;;  %v17259_v28 = vld [vmem:[%s17519_s4 + $0x24a8] sm:$0xff]  }
 0x4d0   : > { %v15578_v36 = vpop.f32.mrb[115].mxu0  ;;  %v15598_v39 = vadd.f32 %v15597_v37, %v15596_v33  ;;  %v15599_v41 = vpop.f32.mrb[114].mxu1  ;;  %15878 = vmatprep.subr.bf16.mxu0 %v17232_v43  ;;  %15899 = vmatpush3.bf16.msra.mxu1 %v17231_v40  ;;  %v438_v29 = vcombine.high %v291_v26, %v291_v26  ;;  %v17263_v31 = vld [vmem:[%s17519_s4 + $0x2478] sm:$0xff]   ;;  %v17262_v33 = vld [vmem:[%s17519_s4 + $0x24b0] sm:$0xff]   ;;  %v656_v35 = vpack.c.bf16 %v291_v26, %v291_v26  ;;  %v292_v37 = vld [vmem:[%s17533_s27 + $0x248] sm:$0xf] }
 0x4d1   : > { %v12342_v34 = vadd.f32 %v15576_v30, %v18799_v56  ;;  %v15600_v44 = vpop.f32.mrb[115].mxu1  ;;  %15900 = vmatprep.subr.bf16.mxu1 %v17234_v46  ;;  %v653_v56 = vpack.c.bf16 %v436_v52, %v436_v52  ;;  %v17261_v30 = vld [vmem:[%s17519_s4 + $0x2430] sm:$0xff]   ;;  %v17266_v36 = vld [vmem:[%s17519_s4 + $0x24b8] sm:$0xff]   ;;  %v658_v38 = vpack.c.bf16 %v292_v37, %v292_v37 }
 0x4d2   : > { %v657_v32 = vpack.c.bf16 %v438_v29, %v438_v29 }
 0x4d3   : > { %v18835_v42 = vadd.f32 %v15598_v39, %v12342_v34  ;;  %15879 = vmatpush3.bf16.msra.mxu0 %v17233_v45  ;;  %12899 = vmatprep.mubr.bf16.mxu0 %v653_v56  ;;  %v17264_v34 = vld [vmem:[%s17519_s4 + $0x2438] sm:$0xff]  }
 0x4d4   : > { %15880 = vmatprep.subr.bf16.mxu0 %v17236_v48  ;;  %15901 = vmatpush3.bf16.msra.mxu1 %v17235_v47 }
 0x4d5   : > { %15902 = vmatprep.subr.bf16.mxu1 %v17238_v50 }
 0x4d7   : > { %15881 = vmatpush3.bf16.msra.mxu0 %v17237_v49 }
 0x4d8   : > { %15910 = vmatprep.subr.bf16.mxu0 %v17241_v55  ;;  %15903 = vmatpush3.bf16.msra.mxu1 %v17240_v53 }
 0x4d9   : > { %15941 = vmatprep.subr.bf16.mxu1 %v17374_v63 }
 0x4da   : > { %12900 = vmatmul.mubr.bf16.vlgmr.msra.gmra.mrb[140].mxu0 %v652_v54 }
 0x4db   : > { %15911 = vmatpush3.bf16.msra.mxu0 %v17243_v59  ;;  %12940 = vmatmul.mubr.bf16.vlgmr.msra.gmra.mrb[140].mxu1 %v654_v60 }
 0x4dc   : > { %15912 = vmatprep.subr.bf16.mxu0 %v17245_v0  ;;  %15942 = vmatpush3.bf16.msra.mxu1 %v17244_v61 }
 0x4dd   : > { %15957 = vmatprep.mubr.msk.bf16.mxu1 %vm17375_vm0, %v17374_v63  ;;  %15943 = vmatprep.subr.bf16.mxu1 %v17374_v63 }
 0x4de   : > { %12979 = vmatprep.mubr.bf16.mxu0 %v657_v32 }
 0x4df   : > { %15913 = vmatpush3.bf16.msra.mxu0 %v17246_v1 }
 0x4e0   : > { %15914 = vmatprep.subr.bf16.mxu0 %v17248_v2  ;;  %15944 = vmatpush3.bf16.msra.mxu1 %v17247_v3 }
 0x4e1   : > { %15945 = vmatprep.subr.bf16.mxu1 %v17374_v63 }
 0x4e3   : > { %15915 = vmatpush3.bf16.msra.mxu0 %v17249_v4 }
 0x4e4   : > { %15916 = vmatprep.subr.bf16.mxu0 %v17251_v5  ;;  %15946 = vmatpush3.bf16.msra.mxu1 %v17250_v6 }
 0x4e5   : > { %15947 = vmatprep.subr.bf16.mxu1 %v17374_v63 }
 0x4e7   : > { %15917 = vmatpush3.bf16.msra.mxu0 %v17252_v7 }
 0x4e8   : > { %15918 = vmatprep.subr.bf16.mxu0 %v17254_v8  ;;  %15948 = vmatpush3.bf16.msra.mxu1 %v17253_v9 }
 0x4e9   : > { %15949 = vmatprep.subr.bf16.mxu1 %v17374_v63 }
 0x4eb   : > { %15919 = vmatpush3.bf16.msra.mxu0 %v17255_v10 }
 0x4ec   : > { %15920 = vmatprep.subr.bf16.mxu0 %v17257_v12  ;;  %15950 = vmatpush3.bf16.msra.mxu1 %v17256_v14 }
 0x4ed   : > { %v15618_v11 = vpop.f32.mrb[116].mxu0  ;;  %15951 = vmatprep.subr.bf16.mxu1 %v17374_v63 }
 0x4ee   : > { %v15619_v13 = vpop.f32.mrb[117].mxu0  ;;  %v15640_v17 = vpop.f32.mrb[116].mxu1 }
 0x4ef   : > { %v15620_v15 = vadd.f32 %v15619_v13, %v15618_v11  ;;  %v15621_v16 = vpop.f32.mrb[118].mxu0  ;;  %v15641_v20 = vpop.f32.mrb[117].mxu1  ;;  %15921 = vmatpush3.bf16.msra.mxu0 %v17258_v18 }
 0x4f0   : > { %v15622_v19 = vpop.f32.mrb[119].mxu0  ;;  %v15642_v22 = vadd.f32 %v15641_v20, %v15640_v17  ;;  %v15643_v23 = vpop.f32.mrb[118].mxu1  ;;  %15922 = vmatprep.subr.bf16.mxu0 %v17260_v24  ;;  %15952 = vmatpush3.bf16.msra.mxu1 %v17259_v28 }
 0x4f1   : > { %v12422_v21 = vadd.f32 %v15620_v15, %v18835_v42  ;;  %v15644_v25 = vpop.f32.mrb[119].mxu1  ;;  %15953 = vmatprep.subr.bf16.mxu1 %v17374_v63 }
 0x4f3   : > { %v12462_v27 = vadd.f32 %v15642_v22, %v12422_v21  ;;  %15923 = vmatpush3.bf16.msra.mxu0 %v17261_v30 }
 0x4f4   : > { %15924 = vmatprep.subr.bf16.mxu0 %v17263_v31  ;;  %15954 = vmatpush3.bf16.msra.mxu1 %v17262_v33 }
 0x4f5   : > { %15955 = vmatprep.subr.bf16.mxu1 %v17374_v63 }
 0x4f7   : > { %15925 = vmatpush3.bf16.msra.mxu0 %v17264_v34 }
 0x4f8   : > { %15956 = vmatpush3.bf16.msra.mxu1 %v17266_v36 }
 0x4fa   : > { %12980 = vmatmul.mubr.bf16.vlgmr.msra.gmra.mrb[144].mxu0 %v656_v35 }
 0x4fb   : > { %15958 = vmatmul.mubr.bf16.vlgmr.msra.gmra.mrb[144].mxu1 %v658_v38 }
 0x50d   : > { %v15662_v39 = vpop.f32.mrb[120].mxu0 }
 0x50e   : > { %v15663_v40 = vpop.f32.mrb[121].mxu0  ;;  %v15684_v43 = vpop.f32.mrb[120].mxu1 }
 0x50f   : > { %v15664_v41 = vadd.f32 %v15663_v40, %v15662_v39  ;;  %v15665_v42 = vpop.f32.mrb[122].mxu0  ;;  %v15685_v45 = vpop.f32.mrb[121].mxu1 }
 0x510   : > { %v15666_v44 = vpop.f32.mrb[123].mxu0  ;;  %v15686_v47 = vadd.f32 %v15685_v45, %v15684_v43  ;;  %v15687_v48 = vpop.f32.mrb[122].mxu1 }
 0x511   : > { %v12502_v46 = vadd.f32 %v15664_v41, %v12462_v27  ;;  %v15688_v49 = vpop.f32.mrb[123].mxu1 }
 0x513   : > { %v12542_v50 = vadd.f32 %v15686_v47, %v12502_v46 }
 0x52d   : > { %v15706_v51 = vpop.f32.mrb[124].mxu0 }
 0x52e   : > { %v15707_v52 = vpop.f32.mrb[125].mxu0  ;;  %v15728_v55 = vpop.f32.mrb[124].mxu1 }
 0x52f   : > { %v15708_v53 = vadd.f32 %v15707_v52, %v15706_v51  ;;  %v15709_v54 = vpop.f32.mrb[126].mxu0  ;;  %v15729_v57 = vpop.f32.mrb[125].mxu1 }
 0x530   : > { %v15710_v56 = vpop.f32.mrb[127].mxu0  ;;  %v15730_v59 = vadd.f32 %v15729_v57, %v15728_v55  ;;  %v15731_v60 = vpop.f32.mrb[126].mxu1  ;;  %v218_v55 = vld [vmem:[#allocation2] sm:$0xf] }
 0x531   : > { %v12582_v58 = vadd.f32 %v15708_v53, %v12542_v50  ;;  %v15732_v61 = vpop.f32.mrb[127].mxu1 }
 0x532   : > { %v14322_v61 = vld [vmem:[#allocation5] ss:$0 sm:$0xff] (!%p14321_p4) }
 0x533   : > { %v12622_v62 = vadd.f32 %v15730_v59, %v12582_v58 }
 0x54d   : > { %v15750_v63 = vpop.f32.mrb[128].mxu0 }
 0x54e   : > { %v15751_v0 = vpop.f32.mrb[129].mxu0  ;;  %v15772_v3 = vpop.f32.mrb[128].mxu1 }
 0x54f   : > { %v15752_v1 = vadd.f32 %v15751_v0, %v15750_v63  ;;  %v15753_v2 = vpop.f32.mrb[130].mxu0  ;;  %v15773_v5 = vpop.f32.mrb[129].mxu1 }
 0x550   : > { %v15754_v4 = vpop.f32.mrb[131].mxu0  ;;  %v15774_v7 = vadd.f32 %v15773_v5, %v15772_v3  ;;  %v15775_v8 = vpop.f32.mrb[130].mxu1 }
 0x551   : > { %v12662_v6 = vadd.f32 %v15752_v1, %v12622_v62  ;;  %v15776_v9 = vpop.f32.mrb[131].mxu1 }
 0x553   : > { %v12702_v10 = vadd.f32 %v15774_v7, %v12662_v6 }
 0x56d   : > { %v15794_v11 = vpop.f32.mrb[132].mxu0 }
 0x56e   : > { %v15795_v12 = vpop.f32.mrb[133].mxu0  ;;  %v15816_v15 = vpop.f32.mrb[132].mxu1 }
 0x56f   : > { %v15796_v13 = vadd.f32 %v15795_v12, %v15794_v11  ;;  %v15797_v14 = vpop.f32.mrb[134].mxu0  ;;  %v15817_v17 = vpop.f32.mrb[133].mxu1 }
 0x570   : > { %v15798_v16 = vpop.f32.mrb[135].mxu0  ;;  %v15818_v19 = vadd.f32 %v15817_v17, %v15816_v15  ;;  %v15819_v20 = vpop.f32.mrb[134].mxu1 }
 0x571   : > { %v12742_v18 = vadd.f32 %v15796_v13, %v12702_v10  ;;  %v15820_v21 = vpop.f32.mrb[135].mxu1 }
 0x573   : > { %v12782_v22 = vadd.f32 %v15818_v19, %v12742_v18 }
 0x58d   : > { %v15838_v23 = vpop.f32.mrb[136].mxu0 }
 0x58e   : > { %v15839_v24 = vpop.f32.mrb[137].mxu0  ;;  %v15860_v27 = vpop.f32.mrb[136].mxu1 }
 0x58f   : > { %v15840_v25 = vadd.f32 %v15839_v24, %v15838_v23  ;;  %v15841_v26 = vpop.f32.mrb[138].mxu0  ;;  %v15861_v29 = vpop.f32.mrb[137].mxu1 }
 0x590   : > { %v15842_v28 = vpop.f32.mrb[139].mxu0  ;;  %v15862_v31 = vadd.f32 %v15861_v29, %v15860_v27  ;;  %v15863_v32 = vpop.f32.mrb[138].mxu1 }
 0x591   : > { %v12822_v30 = vadd.f32 %v15840_v25, %v12782_v22  ;;  %v15864_v33 = vpop.f32.mrb[139].mxu1 }
 0x593   : > { %v12862_v34 = vadd.f32 %v15862_v31, %v12822_v30 }
 0x5ad   : > { %v15882_v35 = vpop.f32.mrb[140].mxu0 }
 0x5ae   : > { %v15883_v36 = vpop.f32.mrb[141].mxu0  ;;  %v15904_v39 = vpop.f32.mrb[140].mxu1 }
 0x5af   : > { %v15884_v37 = vadd.f32 %v15883_v36, %v15882_v35  ;;  %v15885_v38 = vpop.f32.mrb[142].mxu0  ;;  %v15905_v42 = vpop.f32.mrb[141].mxu1 }
 0x5b0   : > { %v15886_v40 = vpop.f32.mrb[143].mxu0  ;;  %v15906_v43 = vadd.f32 %v15905_v42, %v15904_v39  ;;  %v15907_v44 = vpop.f32.mrb[142].mxu1 }
 0x5b1   : > { %v12902_v41 = vadd.f32 %v15884_v37, %v12862_v34  ;;  %v15908_v45 = vpop.f32.mrb[143].mxu1 }
 0x5b3   : > { %v12942_v46 = vadd.f32 %v15906_v43, %v12902_v41 }
 0x5cd   : > { %v15926_v47 = vpop.f32.mrb[144].mxu0 }
 0x5ce   : > { %v15927_v48 = vpop.f32.mrb[145].mxu0  ;;  %v13021_v51 = vpop.f32.mrb[144].mxu1 }
 0x5cf   : > { %v15928_v49 = vadd.f32 %v15927_v48, %v15926_v47  ;;  %v15929_v50 = vpop.f32.mrb[146].mxu0  ;;  %v15959_v54 = vpop.f32.mrb[145].mxu1 }
 0x5d0   : > { %v15930_v52 = vpop.f32.mrb[147].mxu0  ;;  %v13024_v56 = vpop.f32.mrb[146].mxu1 }
 0x5d1   : > { %v12982_v53 = vadd.f32 %v15928_v49, %v12942_v46  ;;  %v15960_v58 = vpop.f32.mrb[147].mxu1  ;;  %13032 = sbr.rel (%p14321_p4) target bundleno = 1689 (0x699), region = 48 }
 0x5d3   : > { %v13022_v57 = vadd.f32 %v13021_v51, %v12982_v53 }
 0x5d5   : > { %v13027_v59 = vadd.f32 %v13022_v57, %v218_v55 }
 0x5d7   : > { %13028 = vst [vmem:[#allocation2] sm:$0xf] %v13027_v59 }
 0x5de   : > { %v13033_v60 = vld [vmem:[#allocation2] sm:$0xf] }
 0x5df   : > { %v13041_v62 = vadd.f32 %v14322_v61, %v13033_v60 }
 0x5e1   : > { %v13050_v63 = vmul.f32 %v13041_v62, %v13041_v62  ;;  %v13043_v0 = vrot.slane %v13041_v62, 2 }
 0x5e3   : > { %v13055_v1 = vsel %vm13054_vm1, %v13050_v63, 0.0  ;;  %v13045_v2 = vmul.f32 %v13043_v0, %v13041_v62  ;;  %v13051_v3 = vsel %vm13046_vm2, %v13050_v63, 0.0 }
 0x5e4   : > { %13056 = vadd.xlane.f32.xlu0 %v13055_v1 }
 0x5e5   : > { %v13047_v4 = vsel %vm13046_vm2, %v13045_v2, 0.0 }
 0x5e6   : > { %13048 = vadd.xlane.f32.xlu1 %v13047_v4 }
 0x5e8   : > { %13052 = vadd.xlane.f32.xlu0 %v13051_v3 }
 0x671   : > { %v13057_v5 = vpop.xlane.xlu0 %13056 }
 0x672   : > { %v13059_v6 = vrot.slane %v13057_v5, 2 }
 0x673   : > { %v13049_v15 = vpop.xlane.xlu1 %13048 }
 0x675   : > { %v13053_v7 = vpop.xlane.xlu0 %13052 }
 0x676   : > { %v13061_v8 = vmul.f32 %v13059_v6, %v13053_v7 }
 0x678   : > { %v13062_v9 = vmax.f32 %v13061_v8, 1e-16 }
 0x67a   : > { %17267 = vrsqrt.f32 %v13062_v9  ;;  %vm13065_vm3 = vcmp.eq.f32.partialorder %v13062_v9, inf  ;;  %v13068_v12 = vand.u32 2147483648, %v13062_v9  ;;  %vm13067_vm4 = vcmp.eq.f32.partialorder %v13062_v9, 0.0 }
 0x684   : > { %v17268_v10 = vpop.eup %17267 }
 0x685   : > { %v13064_v11 = vmul.f32 %v17268_v10, %v13062_v9 }
 0x687   : > { %v13066_v13 = vsel %vm13065_vm3, %v13062_v9, %v13064_v11 }
 0x688   : > { %v13069_v14 = vsel %vm13067_vm4, %v13068_v12, %v13066_v13 }
 0x689   : > { %17269 = vrcp.f32 %v13069_v14 }
 0x693   : > { %v17270_v16 = vpop.eup %17269 }
 0x694   : > { %v13071_v17 = vmul.f32 %v17270_v16, %v13049_v15 }
 0x696   : > { %v13072_v18 = vsub.f32 1.0, %v13071_v17 }
 0x698   : > { %13074 = vst.msk [vmem:[%s18903_s3] sm:$0x3] %vm13073_vm5, %v13072_v18 }
 0x699 PF: > { %p14_p7 = scmp.ge.s32.totalorder %s17418_s17, 4   ;;  %s18919_s12 = smov %s17359_s13 }
 0x69a   : > { %s18920_s13 = smov %s17363_s14  ;;  %s18921_s14 = smov %s17428_s20 }
 0x69b   : > { %s18922_s15 = smov %s17418_s17  ;;  %16 = sbr.rel (!%p14_p7) target bundleno = 4 (0x4), region = 83 }
 0x6a2   :  { %13086 = vsyncpa [#allocation4], 1 }
 0x6a3   :  { %13088 = vsyncpa [#allocation4 + $0x1], 1 }
 0x6a4   :  { %13089 = vsyncpa [#allocation6], 1 }

</bundles_post_ra>
